<compile_context>
chip_gen: v6e
topology: v6e:2x2x1
jax: 0.10.0
libtpu: 0.0.40
codegen_flags: <defaults>
</compile_context>

<pallas_src>
import functools

import jax
import jax.numpy as jnp
from jax import lax
from jax.experimental import pallas as pl
from jax.experimental.pallas import tpu as pltpu


def _round_up(v, m):
    return (v + m - 1) // m * m


def _bottleneck_kernel(xp_ref, w1_ref, s1_ref, b1_ref, w2_ref, s2_ref, b2_ref,
                       o_ref, h1pad_ref, *, H, W, KH, KW, add):
    """One image per grid step. All channel dims pre-padded to the 128-lane width."""
    ph, pw = KH // 2, KW // 2
    Hp, Wp = H + 2 * ph, W + 2 * pw
    C1p = xp_ref.shape[-1]
    C_p = w1_ref.shape[-1]
    C2p = w2_ref.shape[-1]
    HW = H * W

    # ---- cv1: KHxKW 'same' conv as KH*KW shifted MXU matmuls ----------------
    # bf16 x bf16 -> f32 accumulate (native MXU path).
    acc1 = jnp.zeros((HW, C_p), jnp.float32)
    for i in range(KH):
        for j in range(KW):
            patch = xp_ref[0, i:i + H, j:j + W, :].reshape(HW, C1p)      # bf16
            acc1 = acc1 + jnp.dot(patch, w1_ref[i, j],
                                  preferred_element_type=jnp.float32)

    # folded BatchNorm (inference) + SiLU in f32
    h1 = acc1 * s1_ref[0, :] + b1_ref[0, :]
    h1 = h1 * jax.nn.sigmoid(h1)

    # ---- stage cv1 output with a zero halo for the second conv --------------
    # Zero only the 4 thin halo strips; the interior is written exactly once.
    if ph > 0:
        h1pad_ref[0:ph, :, :] = jnp.zeros((ph, Wp, C_p), jnp.float32)
        h1pad_ref[ph + H:, :, :] = jnp.zeros((ph, Wp, C_p), jnp.float32)
    if pw > 0:
        h1pad_ref[:, 0:pw, :] = jnp.zeros((Hp, pw, C_p), jnp.float32)
        h1pad_ref[:, pw + W:, :] = jnp.zeros((Hp, pw, C_p), jnp.float32)
    h1pad_ref[ph:ph + H, pw:pw + W, :] = h1.reshape(H, W, C_p)

    # ---- cv2: KHxKW 'same' conv --------------------------------------------
    acc2 = jnp.zeros((HW, C2p), jnp.float32)
    for i in range(KH):
        for j in range(KW):
            patch = h1pad_ref[i:i + H, j:j + W, :].reshape(HW, C_p)
            acc2 = acc2 + jnp.dot(patch.astype(jnp.bfloat16), w2_ref[i, j],
                                  preferred_element_type=jnp.float32)

    y2 = acc2 * s2_ref[0, :] + b2_ref[0, :]
    y2 = y2 * jax.nn.sigmoid(y2)

    if add:
        # residual comes from the interior of the padded input block (no second input)
        x_int = xp_ref[0, ph:ph + H, pw:pw + W, :].reshape(HW, C1p)
        y2 = y2 + x_int.astype(jnp.float32)

    # lane-dense (last dim = 128) unmasked store
    o_ref[...] = y2.reshape(1, H, W, C2p).astype(o_ref.dtype)


def bottleneck_pallas(x, w1, s1, b1, w2, s2, b2, *, shortcut=True, lane=128):
    """x: (N, H, W, C1) NHWC.  w*: (KH, KW, Cin, Cout) HWIO.  s*, b*: (Cout,) f32."""
    N, H, W, C1 = x.shape
    KH, KW, _, C_ = w1.shape
    C2 = w2.shape[-1]
    add = bool(shortcut and C1 == C2)
    ph, pw = KH // 2, KW // 2
    Hp, Wp = H + 2 * ph, W + 2 * pw

    # Pad every channel dim to the lane width so all matmuls / vregs / stores are
    # lane-dense. Padded channels carry zero weights & zero BN scale/bias, so they
    # contribute exactly nothing and stay zero through SiLU and the residual.
    C1p = _round_up(C1, lane)
    C_p = _round_up(C_, lane)
    C2p = _round_up(C2, lane)

    # One wrapper-side pad: spatial halo + channel padding + bf16 cast, fused.
    xp = jnp.pad(x, ((0, 0), (ph, ph), (pw, pw), (0, C1p - C1))).astype(jnp.bfloat16)
    w1p = jnp.pad(w1, ((0, 0), (0, 0), (0, C1p - C1), (0, C_p - C_))).astype(jnp.bfloat16)
    w2p = jnp.pad(w2, ((0, 0), (0, 0), (0, C_p - C_), (0, C2p - C2))).astype(jnp.bfloat16)
    s1p = jnp.pad(s1.astype(jnp.float32), (0, C_p - C_)).reshape(1, C_p)
    b1p = jnp.pad(b1.astype(jnp.float32), (0, C_p - C_)).reshape(1, C_p)
    s2p = jnp.pad(s2.astype(jnp.float32), (0, C2p - C2)).reshape(1, C2p)
    b2p = jnp.pad(b2.astype(jnp.float32), (0, C2p - C2)).reshape(1, C2p)

    kernel = functools.partial(_bottleneck_kernel, H=H, W=W, KH=KH, KW=KW, add=add)

    out_p = pl.pallas_call(
        kernel,
        out_shape=jax.ShapeDtypeStruct((N, H, W, C2p), jnp.float32),
        grid_spec=pltpu.PrefetchScalarGridSpec(
            num_scalar_prefetch=0,
            grid=(N,),
            in_specs=[
                pl.BlockSpec((1, Hp, Wp, C1p), lambda n: (n, 0, 0, 0)),
                # weights / BN params are grid-invariant (DMA'd once per pipeline)
                pl.BlockSpec((KH, KW, C1p, C_p), lambda n: (0, 0, 0, 0)),
                pl.BlockSpec((1, C_p), lambda n: (0, 0)),
                pl.BlockSpec((1, C_p), lambda n: (0, 0)),
                pl.BlockSpec((KH, KW, C_p, C2p), lambda n: (0, 0, 0, 0)),
                pl.BlockSpec((1, C2p), lambda n: (0, 0)),
                pl.BlockSpec((1, C2p), lambda n: (0, 0)),
            ],
            out_specs=pl.BlockSpec((1, H, W, C2p), lambda n: (n, 0, 0, 0)),
            scratch_shapes=[pltpu.VMEM((Hp, Wp, C_p), jnp.float32)],
        ),
        compiler_params=pltpu.CompilerParams(
            dimension_semantics=("parallel",)),   # shards images across v7x's 2 TCs
    )(xp, w1p, s1p, b1p, w2p, s2p, b2p)

    return out_p[..., :C2]


# ---------------- reference (plain JAX, mirrors the kernel's precision) ------
def _conv_f32(x, w):
    return lax.conv_general_dilated(
        x.astype(jnp.float32), w.astype(jnp.float32),
        window_strides=(1, 1), padding="SAME",
        dimension_numbers=("NHWC", "HWIO", "NHWC"),
        precision=lax.Precision.HIGHEST)


def bottleneck_ref(x, w1, s1, b1, w2, s2, b2, *, shortcut=True):
    # Same mixed precision as the kernel: bf16 conv operands, f32 accumulation,
    # f32 folded-BN + SiLU epilogue.
    h = _conv_f32(x, w1) * s1 + b1
    h = h * jax.nn.sigmoid(h)
    h = h.astype(jnp.bfloat16)            # kernel feeds cv2 with bf16 operands
    y = _conv_f32(h, w2) * s2 + b2
    y = y * jax.nn.sigmoid(y)
    if shortcut and x.shape[-1] == y.shape[-1]:
        y = y + x.astype(jnp.float32)
    return y


def fold_bn(gamma, beta, mean, var, eps=1e-3):
    scale = gamma / jnp.sqrt(var + eps)
    bias = beta - mean * scale
    return scale, bias


if __name__ == "__main__":
    # Bottleneck(c1=4, c2=4, shortcut=True, k=(3,3), e=0.5) -> c_ = 2
    N, H, W = 2, 16, 16
    c1, c2, e = 4, 4, 0.5
    c_ = int(c2 * e)
    KH = KW = 3

    key = jax.random.PRNGKey(0)
    ks = jax.random.split(key, 12)

    # deterministic synthetic parameters (shapes follow the nn.Module)
    x = jax.random.normal(ks[0], (N, H, W, c1), jnp.float32)

    w1 = 0.1 * jax.random.normal(ks[1], (KH, KW, c1, c_), jnp.float32)   # HWIO
    w2 = 0.1 * jax.random.normal(ks[2], (KH, KW, c_, c2), jnp.float32)

    g1 = 1.0 + 0.1 * jax.random.normal(ks[3], (c_,), jnp.float32)
    bt1 = 0.05 * jax.random.normal(ks[4], (c_,), jnp.float32)
    m1 = 0.1 * jax.random.normal(ks[5], (c_,), jnp.float32)
    v1 = 1.0 + 0.1 * jax.random.uniform(ks[6], (c_,), jnp.float32)

    g2 = 1.0 + 0.1 * jax.random.normal(ks[7], (c2,), jnp.float32)
    bt2 = 0.05 * jax.random.normal(ks[8], (c2,), jnp.float32)
    m2 = 0.1 * jax.random.normal(ks[9], (c2,), jnp.float32)
    v2 = 1.0 + 0.1 * jax.random.uniform(ks[10], (c2,), jnp.float32)

    s1, b1 = fold_bn(g1, bt1, m1, v1)   # BN in inference mode (running stats)
    s2, b2 = fold_bn(g2, bt2, m2, v2)

    # standard TPU inference precision: bf16 activations / weights, f32 BN+SiLU
    x_bf = x.astype(jnp.bfloat16)
    w1_bf = w1.astype(jnp.bfloat16)
    w2_bf = w2.astype(jnp.bfloat16)

    out = bottleneck_pallas(x_bf, w1_bf, s1, b1, w2_bf, s2, b2, shortcut=True)
    out = jax.block_until_ready(out)

    ref = bottleneck_ref(x_bf, w1_bf, s1, b1, w2_bf, s2, b2, shortcut=True)
    assert out.shape == (N, H, W, c2)
    max_err = jnp.max(jnp.abs(out - ref))
    assert jnp.allclose(out, ref, atol=1e-4, rtol=1e-4), f"mismatch: max err {max_err}"

    print("KERNEL_OK")
</pallas_src>

<mosaic_0001>
module attributes {stable_mosaic.version = 11 : i64} {
  func.func @_bottleneck_kernel(%arg0: i32, %arg1: memref<1x18x18x128xbf16, #tpu.memory_space<vmem>>, %arg2: memref<3x3x128x128xbf16, #tpu.memory_space<vmem>>, %arg3: memref<1x128xf32, #tpu.memory_space<vmem>>, %arg4: memref<1x128xf32, #tpu.memory_space<vmem>>, %arg5: memref<3x3x128x128xbf16, #tpu.memory_space<vmem>>, %arg6: memref<1x128xf32, #tpu.memory_space<vmem>>, %arg7: memref<1x128xf32, #tpu.memory_space<vmem>>, %arg8: memref<1x16x16x128xf32, #tpu.memory_space<vmem>>, %arg9: memref<18x18x128xf32, #tpu.memory_space<vmem>>) attributes {dimension_semantics = [#tpu.dimension_semantics<parallel>], iteration_bounds = array<i64: 2>, scalar_prefetch = 0 : i64, scratch_operands = 1 : i64, tpu.core_type = #tpu.core_type<tc>, window_params = [{transform_indices = @transform_0, window_bounds = array<i64: 1, 18, 18, 128>}, {pipeline_mode = #tpu.pipeline_mode<synchronous>, transform_indices = @transform_1, window_bounds = array<i64: 3, 3, 128, 128>}, {pipeline_mode = #tpu.pipeline_mode<synchronous>, transform_indices = @transform_2, window_bounds = array<i64: 1, 128>}, {pipeline_mode = #tpu.pipeline_mode<synchronous>, transform_indices = @transform_3, window_bounds = array<i64: 1, 128>}, {pipeline_mode = #tpu.pipeline_mode<synchronous>, transform_indices = @transform_4, window_bounds = array<i64: 3, 3, 128, 128>}, {pipeline_mode = #tpu.pipeline_mode<synchronous>, transform_indices = @transform_5, window_bounds = array<i64: 1, 128>}, {pipeline_mode = #tpu.pipeline_mode<synchronous>, transform_indices = @transform_6, window_bounds = array<i64: 1, 128>}, {transform_indices = @transform_7, window_bounds = array<i64: 1, 16, 16, 128>}]} {
    %cst = arith.constant 0.000000e+00 : f32
    %0 = vector.broadcast %cst : f32 to vector<256x128xf32>
    %c0 = arith.constant 0 : index
    %c0_0 = arith.constant 0 : index
    %c0_1 = arith.constant 0 : index
    %c0_2 = arith.constant 0 : index
    %1 = vector.load %arg1[%c0, %c0_0, %c0_1, %c0_2] : memref<1x18x18x128xbf16, #tpu.memory_space<vmem>>, vector<1x16x16x128xbf16>
    %2 = vector.shape_cast %1 : vector<1x16x16x128xbf16> to vector<16x16x128xbf16>
    %3 = vector.shape_cast %2 : vector<16x16x128xbf16> to vector<256x128xbf16>
    %c0_3 = arith.constant 0 : index
    %c0_4 = arith.constant 0 : index
    %c0_5 = arith.constant 0 : index
    %c0_6 = arith.constant 0 : index
    %4 = vector.load %arg2[%c0_3, %c0_4, %c0_5, %c0_6] : memref<3x3x128x128xbf16, #tpu.memory_space<vmem>>, vector<1x1x128x128xbf16>
    %5 = vector.shape_cast %4 : vector<1x1x128x128xbf16> to vector<128x128xbf16>
    %cst_7 = arith.constant dense<0.000000e+00> : vector<256x128xf32>
    %6 = tpu.matmul %3, %5, %cst_7 {dimension_numbers = #tpu.dot_dimension_numbers<[1], [0], [0], [1], [0, 0, 1, 1], [], []>} : vector<256x128xbf16>, vector<128x128xbf16>, vector<256x128xf32> -> vector<256x128xf32>
    %7 = arith.addf %0, %6 : vector<256x128xf32>
    %c0_8 = arith.constant 0 : index
    %c0_9 = arith.constant 0 : index
    %c1 = arith.constant 1 : index
    %c0_10 = arith.constant 0 : index
    %8 = vector.load %arg1[%c0_8, %c0_9, %c1, %c0_10] : memref<1x18x18x128xbf16, #tpu.memory_space<vmem>>, vector<1x16x16x128xbf16>
    %9 = vector.shape_cast %8 : vector<1x16x16x128xbf16> to vector<16x16x128xbf16>
    %10 = vector.shape_cast %9 : vector<16x16x128xbf16> to vector<256x128xbf16>
    %c0_11 = arith.constant 0 : index
    %c1_12 = arith.constant 1 : index
    %c0_13 = arith.constant 0 : index
    %c0_14 = arith.constant 0 : index
    %11 = vector.load %arg2[%c0_11, %c1_12, %c0_13, %c0_14] : memref<3x3x128x128xbf16, #tpu.memory_space<vmem>>, vector<1x1x128x128xbf16>
    %12 = vector.shape_cast %11 : vector<1x1x128x128xbf16> to vector<128x128xbf16>
    %cst_15 = arith.constant dense<0.000000e+00> : vector<256x128xf32>
    %13 = tpu.matmul %10, %12, %cst_15 {dimension_numbers = #tpu.dot_dimension_numbers<[1], [0], [0], [1], [0, 0, 1, 1], [], []>} : vector<256x128xbf16>, vector<128x128xbf16>, vector<256x128xf32> -> vector<256x128xf32>
    %14 = arith.addf %7, %13 : vector<256x128xf32>
    %c0_16 = arith.constant 0 : index
    %c0_17 = arith.constant 0 : index
    %c2 = arith.constant 2 : index
    %c0_18 = arith.constant 0 : index
    %15 = vector.load %arg1[%c0_16, %c0_17, %c2, %c0_18] : memref<1x18x18x128xbf16, #tpu.memory_space<vmem>>, vector<1x16x16x128xbf16>
    %16 = vector.shape_cast %15 : vector<1x16x16x128xbf16> to vector<16x16x128xbf16>
    %17 = vector.shape_cast %16 : vector<16x16x128xbf16> to vector<256x128xbf16>
    %c0_19 = arith.constant 0 : index
    %c2_20 = arith.constant 2 : index
    %c0_21 = arith.constant 0 : index
    %c0_22 = arith.constant 0 : index
    %18 = vector.load %arg2[%c0_19, %c2_20, %c0_21, %c0_22] : memref<3x3x128x128xbf16, #tpu.memory_space<vmem>>, vector<1x1x128x128xbf16>
    %19 = vector.shape_cast %18 : vector<1x1x128x128xbf16> to vector<128x128xbf16>
    %cst_23 = arith.constant dense<0.000000e+00> : vector<256x128xf32>
    %20 = tpu.matmul %17, %19, %cst_23 {dimension_numbers = #tpu.dot_dimension_numbers<[1], [0], [0], [1], [0, 0, 1, 1], [], []>} : vector<256x128xbf16>, vector<128x128xbf16>, vector<256x128xf32> -> vector<256x128xf32>
    %21 = arith.addf %14, %20 : vector<256x128xf32>
    %c0_24 = arith.constant 0 : index
    %c1_25 = arith.constant 1 : index
    %c0_26 = arith.constant 0 : index
    %c0_27 = arith.constant 0 : index
    %22 = vector.load %arg1[%c0_24, %c1_25, %c0_26, %c0_27] : memref<1x18x18x128xbf16, #tpu.memory_space<vmem>>, vector<1x16x16x128xbf16>
    %23 = vector.shape_cast %22 : vector<1x16x16x128xbf16> to vector<16x16x128xbf16>
    %24 = vector.shape_cast %23 : vector<16x16x128xbf16> to vector<256x128xbf16>
    %c1_28 = arith.constant 1 : index
    %c0_29 = arith.constant 0 : index
    %c0_30 = arith.constant 0 : index
    %c0_31 = arith.constant 0 : index
    %25 = vector.load %arg2[%c1_28, %c0_29, %c0_30, %c0_31] : memref<3x3x128x128xbf16, #tpu.memory_space<vmem>>, vector<1x1x128x128xbf16>
    %26 = vector.shape_cast %25 : vector<1x1x128x128xbf16> to vector<128x128xbf16>
    %cst_32 = arith.constant dense<0.000000e+00> : vector<256x128xf32>
    %27 = tpu.matmul %24, %26, %cst_32 {dimension_numbers = #tpu.dot_dimension_numbers<[1], [0], [0], [1], [0, 0, 1, 1], [], []>} : vector<256x128xbf16>, vector<128x128xbf16>, vector<256x128xf32> -> vector<256x128xf32>
    %28 = arith.addf %21, %27 : vector<256x128xf32>
    %c0_33 = arith.constant 0 : index
    %c1_34 = arith.constant 1 : index
    %c1_35 = arith.constant 1 : index
    %c0_36 = arith.constant 0 : index
    %29 = vector.load %arg1[%c0_33, %c1_34, %c1_35, %c0_36] : memref<1x18x18x128xbf16, #tpu.memory_space<vmem>>, vector<1x16x16x128xbf16>
    %30 = vector.shape_cast %29 : vector<1x16x16x128xbf16> to vector<16x16x128xbf16>
    %31 = vector.shape_cast %30 : vector<16x16x128xbf16> to vector<256x128xbf16>
    %c1_37 = arith.constant 1 : index
    %c1_38 = arith.constant 1 : index
    %c0_39 = arith.constant 0 : index
    %c0_40 = arith.constant 0 : index
    %32 = vector.load %arg2[%c1_37, %c1_38, %c0_39, %c0_40] : memref<3x3x128x128xbf16, #tpu.memory_space<vmem>>, vector<1x1x128x128xbf16>
    %33 = vector.shape_cast %32 : vector<1x1x128x128xbf16> to vector<128x128xbf16>
    %cst_41 = arith.constant dense<0.000000e+00> : vector<256x128xf32>
    %34 = tpu.matmul %31, %33, %cst_41 {dimension_numbers = #tpu.dot_dimension_numbers<[1], [0], [0], [1], [0, 0, 1, 1], [], []>} : vector<256x128xbf16>, vector<128x128xbf16>, vector<256x128xf32> -> vector<256x128xf32>
    %35 = arith.addf %28, %34 : vector<256x128xf32>
    %c0_42 = arith.constant 0 : index
    %c1_43 = arith.constant 1 : index
    %c2_44 = arith.constant 2 : index
    %c0_45 = arith.constant 0 : index
    %36 = vector.load %arg1[%c0_42, %c1_43, %c2_44, %c0_45] : memref<1x18x18x128xbf16, #tpu.memory_space<vmem>>, vector<1x16x16x128xbf16>
    %37 = vector.shape_cast %36 : vector<1x16x16x128xbf16> to vector<16x16x128xbf16>
    %38 = vector.shape_cast %37 : vector<16x16x128xbf16> to vector<256x128xbf16>
    %c1_46 = arith.constant 1 : index
    %c2_47 = arith.constant 2 : index
    %c0_48 = arith.constant 0 : index
    %c0_49 = arith.constant 0 : index
    %39 = vector.load %arg2[%c1_46, %c2_47, %c0_48, %c0_49] : memref<3x3x128x128xbf16, #tpu.memory_space<vmem>>, vector<1x1x128x128xbf16>
    %40 = vector.shape_cast %39 : vector<1x1x128x128xbf16> to vector<128x128xbf16>
    %cst_50 = arith.constant dense<0.000000e+00> : vector<256x128xf32>
    %41 = tpu.matmul %38, %40, %cst_50 {dimension_numbers = #tpu.dot_dimension_numbers<[1], [0], [0], [1], [0, 0, 1, 1], [], []>} : vector<256x128xbf16>, vector<128x128xbf16>, vector<256x128xf32> -> vector<256x128xf32>
    %42 = arith.addf %35, %41 : vector<256x128xf32>
    %c0_51 = arith.constant 0 : index
    %c2_52 = arith.constant 2 : index
    %c0_53 = arith.constant 0 : index
    %c0_54 = arith.constant 0 : index
    %43 = vector.load %arg1[%c0_51, %c2_52, %c0_53, %c0_54] : memref<1x18x18x128xbf16, #tpu.memory_space<vmem>>, vector<1x16x16x128xbf16>
    %44 = vector.shape_cast %43 : vector<1x16x16x128xbf16> to vector<16x16x128xbf16>
    %45 = vector.shape_cast %44 : vector<16x16x128xbf16> to vector<256x128xbf16>
    %c2_55 = arith.constant 2 : index
    %c0_56 = arith.constant 0 : index
    %c0_57 = arith.constant 0 : index
    %c0_58 = arith.constant 0 : index
    %46 = vector.load %arg2[%c2_55, %c0_56, %c0_57, %c0_58] : memref<3x3x128x128xbf16, #tpu.memory_space<vmem>>, vector<1x1x128x128xbf16>
    %47 = vector.shape_cast %46 : vector<1x1x128x128xbf16> to vector<128x128xbf16>
    %cst_59 = arith.constant dense<0.000000e+00> : vector<256x128xf32>
    %48 = tpu.matmul %45, %47, %cst_59 {dimension_numbers = #tpu.dot_dimension_numbers<[1], [0], [0], [1], [0, 0, 1, 1], [], []>} : vector<256x128xbf16>, vector<128x128xbf16>, vector<256x128xf32> -> vector<256x128xf32>
    %49 = arith.addf %42, %48 : vector<256x128xf32>
    %c0_60 = arith.constant 0 : index
    %c2_61 = arith.constant 2 : index
    %c1_62 = arith.constant 1 : index
    %c0_63 = arith.constant 0 : index
    %50 = vector.load %arg1[%c0_60, %c2_61, %c1_62, %c0_63] : memref<1x18x18x128xbf16, #tpu.memory_space<vmem>>, vector<1x16x16x128xbf16>
    %51 = vector.shape_cast %50 : vector<1x16x16x128xbf16> to vector<16x16x128xbf16>
    %52 = vector.shape_cast %51 : vector<16x16x128xbf16> to vector<256x128xbf16>
    %c2_64 = arith.constant 2 : index
    %c1_65 = arith.constant 1 : index
    %c0_66 = arith.constant 0 : index
    %c0_67 = arith.constant 0 : index
    %53 = vector.load %arg2[%c2_64, %c1_65, %c0_66, %c0_67] : memref<3x3x128x128xbf16, #tpu.memory_space<vmem>>, vector<1x1x128x128xbf16>
    %54 = vector.shape_cast %53 : vector<1x1x128x128xbf16> to vector<128x128xbf16>
    %cst_68 = arith.constant dense<0.000000e+00> : vector<256x128xf32>
    %55 = tpu.matmul %52, %54, %cst_68 {dimension_numbers = #tpu.dot_dimension_numbers<[1], [0], [0], [1], [0, 0, 1, 1], [], []>} : vector<256x128xbf16>, vector<128x128xbf16>, vector<256x128xf32> -> vector<256x128xf32>
    %56 = arith.addf %49, %55 : vector<256x128xf32>
    %c0_69 = arith.constant 0 : index
    %c2_70 = arith.constant 2 : index
    %c2_71 = arith.constant 2 : index
    %c0_72 = arith.constant 0 : index
    %57 = vector.load %arg1[%c0_69, %c2_70, %c2_71, %c0_72] : memref<1x18x18x128xbf16, #tpu.memory_space<vmem>>, vector<1x16x16x128xbf16>
    %58 = vector.shape_cast %57 : vector<1x16x16x128xbf16> to vector<16x16x128xbf16>
    %59 = vector.shape_cast %58 : vector<16x16x128xbf16> to vector<256x128xbf16>
    %c2_73 = arith.constant 2 : index
    %c2_74 = arith.constant 2 : index
    %c0_75 = arith.constant 0 : index
    %c0_76 = arith.constant 0 : index
    %60 = vector.load %arg2[%c2_73, %c2_74, %c0_75, %c0_76] : memref<3x3x128x128xbf16, #tpu.memory_space<vmem>>, vector<1x1x128x128xbf16>
    %61 = vector.shape_cast %60 : vector<1x1x128x128xbf16> to vector<128x128xbf16>
    %cst_77 = arith.constant dense<0.000000e+00> : vector<256x128xf32>
    %62 = tpu.matmul %59, %61, %cst_77 {dimension_numbers = #tpu.dot_dimension_numbers<[1], [0], [0], [1], [0, 0, 1, 1], [], []>} : vector<256x128xbf16>, vector<128x128xbf16>, vector<256x128xf32> -> vector<256x128xf32>
    %63 = arith.addf %56, %62 : vector<256x128xf32>
    %c0_78 = arith.constant 0 : index
    %c0_79 = arith.constant 0 : index
    %64 = vector.load %arg3[%c0_78, %c0_79] : memref<1x128xf32, #tpu.memory_space<vmem>>, vector<1x128xf32>
    %65 = vector.shape_cast %64 : vector<1x128xf32> to vector<128xf32>
    %66 = vector.shape_cast %65 : vector<128xf32> to vector<1x128xf32>
    %67 = vector.broadcast %66 : vector<1x128xf32> to vector<256x128xf32>
    %68 = arith.mulf %63, %67 : vector<256x128xf32>
    %c0_80 = arith.constant 0 : index
    %c0_81 = arith.constant 0 : index
    %69 = vector.load %arg4[%c0_80, %c0_81] : memref<1x128xf32, #tpu.memory_space<vmem>>, vector<1x128xf32>
    %70 = vector.shape_cast %69 : vector<1x128xf32> to vector<128xf32>
    %71 = vector.shape_cast %70 : vector<128xf32> to vector<1x128xf32>
    %72 = vector.broadcast %71 : vector<1x128xf32> to vector<256x128xf32>
    %73 = arith.addf %68, %72 : vector<256x128xf32>
    %74 = arith.negf %73 : vector<256x128xf32>
    %75 = math.exp %74 : vector<256x128xf32>
    %cst_82 = arith.constant 1.000000e+00 : f32
    %76 = vector.broadcast %cst_82 : f32 to vector<256x128xf32>
    %77 = arith.addf %76, %75 : vector<256x128xf32>
    %78 = arith.divf %76, %77 : vector<256x128xf32>
    %79 = arith.mulf %73, %78 : vector<256x128xf32>
    %cst_83 = arith.constant 0.000000e+00 : f32
    %80 = vector.broadcast %cst_83 : f32 to vector<1x18x128xf32>
    %c0_84 = arith.constant 0 : index
    %c0_85 = arith.constant 0 : index
    %c0_86 = arith.constant 0 : index
    %81 = vector.load %arg9[%c0_84, %c0_85, %c0_86] : memref<18x18x128xf32, #tpu.memory_space<vmem>>, vector<1x18x128xf32>
    tpu.vector_store %arg9[%c0_84, %c0_85, %c0_86], %80 {strides = array<i32>} : memref<18x18x128xf32, #tpu.memory_space<vmem>>, vector<1x18x128xf32>,
    %cst_87 = arith.constant 0.000000e+00 : f32
    %82 = vector.broadcast %cst_87 : f32 to vector<1x18x128xf32>
    %c17 = arith.constant 17 : index
    %c0_88 = arith.constant 0 : index
    %c0_89 = arith.constant 0 : index
    %83 = vector.load %arg9[%c17, %c0_88, %c0_89] : memref<18x18x128xf32, #tpu.memory_space<vmem>>, vector<1x18x128xf32>
    tpu.vector_store %arg9[%c17, %c0_88, %c0_89], %82 {strides = array<i32>} : memref<18x18x128xf32, #tpu.memory_space<vmem>>, vector<1x18x128xf32>,
    %cst_90 = arith.constant 0.000000e+00 : f32
    %84 = vector.broadcast %cst_90 : f32 to vector<18x1x128xf32>
    %c0_91 = arith.constant 0 : index
    %c0_92 = arith.constant 0 : index
    %c0_93 = arith.constant 0 : index
    %85 = vector.load %arg9[%c0_91, %c0_92, %c0_93] : memref<18x18x128xf32, #tpu.memory_space<vmem>>, vector<18x1x128xf32>
    tpu.vector_store %arg9[%c0_91, %c0_92, %c0_93], %84 {strides = array<i32>} : memref<18x18x128xf32, #tpu.memory_space<vmem>>, vector<18x1x128xf32>,
    %cst_94 = arith.constant 0.000000e+00 : f32
    %86 = vector.broadcast %cst_94 : f32 to vector<18x1x128xf32>
    %c0_95 = arith.constant 0 : index
    %c17_96 = arith.constant 17 : index
    %c0_97 = arith.constant 0 : index
    %87 = vector.load %arg9[%c0_95, %c17_96, %c0_97] : memref<18x18x128xf32, #tpu.memory_space<vmem>>, vector<18x1x128xf32>
    tpu.vector_store %arg9[%c0_95, %c17_96, %c0_97], %86 {strides = array<i32>} : memref<18x18x128xf32, #tpu.memory_space<vmem>>, vector<18x1x128xf32>,
    %88 = vector.shape_cast %79 : vector<256x128xf32> to vector<16x16x128xf32>
    %c1_98 = arith.constant 1 : index
    %c1_99 = arith.constant 1 : index
    %c0_100 = arith.constant 0 : index
    %89 = vector.load %arg9[%c1_98, %c1_99, %c0_100] : memref<18x18x128xf32, #tpu.memory_space<vmem>>, vector<16x16x128xf32>
    tpu.vector_store %arg9[%c1_98, %c1_99, %c0_100], %88 {strides = array<i32>} : memref<18x18x128xf32, #tpu.memory_space<vmem>>, vector<16x16x128xf32>,
    %cst_101 = arith.constant 0.000000e+00 : f32
    %90 = vector.broadcast %cst_101 : f32 to vector<256x128xf32>
    %c0_102 = arith.constant 0 : index
    %c0_103 = arith.constant 0 : index
    %c0_104 = arith.constant 0 : index
    %91 = vector.load %arg9[%c0_102, %c0_103, %c0_104] : memref<18x18x128xf32, #tpu.memory_space<vmem>>, vector<16x16x128xf32>
    %92 = vector.shape_cast %91 : vector<16x16x128xf32> to vector<256x128xf32>
    %93 = arith.truncf %92 : vector<256x128xf32> to vector<256x128xbf16>
    %c0_105 = arith.constant 0 : index
    %c0_106 = arith.constant 0 : index
    %c0_107 = arith.constant 0 : index
    %c0_108 = arith.constant 0 : index
    %94 = vector.load %arg5[%c0_105, %c0_106, %c0_107, %c0_108] : memref<3x3x128x128xbf16, #tpu.memory_space<vmem>>, vector<1x1x128x128xbf16>
    %95 = vector.shape_cast %94 : vector<1x1x128x128xbf16> to vector<128x128xbf16>
    %cst_109 = arith.constant dense<0.000000e+00> : vector<256x128xf32>
    %96 = tpu.matmul %93, %95, %cst_109 {dimension_numbers = #tpu.dot_dimension_numbers<[1], [0], [0], [1], [0, 0, 1, 1], [], []>} : vector<256x128xbf16>, vector<128x128xbf16>, vector<256x128xf32> -> vector<256x128xf32>
    %97 = arith.addf %90, %96 : vector<256x128xf32>
    %c0_110 = arith.constant 0 : index
    %c1_111 = arith.constant 1 : index
    %c0_112 = arith.constant 0 : index
    %98 = vector.load %arg9[%c0_110, %c1_111, %c0_112] : memref<18x18x128xf32, #tpu.memory_space<vmem>>, vector<16x16x128xf32>
    %99 = vector.shape_cast %98 : vector<16x16x128xf32> to vector<256x128xf32>
    %100 = arith.truncf %99 : vector<256x128xf32> to vector<256x128xbf16>
    %c0_113 = arith.constant 0 : index
    %c1_114 = arith.constant 1 : index
    %c0_115 = arith.constant 0 : index
    %c0_116 = arith.constant 0 : index
    %101 = vector.load %arg5[%c0_113, %c1_114, %c0_115, %c0_116] : memref<3x3x128x128xbf16, #tpu.memory_space<vmem>>, vector<1x1x128x128xbf16>
    %102 = vector.shape_cast %101 : vector<1x1x128x128xbf16> to vector<128x128xbf16>
    %cst_117 = arith.constant dense<0.000000e+00> : vector<256x128xf32>
    %103 = tpu.matmul %100, %102, %cst_117 {dimension_numbers = #tpu.dot_dimension_numbers<[1], [0], [0], [1], [0, 0, 1, 1], [], []>} : vector<256x128xbf16>, vector<128x128xbf16>, vector<256x128xf32> -> vector<256x128xf32>
    %104 = arith.addf %97, %103 : vector<256x128xf32>
    %c0_118 = arith.constant 0 : index
    %c2_119 = arith.constant 2 : index
    %c0_120 = arith.constant 0 : index
    %105 = vector.load %arg9[%c0_118, %c2_119, %c0_120] : memref<18x18x128xf32, #tpu.memory_space<vmem>>, vector<16x16x128xf32>
    %106 = vector.shape_cast %105 : vector<16x16x128xf32> to vector<256x128xf32>
    %107 = arith.truncf %106 : vector<256x128xf32> to vector<256x128xbf16>
    %c0_121 = arith.constant 0 : index
    %c2_122 = arith.constant 2 : index
    %c0_123 = arith.constant 0 : index
    %c0_124 = arith.constant 0 : index
    %108 = vector.load %arg5[%c0_121, %c2_122, %c0_123, %c0_124] : memref<3x3x128x128xbf16, #tpu.memory_space<vmem>>, vector<1x1x128x128xbf16>
    %109 = vector.shape_cast %108 : vector<1x1x128x128xbf16> to vector<128x128xbf16>
    %cst_125 = arith.constant dense<0.000000e+00> : vector<256x128xf32>
    %110 = tpu.matmul %107, %109, %cst_125 {dimension_numbers = #tpu.dot_dimension_numbers<[1], [0], [0], [1], [0, 0, 1, 1], [], []>} : vector<256x128xbf16>, vector<128x128xbf16>, vector<256x128xf32> -> vector<256x128xf32>
    %111 = arith.addf %104, %110 : vector<256x128xf32>
    %c1_126 = arith.constant 1 : index
    %c0_127 = arith.constant 0 : index
    %c0_128 = arith.constant 0 : index
    %112 = vector.load %arg9[%c1_126, %c0_127, %c0_128] : memref<18x18x128xf32, #tpu.memory_space<vmem>>, vector<16x16x128xf32>
    %113 = vector.shape_cast %112 : vector<16x16x128xf32> to vector<256x128xf32>
    %114 = arith.truncf %113 : vector<256x128xf32> to vector<256x128xbf16>
    %c1_129 = arith.constant 1 : index
    %c0_130 = arith.constant 0 : index
    %c0_131 = arith.constant 0 : index
    %c0_132 = arith.constant 0 : index
    %115 = vector.load %arg5[%c1_129, %c0_130, %c0_131, %c0_132] : memref<3x3x128x128xbf16, #tpu.memory_space<vmem>>, vector<1x1x128x128xbf16>
    %116 = vector.shape_cast %115 : vector<1x1x128x128xbf16> to vector<128x128xbf16>
    %cst_133 = arith.constant dense<0.000000e+00> : vector<256x128xf32>
    %117 = tpu.matmul %114, %116, %cst_133 {dimension_numbers = #tpu.dot_dimension_numbers<[1], [0], [0], [1], [0, 0, 1, 1], [], []>} : vector<256x128xbf16>, vector<128x128xbf16>, vector<256x128xf32> -> vector<256x128xf32>
    %118 = arith.addf %111, %117 : vector<256x128xf32>
    %c1_134 = arith.constant 1 : index
    %c1_135 = arith.constant 1 : index
    %c0_136 = arith.constant 0 : index
    %119 = vector.load %arg9[%c1_134, %c1_135, %c0_136] : memref<18x18x128xf32, #tpu.memory_space<vmem>>, vector<16x16x128xf32>
    %120 = vector.shape_cast %119 : vector<16x16x128xf32> to vector<256x128xf32>
    %121 = arith.truncf %120 : vector<256x128xf32> to vector<256x128xbf16>
    %c1_137 = arith.constant 1 : index
    %c1_138 = arith.constant 1 : index
    %c0_139 = arith.constant 0 : index
    %c0_140 = arith.constant 0 : index
    %122 = vector.load %arg5[%c1_137, %c1_138, %c0_139, %c0_140] : memref<3x3x128x128xbf16, #tpu.memory_space<vmem>>, vector<1x1x128x128xbf16>
    %123 = vector.shape_cast %122 : vector<1x1x128x128xbf16> to vector<128x128xbf16>
    %cst_141 = arith.constant dense<0.000000e+00> : vector<256x128xf32>
    %124 = tpu.matmul %121, %123, %cst_141 {dimension_numbers = #tpu.dot_dimension_numbers<[1], [0], [0], [1], [0, 0, 1, 1], [], []>} : vector<256x128xbf16>, vector<128x128xbf16>, vector<256x128xf32> -> vector<256x128xf32>
    %125 = arith.addf %118, %124 : vector<256x128xf32>
    %c1_142 = arith.constant 1 : index
    %c2_143 = arith.constant 2 : index
    %c0_144 = arith.constant 0 : index
    %126 = vector.load %arg9[%c1_142, %c2_143, %c0_144] : memref<18x18x128xf32, #tpu.memory_space<vmem>>, vector<16x16x128xf32>
    %127 = vector.shape_cast %126 : vector<16x16x128xf32> to vector<256x128xf32>
    %128 = arith.truncf %127 : vector<256x128xf32> to vector<256x128xbf16>
    %c1_145 = arith.constant 1 : index
    %c2_146 = arith.constant 2 : index
    %c0_147 = arith.constant 0 : index
    %c0_148 = arith.constant 0 : index
    %129 = vector.load %arg5[%c1_145, %c2_146, %c0_147, %c0_148] : memref<3x3x128x128xbf16, #tpu.memory_space<vmem>>, vector<1x1x128x128xbf16>
    %130 = vector.shape_cast %129 : vector<1x1x128x128xbf16> to vector<128x128xbf16>
    %cst_149 = arith.constant dense<0.000000e+00> : vector<256x128xf32>
    %131 = tpu.matmul %128, %130, %cst_149 {dimension_numbers = #tpu.dot_dimension_numbers<[1], [0], [0], [1], [0, 0, 1, 1], [], []>} : vector<256x128xbf16>, vector<128x128xbf16>, vector<256x128xf32> -> vector<256x128xf32>
    %132 = arith.addf %125, %131 : vector<256x128xf32>
    %c2_150 = arith.constant 2 : index
    %c0_151 = arith.constant 0 : index
    %c0_152 = arith.constant 0 : index
    %133 = vector.load %arg9[%c2_150, %c0_151, %c0_152] : memref<18x18x128xf32, #tpu.memory_space<vmem>>, vector<16x16x128xf32>
    %134 = vector.shape_cast %133 : vector<16x16x128xf32> to vector<256x128xf32>
    %135 = arith.truncf %134 : vector<256x128xf32> to vector<256x128xbf16>
    %c2_153 = arith.constant 2 : index
    %c0_154 = arith.constant 0 : index
    %c0_155 = arith.constant 0 : index
    %c0_156 = arith.constant 0 : index
    %136 = vector.load %arg5[%c2_153, %c0_154, %c0_155, %c0_156] : memref<3x3x128x128xbf16, #tpu.memory_space<vmem>>, vector<1x1x128x128xbf16>
    %137 = vector.shape_cast %136 : vector<1x1x128x128xbf16> to vector<128x128xbf16>
    %cst_157 = arith.constant dense<0.000000e+00> : vector<256x128xf32>
    %138 = tpu.matmul %135, %137, %cst_157 {dimension_numbers = #tpu.dot_dimension_numbers<[1], [0], [0], [1], [0, 0, 1, 1], [], []>} : vector<256x128xbf16>, vector<128x128xbf16>, vector<256x128xf32> -> vector<256x128xf32>
    %139 = arith.addf %132, %138 : vector<256x128xf32>
    %c2_158 = arith.constant 2 : index
    %c1_159 = arith.constant 1 : index
    %c0_160 = arith.constant 0 : index
    %140 = vector.load %arg9[%c2_158, %c1_159, %c0_160] : memref<18x18x128xf32, #tpu.memory_space<vmem>>, vector<16x16x128xf32>
    %141 = vector.shape_cast %140 : vector<16x16x128xf32> to vector<256x128xf32>
    %142 = arith.truncf %141 : vector<256x128xf32> to vector<256x128xbf16>
    %c2_161 = arith.constant 2 : index
    %c1_162 = arith.constant 1 : index
    %c0_163 = arith.constant 0 : index
    %c0_164 = arith.constant 0 : index
    %143 = vector.load %arg5[%c2_161, %c1_162, %c0_163, %c0_164] : memref<3x3x128x128xbf16, #tpu.memory_space<vmem>>, vector<1x1x128x128xbf16>
    %144 = vector.shape_cast %143 : vector<1x1x128x128xbf16> to vector<128x128xbf16>
    %cst_165 = arith.constant dense<0.000000e+00> : vector<256x128xf32>
    %145 = tpu.matmul %142, %144, %cst_165 {dimension_numbers = #tpu.dot_dimension_numbers<[1], [0], [0], [1], [0, 0, 1, 1], [], []>} : vector<256x128xbf16>, vector<128x128xbf16>, vector<256x128xf32> -> vector<256x128xf32>
    %146 = arith.addf %139, %145 : vector<256x128xf32>
    %c2_166 = arith.constant 2 : index
    %c2_167 = arith.constant 2 : index
    %c0_168 = arith.constant 0 : index
    %147 = vector.load %arg9[%c2_166, %c2_167, %c0_168] : memref<18x18x128xf32, #tpu.memory_space<vmem>>, vector<16x16x128xf32>
    %148 = vector.shape_cast %147 : vector<16x16x128xf32> to vector<256x128xf32>
    %149 = arith.truncf %148 : vector<256x128xf32> to vector<256x128xbf16>
    %c2_169 = arith.constant 2 : index
    %c2_170 = arith.constant 2 : index
    %c0_171 = arith.constant 0 : index
    %c0_172 = arith.constant 0 : index
    %150 = vector.load %arg5[%c2_169, %c2_170, %c0_171, %c0_172] : memref<3x3x128x128xbf16, #tpu.memory_space<vmem>>, vector<1x1x128x128xbf16>
    %151 = vector.shape_cast %150 : vector<1x1x128x128xbf16> to vector<128x128xbf16>
    %cst_173 = arith.constant dense<0.000000e+00> : vector<256x128xf32>
    %152 = tpu.matmul %149, %151, %cst_173 {dimension_numbers = #tpu.dot_dimension_numbers<[1], [0], [0], [1], [0, 0, 1, 1], [], []>} : vector<256x128xbf16>, vector<128x128xbf16>, vector<256x128xf32> -> vector<256x128xf32>
    %153 = arith.addf %146, %152 : vector<256x128xf32>
    %c0_174 = arith.constant 0 : index
    %c0_175 = arith.constant 0 : index
    %154 = vector.load %arg6[%c0_174, %c0_175] : memref<1x128xf32, #tpu.memory_space<vmem>>, vector<1x128xf32>
    %155 = vector.shape_cast %154 : vector<1x128xf32> to vector<128xf32>
    %156 = vector.shape_cast %155 : vector<128xf32> to vector<1x128xf32>
    %157 = vector.broadcast %156 : vector<1x128xf32> to vector<256x128xf32>
    %158 = arith.mulf %153, %157 : vector<256x128xf32>
    %c0_176 = arith.constant 0 : index
    %c0_177 = arith.constant 0 : index
    %159 = vector.load %arg7[%c0_176, %c0_177] : memref<1x128xf32, #tpu.memory_space<vmem>>, vector<1x128xf32>
    %160 = vector.shape_cast %159 : vector<1x128xf32> to vector<128xf32>
    %161 = vector.shape_cast %160 : vector<128xf32> to vector<1x128xf32>
    %162 = vector.broadcast %161 : vector<1x128xf32> to vector<256x128xf32>
    %163 = arith.addf %158, %162 : vector<256x128xf32>
    %164 = arith.negf %163 : vector<256x128xf32>
    %165 = math.exp %164 : vector<256x128xf32>
    %cst_178 = arith.constant 1.000000e+00 : f32
    %166 = vector.broadcast %cst_178 : f32 to vector<256x128xf32>
    %167 = arith.addf %166, %165 : vector<256x128xf32>
    %168 = arith.divf %166, %167 : vector<256x128xf32>
    %169 = arith.mulf %163, %168 : vector<256x128xf32>
    %c0_179 = arith.constant 0 : index
    %c1_180 = arith.constant 1 : index
    %c1_181 = arith.constant 1 : index
    %c0_182 = arith.constant 0 : index
    %170 = vector.load %arg1[%c0_179, %c1_180, %c1_181, %c0_182] : memref<1x18x18x128xbf16, #tpu.memory_space<vmem>>, vector<1x16x16x128xbf16>
    %171 = vector.shape_cast %170 : vector<1x16x16x128xbf16> to vector<16x16x128xbf16>
    %172 = vector.shape_cast %171 : vector<16x16x128xbf16> to vector<256x128xbf16>
    %173 = arith.extf %172 : vector<256x128xbf16> to vector<256x128xf32>
    %174 = arith.addf %169, %173 : vector<256x128xf32>
    %175 = vector.shape_cast %174 : vector<256x128xf32> to vector<1x16x16x128xf32>
    %c0_183 = arith.constant 0 : index
    %c0_184 = arith.constant 0 : index
    %c0_185 = arith.constant 0 : index
    %c0_186 = arith.constant 0 : index
    %176 = vector.load %arg8[%c0_183, %c0_184, %c0_185, %c0_186] : memref<1x16x16x128xf32, #tpu.memory_space<vmem>>, vector<1x16x16x128xf32>
    tpu.vector_store %arg8[%c0_183, %c0_184, %c0_185, %c0_186], %175 {strides = array<i32>} : memref<1x16x16x128xf32, #tpu.memory_space<vmem>>, vector<1x16x16x128xf32>,
    return
  }
  func.func @transform_0(%arg0: i32) -> (i32, i32, i32, i32) {
    %c0_i32 = arith.constant 0 : i32
    %c0_i32_0 = arith.constant 0 : i32
    %c0_i32_1 = arith.constant 0 : i32
    %c0_i32_2 = arith.constant 0 : i32
    return %arg0, %c0_i32, %c0_i32_0, %c0_i32_1 : i32, i32, i32, i32
  }
  func.func @transform_1(%arg0: i32) -> (i32, i32, i32, i32) {
    %c0_i32 = arith.constant 0 : i32
    %c0_i32_0 = arith.constant 0 : i32
    %c0_i32_1 = arith.constant 0 : i32
    %c0_i32_2 = arith.constant 0 : i32
    %c0_i32_3 = arith.constant 0 : i32
    return %c0_i32, %c0_i32_0, %c0_i32_1, %c0_i32_2 : i32, i32, i32, i32
  }
  func.func @transform_2(%arg0: i32) -> (i32, i32) {
    %c0_i32 = arith.constant 0 : i32
    %c0_i32_0 = arith.constant 0 : i32
    %c0_i32_1 = arith.constant 0 : i32
    return %c0_i32, %c0_i32_0 : i32, i32
  }
  func.func @transform_3(%arg0: i32) -> (i32, i32) {
    %c0_i32 = arith.constant 0 : i32
    %c0_i32_0 = arith.constant 0 : i32
    %c0_i32_1 = arith.constant 0 : i32
    return %c0_i32, %c0_i32_0 : i32, i32
  }
  func.func @transform_4(%arg0: i32) -> (i32, i32, i32, i32) {
    %c0_i32 = arith.constant 0 : i32
    %c0_i32_0 = arith.constant 0 : i32
    %c0_i32_1 = arith.constant 0 : i32
    %c0_i32_2 = arith.constant 0 : i32
    %c0_i32_3 = arith.constant 0 : i32
    return %c0_i32, %c0_i32_0, %c0_i32_1, %c0_i32_2 : i32, i32, i32, i32
  }
  func.func @transform_5(%arg0: i32) -> (i32, i32) {
    %c0_i32 = arith.constant 0 : i32
    %c0_i32_0 = arith.constant 0 : i32
    %c0_i32_1 = arith.constant 0 : i32
    return %c0_i32, %c0_i32_0 : i32, i32
  }
  func.func @transform_6(%arg0: i32) -> (i32, i32) {
    %c0_i32 = arith.constant 0 : i32
    %c0_i32_0 = arith.constant 0 : i32
    %c0_i32_1 = arith.constant 0 : i32
    return %c0_i32, %c0_i32_0 : i32, i32
  }
  func.func @transform_7(%arg0: i32) -> (i32, i32, i32, i32) {
    %c0_i32 = arith.constant 0 : i32
    %c0_i32_0 = arith.constant 0 : i32
    %c0_i32_1 = arith.constant 0 : i32
    %c0_i32_2 = arith.constant 0 : i32
    return %arg0, %c0_i32, %c0_i32_0, %c0_i32_1 : i32, i32, i32, i32
  }
}

</mosaic_0001>

<bundles_post_ra>
// kernel: tpu_custom_call.1
= control target key start
LH: loop header
LB: loop body
LE: loop exit
PB: predicated region body
PF: predicated region fallthrough
CT: control target
= control target key end

     0   :  { %12 = vsyncpa [#allocation4], 0  ;;  %s16041_s0 = inlined_call_operand.vmem [shape: bf16[2,18,18,128], index: 0, kind: input, shape index: {}]   ;;  %s16042_s1 = inlined_call_operand.vmem [shape: bf16[3,3,128,128], index: 1, kind: input, shape index: {}]   ;;  %s16043_s2 = inlined_call_operand.vmem [shape: f32[1,128], index: 2, kind: input, shape index: {}]   ;;  %s16044_s3 = inlined_call_operand.vmem [shape: f32[1,128], index: 3, kind: input, shape index: {}]   ;;  %s16045_s4 = inlined_call_operand.hbm [shape: bf16[3,3,128,128], index: 4, kind: input, shape index: {}]   ;;  %s16046_s5 = inlined_call_operand.vmem [shape: f32[1,128], index: 5, kind: input, shape index: {}]   ;;  %s16047_s6 = inlined_call_operand.vmem [shape: f32[1,128], index: 6, kind: input, shape index: {}]   ;;  %s16048_s7 = inlined_call_operand.hbm [shape: f32[2,16,16,128], index: 7, kind: output, shape index: {}]  }
   0x1   :  { %13 = vsyncpa [#allocation5], 0 }
   0x2   :  { %15 = vsyncpa [#allocation5 + $0x1], 0  ;;  %s11853_s24 = smov 0   ;;  %s11855_s25 = smov 0  }
   0x3   :  { %s11857_s26 = smov 0   ;;  %s11859_s27 = smov 0  }
   0x4 LB: > { %s11874_s28 = sadd.s32 4294967295, %s11804_s27   ;;  %s9120_s29 = sadd.s32 4294967294, %s11804_s27   ;;  %s11804_s27 = sphi %s11859_s27, %s16388_s27   ;;  %s11800_s26 = sphi %s11857_s26, %s16387_s26   ;;  %s11796_s25 = sphi %s11855_s25, %s16386_s25   ;;  %s11792_s24 = sphi %s11853_s24, %s16385_s24  }
   0x5   : > { %s11878_s30 = sadd.s32 1, %s11804_s27   ;;  %s180_s8 = sadd.s32 1, %s11800_s26 }
   0x6   : > { %s177_s9 = ssub.s32 %s11804_s27, %s11878_s30  ;;  %p190_p0 = scmp.ne.s32.totalorder %s11800_s26, %s11796_s25 }
   0x7   : > { %p178_p1 = scmp.eq.s32.totalorder %s177_s9, 0  ;;  %p191_p2 = scmp.eq.s32.totalorder %s11874_s28, 1 }
   0x8   : > { %p196_p3 = scmp.ne.s32.totalorder %s11796_s25, %s11792_s24  ;;  %p197_p4 = scmp.eq.s32.totalorder %s9120_s29, 1 }
   0x9   : > { %s11889_s10 = scalar_select %p178_p1, %s11800_s26, %s180_s8  }
   0xa   : > { %p11891_p5 = por %p191_p2, %p190_p0  ;;  %p11895_p6 = por %p197_p4, %p196_p3 }
   0xb   : > { %p9121_p7 = scmp.ge.s32.totalorder %s11804_s27, 1  ;;  %p204_p8 = scmp.lt.s32.totalorder %s11804_s27, 3 }
   0xc   : > { %s16062_s12 = scalar_select %p11895_p6, 1, 0 }
   0xd   : > { %p11217_p9 = scmp.eq.s32.totalorder %s11874_s28, 0  ;;  %p11902_p10 = pnand %p9121_p7, %p204_p8 }
   0xe   : > { %s11806_s14 = smov [#allocation3]  }
   0xf   : > { %s225_s15 = sshll.u32 %s11806_s14, 4  ;;  %p11209_p11 = pneg %p11902_p10  ;;  %s226_s15 = int_to_ptr.vmem [resolvable:$true] %s225_s15 }
  0x10   : > { %s11725_s16 = scalar_lea.vmem %s226_s15, 9216  ;;  %p11733_p3 = scmp.lt.s32.totalorder %s226_s15, %s226_s15 }
  0x11   : > { %p11210_p12 = pnand %p11217_p9, %p11209_p11  ;;  %p11726_p0 = scmp.ne.s32.totalorder %s226_s15, %s11725_s16 }
  0x12   : > { %p11734_p4 = scmp.lt.s32.totalorder %s11725_s16, %s11725_s16 }
  0x13   : > { %p11716_p13 = pneg %p11210_p12 }
  0x14   : > { %p11735_p6 = por %p11734_p4, %p11733_p3 }
  0x15   : > { %p11728_p1 = pnand %p11726_p0, %p11716_p13 }
  0x17   : > { %p11729_p2 = pneg %p11728_p1 }
  0x19   : > { %p11736_p7 = pnand %p11735_p6, %p11729_p2 }
  0x1b   : > { %11739 = shalt.err (!%p11736_p7)
}
  0x1c   : > { %s11807_s17 = smov 64   ;;  %s11808_s18 = smov 4  }
  0x1d   : > { %11212 = dma.hbm_to_vmem [thread:$0]  (!%p11210_p12), %s16045_s4, 9216, %s226_s15, [#allocation4], %s11807_s17, %s11807_s17, %s11808_s18  }
  0x1e   : > { %255 = sbr.rel (%p11902_p10) target bundleno = 1164 (0x48c), region = 48 }
  0x23   : > { %11783 = dma.done.wait (%p11217_p9), [#allocation4], 9216  }
  0x24   : > { %11785 = vsyncadd (%p11217_p9), [#allocation4], 4294958080  ;;  %v11258_v0 = vld [vmem:[%s16042_s1 + $0x78] sm:$0xff]   ;;  %p287_p6 = scmp.lt.s32.totalorder %s11874_s28, 1  ;;  %v11260_v2 = vld [vmem:[%s16042_s1 + $0x70] sm:$0xff]   ;;  %v16064_v40 = vmov 0 }
  0x25   : > { %v11259_v1 = vld [vmem:[%s16042_s1 + $0x38] sm:$0xff]   ;;  %10338 = vmatprep.subr.bf16.mxu0 %v11258_v0  ;;  %v11261_v3 = vld [vmem:[%s16042_s1 + $0x30] sm:$0xff]   ;;  %v11262_v4 = vld [vmem:[%s16042_s1 + $0x68] sm:$0xff]   ;;  %vm357_vm0 = vsmask.f32 3328  ;;  %vm1387_vm3 = vcmask 1042432  }
  0x26   : > { %10386 = vmatprep.subr.bf16.mxu1 %v11259_v1  ;;  %10339 = vmatpush3.bf16.msra.mxu0 %v11258_v0  ;;  %v11263_v5 = vld [vmem:[%s16042_s1 + $0x28] sm:$0xff]   ;;  %s288_s19 = scalar_select %p287_p6, %s11874_s28, 1  ;;  %v11264_v6 = vld [vmem:[%s16042_s1 + $0x60] sm:$0xff]   ;;  %vm358_vm1 = vsmask.f32 7440  ;;  %v11266_v8 = vld [vmem:[%s16042_s1 + $0x58] sm:$0xff]  }
  0x27   : > { %10387 = vmatpush3.bf16.msra.mxu1 %v11259_v1  ;;  %10340 = vmatprep.subr.bf16.mxu0 %v11260_v2  ;;  %v11265_v7 = vld [vmem:[%s16042_s1 + $0x20] sm:$0xff]   ;;  %v11267_v9 = vld [vmem:[%s16042_s1 + $0x18] sm:$0xff]   ;;  %v11268_v10 = vld [vmem:[%s16042_s1 + $0x50] sm:$0xff]   ;;  %vm1388_vm4 = vcmask 1046532   ;;  %s284_s20 = sand.u32 1, %s11796_s25   ;;  %s11810_s14 = smov [#allocation6]  }
  0x28   : > { %10388 = vmatprep.subr.bf16.mxu1 %v11261_v3  ;;  %s11202_s29 = smul.u32 216, %s288_s19  ;;  %v11269_v11 = vld [vmem:[%s16042_s1 + $0x10] sm:$0xff]   ;;  %v11270_v20 = vld [vmem:[%s16042_s1 + $0x48] sm:$0xff]   ;;  %vm11999_vm2 = vmor %vm357_vm0, %vm358_vm1  ;;  %s15753_s21 = sshll.u32 %s284_s20, 8 }
  0x29   : > { %v11271_v34 = vld [vmem:[%s16042_s1 + $0x8] sm:$0xff]   ;;  %v16065_v40 = vsel %vm11999_vm2, 4294967295, %v16064_v40  ;;  %v11272_v50 = vld [vmem:[%s16042_s1 + $0x40] sm:$0xff]   ;;  %vm12347_vm5 = vmor %vm1387_vm3, %vm1388_vm4  ;;  %s15780_s22 = scalar_lea.vmem [#allocation6], %s15753_s21  ;;  %s11744_s15 = sshll.u32 %s11810_s14, 4  ;;  %s11745_s15 = int_to_ptr.vmem [resolvable:$false] %s11744_s15 }
  0x2a   : > { %10341 = vmatpush3.bf16.msra.mxu0 %v11260_v2  ;;  %s11954_s17 = scalar_lea.vmem %s16041_s0, %s11202_s29  ;;  %16066 = vst [vmem:[#allocation9_spill] sm:$0xff] %v16065_v40  ;;  %v11273_v56 = vld [vmem:[%s16042_s1] sm:$0xff]   ;;  %s9046_s23 = sshll.u32 %s15780_s22, 4  ;;  %s15994_s23 = int_to_ptr.vmem [resolvable:$true] %s9046_s23 }
  0x2b   : > { %10389 = vmatpush3.bf16.msra.mxu1 %v11261_v3  ;;  %10342 = vmatprep.subr.bf16.mxu0 %v11262_v4  ;;  %v293_v12 = vld [vmem:[%s11954_s17] sm:$0xf]  ;;  %v11964_v13 = vld [vmem:[%s11954_s17 + $0x4] sm:$0xf]  ;;  %v11967_v14 = vld [vmem:[%s11954_s17 + $0x8] sm:$0x1]  ;;  %p11747_p11 = scmp.lt.s32.totalorder %s15994_s23, %s11745_s15 }
  0x2c   : > { %10390 = vmatprep.subr.bf16.mxu1 %v11263_v5  ;;  %v361_v15 = vshrl.u32 %v293_v12, 16  ;;  %v364_v16 = vshll.u32 %v293_v12, 16  ;;  %v370_v17 = vshll.u32 %v11964_v13, 16  ;;  %v374_v18 = vshrl.u32 %v11964_v13, 16  ;;  %v11972_v19 = vld [vmem:[%s11954_s17 + $0xc] sm:$0xf] }
  0x2d   : > { %v380_v21 = vshll.u32 %v11967_v14, 16  ;;  %v1395_v22 = vrot.slane %v11967_v14, 5  ;;  %v9168_v23 = vcombine.low %v293_v12, %v11964_v13  ;;  %v11981_v24 = vld [vmem:[%s11954_s17 + $0x10] sm:$0xf]  ;;  %v11984_v25 = vld [vmem:[%s11954_s17 + $0x14] sm:$0x1] }
  0x2e   : > { %10343 = vmatpush3.bf16.msra.mxu0 %v11262_v4  ;;  %v363_v26 = vrot.slane %v361_v15, 4  ;;  %v366_v27 = vrot.slane %v364_v16, 5  ;;  %v372_v28 = vrot.slane %v370_v17, 5  ;;  %v376_v29 = vrot.slane %v374_v18, 4  ;;  %v11995_v39 = vld [vmem:[%s11954_s17 + $0x18] sm:$0xf] }
  0x2f   : > { %10391 = vmatpush3.bf16.msra.mxu1 %v11263_v5  ;;  %10344 = vmatprep.subr.bf16.mxu0 %v11264_v6  ;;  %v382_v30 = vrot.slane %v380_v21, 5  ;;  %v385_v31 = vshrl.u32 %v11972_v19, 16  ;;  %v388_v32 = vshll.u32 %v11972_v19, 16  ;;  %v394_v33 = vshll.u32 %v11981_v24, 16  ;;  %v12005_v45 = vld [vmem:[%s11954_s17 + $0x1c] sm:$0xf] }
  0x30   : > { %10392 = vmatprep.subr.bf16.mxu1 %v11265_v7  ;;  %v367_v35 = vor.u32 %v366_v27, %v363_v26  ;;  %v377_v36 = vor.u32 %v376_v29, %v372_v28  ;;  %10402 = vmatprep.mubr.bf16.mxu1 %v9168_v23  ;;  %v398_v37 = vshrl.u32 %v11981_v24, 16  ;;  %v404_v38 = vshll.u32 %v11984_v25, 16  ;;  %v12013_v53 = vld [vmem:[%s11954_s17 + $0x20] sm:$0x1]  ;;  %v12026_v61 = vld [vmem:[%s11954_s17 + $0x24] sm:$0xf] }
  0x31   : > { %v387_v41 = vrot.slane %v385_v31, 4  ;;  %v390_v42 = vrot.slane %v388_v32, 5  ;;  %v396_v43 = vrot.slane %v394_v33, 5  ;;  %v1402_v44 = vrot.slane %v11984_v25, 5  ;;  %v11289_v21 = vld [vmem:[%s16042_s1 + $0xf8] sm:$0xff]   ;;  %s11740_s13 = scalar_lea.vmem %s15994_s23, 4096 }
  0x32   : > { %10345 = vmatpush3.bf16.msra.mxu0 %v11264_v6  ;;  %v368_v46 = vrot.slane %v367_v35, 4  ;;  %v378_v47 = vrot.slane %v377_v36, 4  ;;  %v400_v48 = vrot.slane %v398_v37, 4  ;;  %v406_v49 = vrot.slane %v404_v38, 5  ;;  %v12031_v6 = vld [vmem:[%s11954_s17 + $0x28] sm:$0xf]  ;;  %p11741_p8 = scmp.ne.s32.totalorder %s15994_s23, %s11740_s13 }
  0x33   : > { %10393 = vmatpush3.bf16.msra.mxu1 %v11265_v7  ;;  %10346 = vmatprep.subr.bf16.mxu0 %v11266_v8  ;;  %v391_v51 = vor.u32 %v390_v42, %v387_v41  ;;  %v9169_v52 = vcombine.low %v11972_v19, %v11981_v24  ;;  %v409_v54 = vshrl.u32 %v11995_v39, 16  ;;  %v412_v55 = vshll.u32 %v11995_v39, 16  ;;  %v12055_v29 = vld [vmem:[%s11954_s17 + $0x34] sm:$0xf]  ;;  %v12063_v35 = vld [vmem:[%s11954_s17 + $0x38] sm:$0x1] }
  0x34   : > { %10394 = vmatprep.subr.bf16.mxu1 %v11267_v9  ;;  %v373_v57 = vsel %vm11999_vm2, %v368_v46, %v372_v28  ;;  %v383_v58 = vsel %vm11999_vm2, %v378_v47, %v382_v30  ;;  %v401_v59 = vor.u32 %v400_v48, %v396_v43  ;;  %v418_v60 = vshll.u32 %v12005_v45, 16  ;;  %v12089_v19 = vld [vmem:[%s11954_s17 + $0x44] sm:$0x1]  ;;  %p11742_p9 = pnand %p11741_p8, %p11891_p5  ;;  %s11746_s16 = scalar_lea.vmem %s11745_s15, 8192 }
  0x35   : > { %v9144_v62 = vcombine.low %v373_v57, %v383_v58  ;;  %v392_v63 = vrot.slane %v391_v51, 4  ;;  %v411_v0 = vrot.slane %v409_v54, 4  ;;  %v414_v1 = vrot.slane %v412_v55, 5  ;;  %v11290_v51 = vld [vmem:[%s16042_s1 + $0xf0] sm:$0xff]   ;;  %v12083_v58 = vld [vmem:[%s11954_s17 + $0x3c] sm:$0xf]  ;;  %p11748_p12 = scmp.lt.s32.totalorder %s11746_s16, %s11740_s13 }
  0x36   : > { %10347 = vmatpush3.bf16.msra.mxu0 %v11266_v8  ;;  %v402_v2 = vrot.slane %v401_v59, 4  ;;  %v420_v3 = vrot.slane %v418_v60, 5  ;;  %v422_v4 = vshrl.u32 %v12005_v45, 16  ;;  %v428_v5 = vshll.u32 %v12013_v53, 16  ;;  %v11276_v8 = vld [vmem:[%s16042_s1 + $0xb8] sm:$0xff]   ;;  %p11743_p10 = pneg %p11742_p9 }
  0x37   : > { %10395 = vmatpush3.bf16.msra.mxu1 %v11267_v9  ;;  %10348 = vmatprep.subr.bf16.mxu0 %v11268_v10  ;;  %v397_v7 = vsel %vm11999_vm2, %v392_v63, %v396_v43  ;;  %v415_v9 = vor.u32 %v414_v1, %v411_v0  ;;  %v433_v12 = vshrl.u32 %v12026_v61, 16  ;;  %v436_v18 = vshll.u32 %v12026_v61, 16  ;;  %v12086_v59 = vld [vmem:[%s11954_s17 + $0x40] sm:$0xf]  ;;  %p11749_p13 = por %p11748_p12, %p11747_p11 }
  0x38   : > { %10396 = vmatprep.subr.bf16.mxu1 %v11269_v11  ;;  %10354 = vmatprep.mubr.bf16.mxu0 %v9144_v62  ;;  %v407_v15 = vsel %vm11999_vm2, %v402_v2, %v406_v49  ;;  %v424_v16 = vrot.slane %v422_v4, 4  ;;  %v430_v17 = vrot.slane %v428_v5, 5  ;;  %v442_v28 = vshll.u32 %v12031_v6, 16 }
  0x39   : > { %v9145_v23 = vcombine.low %v397_v7, %v407_v15  ;;  %v416_v26 = vrot.slane %v415_v9, 4  ;;  %v435_v27 = vrot.slane %v433_v12, 4  ;;  %v438_v31 = vrot.slane %v436_v18, 5  ;;  %v12109_v18 = vld [vmem:[%s11954_s17 + $0x48] sm:$0xf]  ;;  %p11750_p0 = pnand %p11749_p13, %p11743_p10 }
  0x3a   : > { %10349 = vmatpush3.bf16.msra.mxu0 %v11268_v10  ;;  %v9170_v10 = vcombine.low %v11995_v39, %v12005_v45  ;;  %v425_v30 = vor.u32 %v424_v16, %v420_v3  ;;  %v446_v32 = vshrl.u32 %v12031_v6, 16  ;;  %v444_v37 = vrot.slane %v442_v28, 5  ;;  %v11285_v28 = vld [vmem:[%s16042_s1 + $0xa0] sm:$0xff]  }
  0x3b   : > { %10397 = vmatpush3.bf16.msra.mxu1 %v11269_v11  ;;  %10350 = vmatprep.subr.bf16.mxu0 %v11270_v20  ;;  %v12041_v11 = vld [vmem:[%s11954_s17 + $0x2c] sm:$0x1]  ;;  %v421_v36 = vsel %vm11999_vm2, %v416_v26, %v420_v3  ;;  %v9171_v38 = vcombine.low %v12026_v61, %v12031_v6  ;;  %v439_v42 = vor.u32 %v438_v31, %v435_v27  ;;  %v466_v49 = vshll.u32 %v12055_v29, 16 }
  0x3c   : > { %10398 = vmatprep.subr.bf16.mxu1 %v11271_v34  ;;  %v452_v33 = vshll.u32 %v12041_v11, 16  ;;  %v426_v41 = vrot.slane %v425_v30, 4  ;;  %v448_v43 = vrot.slane %v446_v32, 4  ;;  %v476_v57 = vshll.u32 %v12063_v35, 16  ;;  %v12112_v27 = vld [vmem:[%s11954_s17 + $0x4c] sm:$0xf] }
  0x3d   : > { %v440_v55 = vrot.slane %v439_v42, 4  ;;  %v468_v63 = vrot.slane %v466_v49, 5  ;;  %v484_v9 = vshll.u32 %v12083_v58, 16  ;;  %v490_v15 = vshll.u32 %v12086_v59, 16  ;;  %v12128_v42 = vld [vmem:[%s11954_s17 + $0x54] sm:$0xf] }
  0x3e   : > { %10351 = vmatpush3.bf16.msra.mxu0 %v11270_v20  ;;  %v12048_v20 = vld [vmem:[%s11954_s17 + $0x30] sm:$0xf]  ;;  %v454_v46 = vrot.slane %v452_v33, 5  ;;  %v431_v54 = vsel %vm11999_vm2, %v426_v41, %v430_v17  ;;  %v478_v3 = vrot.slane %v476_v57, 5  ;;  %v494_v16 = vshrl.u32 %v12086_v59, 16 }
  0x3f   : > { %10399 = vmatpush3.bf16.msra.mxu1 %v11271_v34  ;;  %10352 = vmatprep.subr.bf16.mxu0 %v11272_v50  ;;  %v11279_v34 = vld [vmem:[%s16042_s1 + $0xb0] sm:$0xff]   ;;  %v457_v39 = vshrl.u32 %v12048_v20, 16  ;;  %v460_v48 = vshll.u32 %v12048_v20, 16  ;;  %v9146_v60 = vcombine.low %v421_v36, %v431_v54  ;;  %v445_v1 = vsel %vm11999_vm2, %v440_v55, %v444_v37 }
  0x40   : > { %10400 = vmatprep.subr.bf16.mxu1 %v11273_v56  ;;  %v9172_v4 = vcombine.low %v12048_v20, %v12055_v29  ;;  %v500_v17 = vshll.u32 %v12089_v19, 16  ;;  %v486_v30 = vrot.slane %v484_v9, 5  ;;  %v492_v31 = vrot.slane %v490_v15, 5 }
  0x41   : > { %v459_v47 = vrot.slane %v457_v39, 4  ;;  %v462_v62 = vrot.slane %v460_v48, 5  ;;  %v496_v32 = vrot.slane %v494_v16, 4  ;;  %v9173_v39 = vcombine.low %v12083_v58, %v12086_v59  ;;  %v12165_v16 = vld [vmem:[%s11954_s17 + $0x64] sm:$0xf] }
  0x42   : > { %10353 = vmatpush3.bf16.msra.mxu0 %v11272_v50  ;;  %v470_v50 = vshrl.u32 %v12055_v29, 16  ;;  %v502_v33 = vrot.slane %v500_v17, 5  ;;  %v505_v41 = vshrl.u32 %v12109_v18, 16  ;;  %v508_v49 = vshll.u32 %v12109_v18, 16  ;;  %v11293_v17 = vld [vmem:[%s16042_s1 + $0x90] sm:$0xff]  }
  0x43   : > { %10401 = vmatpush3.bf16.msra.mxu1 %v11273_v56  ;;  %10434 = vmatprep.subr.bf16.mxu0 %v11276_v8  ;;  %v449_v56 = vor.u32 %v448_v43, %v444_v37  ;;  %v463_v5 = vor.u32 %v462_v62, %v459_v47  ;;  %v11295_v43 = vld [vmem:[%s16042_s1 + $0xe0] sm:$0xff]   ;;  %v497_v48 = vor.u32 %v496_v32, %v492_v31  ;;  %v514_v55 = vshll.u32 %v12112_v27, 16 }
  0x44   : > { %10482 = vmatprep.subr.bf16.mxu1 %v11289_v21  ;;  %v472_v0 = vrot.slane %v470_v50, 4  ;;  %v12138_v50 = vld [vmem:[%s11954_s17 + $0x58] sm:$0xf]  ;;  %v507_v54 = vrot.slane %v505_v41, 4  ;;  %v9174_v62 = vcombine.low %v12109_v18, %v12112_v27 }
  0x45   : > { %10355 = vmatmul.mubr.bf16.vlgmr.msra.gmra.mxu0 %v9145_v23  ;;  %v450_v2 = vrot.slane %v449_v56, 4  ;;  %v518_v56 = vshrl.u32 %v12112_v27, 16  ;;  %v538_v15 = vshll.u32 %v12138_v50, 16 }
  0x46   : > { %10403 = vmatmul.mubr.bf16.vlgmr.msra.gmra.mxu1 %v9169_v52  ;;  %10435 = vmatpush3.bf16.msra.mxu0 %v11276_v8  ;;  %v11282_v52 = vld [vmem:[%s16042_s1 + $0xa8] sm:$0xff]   ;;  %v473_v7 = vor.u32 %v472_v0, %v468_v63  ;;  %v481_v8 = vshrl.u32 %v12083_v58, 16  ;;  %v498_v58 = vrot.slane %v497_v48, 4  ;;  %v516_v0 = vrot.slane %v514_v55, 5 }
  0x47   : > { %10406 = vmatprep.mubr.bf16.mxu1 %v9170_v10  ;;  %10436 = vmatprep.subr.bf16.mxu0 %v11279_v34  ;;  %v11294_v10 = vld [vmem:[%s16042_s1 + $0xe8] sm:$0xff]   ;;  %v455_v12 = vsel %vm11999_vm2, %v450_v2, %v454_v46  ;;  %v529_v2 = vshrl.u32 %v12128_v42, 16 }
  0x48   : > { %10483 = vmatpush3.bf16.msra.mxu1 %v11289_v21  ;;  %10358 = vmatprep.mubr.bf16.mxu0 %v9146_v60  ;;  %v9147_v20 = vcombine.low %v445_v1, %v455_v12  ;;  %v464_v21 = vrot.slane %v463_v5, 4  ;;  %v474_v23 = vrot.slane %v473_v7, 4  ;;  %v483_v26 = vrot.slane %v481_v8, 4  ;;  %v12161_v8 = vld [vmem:[%s11954_s17 + $0x60] sm:$0xf] }
  0x49   : > { %10484 = vmatprep.subr.bf16.mxu1 %v11290_v51  ;;  %v510_v60 = vrot.slane %v508_v49, 5  ;;  %v532_v7 = vshll.u32 %v12128_v42, 16  ;;  %v531_v12 = vrot.slane %v529_v2, 4  ;;  %v553_v32 = vshrl.u32 %v12161_v8, 16 }
  0x4a   : > { %10437 = vmatpush3.bf16.msra.mxu0 %v11279_v34  ;;  %v12118_v34 = vld [vmem:[%s11954_s17 + $0x50] sm:$0x1]  ;;  %v469_v36 = vsel %vm11999_vm2, %v464_v21, %v468_v63  ;;  %v479_v37 = vsel %vm11999_vm2, %v474_v23, %v478_v3  ;;  %v487_v47 = vor.u32 %v486_v30, %v483_v26  ;;  %v11299_v63 = vld [vmem:[%s16042_s1 + $0xd8] sm:$0xff]   ;;  %v542_v21 = vshrl.u32 %v12138_v50, 16  ;;  %v12173_v26 = vld [vmem:[%s11954_s17 + $0x68] sm:$0x1] }
  0x4b   : > { %10438 = vmatprep.subr.bf16.mxu0 %v11282_v52  ;;  %v9148_v46 = vcombine.low %v469_v36, %v479_v37  ;;  %v524_v61 = vshll.u32 %v12118_v34, 16  ;;  %v511_v5 = vor.u32 %v510_v60, %v507_v54  ;;  %v540_v30 = vrot.slane %v538_v15, 5  ;;  %v11300_v36 = vld [vmem:[%s16042_s1 + $0xd0] sm:$0xff]  }
  0x4c   : > { %10485 = vmatpush3.bf16.msra.mxu1 %v11290_v51  ;;  %v11288_v51 = vld [vmem:[%s16042_s1 + $0x98] sm:$0xff]   ;;  %v488_v57 = vrot.slane %v487_v47, 4  ;;  %v12187_v47 = vld [vmem:[%s11954_s17 + $0x70] sm:$0xf]  ;;  %v555_v48 = vrot.slane %v553_v32, 4  ;;  %v556_v49 = vshll.u32 %v12161_v8, 16 }
  0x4d   : > { %10359 = vmatmul.mubr.bf16.gmra.mxu0 %v9147_v20  ;;  %10486 = vmatprep.subr.bf16.mxu1 %v11294_v10  ;;  %v526_v1 = vrot.slane %v524_v61, 5  ;;  %v512_v18 = vrot.slane %v511_v5, 4  ;;  %v534_v20 = vrot.slane %v532_v7, 5  ;;  %v562_v54 = vshll.u32 %v12165_v16, 16  ;;  %v12207_v5 = vld [vmem:[%s11954_s17 + $0x74] sm:$0x1] }
  0x4e   : > { %10407 = vmatmul.mubr.bf16.gmra.mxu1 %v9171_v38  ;;  %10439 = vmatpush3.bf16.msra.mxu0 %v11282_v52  ;;  %v12147_v38 = vld [vmem:[%s11954_s17 + $0x5c] sm:$0x1]  ;;  %v520_v52 = vrot.slane %v518_v56, 4  ;;  %v493_v3 = vsel %vm11999_vm2, %v488_v57, %v492_v31  ;;  %v9175_v31 = vcombine.low %v12128_v42, %v12138_v50  ;;  %v566_v57 = vshrl.u32 %v12165_v16, 16  ;;  %v12224_v32 = vld [vmem:[%s11954_s17 + $0x80] sm:$0x1] }
  0x4f   : > { %10410 = vmatprep.mubr.bf16.mxu1 %v9172_v4  ;;  %10440 = vmatprep.subr.bf16.mxu0 %v11285_v28  ;;  %v503_v4 = vsel %vm11999_vm2, %v498_v58, %v502_v33  ;;  %v548_v23 = vshll.u32 %v12147_v38, 16  ;;  %v12179_v33 = vld [vmem:[%s11954_s17 + $0x6c] sm:$0xf]  ;;  %v517_v37 = vsel %vm11999_vm2, %v512_v18, %v516_v0  ;;  %v535_v41 = vor.u32 %v534_v20, %v531_v12  ;;  %v12218_v18 = vld [vmem:[%s11954_s17 + $0x78] sm:$0xf] }
  0x50   : > { %10362 = vmatprep.mubr.bf16.mxu0 %v9148_v46  ;;  %10487 = vmatpush3.bf16.msra.mxu1 %v11294_v10  ;;  %v9149_v9 = vcombine.low %v493_v3, %v503_v4  ;;  %v521_v10 = vor.u32 %v520_v52, %v516_v0  ;;  %v564_v58 = vrot.slane %v562_v54, 5  ;;  %v572_v60 = vshll.u32 %v12173_v26, 16  ;;  %v11304_v0 = vld [vmem:[%s16042_s1 + $0xc8] sm:$0xff]   ;;  %v12221_v20 = vld [vmem:[%s11954_s17 + $0x7c] sm:$0xf] }
  0x51   : > { %10488 = vmatprep.subr.bf16.mxu1 %v11295_v43  ;;  %v550_v46 = vrot.slane %v548_v23, 5  ;;  %v536_v56 = vrot.slane %v535_v41, 4  ;;  %v577_v2 = vshrl.u32 %v12179_v33, 16  ;;  %v580_v7 = vshll.u32 %v12179_v33, 16 }
  0x52   : > { %10441 = vmatpush3.bf16.msra.mxu0 %v11285_v28  ;;  %v522_v28 = vrot.slane %v521_v10, 4  ;;  %v574_v4 = vrot.slane %v572_v60, 5  ;;  %v601_v54 = vshrl.u32 %v12218_v18, 16 }
  0x53   : > { %10442 = vmatprep.subr.bf16.mxu0 %v11288_v51  ;;  %v541_v52 = vsel %vm11999_vm2, %v536_v56, %v540_v30  ;;  %v579_v15 = vrot.slane %v577_v2, 4  ;;  %v620_v2 = vshll.u32 %v12224_v32, 16 }
  0x54   : > { %10489 = vmatpush3.bf16.msra.mxu1 %v11295_v43  ;;  %v544_v43 = vrot.slane %v542_v21, 4  ;;  %v527_v42 = vsel %vm11999_vm2, %v522_v28, %v526_v1  ;;  %v582_v28 = vrot.slane %v580_v7, 5  ;;  %v603_v60 = vrot.slane %v601_v54, 4  ;;  %v12257_v7 = vld [vmem:[%s11954_s17 + $0x8c] sm:$0x1] }
  0x55   : > { %10363 = vmatmul.mubr.bf16.gmra.mxu0 %v9149_v9  ;;  %10490 = vmatprep.subr.bf16.mxu1 %v11299_v63  ;;  %v9150_v55 = vcombine.low %v517_v37, %v527_v42  ;;  %v11303_v9 = vld [vmem:[%s16042_s1 + $0x80] sm:$0xff]   ;;  %v12276_v54 = vld [vmem:[%s11954_s17 + $0x98] sm:$0x1] }
  0x56   : > { %10411 = vmatmul.mubr.bf16.gmra.mxu1 %v9173_v39  ;;  %10443 = vmatpush3.bf16.msra.mxu0 %v11288_v51  ;;  %v11298_v39 = vld [vmem:[%s16042_s1 + $0x88] sm:$0xff]   ;;  %v545_v61 = vor.u32 %v544_v43, %v540_v30  ;;  %v558_v51 = vrot.slane %v556_v49, 5  ;;  %v11305_v37 = vld [vmem:[%s16042_s1 + $0xc0] sm:$0xff]   ;;  %v583_v49 = vor.u32 %v582_v28, %v579_v15 }
  0x57   : > { %10414 = vmatprep.mubr.bf16.mxu1 %v9174_v62  ;;  %10444 = vmatprep.subr.bf16.mxu0 %v11293_v17  ;;  %v9176_v62 = vcombine.low %v12161_v8, %v12165_v16  ;;  %v586_v8 = vshll.u32 %v12187_v47, 16  ;;  %v12233_v42 = vld [vmem:[%s11954_s17 + $0x84] sm:$0xf] }
  0x58   : > { %10491 = vmatpush3.bf16.msra.mxu1 %v11299_v63  ;;  %10366 = vmatprep.mubr.bf16.mxu0 %v9150_v55  ;;  %v546_v1 = vrot.slane %v545_v61, 4  ;;  %v568_v63 = vrot.slane %v566_v57, 4  ;;  %v559_v3 = vor.u32 %v558_v51, %v555_v48  ;;  %v12242_v55 = vld [vmem:[%s16042_s1 + $0x138] sm:$0xff]   ;;  %v610_v61 = vshll.u32 %v12221_v20, 16  ;;  %v12248_v57 = vld [vmem:[%s11954_s17 + $0x88] sm:$0xf] }
  0x59   : > { %10492 = vmatprep.subr.bf16.mxu1 %v11300_v36  ;;  %v588_v30 = vrot.slane %v586_v8, 5  ;;  %v625_v8 = vshrl.u32 %v12233_v42, 16  ;;  %v628_v15 = vshll.u32 %v12233_v42, 16  ;;  %v634_v28 = vshll.u32 %v12248_v57, 16 }
  0x5a   : > { %10445 = vmatpush3.bf16.msra.mxu0 %v11293_v17  ;;  %v551_v10 = vsel %vm11999_vm2, %v546_v1, %v550_v46  ;;  %v569_v12 = vor.u32 %v568_v63, %v564_v58  ;;  %v590_v17 = vshrl.u32 %v12187_v47, 16  ;;  %v560_v23 = vrot.slane %v559_v3, 4 }
  0x5b   : > { %10446 = vmatprep.subr.bf16.mxu0 %v11298_v39  ;;  %v9151_v21 = vcombine.low %v541_v52, %v551_v10  ;;  %v596_v46 = vshll.u32 %v12207_v5, 16  ;;  %v612_v1 = vrot.slane %v610_v61, 5  ;;  %v614_v63 = vshrl.u32 %v12221_v20, 16 }
  0x5c   : > { %10493 = vmatpush3.bf16.msra.mxu1 %v11300_v36  ;;  %v570_v41 = vrot.slane %v569_v12, 4  ;;  %v592_v43 = vrot.slane %v590_v17, 4  ;;  %v9177_v36 = vcombine.low %v12179_v33, %v12187_v47  ;;  %v565_v48 = vsel %vm11999_vm2, %v560_v23, %v564_v58  ;;  %v317_v17 = vld [vmem:[%s11954_s17 + $0x90] sm:$0xf] }
  0x5d   : > { %10494 = vmatprep.subr.bf16.mxu1 %v11304_v0  ;;  %10367 = vmatmul.mubr.bf16.gmra.mxu0 %v9151_v21  ;;  %v584_v58 = vrot.slane %v583_v49, 4  ;;  %v616_v12 = vrot.slane %v614_v63, 4  ;;  %v636_v49 = vrot.slane %v634_v28, 5  ;;  %v12287_v63 = vld [vmem:[%s11954_s17 + $0xa4] sm:$0x1] }
  0x5e   : > { %10415 = vmatmul.mubr.bf16.gmra.mxu1 %v9175_v31  ;;  %10447 = vmatpush3.bf16.msra.mxu0 %v11298_v39  ;;  %v604_v31 = vshll.u32 %v12218_v18, 16  ;;  %v575_v33 = vsel %vm11999_vm2, %v570_v41, %v574_v4  ;;  %v593_v56 = vor.u32 %v592_v43, %v588_v30  ;;  %v598_v39 = vrot.slane %v596_v46, 5 }
  0x5f   : > { %10418 = vmatprep.mubr.bf16.mxu1 %v9176_v62  ;;  %10448 = vmatprep.subr.bf16.mxu0 %v11303_v9  ;;  %v9152_v51 = vcombine.low %v565_v48, %v575_v33  ;;  %v589_v3 = vsel %vm11999_vm2, %v584_v58, %v588_v30  ;;  %v617_v30 = vor.u32 %v616_v12, %v612_v1  ;;  %v630_v41 = vrot.slane %v628_v15, 5  ;;  %v12269_v48 = vld [vmem:[%s11954_s17 + $0x94] sm:$0xf] }
  0x60   : > { %10495 = vmatpush3.bf16.msra.mxu1 %v11304_v0  ;;  %v606_v62 = vrot.slane %v604_v31, 5  ;;  %v594_v52 = vrot.slane %v593_v56, 4  ;;  %v9178_v0 = vcombine.low %v12218_v18, %v12221_v20  ;;  %v627_v18 = vrot.slane %v625_v8, 4 }
  0x61   : > { %10496 = vmatprep.subr.bf16.mxu1 %v11305_v37  ;;  %10370 = vmatprep.mubr.bf16.mxu0 %v9152_v51  ;;  %v638_v43 = vshrl.u32 %v12248_v57, 16  ;;  %v644_v46 = vshll.u32 %v12257_v7, 16  ;;  %v649_v31 = vshrl.u32 %v317_v17, 16  ;;  %v618_v33 = vrot.slane %v617_v30, 4  ;;  %v12279_v51 = vld [vmem:[%s11954_s17 + $0x9c] sm:$0xf] }
  0x62   : > { %10449 = vmatpush3.bf16.msra.mxu0 %v11303_v9  ;;  %v607_v4 = vor.u32 %v606_v62, %v603_v60  ;;  %v599_v10 = vsel %vm11999_vm2, %v594_v52, %v598_v39  ;;  %v622_v9 = vrot.slane %v620_v2, 5  ;;  %v631_v56 = vor.u32 %v630_v41, %v627_v18 }
  0x63   : > { %10530 = vmatprep.subr.bf16.mxu0 %v12242_v55  ;;  %v9153_v21 = vcombine.low %v589_v3, %v599_v10  ;;  %v640_v39 = vrot.slane %v638_v43, 4  ;;  %v646_v61 = vrot.slane %v644_v46, 5  ;;  %v651_v58 = vrot.slane %v649_v31, 4  ;;  %v321_v43 = vld [vmem:[%s11954_s17 + $0xa8] sm:$0xf] }
  0x64   : > { %10497 = vmatpush3.bf16.msra.mxu1 %v11305_v37  ;;  %v608_v23 = vrot.slane %v607_v4, 4  ;;  %v652_v60 = vshll.u32 %v317_v17, 16  ;;  %v658_v62 = vshll.u32 %v12269_v48, 16  ;;  %v662_v52 = vshrl.u32 %v12269_v48, 16 }
  0x65   : > { %10371 = vmatmul.mubr.bf16.gmra.mxu0 %v9153_v21  ;;  %v632_v2 = vrot.slane %v631_v56, 4  ;;  %v641_v3 = vor.u32 %v640_v39, %v636_v49  ;;  %v668_v4 = vshll.u32 %v12276_v54, 16  ;;  %v9180_v18 = vcombine.low %v317_v17, %v12269_v48  ;;  %v12307_v17 = vld [vmem:[%s11954_s17 + $0xb0] sm:$0x1] }
  0x66   : > { %10419 = vmatmul.mubr.bf16.gmra.mxu1 %v9177_v36  ;;  %v613_v37 = vsel %vm11999_vm2, %v608_v23, %v612_v1  ;;  %v9179_v36 = vcombine.low %v12233_v42, %v12248_v57  ;;  %v12284_v1 = vld [vmem:[%s11954_s17 + $0xa0] sm:$0xf]  ;;  %v623_v42 = vsel %vm11999_vm2, %v618_v33, %v622_v9  ;;  %v654_v8 = vrot.slane %v652_v60, 5  ;;  %v12304_v33 = vld [vmem:[%s11954_s17 + $0xac] sm:$0xf] }
  0x67   : > { %10422 = vmatprep.mubr.bf16.mxu1 %v9178_v0  ;;  %v9154_v0 = vcombine.low %v613_v37, %v623_v42  ;;  %v660_v10 = vrot.slane %v658_v62, 5  ;;  %v664_v12 = vrot.slane %v662_v52, 4  ;;  %v637_v15 = vsel %vm11999_vm2, %v632_v2, %v636_v49 }
  0x68   : > { %v642_v21 = vrot.slane %v641_v3, 4  ;;  %v670_v23 = vrot.slane %v668_v4, 5  ;;  %v655_v9 = vor.u32 %v654_v8, %v651_v58  ;;  %v673_v30 = vshrl.u32 %v12279_v51, 16 }
  0x69   : > { %10374 = vmatprep.mubr.bf16.mxu0 %v9154_v0  ;;  %v665_v28 = vor.u32 %v664_v12, %v660_v10  ;;  %v676_v41 = vshll.u32 %v12279_v51, 16  ;;  %v682_v37 = vshll.u32 %v12284_v1, 16  ;;  %v686_v49 = vshrl.u32 %v12284_v1, 16 }
  0x6a   : > { %v647_v46 = vsel %vm11999_vm2, %v642_v21, %v646_v61  ;;  %v692_v31 = vshll.u32 %v12287_v63, 16  ;;  %v656_v39 = vrot.slane %v655_v9, 4  ;;  %v675_v60 = vrot.slane %v673_v30, 4  ;;  %v12323_v9 = vld [vmem:[%s11954_s17 + $0xb8] sm:$0xf] }
  0x6b   : > { %v9155_v56 = vcombine.low %v637_v15, %v647_v46  ;;  %v666_v58 = vrot.slane %v665_v28, 4  ;;  %v678_v61 = vrot.slane %v676_v41, 5  ;;  %v684_v62 = vrot.slane %v682_v37, 5  ;;  %v12329_v41 = vld [vmem:[%s11954_s17 + $0xbc] sm:$0x1] }
  0x6c   : > { %v688_v52 = vrot.slane %v686_v49, 4  ;;  %v694_v42 = vrot.slane %v692_v31, 5  ;;  %v661_v2 = vsel %vm11999_vm2, %v656_v39, %v660_v10  ;;  %v9181_v4 = vcombine.low %v12279_v51, %v12284_v1  ;;  %v1339_v31 = vld [vmem:[%s11954_s17] sm:$0xe] }
  0x6d   : > { %10375 = vmatmul.mubr.bf16.gmra.mxu0 %v9155_v56  ;;  %v671_v3 = vsel %vm11999_vm2, %v666_v58, %v670_v23  ;;  %v697_v0 = vshrl.u32 %v321_v43, 16  ;;  %v679_v12 = vor.u32 %v678_v61, %v675_v60  ;;  %v700_v21 = vshll.u32 %v321_v43, 16 }
  0x6e   : > { %10423 = vmatmul.mubr.bf16.gmra.mxu1 %v9179_v36  ;;  %v12312_v36 = vld [vmem:[%s16042_s1 + $0x178] sm:$0xff]   ;;  %v9156_v8 = vcombine.low %v661_v2, %v671_v3  ;;  %v689_v15 = vor.u32 %v688_v52, %v684_v62  ;;  %v706_v10 = vshll.u32 %v12304_v33, 16  ;;  %v710_v30 = vshrl.u32 %v12304_v33, 16 }
  0x6f   : > { %10426 = vmatprep.mubr.bf16.mxu1 %v9180_v18  ;;  %10578 = vmatprep.subr.bf16.mxu1 %v12312_v36  ;;  %v323_v18 = vld [vmem:[%s11954_s17 + $0xb4] sm:$0xf]  ;;  %v699_v28 = vrot.slane %v697_v0, 4  ;;  %v716_v23 = vshll.u32 %v12307_v17, 16  ;;  %v680_v51 = vrot.slane %v679_v12, 4  ;;  %v702_v37 = vrot.slane %v700_v21, 5 }
  0x70   : > { %10378 = vmatprep.mubr.bf16.mxu0 %v9156_v8  ;;  %v690_v46 = vrot.slane %v689_v15, 4  ;;  %v9182_v49 = vcombine.low %v321_v43, %v12304_v33  ;;  %v708_v56 = vrot.slane %v706_v10, 5  ;;  %v712_v39 = vrot.slane %v710_v30, 4  ;;  %v1340_v15 = vld [vmem:[%s11954_s17 + $0xc] sm:$0xe] }
  0x71   : > { %v718_v58 = vrot.slane %v716_v23, 5  ;;  %v721_v60 = vshrl.u32 %v323_v18, 16  ;;  %v685_v61 = vsel %vm11999_vm2, %v680_v51, %v684_v62  ;;  %v703_v2 = vor.u32 %v702_v37, %v699_v28  ;;  %v1341_v23 = vld [vmem:[%s11954_s17 + $0x18] sm:$0xe] }
  0x72   : > { %v695_v52 = vsel %vm11999_vm2, %v690_v46, %v694_v42  ;;  %v724_v3 = vshll.u32 %v323_v18, 16  ;;  %v713_v8 = vor.u32 %v712_v39, %v708_v56  ;;  %v730_v12 = vshll.u32 %v12323_v9, 16 }
  0x73   : > { %v9157_v0 = vcombine.low %v685_v61, %v695_v52  ;;  %v723_v43 = vrot.slane %v721_v60, 4  ;;  %v704_v21 = vrot.slane %v703_v2, 4  ;;  %v734_v30 = vshrl.u32 %v12323_v9, 16  ;;  %v1342_v61 = vld [vmem:[%s11954_s17 + $0x24] sm:$0xe] }
  0x74   : > { %v726_v10 = vrot.slane %v724_v3, 5  ;;  %v740_v62 = vshll.u32 %v12329_v41, 16  ;;  %v714_v42 = vrot.slane %v713_v8, 4  ;;  %v9183_v28 = vcombine.low %v323_v18, %v12323_v9 }
  0x75   : > { %10379 = vmatmul.mubr.bf16.gmra.mxu0 %v9157_v0  ;;  %v9192_v51 = vrot.slane %v1339_v31, 9  ;;  %v709_v46 = vsel %vm11999_vm2, %v704_v21, %v708_v56  ;;  %v1392_v18 = vrot.slane %v11964_v13, 5  ;;  %v9193_v31 = vrot.slane %v1340_v15, 9  ;;  %v11307_v56 = vld [vmem:[%s11954_s17 + $0xc] sm:$0xff]  }
  0x76   : > { %10427 = vmatmul.mubr.bf16.gmra.mxu1 %v9181_v4  ;;  %v732_v4 = vrot.slane %v730_v12, 5  ;;  %v727_v37 = vor.u32 %v726_v10, %v723_v43  ;;  %v742_v39 = vrot.slane %v740_v62, 5  ;;  %v719_v52 = vsel %vm11999_vm2, %v714_v42, %v718_v58 }
  0x77   : > { %10430 = vmatprep.mubr.bf16.mxu1 %v9182_v49  ;;  %v736_v49 = vrot.slane %v734_v30, 4  ;;  %v1399_v2 = vrot.slane %v11981_v24, 5  ;;  %v9158_v3 = vcombine.low %v709_v46, %v719_v52  ;;  %v9194_v43 = vrot.slane %v1341_v23, 9  ;;  %v1343_v30 = vld [vmem:[%s11954_s17 + $0x30] sm:$0xe]  ;;  %v11308_v46 = vld [vmem:[%s11954_s17 + $0x18] sm:$0xff]  }
  0x78   : > { %v728_v0 = vrot.slane %v727_v37, 4  ;;  %v1393_v12 = vsel %vm12347_vm5, %v9192_v51, %v1392_v18  ;;  %v1394_v21 = vrot.slane %v1392_v18, 4  ;;  %v1406_v15 = vrot.slane %v12005_v45, 5  ;;  %v1344_v23 = vld [vmem:[%s11954_s17 + $0x3c] sm:$0xe] }
  0x79   : > { %v737_v8 = vor.u32 %v736_v49, %v732_v4  ;;  %v12361_v10 = vsel %vm12347_vm5, %v9193_v31, %v1399_v2  ;;  %v1401_v58 = vrot.slane %v1399_v2, 4  ;;  %10382 = vmatprep.mubr.bf16.mxu0 %v9158_v3  ;;  %v1409_v62 = vrot.slane %v12013_v53, 5  ;;  %v1345_v49 = vld [vmem:[%s11954_s17 + $0x48] sm:$0xe] }
  0x7a   : > { %v733_v13 = vsel %vm11999_vm2, %v728_v0, %v732_v4  ;;  %v1396_v42 = vsel %vm12347_vm5, %v1394_v21, %v1395_v22  ;;  %v9195_v4 = vrot.slane %v1342_v61, 9  ;;  %v1413_v45 = vrot.slane %v12031_v6, 5  ;;  %v11322_v21 = vld [vmem:[%s16042_s1 + $0x170] sm:$0xff]  }
  0x7b   : > { %v738_v24 = vrot.slane %v737_v8, 4  ;;  %v12377_v51 = vsel %vm12347_vm5, %v1401_v58, %v1402_v44  ;;  %v12387_v22 = vsel %vm12347_vm5, %v9194_v43, %v1406_v15  ;;  %v1408_v44 = vrot.slane %v1406_v15, 4  ;;  %v1347_v43 = vld [vmem:[%s11954_s17 + $0x60] sm:$0xe] }
  0x7c   : > { %v9225_v14 = vcombine.low %v12361_v10, %v12377_v51  ;;  %v12391_v37 = vsel %vm12347_vm5, %v9195_v4, %v1413_v45  ;;  %v1415_v6 = vrot.slane %v1413_v45, 4  ;;  %v1416_v61 = vrot.slane %v12041_v11, 5 }
  0x7d   : > { %v743_v53 = vsel %vm11999_vm2, %v738_v24, %v742_v39  ;;  %v1346_v39 = vld [vmem:[%s11954_s17 + $0x54] sm:$0xe]  ;;  %v9196_v52 = vrot.slane %v1343_v30, 9  ;;  %v1420_v18 = vrot.slane %v12055_v29, 5  ;;  %v1423_v31 = vrot.slane %v12063_v35, 5 }
  0x7e   : > { %10431 = vmatmul.mubr.bf16.gmra.mxu1 %v9183_v28  ;;  %v9224_v28 = vcombine.low %v1393_v12, %v1396_v42  ;;  %v9159_v25 = vcombine.low %v733_v13, %v743_v53  ;;  %v1410_v2 = vsel %vm12347_vm5, %v1408_v44, %v1409_v62  ;;  %v9197_v3 = vrot.slane %v1344_v23, 9  ;;  %v1348_v30 = vld [vmem:[%s11954_s17 + $0x6c] sm:$0xe]  ;;  %v11309_v23 = vld [vmem:[%s16042_s1 + $0x130] sm:$0xff]   ;;  %v1350_v44 = vld [vmem:[%s11954_s17 + $0x84] sm:$0xe] }
  0x7f   : > { %10498 = vmatprep.mubr.bf16.mxu1 %v11307_v56  ;;  %v11310_v56 = vld [vmem:[%s11954_s17 + $0x24] sm:$0xff]   ;;  %v1427_v0 = vrot.slane %v12086_v59, 5  ;;  %v1430_v8 = vrot.slane %v12089_v19, 5  ;;  %v9226_v11 = vcombine.low %v12387_v22, %v1410_v2  ;;  %v12407_v29 = vsel %vm12347_vm5, %v1415_v6, %v1416_v61  ;;  %v1349_v22 = vld [vmem:[%s11954_s17 + $0x78] sm:$0xe] }
  0x80   : > { %10383 = vmatmul.mubr.bf16.gmra.mxu0 %v9159_v25  ;;  %v12411_v35 = vsel %vm12347_vm5, %v9196_v52, %v1420_v18  ;;  %v1422_v12 = vrot.slane %v1420_v18, 4  ;;  %v9227_v59 = vcombine.low %v12391_v37, %v12407_v29  ;;  %v9198_v58 = vrot.slane %v1345_v49, 9  ;;  %v11326_v6 = vld [vmem:[%s16042_s1 + $0x168] sm:$0xff]   ;;  %v11313_v49 = vld [vmem:[%s11954_s17 + $0x3c] sm:$0xff]  }
  0x81   : > { %10450 = vmatprep.mubr.bf16.mxu0 %v9224_v28  ;;  %v12420_v19 = vsel %vm12347_vm5, %v9197_v3, %v1427_v0  ;;  %v1429_v10 = vrot.slane %v1427_v0, 4  ;;  %v1434_v24 = vrot.slane %v12112_v27, 5  ;;  %v1437_v15 = vrot.slane %v12118_v34, 5  ;;  %v11311_v34 = vld [vmem:[%s11954_s17 + $0x30] sm:$0xff]   ;;  %v11312_v0 = vld [vmem:[%s16042_s1 + $0x128] sm:$0xff]  }
  0x82   : > { %v12425_v13 = vsel %vm12347_vm5, %v1422_v12, %v1423_v31  ;;  %v9199_v62 = vrot.slane %v1346_v39, 9  ;;  %v1441_v4 = vrot.slane %v12138_v50, 5  ;;  %v1444_v27 = vrot.slane %v12147_v38, 5 }
  0x83   : > { %v9228_v42 = vcombine.low %v12411_v35, %v12425_v13  ;;  %v12436_v51 = vsel %vm12347_vm5, %v1429_v10, %v1430_v8  ;;  %v12446_v53 = vsel %vm12347_vm5, %v9198_v58, %v1434_v24  ;;  %v1436_v28 = vrot.slane %v1434_v24, 4 }
  0x84   : > { %v9229_v45 = vcombine.low %v12420_v19, %v12436_v51  ;;  %v12451_v50 = vsel %vm12347_vm5, %v9199_v62, %v1441_v4  ;;  %v1443_v25 = vrot.slane %v1441_v4, 4  ;;  %v1448_v38 = vrot.slane %v12165_v16, 5  ;;  %v1351_v4 = vld [vmem:[%s11954_s17 + $0x90] sm:$0xe]  ;;  %v11337_v51 = vld [vmem:[%s16042_s1 + $0x140] sm:$0xff]  }
  0x85   : > { %v12462_v39 = vsel %vm12347_vm5, %v1436_v28, %v1437_v15  ;;  %v9201_v61 = vrot.slane %v1348_v30, 9  ;;  %v1455_v52 = vrot.slane %v12187_v47, 5  ;;  %v1458_v18 = vrot.slane %v12207_v5, 5  ;;  %v11327_v47 = vld [vmem:[%s16042_s1 + $0x160] sm:$0xff]   ;;  %v11314_v15 = vld [vmem:[%s11954_s17 + $0x48] sm:$0xff]   ;;  %v11316_v28 = vld [vmem:[%s11954_s17 + $0x54] sm:$0xff]  }
  0x86   : > { %10499 = vmatmul.mubr.bf16.vlgmr.msra.gmra.mxu1 %v11308_v46  ;;  %v9200_v46 = vrot.slane %v1347_v43, 9  ;;  %v9230_v16 = vcombine.low %v12446_v53, %v12462_v39  ;;  %v1450_v2 = vrot.slane %v1448_v38, 4  ;;  %v9202_v3 = vrot.slane %v1349_v22, 9  ;;  %v9323_v53 = vld [vmem:[%s11954_s17 + $0x18] sm:$0xf] }
  0x87   : > { %10502 = vmatprep.mubr.bf16.mxu1 %v11310_v56  ;;  %10579 = vmatpush3.bf16.msra.mxu1 %v12312_v36  ;;  %v1451_v36 = vrot.slane %v12173_v26, 5  ;;  %v12470_v26 = vsel %vm12347_vm5, %v1443_v25, %v1444_v27  ;;  %v1457_v56 = vrot.slane %v1455_v52, 4  ;;  %v1465_v43 = vrot.slane %v12224_v32, 5  ;;  %v11331_v25 = vld [vmem:[%s16042_s1 + $0x158] sm:$0xff]  }
  0x88   : > { %10580 = vmatprep.subr.bf16.mxu1 %v11322_v21  ;;  %10451 = vmatmul.mubr.bf16.vlgmr.msra.gmra.mxu0 %v9225_v14  ;;  %v12474_v31 = vsel %vm12347_vm5, %v9200_v46, %v1448_v38  ;;  %v9231_v5 = vcombine.low %v12451_v50, %v12470_v26  ;;  %v12484_v14 = vsel %vm12347_vm5, %v9201_v61, %v1455_v52  ;;  %v1469_v10 = vrot.slane %v12248_v57, 5  ;;  %v12622_v39 = vld [vmem:[%s11954_s17 + $0x1c] sm:$0xf] }
  0x89   : > { %10531 = vmatpush3.bf16.msra.mxu0 %v12242_v55  ;;  %10454 = vmatprep.mubr.bf16.mxu0 %v9226_v11  ;;  %v12491_v8 = vsel %vm12347_vm5, %v1450_v2, %v1451_v36  ;;  %v1462_v55 = vrot.slane %v12221_v20, 5  ;;  %v9203_v11 = vrot.slane %v1350_v44, 9  ;;  %v1472_v58 = vrot.slane %v12257_v7, 5  ;;  %v11315_v20 = vld [vmem:[%s16042_s1 + $0x120] sm:$0xff]  }
  0x8a   : > { %10532 = vmatprep.subr.bf16.mxu0 %v11309_v23  ;;  %v9232_v12 = vcombine.low %v12474_v31, %v12491_v8  ;;  %v1476_v57 = vrot.slane %v12269_v48, 5  ;;  %v1471_v62 = vrot.slane %v1469_v10, 4  ;;  %v1479_v27 = vrot.slane %v12276_v54, 5  ;;  %v12660_v31 = vld [vmem:[%s16042_s1 + $0x1b8] sm:$0xff]  }
  0x8b   : > { %10581 = vmatpush3.bf16.msra.mxu1 %v11322_v21  ;;  %v12499_v21 = vsel %vm12347_vm5, %v1457_v56, %v1458_v18  ;;  %v12510_v30 = vsel %vm12347_vm5, %v9202_v3, %v1462_v55  ;;  %v1464_v24 = vrot.slane %v1462_v55, 4  ;;  %v12516_v7 = vsel %vm12347_vm5, %v9203_v11, %v1469_v10  ;;  %v1353_v18 = vld [vmem:[%s11954_s17 + $0xa8] sm:$0xe]  ;;  %v11319_v10 = vld [vmem:[%s11954_s17 + $0x6c] sm:$0xff]  }
  0x8c   : > { %10582 = vmatprep.subr.bf16.mxu1 %v11326_v6  ;;  %v9233_v32 = vcombine.low %v12484_v14, %v12499_v21  ;;  %v9204_v22 = vrot.slane %v1351_v4, 9  ;;  %v1478_v48 = vrot.slane %v1476_v57, 4  ;;  %v12533_v54 = vsel %vm12347_vm5, %v1471_v62, %v1472_v58  ;;  %v9321_v62 = vld [vmem:[%s11954_s17 + $0x10] sm:$0xf] }
  0x8d   : > { %10533 = vmatpush3.bf16.msra.mxu0 %v11309_v23  ;;  %v12524_v46 = vsel %vm12347_vm5, %v1464_v24, %v1465_v43  ;;  %v1483_v36 = vrot.slane %v12284_v1, 5  ;;  %v1486_v44 = vrot.slane %v12287_v63, 5  ;;  %v9235_v61 = vcombine.low %v12516_v7, %v12533_v54  ;;  %v11317_v43 = vld [vmem:[%s11954_s17 + $0x60] sm:$0xff]   ;;  %v11328_v24 = vld [vmem:[%s16042_s1 + $0x108] sm:$0xff]  }
  0x8e   : > { %10503 = vmatmul.mubr.bf16.gmra.mxu1 %v11311_v34  ;;  %v1352_v34 = vld [vmem:[%s11954_s17 + $0x9c] sm:$0xe]  ;;  %10534 = vmatprep.subr.bf16.mxu0 %v11312_v0  ;;  %v9234_v38 = vcombine.low %v12510_v30, %v12524_v46  ;;  %v12550_v1 = vsel %vm12347_vm5, %v9204_v22, %v1476_v57  ;;  %v12554_v63 = vsel %vm12347_vm5, %v1478_v48, %v1479_v27  ;;  %v1490_v52 = vrot.slane %v12304_v33, 5  ;;  %v11323_v33 = vld [vmem:[%s16042_s1 + $0x110] sm:$0xff]  }
  0x8f   : > { %10506 = vmatprep.mubr.bf16.mxu1 %v11313_v49  ;;  %10583 = vmatpush3.bf16.msra.mxu1 %v11326_v6  ;;  %v9205_v23 = vrot.slane %v1352_v34, 9  ;;  %v11332_v6 = vld [vmem:[%s16042_s1 + $0x150] sm:$0xff]   ;;  %v11318_v49 = vld [vmem:[%s16042_s1 + $0x118] sm:$0xff]   ;;  %v9236_v37 = vcombine.low %v12550_v1, %v12554_v63  ;;  %v9206_v13 = vrot.slane %v1353_v18, 9  ;;  %v1493_v2 = vrot.slane %v12307_v17, 5 }
  0x90   : > { %10584 = vmatprep.subr.bf16.mxu1 %v11327_v47  ;;  %10455 = vmatmul.mubr.bf16.gmra.mxu0 %v9227_v59  ;;  %v1485_v59 = vrot.slane %v1483_v36, 4  ;;  %v1500_v55 = vrot.slane %v12329_v41, 5  ;;  %v2269_v34 = vshll.u32 %v9321_v62, 16  ;;  %v12764_v63 = vld [vmem:[%s11954_s17 + $0x50] sm:$0x1] }
  0x91   : > { %10458 = vmatprep.mubr.bf16.mxu0 %v9228_v42  ;;  %10535 = vmatpush3.bf16.msra.mxu0 %v11312_v0  ;;  %v12563_v29 = vsel %vm12347_vm5, %v9205_v23, %v1483_v36  ;;  %v1492_v42 = vrot.slane %v1490_v52, 4  ;;  %v1497_v0 = vrot.slane %v12323_v9, 5  ;;  %v12583_v17 = vsel %vm12347_vm5, %v9206_v13, %v1490_v52  ;;  %v11320_v52 = vld [vmem:[%s11954_s17 + $0x78] sm:$0xff]  }
  0x92   : > { %10536 = vmatprep.subr.bf16.mxu0 %v11315_v20  ;;  %v12569_v35 = vsel %vm12347_vm5, %v1485_v59, %v1486_v44  ;;  %v2271_v23 = vrot.slane %v2269_v34, 5  ;;  %v2284_v36 = vshrl.u32 %v9323_v53, 16  ;;  %v2293_v59 = vshll.u32 %v12622_v39, 16 }
  0x93   : > { %10585 = vmatpush3.bf16.msra.mxu1 %v11327_v47  ;;  %v1354_v47 = vld [vmem:[%s11954_s17 + $0xb4] sm:$0xe]  ;;  %v9237_v56 = vcombine.low %v12563_v29, %v12569_v35  ;;  %v12587_v11 = vsel %vm12347_vm5, %v1492_v42, %v1493_v2  ;;  %v1499_v58 = vrot.slane %v1497_v0, 4  ;;  %v2297_v42 = vshrl.u32 %v12622_v39, 16 }
  0x94   : > { %10586 = vmatprep.subr.bf16.mxu1 %v11331_v25  ;;  %v9207_v3 = vrot.slane %v1354_v47, 9  ;;  %v9238_v9 = vcombine.low %v12583_v17, %v12587_v11  ;;  %v2286_v13 = vrot.slane %v2284_v36, 4  ;;  %v11333_v47 = vld [vmem:[%s16042_s1 + $0x100] sm:$0xff]  }
  0x95   : > { %10537 = vmatpush3.bf16.msra.mxu0 %v11315_v20  ;;  %v11336_v20 = vld [vmem:[%s16042_s1 + $0x148] sm:$0xff]   ;;  %v12607_v57 = vsel %vm12347_vm5, %v1499_v58, %v1500_v55  ;;  %v2295_v55 = vrot.slane %v2293_v59, 5  ;;  %v2299_v58 = vrot.slane %v2297_v42, 4  ;;  %v9341_v17 = vld [vmem:[%s11954_s17 + $0x60] sm:$0xf] }
  0x96   : > { %10507 = vmatmul.mubr.bf16.gmra.mxu1 %v11314_v15  ;;  %10538 = vmatprep.subr.bf16.mxu0 %v11318_v49  ;;  %v12594_v41 = vsel %vm12347_vm5, %v9207_v3, %v1497_v0  ;;  %v9320_v15 = vld [vmem:[%s11954_s17 + $0xc] sm:$0xf] }
  0x97   : > { %10510 = vmatprep.mubr.bf16.mxu1 %v11316_v28  ;;  %10587 = vmatpush3.bf16.msra.mxu1 %v11331_v25  ;;  %v9239_v19 = vcombine.low %v12594_v41, %v12607_v57  ;;  %v2260_v4 = vshrl.u32 %v9320_v15, 16  ;;  %v2263_v27 = vshll.u32 %v9320_v15, 16  ;;  %v2273_v28 = vshrl.u32 %v9321_v62, 16  ;;  %v12625_v25 = vld [vmem:[%s11954_s17 + $0x20] sm:$0x1] }
  0x98   : > { %10588 = vmatprep.subr.bf16.mxu1 %v11332_v6  ;;  %10459 = vmatmul.mubr.bf16.gmra.mxu0 %v9229_v45  ;;  %v9322_v45 = vld [vmem:[%s11954_s17 + $0x14] sm:$0x1]  ;;  %v2303_v2 = vshll.u32 %v12625_v25, 16  ;;  %v2300_v26 = vor.u32 %v2299_v58, %v2295_v55 }
  0x99   : > { %10462 = vmatprep.mubr.bf16.mxu0 %v9230_v16  ;;  %10539 = vmatpush3.bf16.msra.mxu0 %v11318_v49  ;;  %v2279_v22 = vshll.u32 %v9322_v45, 16  ;;  %v2262_v16 = vrot.slane %v2260_v4, 4  ;;  %v2265_v48 = vrot.slane %v2263_v27, 5  ;;  %v2275_v44 = vrot.slane %v2273_v28, 4  ;;  %v9409_v4 = vld [vmem:[%s11954_s17 + $0x18] sm:$0xe] }
  0x9a   : > { %10540 = vmatprep.subr.bf16.mxu0 %v11323_v33  ;;  %v2287_v49 = vshll.u32 %v9323_v53, 16  ;;  %v11324_v27 = vld [vmem:[%s11954_s17 + $0x84] sm:$0xff]   ;;  %v3034_v53 = vrot.slane %v9322_v45, 5  ;;  %v2301_v36 = vrot.slane %v2300_v26, 4  ;;  %v11325_v58 = vld [vmem:[%s11954_s17 + $0x90] sm:$0xff]  }
  0x9b   : > { %10589 = vmatpush3.bf16.msra.mxu1 %v11332_v6  ;;  %v2281_v6 = vrot.slane %v2279_v22, 5  ;;  %v2266_v18 = vor.u32 %v2265_v48, %v2262_v16  ;;  %v2276_v3 = vor.u32 %v2275_v44, %v2271_v23  ;;  %v9326_v45 = vld [vmem:[%s11954_s17 + $0x24] sm:$0xf] }
  0x9c   : > { %10590 = vmatprep.subr.bf16.mxu1 %v11336_v20  ;;  %v2289_v0 = vrot.slane %v2287_v49, 5  ;;  %v12677_v49 = vld [vmem:[%s11954_s17 + $0x2c] sm:$0x1] }
  0x9d   : > { %10541 = vmatpush3.bf16.msra.mxu0 %v11323_v33  ;;  %v2267_v33 = vrot.slane %v2266_v18, 4  ;;  %v2277_v34 = vrot.slane %v2276_v3, 4  ;;  %v2308_v18 = vshrl.u32 %v9326_v45, 16 }
  0x9e   : > { %10511 = vmatmul.mubr.bf16.gmra.mxu1 %v11317_v43  ;;  %10542 = vmatprep.subr.bf16.mxu0 %v11328_v24  ;;  %v9408_v43 = vld [vmem:[%s11954_s17 + $0xc] sm:$0xe]  ;;  %v2290_v28 = vor.u32 %v2289_v0, %v2286_v13  ;;  %v9329_v13 = vld [vmem:[%s11954_s17 + $0x30] sm:$0xf]  ;;  %v9330_v0 = vld [vmem:[%s11954_s17 + $0x34] sm:$0xf] }
  0x9f   : > { %10514 = vmatprep.mubr.bf16.mxu1 %v11319_v10  ;;  %10591 = vmatpush3.bf16.msra.mxu1 %v11336_v20  ;;  %v3031_v10 = vrot.slane %v9321_v62, 5  ;;  %v2305_v20 = vrot.slane %v2303_v2, 5  ;;  %v9424_v15 = vrot.slane %v9408_v43, 9  ;;  %v12643_v62 = vld [vmem:[%s16042_s1 + $0x1f8] sm:$0xff]   ;;  %v2272_v50 = vsel %vm11999_vm2, %v2267_v33, %v2271_v23 }
  0xa0   : > { %10592 = vmatprep.subr.bf16.mxu1 %v11337_v51  ;;  %10463 = vmatmul.mubr.bf16.gmra.mxu0 %v9231_v5  ;;  %v2282_v16 = vsel %vm11999_vm2, %v2277_v34, %v2281_v6  ;;  %v2291_v48 = vrot.slane %v2290_v28, 4  ;;  %v3041_v6 = vrot.slane %v12625_v25, 5  ;;  %v2311_v25 = vshll.u32 %v9326_v45, 16  ;;  %v9331_v33 = vld [vmem:[%s11954_s17 + $0x38] sm:$0x1]  ;;  %v11329_v28 = vld [vmem:[%s11954_s17 + $0x9c] sm:$0xff]  }
  0xa1   : > { %v3033_v22 = vrot.slane %v3031_v10, 4  ;;  %10466 = vmatprep.mubr.bf16.mxu0 %v9232_v12  ;;  %10543 = vmatpush3.bf16.msra.mxu0 %v11328_v24  ;;  %v12652_v5 = vsel %vm12347_vm5, %v9424_v15, %v3031_v10  ;;  %v3038_v12 = vrot.slane %v12622_v39, 5  ;;  %v12668_v24 = vld [vmem:[%s11954_s17 + $0x28] sm:$0xf]  ;;  %v12671_v23 = vcombine.low %v2272_v50, %v2282_v16  ;;  %v9410_v34 = vld [vmem:[%s11954_s17 + $0x24] sm:$0xe] }
  0xa2   : > { %10544 = vmatprep.subr.bf16.mxu0 %v11333_v47  ;;  %v2296_v39 = vsel %vm11999_vm2, %v2291_v48, %v2295_v55  ;;  %v2306_v42 = vsel %vm11999_vm2, %v2301_v36, %v2305_v20  ;;  %v2317_v2 = vshll.u32 %v12668_v24, 16  ;;  %v2321_v3 = vshrl.u32 %v12668_v24, 16 }
  0xa3   : > { %10593 = vmatpush3.bf16.msra.mxu1 %v11337_v51  ;;  %v9425_v51 = vrot.slane %v9409_v4, 9  ;;  %v12664_v8 = vsel %vm12347_vm5, %v3033_v22, %v3034_v53  ;;  %v12691_v55 = vcombine.low %v2296_v39, %v2306_v42  ;;  %v2327_v10 = vshll.u32 %v12677_v49, 16 }
  0xa4   : > { %10674 = vmatprep.subr.bf16.mxu1 %v12643_v62  ;;  %v9456_v44 = vcombine.low %v12652_v5, %v12664_v8  ;;  %v2313_v15 = vrot.slane %v2311_v25, 5  ;;  %v2319_v4 = vrot.slane %v2317_v2, 5  ;;  %v2332_v53 = vshrl.u32 %v9329_v13, 16 }
  0xa5   : > { %v12683_v59 = vsel %vm12347_vm5, %v9425_v51, %v3038_v12  ;;  %10545 = vmatpush3.bf16.msra.mxu0 %v11333_v47  ;;  %v2310_v47 = vrot.slane %v2308_v18, 4  ;;  %v2329_v22 = vrot.slane %v2327_v10, 5  ;;  %v2335_v50 = vshll.u32 %v9329_v13, 16  ;;  %v11330_v10 = vld [vmem:[%s11954_s17 + $0xa8] sm:$0xff]  }
  0xa6   : > { %10515 = vmatmul.mubr.bf16.gmra.mxu1 %v11320_v52  ;;  %v3040_v52 = vrot.slane %v3038_v12, 4  ;;  %10626 = vmatprep.subr.bf16.mxu0 %v12660_v31  ;;  %v2341_v26 = vshll.u32 %v9330_v0, 16  ;;  %v2345_v16 = vshrl.u32 %v9330_v0, 16  ;;  %v2351_v48 = vshll.u32 %v9331_v33, 16  ;;  %v9411_v12 = vld [vmem:[%s11954_s17 + $0x30] sm:$0xe] }
  0xa7   : > { %10518 = vmatprep.mubr.bf16.mxu1 %v11324_v27  ;;  %v2323_v27 = vrot.slane %v2321_v3, 4  ;;  %v2314_v51 = vor.u32 %v2313_v15, %v2310_v47  ;;  %v2334_v36 = vrot.slane %v2332_v53, 4  ;;  %v9426_v14 = vrot.slane %v9410_v34, 9  ;;  %v9332_v47 = vld [vmem:[%s11954_s17 + $0x3c] sm:$0xf] }
  0xa8   : > { %v12696_v43 = vsel %vm12347_vm5, %v3040_v52, %v3041_v6  ;;  %10467 = vmatmul.mubr.bf16.gmra.mxu0 %v9233_v32  ;;  %v2337_v6 = vrot.slane %v2335_v50, 5  ;;  %v2343_v39 = vrot.slane %v2341_v26, 5  ;;  %v2347_v52 = vrot.slane %v2345_v16, 4  ;;  %v12733_v53 = vld [vmem:[%s11954_s17 + $0x44] sm:$0x1] }
  0xa9   : > { %v9457_v20 = vcombine.low %v12683_v59, %v12696_v43  ;;  %10470 = vmatprep.mubr.bf16.mxu0 %v9234_v38  ;;  %v2324_v45 = vor.u32 %v2323_v27, %v2319_v4  ;;  %v2315_v21 = vrot.slane %v2314_v51, 4  ;;  %v2353_v18 = vrot.slane %v2351_v48, 5  ;;  %v9333_v27 = vld [vmem:[%s11954_s17 + $0x40] sm:$0xf]  ;;  %v9335_v16 = vld [vmem:[%s11954_s17 + $0x48] sm:$0xf] }
  0xaa   : > { %v2338_v30 = vor.u32 %v2337_v6, %v2334_v36  ;;  %v3045_v46 = vrot.slane %v12668_v24, 5  ;;  %v3048_v38 = vrot.slane %v12677_v49, 5  ;;  %v9427_v13 = vrot.slane %v9411_v12, 9  ;;  %v12746_v48 = vld [vmem:[%s11954_s17 + $0x4c] sm:$0xf] }
  0xab   : > { %v2325_v32 = vrot.slane %v2324_v45, 4  ;;  %v2320_v42 = vsel %vm11999_vm2, %v2315_v21, %v2319_v4  ;;  %v2348_v2 = vor.u32 %v2347_v52, %v2343_v39  ;;  %v3052_v3 = vrot.slane %v9330_v0, 5  ;;  %v11334_v4 = vld [vmem:[%s11954_s17 + $0xb4] sm:$0xff]  }
  0xac   : > { %v2339_v15 = vrot.slane %v2338_v30, 4  ;;  %v12724_v24 = vsel %vm12347_vm5, %v9426_v14, %v3045_v46  ;;  %v3047_v49 = vrot.slane %v3045_v46, 4  ;;  %v2356_v51 = vshrl.u32 %v9332_v47, 16  ;;  %v9412_v46 = vld [vmem:[%s11954_s17 + $0x3c] sm:$0xe] }
  0xad   : > { %v2330_v25 = vsel %vm11999_vm2, %v2325_v32, %v2329_v22  ;;  %v2349_v34 = vrot.slane %v2348_v2, 4  ;;  %v3054_v0 = vrot.slane %v3052_v3, 4  ;;  %v3055_v22 = vrot.slane %v9331_v33, 5 }
  0xae   : > { %10519 = vmatmul.mubr.bf16.gmra.mxu1 %v11325_v58  ;;  %v12720_v58 = vcombine.low %v2320_v42, %v2330_v25  ;;  %v2344_v50 = vsel %vm11999_vm2, %v2339_v15, %v2343_v39  ;;  %v12742_v26 = vsel %vm12347_vm5, %v3047_v49, %v3048_v38  ;;  %v2359_v45 = vshll.u32 %v9332_v47, 16  ;;  %v9413_v15 = vld [vmem:[%s11954_s17 + $0x48] sm:$0xe]  ;;  %v11335_v49 = vld [vmem:[%s11954_s17 + $0xc0] sm:$0xff]  }
  0xaf   : > { %10522 = vmatprep.mubr.bf16.mxu1 %v11329_v28  ;;  %v12730_v28 = vsel %vm12347_vm5, %v9427_v13, %v3052_v3  ;;  %v2354_v7 = vsel %vm11999_vm2, %v2349_v34, %v2353_v18  ;;  %v9458_v54 = vcombine.low %v12724_v24, %v12742_v26  ;;  %v2365_v33 = vshll.u32 %v9333_v27, 16  ;;  %v12869_v24 = vld [vmem:[%s11954_s17 + $0x74] sm:$0x1]  ;;  %v11346_v26 = vld [vmem:[%s16042_s1 + $0x1e8] sm:$0xff]  }
  0xb0   : > { %10471 = vmatmul.mubr.bf16.gmra.mxu0 %v9235_v61  ;;  %v12757_v61 = vsel %vm12347_vm5, %v3054_v0, %v3055_v22  ;;  %v12759_v12 = vcombine.low %v2344_v50, %v2354_v7  ;;  %v2358_v6 = vrot.slane %v2356_v51, 4  ;;  %v2361_v1 = vrot.slane %v2359_v45, 5  ;;  %v9338_v7 = vld [vmem:[%s11954_s17 + $0x54] sm:$0xf] }
  0xb1   : > { %10474 = vmatprep.mubr.bf16.mxu0 %v9236_v37  ;;  %v9459_v36 = vcombine.low %v12730_v28, %v12757_v61  ;;  %v2367_v37 = vrot.slane %v2365_v33, 5  ;;  %v2369_v39 = vshrl.u32 %v9333_v27, 16  ;;  %v2375_v14 = vshll.u32 %v12733_v53, 16  ;;  %v11341_v28 = vld [vmem:[%s16042_s1 + $0x1a0] sm:$0xff]  }
  0xb2   : > { %v2380_v21 = vshrl.u32 %v9335_v16, 16  ;;  %v2362_v32 = vor.u32 %v2361_v1, %v2358_v6  ;;  %v2383_v52 = vshll.u32 %v9335_v16, 16  ;;  %v2389_v18 = vshll.u32 %v12746_v48, 16  ;;  %v12791_v6 = vld [vmem:[%s11954_s17 + $0x5c] sm:$0x1] }
  0xb3   : > { %v2393_v30 = vshrl.u32 %v12746_v48, 16  ;;  %v2371_v38 = vrot.slane %v2369_v39, 4  ;;  %v2377_v13 = vrot.slane %v2375_v14, 5  ;;  %v2399_v25 = vshll.u32 %v12764_v63, 16 }
  0xb4   : > { %v2382_v42 = vrot.slane %v2380_v21, 4  ;;  %v2363_v2 = vrot.slane %v2362_v32, 4  ;;  %v2385_v3 = vrot.slane %v2383_v52, 5  ;;  %v2391_v47 = vrot.slane %v2389_v18, 5  ;;  %v12803_v32 = vld [vmem:[%s11954_s17 + $0x64] sm:$0xf] }
  0xb5   : > { %v2401_v34 = vrot.slane %v2399_v25, 5  ;;  %v9428_v0 = vrot.slane %v9412_v46, 9  ;;  %v3059_v22 = vrot.slane %v9333_v27, 5  ;;  %v3062_v16 = vrot.slane %v12733_v53, 5 }
  0xb6   : > { %10523 = vmatmul.mubr.bf16.gmra.mxu1 %v11330_v10  ;;  %v2395_v10 = vrot.slane %v2393_v30, 4  ;;  %v2368_v50 = vsel %vm11999_vm2, %v2363_v2, %v2367_v37  ;;  %v2386_v51 = vor.u32 %v2385_v3, %v2382_v42  ;;  %v9429_v35 = vrot.slane %v9413_v15, 9  ;;  %v12830_v2 = vld [vmem:[%s11954_s17 + $0x68] sm:$0x1]  ;;  %v11344_v15 = vld [vmem:[%s16042_s1 + $0x1f0] sm:$0xff]  }
  0xb7   : > { %10526 = vmatprep.mubr.bf16.mxu1 %v11334_v4  ;;  %v2372_v4 = vor.u32 %v2371_v38, %v2367_v37  ;;  %v12785_v27 = vsel %vm12347_vm5, %v9428_v0, %v3059_v22  ;;  %v3061_v29 = vrot.slane %v3059_v22, 4  ;;  %v3066_v53 = vrot.slane %v12746_v48, 5  ;;  %v9414_v22 = vld [vmem:[%s11954_s17 + $0x54] sm:$0xe] }
  0xb8   : > { %10475 = vmatmul.mubr.bf16.gmra.mxu0 %v9237_v56  ;;  %v2396_v45 = vor.u32 %v2395_v10, %v2391_v47  ;;  %v12788_v56 = vld [vmem:[%s11954_s17 + $0x58] sm:$0xf]  ;;  %v2387_v1 = vrot.slane %v2386_v51, 4  ;;  %v3069_v39 = vrot.slane %v12764_v63, 5  ;;  %v2404_v14 = vshrl.u32 %v9338_v7, 16 }
  0xb9   : > { %10478 = vmatprep.mubr.bf16.mxu0 %v9238_v9  ;;  %v2373_v33 = vrot.slane %v2372_v4, 4  ;;  %v12800_v9 = vsel %vm12347_vm5, %v3061_v29, %v3062_v16  ;;  %v2407_v21 = vshll.u32 %v9338_v7, 16  ;;  %v12820_v46 = vsel %vm12347_vm5, %v9429_v35, %v3066_v53 }
  0xba   : > { %v2397_v37 = vrot.slane %v2396_v45, 4  ;;  %v2392_v63 = vsel %vm11999_vm2, %v2387_v1, %v2391_v47  ;;  %v9460_v18 = vcombine.low %v12785_v27, %v12800_v9  ;;  %v3068_v38 = vrot.slane %v3066_v53, 4  ;;  %v11339_v53 = vld [vmem:[%s16042_s1 + $0x1b0] sm:$0xff]   ;;  %v9417_v27 = vld [vmem:[%s11954_s17 + $0x78] sm:$0xe] }
  0xbb   : > { %v2378_v11 = vsel %vm11999_vm2, %v2373_v33, %v2377_v13  ;;  %v2406_v5 = vrot.slane %v2404_v14, 4  ;;  %v2409_v8 = vrot.slane %v2407_v21, 5  ;;  %v2417_v13 = vshrl.u32 %v12788_v56, 16 }
  0xbc   : > { %v12808_v48 = vcombine.low %v2368_v50, %v2378_v11  ;;  %v2402_v52 = vsel %vm11999_vm2, %v2397_v37, %v2401_v34  ;;  %v2423_v42 = vshll.u32 %v12791_v6, 16  ;;  %v12827_v25 = vsel %vm12347_vm5, %v3068_v38, %v3069_v39  ;;  %v9415_v50 = vld [vmem:[%s11954_s17 + $0x60] sm:$0xe]  ;;  %v9344_v37 = vld [vmem:[%s11954_s17 + $0x6c] sm:$0xf] }
  0xbd   : > { %v12816_v30 = vcombine.low %v2392_v63, %v2402_v52  ;;  %v2428_v3 = vshrl.u32 %v9341_v17, 16  ;;  %v2431_v47 = vshll.u32 %v9341_v17, 16  ;;  %v2437_v10 = vshll.u32 %v12803_v32, 16  ;;  %v12861_v17 = vld [vmem:[%s11954_s17 + $0x70] sm:$0xf] }
  0xbe   : > { %10527 = vmatmul.mubr.bf16.gmra.mxu1 %v11335_v49  ;;  %v9461_v49 = vcombine.low %v12820_v46, %v12827_v25  ;;  %v2410_v4 = vor.u32 %v2409_v8, %v2406_v5  ;;  %v2419_v0 = vrot.slane %v2417_v13, 4  ;;  %v2425_v51 = vrot.slane %v2423_v42, 5 }
  0xbf   : > { %10594 = vmatprep.mubr.bf16.mxu1 %v9456_v44  ;;  %v2413_v44 = vshll.u32 %v12788_v56, 16  ;;  %v2430_v45 = vrot.slane %v2428_v3, 4  ;;  %v2433_v16 = vrot.slane %v2431_v47, 5  ;;  %v2439_v7 = vrot.slane %v2437_v10, 5 }
  0xc0   : > { %10479 = vmatmul.mubr.bf16.gmra.mxu0 %v9239_v19  ;;  %v2411_v33 = vrot.slane %v2410_v4, 4  ;;  %v2441_v41 = vshrl.u32 %v12803_v32, 16  ;;  %v2447_v57 = vshll.u32 %v12830_v2, 16  ;;  %v9430_v35 = vrot.slane %v9414_v22, 9 }
  0xc1   : > { %v2415_v34 = vrot.slane %v2413_v44, 5  ;;  %10546 = vmatprep.mubr.bf16.mxu0 %v12671_v23  ;;  %v2434_v19 = vor.u32 %v2433_v16, %v2430_v45  ;;  %v3073_v23 = vrot.slane %v12788_v56, 5  ;;  %v3076_v1 = vrot.slane %v12791_v6, 5  ;;  %v9347_v44 = vld [vmem:[%s11954_s17 + $0x78] sm:$0xf] }
  0xc2   : > { %v2449_v39 = vrot.slane %v2447_v57, 5  ;;  %v9431_v14 = vrot.slane %v9415_v50, 9  ;;  %v3083_v63 = vrot.slane %v12830_v2, 5  ;;  %v2452_v8 = vshrl.u32 %v9344_v37, 16  ;;  %v12915_v50 = vld [vmem:[%s11954_s17 + $0x80] sm:$0x1] }
  0xc3   : > { %v2420_v29 = vor.u32 %v2419_v0, %v2415_v34  ;;  %v2416_v59 = vsel %vm11999_vm2, %v2411_v33, %v2415_v34  ;;  %v2435_v56 = vrot.slane %v2434_v19, 4  ;;  %v12866_v6 = vsel %vm12347_vm5, %v9430_v35, %v3073_v23  ;;  %v12905_v0 = vld [vmem:[%s11954_s17 + $0x7c] sm:$0xf] }
  0xc4   : > { %v3075_v11 = vrot.slane %v3073_v23, 4  ;;  %v2454_v47 = vrot.slane %v2452_v8, 4  ;;  %v2455_v10 = vshll.u32 %v9344_v37, 16  ;;  %v2461_v4 = vshll.u32 %v12861_v17, 16 }
  0xc5   : > { %v2421_v43 = vrot.slane %v2420_v29, 4  ;;  %v2440_v38 = vsel %vm11999_vm2, %v2435_v56, %v2439_v7  ;;  %v2465_v34 = vshrl.u32 %v12861_v17, 16  ;;  %v2479_v19 = vshll.u32 %v9347_v44, 16 }
  0xc6   : > { %10595 = vmatmul.mubr.bf16.vlgmr.msra.gmra.mxu1 %v9457_v20  ;;  %v2443_v20 = vrot.slane %v2441_v41, 4  ;;  %v12884_v5 = vsel %vm12347_vm5, %v3075_v11, %v3076_v1  ;;  %v2463_v33 = vrot.slane %v2461_v4, 5  ;;  %v2489_v35 = vshrl.u32 %v12905_v0, 16  ;;  %v9353_v4 = vld [vmem:[%s11954_s17 + $0x90] sm:$0xf] }
  0xc7   : > { %10598 = vmatprep.mubr.bf16.mxu1 %v9458_v54  ;;  %10675 = vmatpush3.bf16.msra.mxu1 %v12643_v62  ;;  %v2426_v54 = vsel %vm11999_vm2, %v2421_v43, %v2425_v51  ;;  %v3080_v62 = vrot.slane %v12803_v32, 5  ;;  %v11340_v32 = vld [vmem:[%s16042_s1 + $0x1a8] sm:$0xff]   ;;  %v9462_v42 = vcombine.low %v12866_v6, %v12884_v5  ;;  %v2467_v29 = vrot.slane %v2465_v34, 4 }
  0xc8   : > { %10676 = vmatprep.subr.bf16.mxu1 %v11344_v15  ;;  %v2444_v21 = vor.u32 %v2443_v20, %v2439_v7  ;;  %v12878_v52 = vcombine.low %v2416_v59, %v2426_v54  ;;  %10547 = vmatmul.mubr.bf16.vlgmr.msra.gmra.mxu0 %v12691_v55  ;;  %v11347_v55 = vld [vmem:[%s16042_s1 + $0x1e0] sm:$0xff]   ;;  %v9416_v51 = vld [vmem:[%s11954_s17 + $0x6c] sm:$0xe]  ;;  %v2457_v7 = vrot.slane %v2455_v10, 5  ;;  %v2495_v23 = vshll.u32 %v12915_v50, 16  ;;  %v11349_v59 = vld [vmem:[%s16042_s1 + $0x1d8] sm:$0xff]  }
  0xc9   : > { %v12895_v2 = vsel %vm12347_vm5, %v9431_v14, %v3080_v62  ;;  %v3082_v3 = vrot.slane %v3080_v62, 4  ;;  %10627 = vmatpush3.bf16.msra.mxu0 %v12660_v31  ;;  %10550 = vmatprep.mubr.bf16.mxu0 %v12720_v58  ;;  %v2471_v31 = vshll.u32 %v12869_v24, 16  ;;  %v2476_v58 = vshrl.u32 %v9347_v44, 16 }
  0xca   : > { %v2445_v13 = vrot.slane %v2444_v21, 4  ;;  %10628 = vmatprep.subr.bf16.mxu0 %v11339_v53  ;;  %v2458_v61 = vor.u32 %v2457_v7, %v2454_v47  ;;  %v2468_v9 = vor.u32 %v2467_v29, %v2463_v33  ;;  %v9432_v1 = vrot.slane %v9416_v51, 9  ;;  %v12970_v47 = vld [vmem:[%s11954_s17 + $0x8c] sm:$0x1]  ;;  %v13004_v29 = vld [vmem:[%s11954_s17 + $0x98] sm:$0x1] }
  0xcb   : > { %10677 = vmatpush3.bf16.msra.mxu1 %v11344_v15  ;;  %v12911_v22 = vsel %vm12347_vm5, %v3082_v3, %v3083_v63  ;;  %v2473_v41 = vrot.slane %v2471_v31, 5  ;;  %v2478_v57 = vrot.slane %v2476_v58, 4  ;;  %v3087_v37 = vrot.slane %v12861_v17, 5  ;;  %v11350_v63 = vld [vmem:[%s16042_s1 + $0x1d0] sm:$0xff]  }
  0xcc   : > { %v2450_v15 = vsel %vm11999_vm2, %v2445_v13, %v2449_v39  ;;  %10678 = vmatprep.subr.bf16.mxu1 %v11346_v26  ;;  %v9463_v16 = vcombine.low %v12895_v2, %v12911_v22  ;;  %v2459_v43 = vrot.slane %v2458_v61, 4  ;;  %v2491_v39 = vrot.slane %v2489_v35, 4 }
  0xcd   : > { %v12921_v45 = vcombine.low %v2440_v38, %v2450_v15  ;;  %10629 = vmatpush3.bf16.msra.mxu0 %v11339_v53  ;;  %v9350_v53 = vld [vmem:[%s11954_s17 + $0x84] sm:$0xf]  ;;  %v2497_v56 = vrot.slane %v2495_v23, 5  ;;  %v2469_v11 = vrot.slane %v2468_v9, 4  ;;  %v3089_v54 = vrot.slane %v3087_v37, 4  ;;  %v11345_v15 = vld [vmem:[%s16042_s1 + $0x190] sm:$0xff]  }
  0xce   : > { %10599 = vmatmul.mubr.bf16.gmra.mxu1 %v9459_v36  ;;  %v2485_v36 = vshll.u32 %v12905_v0, 16  ;;  %10630 = vmatprep.subr.bf16.mxu0 %v11340_v32  ;;  %v2464_v17 = vsel %vm11999_vm2, %v2459_v43, %v2463_v33  ;;  %v3090_v62 = vrot.slane %v12869_v24, 5  ;;  %v3094_v44 = vrot.slane %v12905_v0, 5  ;;  %v12984_v0 = vld [vmem:[%s11954_s17 + $0x94] sm:$0xf] }
  0xcf   : > { %10602 = vmatprep.mubr.bf16.mxu1 %v9460_v18  ;;  %10679 = vmatpush3.bf16.msra.mxu1 %v11346_v26  ;;  %v2481_v18 = vrot.slane %v2479_v19, 5  ;;  %v12943_v26 = vsel %vm12347_vm5, %v9432_v1, %v3087_v37  ;;  %v2474_v38 = vsel %vm11999_vm2, %v2469_v11, %v2473_v41  ;;  %v3097_v24 = vrot.slane %v12915_v50, 5  ;;  %v11352_v50 = vld [vmem:[%s16042_s1 + $0x1c8] sm:$0xff]   ;;  %v9418_v41 = vld [vmem:[%s11954_s17 + $0x84] sm:$0xe] }
  0xd0   : > { %10680 = vmatprep.subr.bf16.mxu1 %v11347_v55  ;;  %v2487_v20 = vrot.slane %v2485_v36, 5  ;;  %10551 = vmatmul.mubr.bf16.gmra.mxu0 %v12759_v12  ;;  %v9433_v12 = vrot.slane %v9417_v27, 9  ;;  %v12965_v13 = vcombine.low %v2464_v17, %v2474_v38  ;;  %v2500_v10 = vshrl.u32 %v9350_v53, 16  ;;  %v9419_v36 = vld [vmem:[%s11954_s17 + $0x90] sm:$0xe] }
  0xd1   : > { %v2482_v14 = vor.u32 %v2481_v18, %v2478_v57  ;;  %10554 = vmatprep.mubr.bf16.mxu0 %v12808_v48  ;;  %10631 = vmatpush3.bf16.msra.mxu0 %v11340_v32  ;;  %v11342_v48 = vld [vmem:[%s16042_s1 + $0x198] sm:$0xff]   ;;  %v12960_v32 = vld [vmem:[%s11954_s17 + $0x88] sm:$0xf]  ;;  %v2519_v33 = vshll.u32 %v12970_v47, 16  ;;  %v2524_v61 = vshrl.u32 %v9353_v4, 16  ;;  %v2527_v27 = vshll.u32 %v9353_v4, 16 }
  0xd2   : > { %v2492_v21 = vor.u32 %v2491_v39, %v2487_v20  ;;  %10632 = vmatprep.subr.bf16.mxu0 %v11341_v28  ;;  %v12981_v25 = vsel %vm12347_vm5, %v9433_v12, %v3094_v44  ;;  %v2502_v5 = vrot.slane %v2500_v10, 4  ;;  %v2509_v31 = vshll.u32 %v12960_v32, 16  ;;  %v13044_v10 = vld [vmem:[%s11954_s17 + $0xa4] sm:$0x1] }
  0xd3   : > { %10681 = vmatpush3.bf16.msra.mxu1 %v11347_v55  ;;  %v2483_v8 = vrot.slane %v2482_v14, 4  ;;  %v3091_v55 = vsel %vm12347_vm5, %v3089_v54, %v3090_v62  ;;  %v2513_v7 = vshrl.u32 %v12960_v32, 16  ;;  %v2521_v23 = vrot.slane %v2519_v33, 5 }
  0xd4   : > { %10682 = vmatprep.subr.bf16.mxu1 %v11349_v59  ;;  %v2493_v3 = vrot.slane %v2492_v21, 4  ;;  %v9464_v46 = vcombine.low %v12943_v26, %v3091_v55  ;;  %v2533_v9 = vshll.u32 %v12984_v0, 16  ;;  %v2526_v1 = vrot.slane %v2524_v61, 4 }
  0xd5   : > { %v2488_v34 = vsel %vm11999_vm2, %v2483_v8, %v2487_v20  ;;  %10633 = vmatpush3.bf16.msra.mxu0 %v11341_v28  ;;  %v2511_v28 = vrot.slane %v2509_v31, 5  ;;  %v2515_v35 = vrot.slane %v2513_v7, 4  ;;  %v2537_v37 = vshrl.u32 %v12984_v0, 16  ;;  %v13057_v31 = vld [vmem:[%s11954_s17 + $0xac] sm:$0xf] }
  0xd6   : > { %10603 = vmatmul.mubr.bf16.gmra.mxu1 %v9461_v49  ;;  %v3096_v49 = vrot.slane %v3094_v44, 4  ;;  %v2498_v6 = vsel %vm11999_vm2, %v2493_v3, %v2497_v56  ;;  %10634 = vmatprep.subr.bf16.mxu0 %v11342_v48  ;;  %v2529_v43 = vrot.slane %v2527_v27, 5  ;;  %v2535_v20 = vrot.slane %v2533_v9, 5  ;;  %v9356_v56 = vld [vmem:[%s11954_s17 + $0x9c] sm:$0xf] }
  0xd7   : > { %10606 = vmatprep.mubr.bf16.mxu1 %v9462_v42  ;;  %10683 = vmatpush3.bf16.msra.mxu1 %v11349_v59  ;;  %v2503_v42 = vshll.u32 %v9350_v53, 16  ;;  %v12995_v58 = vcombine.low %v2488_v34, %v2498_v6  ;;  %v2543_v53 = vshll.u32 %v13004_v29, 16  ;;  %v2516_v59 = vor.u32 %v2515_v35, %v2511_v28 }
  0xd8   : > { %10684 = vmatprep.subr.bf16.mxu1 %v11350_v63  ;;  %v12999_v51 = vsel %vm12347_vm5, %v3096_v49, %v3097_v24  ;;  %10555 = vmatmul.mubr.bf16.gmra.mxu0 %v12816_v30  ;;  %v11353_v30 = vld [vmem:[%s16042_s1 + $0x1c0] sm:$0xff]   ;;  %v9434_v39 = vrot.slane %v9418_v41, 9  ;;  %v2539_v14 = vrot.slane %v2537_v37, 4  ;;  %v3101_v54 = vrot.slane %v12960_v32, 5  ;;  %v13071_v41 = vld [vmem:[%s11954_s17 + $0xb0] sm:$0x1] }
  0xd9   : > { %v9465_v57 = vcombine.low %v12981_v25, %v12999_v51  ;;  %v2505_v19 = vrot.slane %v2503_v42, 5  ;;  %10558 = vmatprep.mubr.bf16.mxu0 %v12878_v52  ;;  %10635 = vmatpush3.bf16.msra.mxu0 %v11342_v48  ;;  %v11348_v52 = vld [vmem:[%s16042_s1 + $0x188] sm:$0xff]   ;;  %v2545_v26 = vrot.slane %v2543_v53, 5  ;;  %v2517_v17 = vrot.slane %v2516_v59, 4  ;;  %v11351_v32 = vld [vmem:[%s16042_s1 + $0x180] sm:$0xff]  }
  0xda   : > { %10636 = vmatprep.subr.bf16.mxu0 %v11345_v15  ;;  %v2530_v21 = vor.u32 %v2529_v43, %v2526_v1  ;;  %v3104_v62 = vrot.slane %v12970_v47, 5  ;;  %v9435_v12 = vrot.slane %v9419_v36, 9  ;;  %v2540_v2 = vor.u32 %v2539_v14, %v2535_v20 }
  0xdb   : > { %10685 = vmatpush3.bf16.msra.mxu1 %v11350_v63  ;;  %v2506_v18 = vor.u32 %v2505_v19, %v2502_v5  ;;  %v13028_v63 = vld [vmem:[%s11954_s17 + $0xa0] sm:$0xf]  ;;  %v3102_v22 = vsel %vm12347_vm5, %v9434_v39, %v3101_v54  ;;  %v2522_v8 = vsel %vm11999_vm2, %v2517_v17, %v2521_v23  ;;  %v3108_v44 = vrot.slane %v12984_v0, 5  ;;  %v9420_v19 = vld [vmem:[%s11954_s17 + $0x9c] sm:$0xe] }
  0xdc   : > { %10686 = vmatprep.subr.bf16.mxu1 %v11352_v50  ;;  %v2531_v48 = vrot.slane %v2530_v21, 4  ;;  %v3111_v24 = vrot.slane %v13004_v29, 5  ;;  %v2541_v55 = vrot.slane %v2540_v2, 4  ;;  %v2548_v4 = vshrl.u32 %v9356_v56, 16  ;;  %v9421_v23 = vld [vmem:[%s11954_s17 + $0xa8] sm:$0xe] }
  0xdd   : > { %v2507_v11 = vrot.slane %v2506_v18, 4  ;;  %10637 = vmatpush3.bf16.msra.mxu0 %v11345_v15  ;;  %v3109_v49 = vsel %vm12347_vm5, %v9435_v12, %v3108_v44  ;;  %v3110_v0 = vrot.slane %v3108_v44, 4  ;;  %v9359_v15 = vld [vmem:[%s11954_s17 + $0xa8] sm:$0xf]  ;;  %v2551_v42 = vshll.u32 %v9356_v56, 16 }
  0xde   : > { %10607 = vmatmul.mubr.bf16.gmra.mxu1 %v9463_v16  ;;  %v3103_v16 = vrot.slane %v3101_v54, 4  ;;  %10638 = vmatprep.subr.bf16.mxu0 %v11348_v52  ;;  %v2536_v34 = vsel %vm11999_vm2, %v2531_v48, %v2535_v20  ;;  %v2546_v6 = vsel %vm11999_vm2, %v2541_v55, %v2545_v26  ;;  %v2550_v5 = vrot.slane %v2548_v4, 4  ;;  %v9362_v20 = vld [vmem:[%s11954_s17 + $0xb4] sm:$0xf]  ;;  %v13102_v55 = vld [vmem:[%s11954_s17 + $0xc4] sm:$0xf] }
  0xdf   : > { %10610 = vmatprep.mubr.bf16.mxu1 %v9464_v46  ;;  %10687 = vmatpush3.bf16.msra.mxu1 %v11352_v50  ;;  %v2512_v38 = vsel %vm11999_vm2, %v2507_v11, %v2511_v28  ;;  %v13062_v50 = vld [vmem:[%s16042_s1 + $0x238] sm:$0xff]   ;;  %v13064_v7 = vcombine.low %v2536_v34, %v2546_v6  ;;  %v2561_v33 = vshrl.u32 %v13028_v63, 16  ;;  %v2567_v29 = vshll.u32 %v13044_v10, 16 }
  0xe0   : > { %10688 = vmatprep.subr.bf16.mxu1 %v11353_v30  ;;  %v9394_v3 = vcombine.low %v2512_v38, %v2522_v8  ;;  %v3105_v47 = vsel %vm12347_vm5, %v3103_v16, %v3104_v62  ;;  %10559 = vmatmul.mubr.bf16.gmra.mxu0 %v12921_v45  ;;  %v2557_v45 = vshll.u32 %v13028_v63, 16  ;;  %v2553_v61 = vrot.slane %v2551_v42, 5  ;;  %v13096_v8 = vld [vmem:[%s11954_s17 + $0xbc] sm:$0x1] }
  0xe1   : > { %v9466_v46 = vcombine.low %v3102_v22, %v3105_v47  ;;  %10562 = vmatprep.mubr.bf16.mxu0 %v12965_v13  ;;  %10639 = vmatpush3.bf16.msra.mxu0 %v11348_v52  ;;  %v3112_v13 = vsel %vm12347_vm5, %v3110_v0, %v3111_v24  ;;  %v2572_v35 = vshrl.u32 %v9359_v15, 16  ;;  %v2563_v27 = vrot.slane %v2561_v33, 4 }
  0xe2   : > { %10640 = vmatprep.subr.bf16.mxu0 %v11351_v32  ;;  %v9467_v28 = vcombine.low %v3109_v49, %v3112_v13  ;;  %v2559_v36 = vrot.slane %v2557_v45, 5  ;;  %v2569_v9 = vrot.slane %v2567_v29, 5  ;;  %v2575_v18 = vshll.u32 %v9359_v15, 16 }
  0xe3   : > { %10689 = vmatpush3.bf16.msra.mxu1 %v11353_v30  ;;  %v2581_v1 = vshll.u32 %v13057_v31, 16  ;;  %v2554_v37 = vor.u32 %v2553_v61, %v2550_v5  ;;  %v2574_v53 = vrot.slane %v2572_v35, 4  ;;  %v2585_v30 = vshrl.u32 %v13057_v31, 16  ;;  %v9422_v5 = vld [vmem:[%s11954_s17 + $0xb4] sm:$0xe] }
  0xe4   : > { %v2591_v59 = vshll.u32 %v13071_v41, 16  ;;  %v2564_v25 = vor.u32 %v2563_v27, %v2559_v36  ;;  %v2577_v51 = vrot.slane %v2575_v18, 5  ;;  %v9436_v43 = vrot.slane %v9420_v19, 9 }
  0xe5   : > { %10641 = vmatpush3.bf16.msra.mxu0 %v11351_v32  ;;  %v2555_v39 = vrot.slane %v2554_v37, 4  ;;  %v2587_v56 = vrot.slane %v2585_v30, 4  ;;  %v3115_v11 = vrot.slane %v13028_v63, 5  ;;  %v3118_v54 = vrot.slane %v13044_v10, 5  ;;  %v9363_v63 = vld [vmem:[%s11954_s17 + $0xb8] sm:$0xf] }
  0xe6   : > { %10611 = vmatmul.mubr.bf16.gmra.mxu1 %v9465_v57  ;;  %v2583_v57 = vrot.slane %v2581_v1, 5  ;;  %10722 = vmatprep.subr.bf16.mxu0 %v13062_v50  ;;  %v2593_v52 = vrot.slane %v2591_v59, 5  ;;  %v2565_v14 = vrot.slane %v2564_v25, 4  ;;  %v2578_v26 = vor.u32 %v2577_v51, %v2574_v53  ;;  %v9423_v1 = vld [vmem:[%s11954_s17 + $0xc0] sm:$0xe] }
  0xe7   : > { %10614 = vmatprep.mubr.bf16.mxu1 %v9466_v46  ;;  %v9437_v17 = vrot.slane %v9421_v23, 9  ;;  %v2560_v21 = vsel %vm11999_vm2, %v2555_v39, %v2559_v36  ;;  %v3116_v12 = vsel %vm12347_vm5, %v9436_v43, %v3115_v11  ;;  %v3117_v38 = vrot.slane %v3115_v11, 4  ;;  %v13109_v46 = vld [vmem:[%s11954_s17 + $0xc8] sm:$0x1] }
  0xe8   : > { %10563 = vmatmul.mubr.bf16.gmra.mxu0 %v12995_v58  ;;  %v2588_v62 = vor.u32 %v2587_v56, %v2583_v57  ;;  %v2570_v58 = vsel %vm11999_vm2, %v2565_v14, %v2569_v9  ;;  %v2579_v2 = vrot.slane %v2578_v26, 4  ;;  %v3122_v22 = vrot.slane %v13057_v31, 5 }
  0xe9   : > { %10566 = vmatprep.mubr.bf16.mxu0 %v9394_v3  ;;  %v3125_v16 = vrot.slane %v13071_v41, 5  ;;  %v9396_v48 = vcombine.low %v2560_v21, %v2570_v58  ;;  %v3119_v24 = vsel %vm12347_vm5, %v3117_v38, %v3118_v54  ;;  %v2596_v32 = vshrl.u32 %v9362_v20, 16  ;;  %v9365_v3 = vld [vmem:[%s11954_s17 + $0xc0] sm:$0xf]  ;;  %v9555_v58 = vld [vmem:[%s11954_s17 + $0x24] sm:$0xf] }
  0xea   : > { %v2589_v44 = vrot.slane %v2588_v62, 4  ;;  %v2584_v47 = vsel %vm11999_vm2, %v2579_v2, %v2583_v57  ;;  %v9468_v10 = vcombine.low %v3116_v12, %v3119_v24  ;;  %v3123_v4 = vsel %vm12347_vm5, %v9437_v17, %v3122_v22  ;;  %v9553_v17 = vld [vmem:[%s11954_s17 + $0x1c] sm:$0xf]  ;;  %v9554_v21 = vld [vmem:[%s11954_s17 + $0x20] sm:$0x1] }
  0xeb   : > { %v3124_v34 = vrot.slane %v3122_v22, 4  ;;  %v2598_v0 = vrot.slane %v2596_v32, 4  ;;  %v2599_v15 = vshll.u32 %v9362_v20, 16  ;;  %v2605_v6 = vshll.u32 %v9363_v63, 16 }
  0xec   : > { %v2594_v49 = vsel %vm11999_vm2, %v2589_v44, %v2593_v52  ;;  %v2609_v31 = vshrl.u32 %v9363_v63, 16  ;;  %v2615_v13 = vshll.u32 %v13096_v8, 16  ;;  %v2620_v19 = vshrl.u32 %v9365_v3, 16  ;;  %v9552_v52 = vld [vmem:[%s11954_s17 + $0x18] sm:$0xf] }
  0xed   : > { %v9397_v42 = vcombine.low %v2584_v47, %v2594_v49  ;;  %v3126_v45 = vsel %vm12347_vm5, %v3124_v34, %v3125_v16  ;;  %v2601_v29 = vrot.slane %v2599_v15, 5  ;;  %v2607_v41 = vrot.slane %v2605_v6, 5 }
  0xee   : > { %10615 = vmatmul.mubr.bf16.gmra.mxu1 %v9467_v28  ;;  %v9469_v33 = vcombine.low %v3123_v4, %v3126_v45  ;;  %v2611_v28 = vrot.slane %v2609_v31, 4  ;;  %v2617_v61 = vrot.slane %v2615_v13, 5  ;;  %v2623_v36 = vshll.u32 %v9365_v3, 16 }
  0xef   : > { %10618 = vmatprep.mubr.bf16.mxu1 %v9468_v10  ;;  %v2629_v35 = vshll.u32 %v13102_v55, 16  ;;  %v2602_v23 = vor.u32 %v2601_v29, %v2598_v0  ;;  %v2622_v27 = vrot.slane %v2620_v19, 4  ;;  %v2633_v9 = vshrl.u32 %v13102_v55, 16  ;;  %v13149_v0 = vld [vmem:[%s11954_s17 + $0x2c] sm:$0x1]  ;;  %v11354_v29 = vld [vmem:[%s11954_s17 + $0x18] sm:$0xff]  }
  0xf0   : > { %10567 = vmatmul.mubr.bf16.gmra.mxu0 %v13064_v7  ;;  %v2639_v18 = vshll.u32 %v13109_v46, 16  ;;  %v2612_v37 = vor.u32 %v2611_v28, %v2607_v41  ;;  %v2625_v53 = vrot.slane %v2623_v36, 5  ;;  %v9438_v59 = vrot.slane %v9422_v5, 9  ;;  %v9558_v36 = vld [vmem:[%s11954_s17 + $0x30] sm:$0xf] }
  0xf1   : > { %10570 = vmatprep.mubr.bf16.mxu0 %v9396_v48  ;;  %v2631_v30 = vrot.slane %v2629_v35, 5  ;;  %v2603_v7 = vrot.slane %v2602_v23, 4  ;;  %v2635_v25 = vrot.slane %v2633_v9, 4  ;;  %v3129_v57 = vrot.slane %v9363_v63, 5  ;;  %v13138_v48 = vld [vmem:[%s11954_s17 + $0x28] sm:$0xf] }
  0xf2   : > { %v2641_v51 = vrot.slane %v2639_v18, 5  ;;  %v2613_v43 = vrot.slane %v2612_v37, 4  ;;  %v2626_v20 = vor.u32 %v2625_v53, %v2622_v27  ;;  %v3132_v39 = vrot.slane %v13096_v8, 5  ;;  %v9559_v18 = vld [vmem:[%s11954_s17 + $0x34] sm:$0xf] }
  0xf3   : > { %v9439_v56 = vrot.slane %v9423_v1, 9  ;;  %v2608_v11 = vsel %vm11999_vm2, %v2603_v7, %v2607_v41  ;;  %v2636_v14 = vor.u32 %v2635_v25, %v2631_v30  ;;  %v3130_v26 = vsel %vm12347_vm5, %v9438_v59, %v3129_v57 }
  0xf4   : > { %v3131_v54 = vrot.slane %v3129_v57, 4  ;;  %v2618_v62 = vsel %vm11999_vm2, %v2613_v43, %v2617_v61  ;;  %v2627_v12 = vrot.slane %v2626_v20, 4  ;;  %v3136_v38 = vrot.slane %v13102_v55, 5  ;;  %v9561_v57 = vld [vmem:[%s11954_s17 + $0x3c] sm:$0xf] }
  0xf5   : > { %v3139_v63 = vrot.slane %v13109_v46, 5  ;;  %v9398_v2 = vcombine.low %v2608_v11, %v2618_v62  ;;  %v2637_v22 = vrot.slane %v2636_v14, 4  ;;  %v3899_v8 = vshrl.u32 %v9552_v52, 16 }
  0xf6   : > { %10619 = vmatmul.mubr.bf16.gmra.mxu1 %v9469_v33  ;;  %v3133_v16 = vsel %vm12347_vm5, %v3131_v54, %v3132_v39  ;;  %v2632_v44 = vsel %vm11999_vm2, %v2627_v12, %v2631_v30  ;;  %v3137_v32 = vsel %vm12347_vm5, %v9439_v56, %v3136_v38  ;;  %v3138_v3 = vrot.slane %v3136_v38, 4  ;;  %v9560_v30 = vld [vmem:[%s11954_s17 + $0x38] sm:$0x1] }
  0xf7   : > { %v9470_v24 = vcombine.low %v3130_v26, %v3133_v16  ;;  %v2642_v55 = vsel %vm11999_vm2, %v2637_v22, %v2641_v51  ;;  %v3901_v47 = vrot.slane %v3899_v8, 4  ;;  %v3902_v10 = vshll.u32 %v9552_v52, 16 }
  0xf8   : > { %10571 = vmatmul.mubr.bf16.gmra.mxu0 %v9397_v42  ;;  %v3908_v4 = vshll.u32 %v9553_v17, 16  ;;  %v3140_v34 = vsel %vm12347_vm5, %v3138_v3, %v3139_v63  ;;  %v3912_v46 = vshrl.u32 %v9553_v17, 16  ;;  %v3918_v49 = vshll.u32 %v9554_v21, 16  ;;  %v11357_v3 = vld [vmem:[%s11954_s17 + $0x30] sm:$0xff]  }
  0xf9   : > { %10574 = vmatprep.mubr.bf16.mxu0 %v9398_v2  ;;  %10622 = vmatprep.mubr.bf16.mxu1 %v9470_v24  ;;  %v9471_v15 = vcombine.low %v3137_v32, %v3140_v34  ;;  %v3904_v6 = vrot.slane %v3902_v10, 5  ;;  %v3923_v42 = vshrl.u32 %v9555_v58, 16  ;;  %v9399_v45 = vcombine.low %v2632_v44, %v2642_v55  ;;  %v9562_v44 = vld [vmem:[%s11954_s17 + $0x40] sm:$0xf]  ;;  %v11359_v55 = vld [vmem:[%s16042_s1 + $0x230] sm:$0xff]  }
  0xfa   : > { %v3910_v5 = vrot.slane %v3908_v4, 5  ;;  %v3914_v31 = vrot.slane %v3912_v46, 4  ;;  %v3926_v13 = vshll.u32 %v9555_v58, 16  ;;  %v3932_v33 = vshll.u32 %v13138_v48, 16  ;;  %v11355_v58 = vld [vmem:[%s11954_s17 + $0x24] sm:$0xff]  }
  0xfb   : > { %v3905_v41 = vor.u32 %v3904_v6, %v3901_v47  ;;  %v3925_v19 = vrot.slane %v3923_v42, 4  ;;  %v3936_v28 = vshrl.u32 %v13138_v48, 16  ;;  %v3942_v61 = vshll.u32 %v13149_v0, 16  ;;  %v13176_v10 = vld [vmem:[%s11954_s17 + $0x44] sm:$0x1] }
  0xfc   : > { %v3915_v35 = vor.u32 %v3914_v31, %v3910_v5  ;;  %v3920_v23 = vrot.slane %v3918_v49, 5  ;;  %v3928_v27 = vrot.slane %v3926_v13, 5  ;;  %v3934_v9 = vrot.slane %v3932_v33, 5  ;;  %v9564_v42 = vld [vmem:[%s11954_s17 + $0x48] sm:$0xf] }
  0xfd   : > { %v3906_v1 = vrot.slane %v3905_v41, 4  ;;  %v3938_v37 = vrot.slane %v3936_v28, 4  ;;  %v3944_v53 = vrot.slane %v3942_v61, 5  ;;  %v3947_v25 = vshrl.u32 %v9558_v36, 16 }
  0xfe   : > { %10623 = vmatmul.mubr.bf16.gmra.mxu1 %v9471_v15  ;;  %v3916_v59 = vrot.slane %v3915_v35, 4  ;;  %v3929_v7 = vor.u32 %v3928_v27, %v3925_v19  ;;  %v3950_v51 = vshll.u32 %v9558_v36, 16  ;;  %v3956_v39 = vshll.u32 %v9559_v18, 16  ;;  %v9566_v19 = vld [vmem:[%s11954_s17 + $0x50] sm:$0x1] }
  0xff   : > { %v3911_v43 = vsel %vm11999_vm2, %v3906_v1, %v3910_v5  ;;  %v3939_v20 = vor.u32 %v3938_v37, %v3934_v9  ;;  %v3960_v56 = vshrl.u32 %v9559_v18, 16  ;;  %v3949_v26 = vrot.slane %v3947_v25, 4 }
 0x100   : > { %10575 = vmatmul.mubr.bf16.gmra.mxu0 %v9399_v45  ;;  %v3921_v11 = vsel %vm11999_vm2, %v3916_v59, %v3920_v23  ;;  %v3930_v14 = vrot.slane %v3929_v7, 4  ;;  %v3952_v54 = vrot.slane %v3950_v51, 5  ;;  %v3958_v12 = vrot.slane %v3956_v39, 5  ;;  %v9565_v45 = vld [vmem:[%s11954_s17 + $0x4c] sm:$0xf] }
 0x101   : > { %10642 = vmatprep.mubr.bf16.mxu0 %v11354_v29  ;;  %v9616_v21 = vcombine.low %v3911_v43, %v3921_v11  ;;  %v3940_v62 = vrot.slane %v3939_v20, 4  ;;  %v3962_v38 = vrot.slane %v3960_v56, 4  ;;  %v3966_v8 = vshll.u32 %v9560_v30, 16 }
 0x102   : > { %v3935_v22 = vsel %vm11999_vm2, %v3930_v14, %v3934_v9  ;;  %v3953_v16 = vor.u32 %v3952_v54, %v3949_v26  ;;  %v3971_v4 = vshrl.u32 %v9561_v57, 16  ;;  %v3974_v34 = vshll.u32 %v9561_v57, 16  ;;  %v11358_v57 = vld [vmem:[%s11954_s17 + $0x3c] sm:$0xff]  }
 0x103   : > { %10690 = vmatprep.mubr.bf16.mxu1 %v9616_v21  ;;  %v3945_v32 = vsel %vm11999_vm2, %v3940_v62, %v3944_v53  ;;  %v3963_v47 = vor.u32 %v3962_v38, %v3958_v12  ;;  %v3968_v5 = vrot.slane %v3966_v8, 5  ;;  %v3980_v41 = vshll.u32 %v9562_v44, 16  ;;  %v13202_v21 = vld [vmem:[%s11954_s17 + $0x58] sm:$0xf]  ;;  %v11360_v38 = vld [vmem:[%s11954_s17 + $0x48] sm:$0xff]  }
 0x104   : > { %v9617_v49 = vcombine.low %v3935_v22, %v3945_v32  ;;  %v3954_v6 = vrot.slane %v3953_v16, 4  ;;  %v3973_v33 = vrot.slane %v3971_v4, 4  ;;  %v3976_v29 = vrot.slane %v3974_v34, 5 }
 0x105   : > { %v10356_v52 = vpop.f32.mrf.mxu0  ;;  %v3964_v13 = vrot.slane %v3963_v47, 4  ;;  %v3984_v35 = vshrl.u32 %v9562_v44, 16  ;;  %v3990_v23 = vshll.u32 %v13176_v10, 16  ;;  %v3982_v37 = vrot.slane %v3980_v41, 5 }
 0x106   : > { %v10404_v17 = vpop.f32.mrf.mxu1  ;;  %10691 = vmatmul.mubr.bf16.vlgmr.msra.gmra.mxu1 %v9617_v49  ;;  %v3959_v36 = vsel %vm11999_vm2, %v3954_v6, %v3958_v12  ;;  %v3977_v1 = vor.u32 %v3976_v29, %v3973_v33  ;;  %v3995_v20 = vshrl.u32 %v9564_v42, 16  ;;  %v3998_v39 = vshll.u32 %v9564_v42, 16  ;;  %v9570_v6 = vld [vmem:[%s11954_s17 + $0x60] sm:$0xf] }
 0x107   : > { %v13163_v63 = vadd.f32 %v10404_v17, %v10356_v52  ;;  %v907_v2 = vpop.f32.mrf.mxu0  ;;  %v3969_v18 = vsel %vm11999_vm2, %v3964_v13, %v3968_v5  ;;  %v3986_v7 = vrot.slane %v3984_v35, 4  ;;  %v3992_v25 = vrot.slane %v3990_v23, 5  ;;  %v9567_v17 = vld [vmem:[%s11954_s17 + $0x54] sm:$0xf] }
 0x108   : > { %v1212_v24 = vpop.f32.mrf.mxu1  ;;  %10643 = vmatmul.mubr.bf16.vlgmr.msra.gmra.mxu0 %v11355_v58  ;;  %v9618_v59 = vcombine.low %v3959_v36, %v3969_v18  ;;  %v3978_v43 = vrot.slane %v3977_v1, 4  ;;  %v4004_v56 = vshll.u32 %v9565_v45, 16  ;;  %v4008_v26 = vshrl.u32 %v9565_v45, 16  ;;  %v11368_v1 = vld [vmem:[%s16042_s1 + $0x218] sm:$0xff]  }
 0x109   : > { %v13178_v46 = vadd.f32 %v1212_v24, %v907_v2  ;;  %v10357_v15 = vpop.f32.mrf.mxu0  ;;  %10723 = vmatpush3.bf16.msra.mxu0 %v13062_v50  ;;  %10646 = vmatprep.mubr.bf16.mxu0 %v11357_v3  ;;  %v11362_v50 = vld [vmem:[%s16042_s1 + $0x228] sm:$0xff]   ;;  %v3987_v14 = vor.u32 %v3986_v7, %v3982_v37  ;;  %v4014_v54 = vshll.u32 %v9566_v19, 16  ;;  %v3997_v58 = vrot.slane %v3995_v20, 4  ;;  %v13210_v3 = vld [vmem:[%s11954_s17 + $0x5c] sm:$0x1] }
 0x10a   : > { %v10405_v31 = vpop.f32.mrf.mxu1  ;;  %10724 = vmatprep.subr.bf16.mxu0 %v11359_v55  ;;  %10694 = vmatprep.mubr.bf16.mxu1 %v9618_v59  ;;  %v3983_v12 = vsel %vm11999_vm2, %v3978_v43, %v3982_v37  ;;  %v4000_v2 = vrot.slane %v3998_v39, 5  ;;  %v4006_v22 = vrot.slane %v4004_v56, 5  ;;  %v4010_v24 = vrot.slane %v4008_v26, 4  ;;  %v13240_v56 = vld [vmem:[%s11954_s17 + $0x68] sm:$0x1] }
 0x10b   : > { %v13183_v28 = vadd.f32 %v10405_v31, %v10357_v15  ;;  %v910_v61 = vpop.f32.mrf.mxu0  ;;  %v3988_v8 = vrot.slane %v3987_v14, 4  ;;  %v4016_v32 = vrot.slane %v4014_v54, 5  ;;  %v4019_v34 = vshrl.u32 %v9567_v17, 16  ;;  %v9573_v14 = vld [vmem:[%s11954_s17 + $0x6c] sm:$0xf] }
 0x10c   : > { %v1215_v9 = vpop.f32.mrf.mxu1  ;;  %v4001_v4 = vor.u32 %v4000_v2, %v3997_v58  ;;  %v4022_v49 = vshll.u32 %v9567_v17, 16  ;;  %v4028_v15 = vshll.u32 %v13202_v21, 16  ;;  %v4011_v31 = vor.u32 %v4010_v24, %v4006_v22  ;;  %v13245_v58 = vld [vmem:[%s11954_s17 + $0x70] sm:$0xf] }
 0x10d   : > { %v13192_v53 = vadd.f32 %v1215_v9, %v910_v61  ;;  %v10360_v30 = vpop.f32.mrf.mxu0  ;;  %10725 = vmatpush3.bf16.msra.mxu0 %v11359_v55  ;;  %v11365_v55 = vld [vmem:[%s16042_s1 + $0x220] sm:$0xff]   ;;  %v3993_v5 = vsel %vm11999_vm2, %v3988_v8, %v3992_v25  ;;  %v4032_v13 = vshrl.u32 %v13202_v21, 16  ;;  %v4021_v19 = vrot.slane %v4019_v34, 4 }
 0x10e   : > { %v10408_v51 = vpop.f32.mrf.mxu1  ;;  %10726 = vmatprep.subr.bf16.mxu0 %v11362_v50  ;;  %v9619_v33 = vcombine.low %v3983_v12, %v3993_v5  ;;  %v4002_v41 = vrot.slane %v4001_v4, 4  ;;  %v4024_v61 = vrot.slane %v4022_v49, 5  ;;  %v4012_v23 = vrot.slane %v4011_v31, 4  ;;  %v11363_v12 = vld [vmem:[%s11954_s17 + $0x60] sm:$0xff]  }
 0x10f   : > { %v13198_v52 = vadd.f32 %v10408_v51, %v10360_v30  ;;  %v923_v11 = vpop.f32.mrf.mxu0  ;;  %v4030_v9 = vrot.slane %v4028_v15, 5  ;;  %v4034_v18 = vrot.slane %v4032_v13, 4  ;;  %v4038_v25 = vshll.u32 %v13210_v3, 16 }
 0x110   : > { %v1228_v62 = vpop.f32.mrf.mxu1  ;;  %10647 = vmatmul.mubr.bf16.gmra.mxu0 %v11358_v57  ;;  %10695 = vmatmul.mubr.bf16.gmra.mxu1 %v9619_v33  ;;  %v4007_v59 = vsel %vm11999_vm2, %v4002_v41, %v4006_v22  ;;  %v4025_v7 = vor.u32 %v4024_v61, %v4021_v19  ;;  %v11361_v57 = vld [vmem:[%s11954_s17 + $0x54] sm:$0xff]   ;;  %v4017_v43 = vsel %vm11999_vm2, %v4012_v23, %v4016_v32  ;;  %v4062_v15 = vshll.u32 %v13240_v56, 16 }
 0x111   : > { %v13207_v16 = vadd.f32 %v1228_v62, %v923_v11  ;;  %v10361_v44 = vpop.f32.mrf.mxu0  ;;  %10650 = vmatprep.mubr.bf16.mxu0 %v11360_v38  ;;  %10727 = vmatpush3.bf16.msra.mxu0 %v11362_v50  ;;  %v13232_v50 = vld [vmem:[%s11954_s17 + $0x64] sm:$0xf]  ;;  %v4035_v39 = vor.u32 %v4034_v18, %v4030_v9  ;;  %v4043_v11 = vshrl.u32 %v9570_v6, 16  ;;  %v9620_v26 = vcombine.low %v4007_v59, %v4017_v43  ;;  %v13251_v32 = vld [vmem:[%s11954_s17 + $0x74] sm:$0x1]  ;;  %v11374_v59 = vld [vmem:[%s16042_s1 + $0x208] sm:$0xff]  }
 0x112   : > { %v10409_v47 = vpop.f32.mrf.mxu1  ;;  %10728 = vmatprep.subr.bf16.mxu0 %v11365_v55  ;;  %v4026_v17 = vrot.slane %v4025_v7, 4  ;;  %v4040_v62 = vrot.slane %v4038_v25, 5  ;;  %v4046_v38 = vshll.u32 %v9570_v6, 16  ;;  %v4052_v24 = vshll.u32 %v13232_v50, 16  ;;  %v9576_v6 = vld [vmem:[%s11954_s17 + $0x78] sm:$0xf] }
 0x113   : > { %v13219_v42 = vadd.f32 %v10409_v47, %v10361_v44  ;;  %v926_v45 = vpop.f32.mrf.mxu0  ;;  %v4036_v22 = vrot.slane %v4035_v39, 4  ;;  %v4045_v44 = vrot.slane %v4043_v11, 4  ;;  %v11371_v47 = vld [vmem:[%s16042_s1 + $0x210] sm:$0xff]   ;;  %10698 = vmatprep.mubr.bf16.mxu1 %v9620_v26  ;;  %v4056_v49 = vshrl.u32 %v13232_v50, 16 }
 0x114   : > { %v1231_v29 = vpop.f32.mrf.mxu1  ;;  %v4048_v34 = vrot.slane %v4046_v38, 5  ;;  %v4054_v13 = vrot.slane %v4052_v24, 5  ;;  %v4067_v33 = vshrl.u32 %v9573_v14, 16  ;;  %v4070_v18 = vshll.u32 %v9573_v14, 16  ;;  %v11364_v25 = vld [vmem:[%s11954_s17 + $0x6c] sm:$0xff]  }
 0x115   : > { %v13222_v36 = vadd.f32 %v1231_v29, %v926_v45  ;;  %v10364_v35 = vpop.f32.mrf.mxu0  ;;  %10729 = vmatpush3.bf16.msra.mxu0 %v11365_v55  ;;  %v4031_v55 = vsel %vm11999_vm2, %v4026_v17, %v4030_v9  ;;  %v4041_v5 = vsel %vm11999_vm2, %v4036_v22, %v4040_v62  ;;  %v4058_v61 = vrot.slane %v4056_v49, 4 }
 0x116   : > { %v10412_v30 = vpop.f32.mrf.mxu1  ;;  %10730 = vmatprep.subr.bf16.mxu0 %v11368_v1  ;;  %v9621_v29 = vcombine.low %v4031_v55, %v4041_v5  ;;  %v4049_v19 = vor.u32 %v4048_v34, %v4045_v44  ;;  %v4069_v9 = vrot.slane %v4067_v33, 4  ;;  %v4072_v14 = vrot.slane %v4070_v18, 5  ;;  %v11366_v44 = vld [vmem:[%s11954_s17 + $0x78] sm:$0xff]   ;;  %v13284_v34 = vld [vmem:[%s11954_s17 + $0x80] sm:$0x1] }
 0x117   : > { %v13234_v51 = vadd.f32 %v10412_v30, %v10364_v35  ;;  %v939_v20 = vpop.f32.mrf.mxu0  ;;  %v4064_v35 = vrot.slane %v4062_v15, 5  ;;  %v4076_v30 = vshll.u32 %v13245_v58, 16  ;;  %v4059_v43 = vor.u32 %v4058_v61, %v4054_v13  ;;  %v11377_v5 = vld [vmem:[%s16042_s1 + $0x200] sm:$0xff]  }
 0x118   : > { %v1244_v54 = vpop.f32.mrf.mxu1  ;;  %10651 = vmatmul.mubr.bf16.gmra.mxu0 %v11361_v57  ;;  %10699 = vmatmul.mubr.bf16.gmra.mxu1 %v9621_v29  ;;  %v4050_v57 = vrot.slane %v4049_v19, 4  ;;  %v4091_v17 = vshrl.u32 %v9576_v6, 16  ;;  %v4073_v55 = vor.u32 %v4072_v14, %v4069_v9  ;;  %v4094_v15 = vshll.u32 %v9576_v6, 16  ;;  %v13302_v14 = vld [vmem:[%s11954_s17 + $0x88] sm:$0xf] }
 0x119   : > { %v13247_v2 = vadd.f32 %v1244_v54, %v939_v20  ;;  %v10365_v8 = vpop.f32.mrf.mxu0  ;;  %10654 = vmatprep.mubr.bf16.mxu0 %v11363_v12  ;;  %10731 = vmatpush3.bf16.msra.mxu0 %v11368_v1  ;;  %v4080_v1 = vshrl.u32 %v13245_v58, 16  ;;  %v4086_v20 = vshll.u32 %v13251_v32, 16  ;;  %v4078_v26 = vrot.slane %v4076_v30, 5  ;;  %v13276_v54 = vld [vmem:[%s11954_s17 + $0x7c] sm:$0xf] }
 0x11a   : > { %v10413_v4 = vpop.f32.mrf.mxu1  ;;  %10732 = vmatprep.subr.bf16.mxu0 %v11371_v47  ;;  %v4055_v12 = vsel %vm11999_vm2, %v4050_v57, %v4054_v13  ;;  %v4060_v38 = vrot.slane %v4059_v43, 4  ;;  %v4093_v49 = vrot.slane %v4091_v17, 4  ;;  %v4074_v61 = vrot.slane %v4073_v55, 4 }
 0x11b   : > { %v13263_v45 = vadd.f32 %v10413_v4, %v10365_v8  ;;  %v942_v31 = vpop.f32.mrf.mxu0  ;;  %v4082_v8 = vrot.slane %v4080_v1, 4  ;;  %v4088_v4 = vrot.slane %v4086_v20, 5  ;;  %v4096_v9 = vrot.slane %v4094_v15, 5 }
 0x11c   : > { %v1247_v41 = vpop.f32.mrf.mxu1  ;;  %v4104_v18 = vshrl.u32 %v13276_v54, 16  ;;  %v4110_v43 = vshll.u32 %v13284_v34, 16 }
 0x11d   : > { %v13265_v23 = vadd.f32 %v1247_v41, %v942_v31  ;;  %v10368_v11 = vpop.f32.mrf.mxu0  ;;  %10733 = vmatpush3.bf16.msra.mxu0 %v11371_v47  ;;  %v4065_v31 = vsel %vm11999_vm2, %v4060_v38, %v4064_v35  ;;  %v4083_v33 = vor.u32 %v4082_v8, %v4078_v26  ;;  %v4100_v47 = vshll.u32 %v13276_v54, 16  ;;  %v9579_v41 = vld [vmem:[%s11954_s17 + $0x84] sm:$0xf]  ;;  %v13309_v8 = vld [vmem:[%s11954_s17 + $0x8c] sm:$0x1] }
 0x11e   : > { %v10416_v7 = vpop.f32.mrf.mxu1  ;;  %10734 = vmatprep.subr.bf16.mxu0 %v11374_v59  ;;  %v9622_v19 = vcombine.low %v4055_v12, %v4065_v31  ;;  %v4097_v20 = vor.u32 %v4096_v9, %v4093_v49  ;;  %v4115_v17 = vshrl.u32 %v9579_v41, 16  ;;  %v11367_v49 = vld [vmem:[%s11954_s17 + $0x84] sm:$0xff]  }
 0x11f   : > { %v13278_v62 = vadd.f32 %v10416_v7, %v10368_v11  ;;  %v955_v24 = vpop.f32.mrf.mxu0  ;;  %v4084_v30 = vrot.slane %v4083_v33, 4  ;;  %v4102_v35 = vrot.slane %v4100_v47, 5  ;;  %v4106_v11 = vrot.slane %v4104_v18, 4 }
 0x120   : > { %v1260_v22 = vpop.f32.mrf.mxu1  ;;  %10655 = vmatmul.mubr.bf16.gmra.mxu0 %v11364_v25  ;;  %10702 = vmatprep.mubr.bf16.mxu1 %v9622_v19  ;;  %v4079_v25 = vsel %vm11999_vm2, %v4074_v61, %v4078_v26  ;;  %v9582_v26 = vld [vmem:[%s11954_s17 + $0x90] sm:$0xf]  ;;  %v4098_v15 = vrot.slane %v4097_v20, 4  ;;  %v4117_v33 = vrot.slane %v4115_v17, 4  ;;  %v4128_v61 = vshrl.u32 %v13302_v14, 16 }
 0x121   : > { %v13291_v13 = vadd.f32 %v1260_v22, %v955_v24  ;;  %v10369_v6 = vpop.f32.mrf.mxu0  ;;  %10658 = vmatprep.mubr.bf16.mxu0 %v11366_v44  ;;  %10735 = vmatpush3.bf16.msra.mxu0 %v11374_v59  ;;  %v4089_v12 = vsel %vm11999_vm2, %v4084_v30, %v4088_v4  ;;  %v4112_v59 = vrot.slane %v4110_v43, 5  ;;  %v4118_v44 = vshll.u32 %v9579_v41, 16  ;;  %v13324_v17 = vld [vmem:[%s11954_s17 + $0x94] sm:$0xf] }
 0x122   : > { %v10417_v29 = vpop.f32.mrf.mxu1  ;;  %10736 = vmatprep.subr.bf16.mxu0 %v11377_v5  ;;  %v9623_v24 = vcombine.low %v4079_v25, %v4089_v12  ;;  %v4107_v31 = vor.u32 %v4106_v11, %v4102_v35  ;;  %v4124_v4 = vshll.u32 %v13302_v14, 16  ;;  %v4103_v41 = vsel %vm11999_vm2, %v4098_v15, %v4102_v35 }
 0x123   : > { %v13296_v7 = vadd.f32 %v10417_v29, %v10369_v6  ;;  %v958_v1 = vpop.f32.mrf.mxu0  ;;  %v4120_v19 = vrot.slane %v4118_v44, 5  ;;  %v11369_v6 = vld [vmem:[%s11954_s17 + $0x90] sm:$0xff]   ;;  %v4134_v30 = vshll.u32 %v13309_v8, 16  ;;  %v4130_v20 = vrot.slane %v4128_v61, 4 }
 0x124   : > { %v1263_v57 = vpop.f32.mrf.mxu1  ;;  %10703 = vmatmul.mubr.bf16.gmra.mxu1 %v9623_v24  ;;  %v4108_v9 = vrot.slane %v4107_v31, 4  ;;  %v4142_v24 = vshll.u32 %v9582_v26, 16  ;;  %v4148_v61 = vshll.u32 %v13324_v17, 16 }
 0x125   : > { %16069 = vst [vmem:[#allocation10_spill] sm:$0xff] %v13296_v7  ;;  %v13306_v38 = vadd.f32 %v1263_v57, %v958_v1  ;;  %v10372_v55 = vpop.f32.mrf.mxu0  ;;  %10737 = vmatpush3.bf16.msra.mxu0 %v11377_v5  ;;  %v4139_v57 = vshrl.u32 %v9582_v26, 16  ;;  %v4121_v25 = vor.u32 %v4120_v19, %v4117_v33  ;;  %v4126_v1 = vrot.slane %v4124_v4, 5  ;;  %v13327_v5 = vld [vmem:[%s11954_s17 + $0x98] sm:$0x1] }
 0x126   : > { %v10420_v22 = vpop.f32.mrf.mxu1  ;;  %v4113_v35 = vsel %vm11999_vm2, %v4108_v9, %v4112_v59  ;;  %v4136_v12 = vrot.slane %v4134_v30, 5  ;;  %v4144_v59 = vrot.slane %v4142_v24, 5  ;;  %v4152_v26 = vshrl.u32 %v13324_v17, 16  ;;  %v13345_v9 = vld [vmem:[%s11954_s17 + $0xa4] sm:$0x1] }
 0x127   : > { %16070 = vst [vmem:[#allocation11_spill] sm:$0xff] %v13306_v38  ;;  %v13313_v29 = vadd.f32 %v10420_v22, %v10372_v55  ;;  %v971_v18 = vpop.f32.mrf.mxu0  ;;  %v4141_v44 = vrot.slane %v4139_v57, 4  ;;  %v9585_v55 = vld [vmem:[%s11954_s17 + $0x9c] sm:$0xf]  ;;  %v9624_v15 = vcombine.low %v4103_v41, %v4113_v35  ;;  %v4122_v31 = vrot.slane %v4121_v25, 4  ;;  %16076 = vst [vmem:[#allocation17_spill] sm:$0xff] %v13345_v9 }
 0x128   : > { %v1276_v47 = vpop.f32.mrf.mxu1  ;;  %10659 = vmatmul.mubr.bf16.gmra.mxu0 %v11367_v49  ;;  %v4131_v33 = vor.u32 %v4130_v20, %v4126_v1  ;;  %v13337_v49 = vld [vmem:[%s11954_s17 + $0xa0] sm:$0xf]  ;;  %v4158_v41 = vshll.u32 %v13327_v5, 16  ;;  %v4163_v57 = vshrl.u32 %v9585_v55, 16  ;;  %v9588_v25 = vld [vmem:[%s11954_s17 + $0xa8] sm:$0xf] }
 0x129   : > { %16071 = vst [vmem:[#allocation12_spill] sm:$0xff] %v13313_v29  ;;  %v13321_v43 = vadd.f32 %v1276_v47, %v971_v18  ;;  %v10373_v22 = vpop.f32.mrf.mxu0  ;;  %10662 = vmatprep.mubr.bf16.mxu0 %v11369_v6  ;;  %10706 = vmatprep.mubr.bf16.mxu1 %v9624_v15  ;;  %v4127_v18 = vsel %vm11999_vm2, %v4122_v31, %v4126_v1  ;;  %v11370_v20 = vld [vmem:[%s11954_s17 + $0x9c] sm:$0xff]   ;;  %v4150_v35 = vrot.slane %v4148_v61, 5  ;;  %v4166_v27 = vshll.u32 %v9585_v55, 16  ;;  %v11372_v1 = vld [vmem:[%s11954_s17 + $0xa8] sm:$0xff]  }
 0x12a   : > { %v10421_v11 = vpop.f32.mrf.mxu1  ;;  %v4132_v6 = vrot.slane %v4131_v33, 4  ;;  %v4160_v24 = vrot.slane %v4158_v41, 5  ;;  %v4165_v15 = vrot.slane %v4163_v57, 4  ;;  %v13356_v31 = vld [vmem:[%s11954_s17 + $0xac] sm:$0xf]  ;;  %v4182_v41 = vshll.u32 %v13345_v9, 16 }
 0x12b   : > { %16072 = vst [vmem:[#allocation13_spill] sm:$0xff] %v13321_v43  ;;  %v13332_v47 = vadd.f32 %v10421_v11, %v10373_v22  ;;  %v13339_v4 = vpop.f32.mrf.mxu0  ;;  %v4145_v11 = vor.u32 %v4144_v59, %v4141_v44  ;;  %v4154_v22 = vrot.slane %v4152_v26, 4  ;;  %v4176_v59 = vshrl.u32 %v13337_v49, 16  ;;  %v13363_v55 = vld [vmem:[%s11954_s17 + $0xb0] sm:$0x1] }
 0x12c   : > { %v13334_v19 = vpop.f32.mrf.mxu1  ;;  %16075 = vst [vmem:[#allocation16_spill] sm:$0xff] %v13339_v4  ;;  %v4137_v39 = vsel %vm11999_vm2, %v4132_v6, %v4136_v12  ;;  %v4168_v26 = vrot.slane %v4166_v27, 5  ;;  %16078 = vst [vmem:[#allocation19_spill] sm:$0xff] %v13363_v55  ;;  %v9591_v43 = vld [vmem:[%s11954_s17 + $0xb4] sm:$0xf] }
 0x12d   : > { %16073 = vst [vmem:[#allocation14_spill] sm:$0xff] %v13332_v47  ;;  %16074 = vst [vmem:[#allocation15_spill] sm:$0xff] %v13334_v19  ;;  %v4172_v19 = vshll.u32 %v13337_v49, 16  ;;  %v9625_v33 = vcombine.low %v4127_v18, %v4137_v39  ;;  %v10376_v4 = vpop.f32.mrf.mxu0  ;;  %v4146_v47 = vrot.slane %v4145_v11, 4  ;;  %v4155_v44 = vor.u32 %v4154_v22, %v4150_v35  ;;  %v9594_v29 = vld [vmem:[%s11954_s17 + $0xc0] sm:$0xf] }
 0x12e   : > { %v10424_v30 = vpop.f32.mrf.mxu1  ;;  %v4178_v11 = vrot.slane %v4176_v59, 4  ;;  %v4187_v22 = vshrl.u32 %v9588_v25, 16  ;;  %v4169_v27 = vor.u32 %v4168_v26, %v4165_v15  ;;  %v13398_v9 = vld [vmem:[%s11954_s17 + $0xc4] sm:$0xf] }
 0x12f   : > { %v13359_v61 = vadd.f32 %v10424_v30, %v10376_v4  ;;  %v4174_v12 = vrot.slane %v4172_v19, 5  ;;  %10707 = vmatmul.mubr.bf16.gmra.mxu1 %v9625_v33  ;;  %v4151_v39 = vsel %vm11999_vm2, %v4146_v47, %v4150_v35  ;;  %v4156_v18 = vrot.slane %v4155_v44, 4  ;;  %v987_v57 = vpop.f32.mrf.mxu0  ;;  %v11373_v35 = vld [vmem:[%s11954_s17 + $0xb4] sm:$0xff]  }
 0x130   : > { %v1292_v37 = vpop.f32.mrf.mxu1  ;;  %10663 = vmatmul.mubr.bf16.gmra.mxu0 %v11370_v20  ;;  %v4184_v19 = vrot.slane %v4182_v41, 5  ;;  %v4190_v33 = vshll.u32 %v9588_v25, 16  ;;  %v4189_v44 = vrot.slane %v4187_v22, 4  ;;  %v4170_v15 = vrot.slane %v4169_v27, 4  ;;  %v11375_v25 = vld [vmem:[%s11954_s17 + $0xc0] sm:$0xff]  }
 0x131   : > { %16077 = vst [vmem:[#allocation18_spill] sm:$0xff] %v13359_v61  ;;  %v13368_v4 = vadd.f32 %v1292_v37, %v987_v57  ;;  %10666 = vmatprep.mubr.bf16.mxu0 %v11372_v1  ;;  %v4161_v20 = vsel %vm11999_vm2, %v4156_v18, %v4160_v24  ;;  %v4179_v61 = vor.u32 %v4178_v11, %v4174_v12  ;;  %v10377_v47 = vpop.f32.mrf.mxu0  ;;  %v4196_v37 = vshll.u32 %v13356_v31, 16  ;;  %v13387_v22 = vld [vmem:[%s11954_s17 + $0xbc] sm:$0x1] }
 0x132   : > { %v10425_v6 = vpop.f32.mrf.mxu1  ;;  %v9626_v59 = vcombine.low %v4151_v39, %v4161_v20  ;;  %v4192_v57 = vrot.slane %v4190_v33, 5  ;;  %v4200_v18 = vshrl.u32 %v13356_v31, 16  ;;  %v4206_v11 = vshll.u32 %v13363_v55, 16  ;;  %16083 = vst [vmem:[#allocation24_spill] sm:$0xff] %v13387_v22 }
 0x133   : > { %16079 = vst [vmem:[#allocation20_spill] sm:$0xff] %v13368_v4  ;;  %v13376_v26 = vadd.f32 %v10425_v6, %v10377_v47  ;;  %v4180_v1 = vrot.slane %v4179_v61, 4  ;;  %v13382_v4 = vpop.f32.mrf.mxu0  ;;  %v4198_v24 = vrot.slane %v4196_v37, 5  ;;  %v4175_v6 = vsel %vm11999_vm2, %v4170_v15, %v4174_v12 }
 0x134   : > { %v13370_v30 = vpop.f32.mrf.mxu1  ;;  %16082 = vst [vmem:[#allocation23_spill] sm:$0xff] %v13382_v4  ;;  %10710 = vmatprep.mubr.bf16.mxu1 %v9626_v59  ;;  %v4193_v27 = vor.u32 %v4192_v57, %v4189_v44  ;;  %v4211_v61 = vshrl.u32 %v9591_v43, 16  ;;  %v4202_v37 = vrot.slane %v4200_v18, 4  ;;  %v4208_v4 = vrot.slane %v4206_v11, 5 }
 0x135   : > { %16080 = vst [vmem:[#allocation21_spill] sm:$0xff] %v13370_v30  ;;  %16081 = vst [vmem:[#allocation22_spill] sm:$0xff] %v13376_v26  ;;  %v13379_v30 = vld [vmem:[%s11954_s17 + $0xb8] sm:$0xf]  ;;  %v4185_v20 = vsel %vm11999_vm2, %v4180_v1, %v4184_v19  ;;  %v10380_v47 = vpop.f32.mrf.mxu0  ;;  %v4214_v26 = vshll.u32 %v9591_v43, 16  ;;  %v4230_v1 = vshll.u32 %v13387_v22, 16 }
 0x136   : > { %v10428_v41 = vpop.f32.mrf.mxu1  ;;  %v9627_v38 = vcombine.low %v4175_v6, %v4185_v20  ;;  %v4194_v7 = vrot.slane %v4193_v27, 4  ;;  %v4213_v39 = vrot.slane %v4211_v61, 4  ;;  %v4203_v12 = vor.u32 %v4202_v37, %v4198_v24  ;;  %v9597_v20 = vld [vmem:[%s11954_s17 + $0xcc] sm:$0xf] }
 0x137   : > { %v13395_v55 = vadd.f32 %v10428_v41, %v10380_v47  ;;  %v1003_v44 = vpop.f32.mrf.mxu0  ;;  %v4216_v15 = vrot.slane %v4214_v26, 5  ;;  %v4220_v19 = vshll.u32 %v13379_v30, 16  ;;  %v4224_v57 = vshrl.u32 %v13379_v30, 16 }
 0x138   : > { %v1308_v33 = vpop.f32.mrf.mxu1  ;;  %10667 = vmatmul.mubr.bf16.gmra.mxu0 %v11373_v35  ;;  %10711 = vmatmul.mubr.bf16.gmra.mxu1 %v9627_v38  ;;  %v4199_v43 = vsel %vm11999_vm2, %v4194_v7, %v4198_v24  ;;  %v13410_v35 = vld [vmem:[%s11954_s17 + $0xc8] sm:$0x1]  ;;  %v4235_v26 = vshrl.u32 %v9594_v29, 16  ;;  %v4204_v11 = vrot.slane %v4203_v12, 4  ;;  %v4232_v47 = vrot.slane %v4230_v1, 5 }
 0x139   : > { %16084 = vst [vmem:[#allocation25_spill] sm:$0xff] %v13395_v55  ;;  %v13404_v41 = vadd.f32 %v1308_v33, %v1003_v44  ;;  %10670 = vmatprep.mubr.bf16.mxu0 %v11375_v25  ;;  %16087 = vst [vmem:[#allocation28_spill] sm:$0xff] %v13410_v35  ;;  %v4217_v6 = vor.u32 %v4216_v15, %v4213_v39  ;;  %v4222_v27 = vrot.slane %v4220_v19, 5  ;;  %v4226_v61 = vrot.slane %v4224_v57, 4  ;;  %v10381_v38 = vpop.f32.mrf.mxu0  ;;  %v11376_v33 = vld [vmem:[%s11954_s17 + $0xcc] sm:$0xff]  }
 0x13a   : > { %v10429_v59 = vpop.f32.mrf.mxu1  ;;  %v4237_v37 = vrot.slane %v4235_v26, 4  ;;  %v4238_v44 = vshll.u32 %v9594_v29, 16  ;;  %v4209_v25 = vsel %vm11999_vm2, %v4204_v11, %v4208_v4  ;;  %v4244_v15 = vshll.u32 %v13398_v9, 16  ;;  %v13429_v4 = vld [vmem:[%s11954_s17 + $0xd4] sm:$0x1] }
 0x13b   : > { %16085 = vst [vmem:[#allocation26_spill] sm:$0xff] %v13404_v41  ;;  %v13413_v7 = vadd.f32 %v10429_v59, %v10381_v38  ;;  %v4218_v41 = vrot.slane %v4217_v6, 4  ;;  %v4227_v12 = vor.u32 %v4226_v61, %v4222_v27  ;;  %v13421_v39 = vpop.f32.mrf.mxu0  ;;  %v9628_v19 = vcombine.low %v4199_v43, %v4209_v25  ;;  %v9640_v43 = vld [vmem:[%s11954_s17 + $0x18] sm:$0xe] }
 0x13c   : > { %v13407_v18 = vpop.f32.mrf.mxu1  ;;  %16089 = vst [vmem:[#allocation30_spill] sm:$0xff] %v13421_v39  ;;  %v4240_v59 = vrot.slane %v4238_v44, 5  ;;  %v4248_v57 = vshrl.u32 %v13398_v9, 16  ;;  %v4246_v38 = vrot.slane %v4244_v15, 5  ;;  %v4259_v61 = vshrl.u32 %v9597_v20, 16 }
 0x13d   : > { %16086 = vst [vmem:[#allocation27_spill] sm:$0xff] %v13407_v18  ;;  %16088 = vst [vmem:[#allocation29_spill] sm:$0xff] %v13413_v7  ;;  %v13417_v18 = vld [vmem:[%s11954_s17 + $0xd0] sm:$0xf]  ;;  %v4223_v29 = vsel %vm11999_vm2, %v4218_v41, %v4222_v27  ;;  %v4228_v26 = vrot.slane %v4227_v12, 4  ;;  %v4254_v7 = vshll.u32 %v13410_v35, 16  ;;  %10714 = vmatprep.mubr.bf16.mxu1 %v9628_v19 }
 0x13e   : > { %v10432_v24 = vpop.f32.mrf.mxu1  ;;  %v4241_v11 = vor.u32 %v4240_v59, %v4237_v37  ;;  %v4250_v6 = vrot.slane %v4248_v57, 4  ;;  %v4262_v39 = vshll.u32 %v9597_v20, 16  ;;  %v4268_v27 = vshll.u32 %v13417_v18, 16 }
 0x13f   : > { %v4233_v44 = vsel %vm11999_vm2, %v4228_v26, %v4232_v47  ;;  %v4256_v41 = vrot.slane %v4254_v7, 5  ;;  %v4272_v12 = vshrl.u32 %v13417_v18, 16  ;;  %v4261_v57 = vrot.slane %v4259_v61, 4 }
 0x140   : > { %v1324_v1 = vpop.f32.mrf.mxu1  ;;  %v10384_v25 = vpop.f32.mrf.mxu0  ;;  %10671 = vmatmul.mubr.bf16.gmra.mxu0 %v11376_v33  ;;  %v9629_v15 = vcombine.low %v4223_v29, %v4233_v44  ;;  %v4242_v37 = vrot.slane %v4241_v11, 4  ;;  %v4251_v19 = vor.u32 %v4250_v6, %v4246_v38  ;;  %v4264_v47 = vrot.slane %v4262_v39, 5  ;;  %v9641_v33 = vld [vmem:[%s11954_s17 + $0x24] sm:$0xe]  ;;  %v9642_v44 = vld [vmem:[%s11954_s17 + $0x30] sm:$0xe] }
 0x141   : > { %v13436_v35 = vadd.f32 %v10432_v24, %v10384_v25  ;;  %v4270_v26 = vrot.slane %v4268_v27, 5  ;;  %v4274_v22 = vrot.slane %v4272_v12, 4  ;;  %v4278_v11 = vshll.u32 %v13429_v4, 16  ;;  %v11706_v39 = vld [vmem:[%s11954_s17 + $0x1c] sm:$0xf] }
 0x142   : > { %v10433_v55 = vpop.f32.mrf.mxu1  ;;  %v1019_v59 = vpop.f32.mrf.mxu0  ;;  %10715 = vmatmul.mubr.bf16.gmra.mxu1 %v9629_v15  ;;  %v4247_v7 = vsel %vm11999_vm2, %v4242_v37, %v4246_v38  ;;  %v4252_v29 = vrot.slane %v4251_v19, 4  ;;  %v4265_v25 = vor.u32 %v4264_v47, %v4261_v57  ;;  %v4670_v27 = vrot.slane %v11706_v39, 5 }
 0x143   : > { %16090 = vst [vmem:[#allocation31_spill] sm:$0xff] %v13436_v35  ;;  %v13443_v24 = vadd.f32 %v1324_v1, %v1019_v59  ;;  %v9656_v35 = vrot.slane %v9640_v43, 9  ;;  %v4280_v15 = vrot.slane %v4278_v11, 5  ;;  %v11707_v1 = vld [vmem:[%s11954_s17 + $0x20] sm:$0x1]  ;;  %v9657_v39 = vrot.slane %v9641_v33, 9 }
 0x144   : > { %v13438_v20 = vpop.f32.mrf.mxu1  ;;  %v10385_v61 = vpop.f32.mrf.mxu0  ;;  %v4257_v12 = vsel %vm11999_vm2, %v4252_v29, %v4256_v41  ;;  %v4673_v37 = vrot.slane %v11707_v1, 5  ;;  %v4672_v47 = vrot.slane %v4670_v27, 4  ;;  %v16093_v41 = vrot.slane %v13138_v48, 5  ;;  %v11708_v1 = vld [vmem:[%s11954_s17 + $0x34] sm:$0xf] }
 0x145   : > { %16091 = vst [vmem:[#allocation32_spill] sm:$0xff] %v13438_v20  ;;  %16092 = vst [vmem:[#allocation33_spill] sm:$0xff] %v13443_v24  ;;  %v4275_v20 = vor.u32 %v4274_v22, %v4270_v26  ;;  %v13450_v38 = vadd.f32 %v10433_v55, %v10385_v61  ;;  %v9630_v59 = vcombine.low %v4247_v7, %v4257_v12  ;;  %v4266_v24 = vrot.slane %v4265_v25, 4  ;;  %v9643_v55 = vld [vmem:[%s11954_s17 + $0x3c] sm:$0xe] }
 0x146   : > { %v10500_v6 = vpop.f32.mrf.mxu1  ;;  %v13453_v22 = vpop.f32.mrf.mxu0  ;;  %v4671_v43 = vsel %vm12347_vm5, %v9656_v35, %v4670_v27  ;;  %v4679_v29 = vrot.slane %v16093_v41, 4  ;;  %v9644_v61 = vld [vmem:[%s11954_s17 + $0x48] sm:$0xe]  ;;  %v9658_v12 = vrot.slane %v9642_v44, 9  ;;  %v4684_v35 = vrot.slane %v11708_v1, 5 }
 0x147   : > { %v4276_v57 = vrot.slane %v4275_v20, 4  ;;  %10718 = vmatprep.mubr.bf16.mxu1 %v9630_v59  ;;  %v4271_v7 = vsel %vm11999_vm2, %v4266_v24, %v4270_v26  ;;  %v4674_v33 = vsel %vm12347_vm5, %v4672_v47, %v4673_v37  ;;  %v16094_v59 = vrot.slane %v13138_v48, 5 }
 0x148   : > { %v2052_v19 = vpop.f32.mrf.mxu1  ;;  %v10452_v25 = vpop.f32.mrf.mxu0  ;;  %v16095_v44 = vrot.slane %v13149_v0, 5  ;;  %v4685_v37 = vsel %vm12347_vm5, %v9658_v12, %v4684_v35  ;;  %v9659_v1 = vrot.slane %v9643_v55, 9  ;;  %v9660_v12 = vrot.slane %v9644_v61, 9 }
 0x149   : > { %v4281_v20 = vsel %vm11999_vm2, %v4276_v57, %v4280_v15  ;;  %v1794_v41 = vadd.f32 %v10452_v25, %v13163_v63  ;;  %v4678_v26 = vsel %vm12347_vm5, %v9657_v39, %v16094_v59  ;;  %v9688_v15 = vcombine.low %v4671_v43, %v4674_v33  ;;  %v9645_v25 = vld [vmem:[%s11954_s17 + $0x54] sm:$0xe]  ;;  %v11710_v33 = vld [vmem:[%s11954_s17 + $0x40] sm:$0xf] }
 0x14a   : > { %v10501_v11 = vpop.f32.mrf.mxu1  ;;  %v9631_v27 = vcombine.low %v4271_v7, %v4281_v20  ;;  %v4681_v57 = vsel %vm12347_vm5, %v4679_v29, %v16095_v44  ;;  %v1665_v7 = vpop.f32.mrf.mxu0  ;;  %v4686_v63 = vrot.slane %v4684_v35, 4  ;;  %v11709_v20 = vld [vmem:[%s11954_s17 + $0x38] sm:$0x1]  ;;  %v4691_v59 = vrot.slane %v11710_v33, 5  ;;  %v11711_v44 = vld [vmem:[%s11954_s17 + $0x4c] sm:$0xf] }
 0x14b   : > { %v9689_v48 = vcombine.low %v4678_v26, %v4681_v57  ;;  %v1792_v47 = vadd.f32 %v1665_v7, %v13178_v46  ;;  %v13482_v39 = vadd.f32 %v10500_v6, %v1794_v41  ;;  %v4687_v43 = vrot.slane %v11709_v20, 5  ;;  %10738 = vmatprep.mubr.bf16.mxu0 %v9688_v15  ;;  %v11712_v26 = vld [vmem:[%s11954_s17 + $0x50] sm:$0x1]  ;;  %v9646_v15 = vld [vmem:[%s11954_s17 + $0x60] sm:$0xe] }
 0x14c   : > { %v13473_v24 = vpop.f32.mrf.mxu1  ;;  %10719 = vmatmul.mubr.bf16.gmra.mxu1 %v9631_v27  ;;  %v10453_v29 = vpop.f32.mrf.mxu0  ;;  %v4698_v35 = vrot.slane %v11711_v44, 5  ;;  %v4701_v57 = vrot.slane %v11712_v26, 5  ;;  %v4722_v55 = vrot.slane %v13251_v32, 5  ;;  %v4692_v61 = vsel %vm12347_vm5, %v9659_v1, %v4691_v59 }
 0x14d   : > { %10739 = vmatmul.mubr.bf16.vlgmr.msra.gmra.mxu0 %v9689_v48  ;;  %v1795_v27 = vadd.f32 %v10453_v29, %v13183_v28  ;;  %v13489_v46 = vadd.f32 %v2052_v19, %v1792_v47  ;;  %v4688_v6 = vsel %vm12347_vm5, %v4686_v63, %v4687_v43  ;;  %v4693_v48 = vrot.slane %v4691_v59, 4  ;;  %v9647_v29 = vld [vmem:[%s11954_s17 + $0x6c] sm:$0xe] }
 0x14e   : > { %v10504_v0 = vpop.f32.mrf.mxu1  ;;  %v1668_v7 = vpop.f32.mrf.mxu0  ;;  %v9690_v20 = vcombine.low %v4685_v37, %v4688_v6  ;;  %v4699_v63 = vsel %vm12347_vm5, %v9660_v12, %v4698_v35  ;;  %v4700_v43 = vrot.slane %v4698_v35, 4  ;;  %v16096_v32 = vrot.slane %v13176_v10, 5 }
 0x14f   : > { %v13499_v28 = vadd.f32 %v1668_v7, %v13192_v53  ;;  %v13501_v19 = vadd.f32 %v10501_v11, %v1795_v27  ;;  %v9661_v1 = vrot.slane %v9645_v25, 9  ;;  %v4705_v59 = vrot.slane %v13202_v21, 5 }
 0x150   : > { %v2068_v41 = vpop.f32.mrf.mxu1  ;;  %10742 = vmatprep.mubr.bf16.mxu0 %v9690_v20  ;;  %v10456_v33 = vpop.f32.mrf.mxu0  ;;  %v4695_v37 = vsel %vm12347_vm5, %v4693_v48, %v16096_v32  ;;  %v4712_v53 = vrot.slane %v13232_v50, 5  ;;  %v4702_v12 = vsel %vm12347_vm5, %v4700_v43, %v4701_v57  ;;  %v9662_v26 = vrot.slane %v9646_v15, 9 }
 0x151   : > { %v1798_v11 = vadd.f32 %v10456_v33, %v13198_v52  ;;  %v9691_v44 = vcombine.low %v4692_v61, %v4695_v37  ;;  %v9692_v6 = vcombine.low %v4699_v63, %v4702_v12  ;;  %v4707_v10 = vrot.slane %v4705_v59, 4  ;;  %v9648_v33 = vld [vmem:[%s11954_s17 + $0x78] sm:$0xe] }
 0x152   : > { %v10505_v47 = vpop.f32.mrf.mxu1  ;;  %v1681_v27 = vpop.f32.mrf.mxu0  ;;  %v4714_v20 = vrot.slane %v4712_v53, 4  ;;  %v4715_v50 = vrot.slane %v13240_v56, 5  ;;  %v9663_v48 = vrot.slane %v9647_v29, 9  ;;  %v4719_v61 = vrot.slane %v13245_v58, 5 }
 0x153   : > { %v1796_v7 = vadd.f32 %v1681_v27, %v13207_v16  ;;  %v13518_v25 = vadd.f32 %v10504_v0, %v1798_v11  ;;  %v4706_v16 = vsel %vm12347_vm5, %v9661_v1, %v4705_v59  ;;  %v16097_v63 = vrot.slane %v13210_v3, 5 }
 0x154   : > { %v13515_v35 = vpop.f32.mrf.mxu1  ;;  %v10457_v52 = vpop.f32.mrf.mxu0  ;;  %v13534_v58 = vsel %vm12347_vm5, %v9663_v48, %v4719_v61  ;;  %v4721_v29 = vrot.slane %v4719_v61, 4  ;;  %v4713_v1 = vsel %vm12347_vm5, %v9662_v26, %v4712_v53  ;;  %v4716_v3 = vsel %vm12347_vm5, %v4714_v20, %v4715_v50  ;;  %v9650_v48 = vld [vmem:[%s11954_s17 + $0x90] sm:$0xe] }
 0x155   : > { %10743 = vmatmul.mubr.bf16.gmra.mxu0 %v9691_v44  ;;  %v1799_v57 = vadd.f32 %v10457_v52, %v13219_v42  ;;  %v13524_v43 = vadd.f32 %v2068_v41, %v1796_v7  ;;  %v4709_v56 = vsel %vm12347_vm5, %v4707_v10, %v16097_v63  ;;  %v4726_v42 = vrot.slane %v13276_v54, 5  ;;  %v9649_v44 = vld [vmem:[%s11954_s17 + $0x84] sm:$0xe] }
 0x156   : > { %v10508_v21 = vpop.f32.mrf.mxu1  ;;  %v1684_v15 = vpop.f32.mrf.mxu0  ;;  %10746 = vmatprep.mubr.bf16.mxu0 %v9692_v6  ;;  %v4723_v11 = vsel %vm12347_vm5, %v4721_v29, %v4722_v55  ;;  %v9693_v12 = vcombine.low %v4706_v16, %v4709_v56  ;;  %v9664_v27 = vrot.slane %v9648_v33, 9  ;;  %v9694_v10 = vcombine.low %v4713_v1, %v4716_v3  ;;  %v13578_v29 = vld [vmem:[%s11954_s17 + $0xa8] sm:$0xe] }
 0x157   : > { %v13538_v41 = vadd.f32 %v1684_v15, %v13222_v36  ;;  %v13540_v32 = vadd.f32 %v10505_v47, %v1799_v57  ;;  %v9695_v47 = vcombine.low %v13534_v58, %v4723_v11  ;;  %v4728_v53 = vrot.slane %v4726_v42, 4  ;;  %v13569_v15 = vld [vmem:[%s11954_s17 + $0x9c] sm:$0xe]  ;;  %v13585_v11 = vld [vmem:[%s11954_s17 + $0xb4] sm:$0xe] }
 0x158   : > { %v2084_v0 = vpop.f32.mrf.mxu1  ;;  %v10460_v59 = vpop.f32.mrf.mxu0  ;;  %v4729_v26 = vrot.slane %v13284_v34, 5  ;;  %v4733_v50 = vrot.slane %v13302_v14, 5  ;;  %v9665_v52 = vrot.slane %v9649_v44, 9  ;;  %v4740_v61 = vrot.slane %v13324_v17, 5 }
 0x159   : > { %v1802_v54 = vadd.f32 %v10460_v59, %v13234_v51  ;;  %v16054_v17 = vrot.slane %v13337_v49, 5  ;;  %v9666_v58 = vrot.slane %v9650_v48, 9  ;;  %v4743_v3 = vrot.slane %v13327_v5, 5 }
 0x15a   : > { %v10509_v37 = vpop.f32.mrf.mxu1  ;;  %v1697_v6 = vpop.f32.mrf.mxu0  ;;  %v4730_v14 = vsel %vm12347_vm5, %v4728_v53, %v4729_v26  ;;  %v4735_v56 = vrot.slane %v4733_v50, 4  ;;  %v4742_v1 = vrot.slane %v4740_v61, 4  ;;  %v16053_v26 = vrot.slane %v13379_v30, 5 }
 0x15b   : > { %v1800_v7 = vadd.f32 %v1697_v6, %v13247_v2  ;;  %v13555_v20 = vadd.f32 %v10508_v21, %v1802_v54  ;;  %v4727_v2 = vsel %vm12347_vm5, %v9664_v27, %v4726_v42  ;;  %v4736_v21 = vrot.slane %v13309_v8, 5  ;;  %v13592_v27 = vld [vmem:[%s11954_s17 + $0xc0] sm:$0xe] }
 0x15c   : > { %v13550_v36 = vpop.f32.mrf.mxu1  ;;  %v10461_v51 = vpop.f32.mrf.mxu0  ;;  %v9696_v44 = vcombine.low %v4727_v2, %v4730_v14  ;;  %v4749_v54 = vrot.slane %v16054_v17, 4  ;;  %v4741_v14 = vsel %vm12347_vm5, %v9666_v58, %v4740_v61  ;;  %v4763_v61 = vrot.slane %v16053_v26, 4 }
 0x15d   : > { %10747 = vmatmul.mubr.bf16.gmra.mxu0 %v9693_v12  ;;  %v1803_v33 = vadd.f32 %v10461_v51, %v13263_v45  ;;  %v13561_v57 = vadd.f32 %v2084_v0, %v1800_v7  ;;  %v4754_v12 = vrot.slane %v13356_v31, 5  ;;  %v4734_v51 = vsel %vm12347_vm5, %v9665_v52, %v4733_v50 }
 0x15e   : > { %v10512_v55 = vpop.f32.mrf.mxu1  ;;  %v1700_v16 = vpop.f32.mrf.mxu0  ;;  %10750 = vmatprep.mubr.bf16.mxu0 %v9694_v10  ;;  %v16099_v10 = vld [vmem:[#allocation17_spill] sm:$0xff]  ;;  %v4737_v48 = vsel %vm12347_vm5, %v4735_v56, %v4736_v21  ;;  %v9668_v31 = vrot.slane %v13578_v29, 9  ;;  %v16101_v21 = vld [vmem:[#allocation19_spill] sm:$0xff]  ;;  %v9669_v29 = vrot.slane %v13585_v11, 9  ;;  %v9670_v58 = vrot.slane %v13592_v27, 9  ;;  %v16105_v11 = vld [vmem:[#allocation12_spill] sm:$0xff] }
 0x15f   : > { %v13573_v45 = vadd.f32 %v1700_v16, %v13265_v23  ;;  %v13575_v0 = vadd.f32 %v10509_v37, %v1803_v33  ;;  %v9667_v37 = vrot.slane %v13569_v15, 9  ;;  %v4750_v53 = vrot.slane %v16099_v10, 5  ;;  %v16107_v27 = vld [vmem:[#allocation14_spill] sm:$0xff] }
 0x160   : > { %v2100_v34 = vpop.f32.mrf.mxu1  ;;  %v10464_v42 = vpop.f32.mrf.mxu0  ;;  %v16057_v33 = vrot.slane %v13398_v9, 5  ;;  %v4744_v15 = vsel %vm12347_vm5, %v4742_v1, %v4743_v3  ;;  %v4756_v52 = vrot.slane %v4754_v12, 4  ;;  %v4757_v56 = vrot.slane %v16101_v21, 5 }
 0x161   : > { %v1806_v8 = vadd.f32 %v10464_v42, %v13278_v62  ;;  %v16102_v42 = vld [vmem:[#allocation24_spill] sm:$0xff] }
 0x162   : > { %v10513_v63 = vpop.f32.mrf.mxu1  ;;  %v1713_v23 = vpop.f32.mrf.mxu0  ;;  %v4770_v3 = vrot.slane %v16057_v33, 4 }
 0x163   : > { %v1804_v6 = vadd.f32 %v1713_v23, %v13291_v13  ;;  %v13595_v5 = vadd.f32 %v10512_v55, %v1806_v8  ;;  %v16100_v13 = vld [vmem:[#allocation10_spill] sm:$0xff]  ;;  %v16103_v8 = vld [vmem:[#allocation11_spill] sm:$0xff] }
 0x164   : > { %v13582_v59 = vpop.f32.mrf.mxu1  ;;  %v10465_v7 = vpop.f32.mrf.mxu0 }
 0x165   : > { %16098 = vst [vmem:[#allocation34_spill] sm:$0xff] %v13582_v59  ;;  %10751 = vmatmul.mubr.bf16.gmra.mxu0 %v9695_v47  ;;  %v1807_v55 = vadd.f32 %v10465_v7, %v16100_v13  ;;  %v13606_v16 = vadd.f32 %v2100_v34, %v1804_v6  ;;  %v4764_v47 = vrot.slane %v16102_v42, 5  ;;  %v9697_v13 = vcombine.low %v4734_v51, %v4737_v48 }
 0x166   : > { %v10516_v62 = vpop.f32.mrf.mxu1  ;;  %v1716_v50 = vpop.f32.mrf.mxu0  ;;  %10754 = vmatprep.mubr.bf16.mxu0 %v9696_v44  ;;  %v16104_v44 = vld [vmem:[#allocation28_spill] sm:$0xff]  ;;  %v16108_v51 = vrot.slane %v13337_v49, 5 }
 0x167   : > { %v13616_v23 = vadd.f32 %v1716_v50, %v16103_v8  ;;  %v13618_v34 = vadd.f32 %v10513_v63, %v1807_v55  ;;  %v4771_v10 = vrot.slane %v16104_v44, 5  ;;  %v9698_v63 = vcombine.low %v4741_v14, %v4744_v15  ;;  %v16106_v55 = vld [vmem:[#allocation13_spill] sm:$0xff] }
 0x168   : > { %v2116_v2 = vpop.f32.mrf.mxu1  ;;  %v10468_v1 = vpop.f32.mrf.mxu0  ;;  %v4748_v48 = vsel %vm12347_vm5, %v9667_v37, %v16108_v51  ;;  %v4775_v51 = vrot.slane %v13417_v18, 5 }
 0x169   : > { %v1810_v7 = vadd.f32 %v10468_v1, %v16105_v11  ;;  %v16109_v11 = vld [vmem:[#allocation18_spill] sm:$0xff] }
 0x16a   : > { %v10517_v6 = vpop.f32.mrf.mxu1  ;;  %v1729_v50 = vpop.f32.mrf.mxu0 }
 0x16b   : > { %v1808_v42 = vadd.f32 %v1729_v50, %v16106_v55  ;;  %v13630_v8 = vadd.f32 %v10516_v62, %v1810_v7  ;;  %v4751_v62 = vsel %vm12347_vm5, %v4749_v54, %v4750_v53 }
 0x16c   : > { %v13627_v21 = vpop.f32.mrf.mxu1  ;;  %v10469_v17 = vpop.f32.mrf.mxu0 }
 0x16d   : > { %10755 = vmatmul.mubr.bf16.gmra.mxu0 %v9697_v13  ;;  %v1811_v40 = vadd.f32 %v10469_v17, %v16107_v27  ;;  %v13633_v59 = vadd.f32 %v2116_v2, %v1808_v42  ;;  %v4755_v17 = vsel %vm12347_vm5, %v9668_v31, %v4754_v12  ;;  %v4758_v2 = vsel %vm12347_vm5, %v4756_v52, %v4757_v56  ;;  %v16111_v12 = vld [vmem:[#allocation22_spill] sm:$0xff] }
 0x16e   : > { %v10520_v26 = vpop.f32.mrf.mxu1  ;;  %v13635_v44 = vpop.f32.mrf.mxu0  ;;  %10758 = vmatprep.mubr.bf16.mxu0 %v9698_v63  ;;  %v9699_v13 = vcombine.low %v4748_v48, %v4751_v62  ;;  %v9700_v37 = vcombine.low %v4755_v17, %v4758_v2  ;;  %v16110_v63 = vld [vmem:[#allocation20_spill] sm:$0xff]  ;;  %v16112_v42 = vrot.slane %v13379_v30, 5  ;;  %v4772_v2 = vsel %vm12347_vm5, %v4770_v3, %v4771_v10  ;;  %v16116_v3 = vld [vmem:[#allocation29_spill] sm:$0xff] }
 0x16f   : > { %v13643_v14 = vadd.f32 %v10517_v6, %v1811_v40  ;;  %v9655_v30 = vld [vmem:[%s11954_s17 + $0xcc] sm:$0xe] }
 0x170   : > { %v2132_v33 = vpop.f32.mrf.mxu1  ;;  %v10472_v1 = vpop.f32.mrf.mxu0  ;;  %v4762_v27 = vsel %vm12347_vm5, %v9669_v29, %v16112_v42 }
 0x171   : > { %v1814_v7 = vadd.f32 %v10472_v1, %v16109_v11  ;;  %v16114_v11 = vld [vmem:[#allocation25_spill] sm:$0xff] }
 0x172   : > { %v10521_v15 = vpop.f32.mrf.mxu1  ;;  %v1745_v50 = vpop.f32.mrf.mxu0 }
 0x173   : > { %v1812_v55 = vadd.f32 %v1745_v50, %v16110_v63  ;;  %v13653_v54 = vadd.f32 %v10520_v26, %v1814_v7  ;;  %v4765_v26 = vsel %vm12347_vm5, %v4763_v61, %v4764_v47  ;;  %v9671_v61 = vrot.slane %v9655_v30, 9 }
 0x174   : > { %v13650_v49 = vpop.f32.mrf.mxu1  ;;  %v10473_v53 = vpop.f32.mrf.mxu0  ;;  %v9701_v7 = vcombine.low %v4762_v27, %v4765_v26  ;;  %v4778_v50 = vrot.slane %v13429_v4, 5 }
 0x175   : > { %10759 = vmatmul.mubr.bf16.gmra.mxu0 %v9699_v13  ;;  %v1815_v31 = vadd.f32 %v10473_v53, %v16111_v12  ;;  %v13656_v6 = vadd.f32 %v2132_v33, %v1812_v55  ;;  %v16113_v33 = vrot.slane %v13398_v9, 5  ;;  %v16115_v9 = vld [vmem:[#allocation26_spill] sm:$0xff]  ;;  %v4776_v42 = vsel %vm12347_vm5, %v9671_v61, %v4775_v51 }
 0x176   : > { %v10524_v40 = vpop.f32.mrf.mxu1  ;;  %v13658_v56 = vpop.f32.mrf.mxu0  ;;  %10762 = vmatprep.mubr.bf16.mxu0 %v9700_v37 }
 0x177   : > { %v13667_v48 = vadd.f32 %v10521_v15, %v1815_v31  ;;  %v4769_v17 = vsel %vm12347_vm5, %v9670_v58, %v16113_v33  ;;  %v4777_v15 = vrot.slane %v4775_v51, 4  ;;  %v16117_v33 = vld [vmem:[#allocation31_spill] sm:$0xff] }
 0x178   : > { %v2148_v52 = vpop.f32.mrf.mxu1  ;;  %v10476_v1 = vpop.f32.mrf.mxu0  ;;  %v9702_v18 = vcombine.low %v4769_v17, %v4772_v2 }
 0x179   : > { %v1818_v29 = vadd.f32 %v10476_v1, %v16114_v11  ;;  %v4779_v4 = vsel %vm12347_vm5, %v4777_v15, %v4778_v50  ;;  %v16118_v1 = vld [vmem:[#allocation33_spill] sm:$0xff] }
 0x17a   : > { %v10525_v62 = vpop.f32.mrf.mxu1  ;;  %v1761_v47 = vpop.f32.mrf.mxu0  ;;  %v9703_v2 = vcombine.low %v4776_v42, %v4779_v4 }
 0x17b   : > { %v1816_v37 = vadd.f32 %v1761_v47, %v16115_v9  ;;  %v13681_v63 = vadd.f32 %v10524_v40, %v1818_v29 }
 0x17c   : > { %v13677_v13 = vpop.f32.mrf.mxu1  ;;  %v10477_v55 = vpop.f32.mrf.mxu0 }
 0x17d   : > { %10763 = vmatmul.mubr.bf16.gmra.mxu0 %v9701_v7  ;;  %v1819_v10 = vadd.f32 %v10477_v55, %v16116_v3  ;;  %v13684_v53 = vadd.f32 %v2148_v52, %v1816_v37  ;;  %v11378_v55 = vld [vmem:[#allocation3 + $0x78] sm:$0xff]  }
 0x17e   : > { %v10528_v58 = vpop.f32.mrf.mxu1  ;;  %v13686_v31 = vpop.f32.mrf.mxu0  ;;  %10766 = vmatprep.mubr.bf16.mxu0 %v9702_v18  ;;  %10770 = vmatprep.subr.bf16.mxu1 %v11378_v55 }
 0x17f   : > { %v13692_v27 = vadd.f32 %v10525_v62, %v1819_v10  ;;  %10771 = vmatpush3.bf16.msra.mxu1 %v11378_v55 }
 0x180   : > { %v2164_v12 = vpop.f32.mrf.mxu1  ;;  %v10480_v26 = vpop.f32.mrf.mxu0 }
 0x181   : > { %v1822_v17 = vadd.f32 %v10480_v26, %v16117_v33 }
 0x182   : > { %v10529_v40 = vpop.f32.mrf.mxu1  ;;  %v1777_v52 = vpop.f32.mrf.mxu0 }
 0x183   : > { %v1820_v11 = vadd.f32 %v1777_v52, %v16118_v1  ;;  %v13698_v29 = vadd.f32 %v10528_v58, %v1822_v17 }
 0x184   : > { %v13695_v30 = vpop.f32.mrf.mxu1  ;;  %v10481_v51 = vpop.f32.mrf.mxu0 }
 0x185   : > { %10767 = vmatmul.mubr.bf16.gmra.mxu0 %v9703_v2  ;;  %v1823_v60 = vadd.f32 %v10481_v51, %v13450_v38  ;;  %v13703_v62 = vadd.f32 %v2164_v12, %v1820_v11 }
 0x186   : > { %v13700_v7 = vpop.f32.mrf.mxu1  ;;  %v13707_v18 = vpop.f32.mrf.mxu0 }
 0x187   : > { %v13709_v61 = vadd.f32 %v10529_v40, %v1823_v60 }
 0x188   : > { %v13705_v47 = vpop.f32.mrf.mxu1  ;;  %v10548_v50 = vpop.f32.mrf.mxu0 }
 0x189   : > { %v13714_v9 = vadd.f32 %v10548_v50, %v13482_v39 }
 0x18a   : > { %v13711_v15 = vpop.f32.mrf.mxu1  ;;  %v2806_v58 = vpop.f32.mrf.mxu0 }
 0x18b   : > { %v13719_v38 = vadd.f32 %v2806_v58, %v13489_v46 }
 0x18c   : > { %v13716_v37 = vpop.f32.mrf.mxu1  ;;  %v10549_v10 = vpop.f32.mrf.mxu0 }
 0x18d   : > { %v13724_v12 = vadd.f32 %v10549_v10, %v13501_v19 }
 0x18e   : > { %v13721_v3 = vpop.f32.mrf.mxu1  ;;  %v13728_v4 = vpop.f32.mrf.mxu0 }
 0x190   : > { %v13726_v42 = vpop.f32.mrf.mxu1  ;;  %v10552_v40 = vpop.f32.mrf.mxu0 }
 0x191   : > { %v13733_v26 = vadd.f32 %v10552_v40, %v13518_v25 }
 0x192   : > { %v13730_v39 = vpop.f32.mrf.mxu1  ;;  %v2822_v33 = vpop.f32.mrf.mxu0 }
 0x193   : > { %v13738_v17 = vadd.f32 %v2822_v33, %v13524_v43 }
 0x194   : > { %v13735_v46 = vpop.f32.mrf.mxu1  ;;  %v10553_v19 = vpop.f32.mrf.mxu0 }
 0x195   : > { %v13743_v52 = vadd.f32 %v10553_v19, %v13540_v32 }
 0x196   : > { %v13740_v2 = vpop.f32.mrf.mxu1  ;;  %v13747_v11 = vpop.f32.mrf.mxu0 }
 0x198   : > { %v13745_v1 = vpop.f32.mrf.mxu1  ;;  %v10556_v25 = vpop.f32.mrf.mxu0 }
 0x199   : > { %v13752_v60 = vadd.f32 %v10556_v25, %v13555_v20 }
 0x19a   : > { %v13749_v51 = vpop.f32.mrf.mxu1  ;;  %v2838_v43 = vpop.f32.mrf.mxu0 }
 0x19b   : > { %16119 = vst [vmem:[#allocation17_spill] sm:$0xff] %v13749_v51  ;;  %v13757_v58 = vadd.f32 %v2838_v43, %v13561_v57 }
 0x19c   : > { %v13754_v50 = vpop.f32.mrf.mxu1  ;;  %v10557_v32 = vpop.f32.mrf.mxu0 }
 0x19d   : > { %16120 = vst [vmem:[#allocation10_spill] sm:$0xff] %v13754_v50  ;;  %v13762_v10 = vadd.f32 %v10557_v32, %v13575_v0  ;;  %v11379_v32 = vld [vmem:[#allocation3 + $0x70] sm:$0xff]  }
 0x19e   : > { %v13759_v55 = vpop.f32.mrf.mxu1  ;;  %v13766_v33 = vpop.f32.mrf.mxu0  ;;  %10772 = vmatprep.subr.bf16.mxu1 %v11379_v32 }
 0x19f   : > { %16121 = vst [vmem:[#allocation19_spill] sm:$0xff] %v13759_v55  ;;  %10773 = vmatpush3.bf16.msra.mxu1 %v11379_v32  ;;  %v11381_v32 = vld [vmem:[#allocation3 + $0x60] sm:$0xff]  }
 0x1a0   : > { %v13764_v40 = vpop.f32.mrf.mxu1  ;;  %v10560_v20 = vpop.f32.mrf.mxu0 }
 0x1a1   : > { %16122 = vst [vmem:[#allocation24_spill] sm:$0xff] %v13764_v40  ;;  %v13771_v25 = vadd.f32 %v10560_v20, %v13595_v5 }
 0x1a2   : > { %v13768_v19 = vpop.f32.mrf.mxu1  ;;  %v2854_v57 = vpop.f32.mrf.mxu0 }
 0x1a3   : > { %16123 = vst [vmem:[#allocation11_spill] sm:$0xff] %v13768_v19  ;;  %16124 = vst [vmem:[#allocation28_spill] sm:$0xff] %v13771_v25  ;;  %v13776_v43 = vadd.f32 %v2854_v57, %v13606_v16  ;;  %v11383_v25 = vld [vmem:[#allocation3 + $0x38] sm:$0xff]  }
 0x1a4   : > { %v13773_v50 = vpop.f32.mrf.mxu1  ;;  %v10561_v0 = vpop.f32.mrf.mxu0  ;;  %10818 = vmatprep.subr.bf16.mxu0 %v11383_v25 }
 0x1a5   : > { %16125 = vst [vmem:[#allocation12_spill] sm:$0xff] %v13773_v50  ;;  %v13781_v40 = vadd.f32 %v10561_v0, %v13618_v34  ;;  %v11380_v50 = vld [vmem:[#allocation3 + $0x68] sm:$0xff]   ;;  %10819 = vmatpush3.bf16.msra.mxu0 %v11383_v25 }
 0x1a6   : > { %v13778_v55 = vpop.f32.mrf.mxu1  ;;  %v13785_v19 = vpop.f32.mrf.mxu0  ;;  %10774 = vmatprep.subr.bf16.mxu1 %v11380_v50 }
 0x1a7   : > { %16126 = vst [vmem:[#allocation13_spill] sm:$0xff] %v13778_v55  ;;  %16127 = vst [vmem:[#allocation14_spill] sm:$0xff] %v13781_v40  ;;  %10775 = vmatpush3.bf16.msra.mxu1 %v11380_v50  ;;  %v11386_v50 = vld [vmem:[#allocation3 + $0x28] sm:$0xff]  }
 0x1a8   : > { %v13783_v51 = vpop.f32.mrf.mxu1  ;;  %v10564_v20 = vpop.f32.mrf.mxu0  ;;  %10776 = vmatprep.subr.bf16.mxu1 %v11381_v32 }
 0x1a9   : > { %16128 = vst [vmem:[#allocation18_spill] sm:$0xff] %v13783_v51  ;;  %v13790_v16 = vadd.f32 %v10564_v20, %v13630_v8  ;;  %v11384_v51 = vld [vmem:[#allocation3 + $0x30] sm:$0xff]  }
 0x1aa   : > { %v13787_v5 = vpop.f32.mrf.mxu1  ;;  %v2870_v55 = vpop.f32.mrf.mxu0  ;;  %10820 = vmatprep.subr.bf16.mxu0 %v11384_v51 }
 0x1ab   : > { %16129 = vst [vmem:[#allocation20_spill] sm:$0xff] %v13787_v5  ;;  %v13795_v34 = vadd.f32 %v2870_v55, %v13633_v59  ;;  %10777 = vmatpush3.bf16.msra.mxu1 %v11381_v32  ;;  %10821 = vmatpush3.bf16.msra.mxu0 %v11384_v51  ;;  %v11382_v55 = vld [vmem:[#allocation3 + $0x58] sm:$0xff]   ;;  %v11385_v51 = vld [vmem:[#allocation3 + $0x50] sm:$0xff]  }
 0x1ac   : > { %v13792_v57 = vpop.f32.mrf.mxu1  ;;  %v10565_v5 = vpop.f32.mrf.mxu0  ;;  %10778 = vmatprep.subr.bf16.mxu1 %v11382_v55  ;;  %10822 = vmatprep.subr.bf16.mxu0 %v11386_v50 }
 0x1ad   : > { %16130 = vst [vmem:[#allocation22_spill] sm:$0xff] %v13792_v57  ;;  %v13800_v40 = vadd.f32 %v10565_v5, %v13643_v14 }
 0x1ae   : > { %v13797_v0 = vpop.f32.mrf.mxu1  ;;  %v13804_v20 = vpop.f32.mrf.mxu0 }
 0x1af   : > { %16131 = vst [vmem:[#allocation25_spill] sm:$0xff] %v13797_v0  ;;  %16132 = vst [vmem:[#allocation26_spill] sm:$0xff] %v13800_v40  ;;  %10779 = vmatpush3.bf16.msra.mxu1 %v11382_v55  ;;  %10823 = vmatpush3.bf16.msra.mxu0 %v11386_v50  ;;  %v11389_v55 = vld [vmem:[#allocation3 + $0x18] sm:$0xff]  }
 0x1b0   : > { %v13802_v8 = vpop.f32.mrf.mxu1  ;;  %v10568_v59 = vpop.f32.mrf.mxu0  ;;  %10780 = vmatprep.subr.bf16.mxu1 %v11385_v51 }
 0x1b1   : > { %16133 = vst [vmem:[#allocation29_spill] sm:$0xff] %v13802_v8  ;;  %v13809_v25 = vadd.f32 %v10568_v59, %v13653_v54 }
 0x1b2   : > { %v13806_v57 = vpop.f32.mrf.mxu1  ;;  %v2886_v14 = vpop.f32.mrf.mxu0 }
 0x1b3   : > { %16134 = vst [vmem:[#allocation31_spill] sm:$0xff] %v13806_v57  ;;  %v13814_v5 = vadd.f32 %v2886_v14, %v13656_v6  ;;  %v11387_v57 = vld [vmem:[#allocation3 + $0x20] sm:$0xff]   ;;  %10781 = vmatpush3.bf16.msra.mxu1 %v11385_v51  ;;  %v16058_v6 = vmov 0.0  }
 0x1b4   : > { %v13811_v0 = vpop.f32.mrf.mxu1  ;;  %v10569_v32 = vpop.f32.mrf.mxu0  ;;  %10824 = vmatprep.subr.bf16.mxu0 %v11387_v57  ;;  %5404 = vst [vmem:[#allocation2] sm:$0xff] %v16058_v6  ;;  %5405 = vst [vmem:[#allocation2 + $0x8] sm:$0xff] %v16058_v6 }
 0x1b5   : > { %16135 = vst [vmem:[#allocation33_spill] sm:$0xff] %v13811_v0  ;;  %v13819_v40 = vadd.f32 %v10569_v32, %v13667_v48  ;;  %10825 = vmatpush3.bf16.msra.mxu0 %v11387_v57  ;;  %5406 = vst [vmem:[#allocation2 + $0x10] sm:$0x3] %v16058_v6  ;;  %v11388_v57 = vld [vmem:[#allocation3 + $0x48] sm:$0xff]  }
 0x1b6   : > { %v13816_v8 = vpop.f32.mrf.mxu1  ;;  %v13823_v59 = vpop.f32.mrf.mxu0  ;;  %5408 = vst [vmem:[#allocation2 + $0x198] sm:$0xff] %v16058_v6  ;;  %5409 = vst [vmem:[#allocation2 + $0x1a0] sm:$0xff] %v16058_v6  ;;  %10782 = vmatprep.subr.bf16.mxu1 %v11388_v57  ;;  %10826 = vmatprep.subr.bf16.mxu0 %v11389_v55 }
 0x1b7   : > { %16136 = vst [vmem:[#allocation35_spill] sm:$0xff] %v13816_v8  ;;  %16137 = vst [vmem:[#allocation36_spill] sm:$0xff] %v13819_v40  ;;  %10783 = vmatpush3.bf16.msra.mxu1 %v11388_v57  ;;  %v11391_v8 = vld [vmem:[#allocation3 + $0x40] sm:$0xff]  }
 0x1b8   : > { %v13821_v54 = vpop.f32.mrf.mxu1  ;;  %5410 = vst [vmem:[#allocation2 + $0x1a8] sm:$0x3] %v16058_v6  ;;  %5412 = vst [vmem:[#allocation2 + $0x18] sm:$0x1] %v16058_v6  ;;  %v10572_v48 = vpop.f32.mrf.mxu0  ;;  %10784 = vmatprep.subr.bf16.mxu1 %v11391_v8 }
 0x1b9   : > { %16138 = vst [vmem:[#allocation37_spill] sm:$0xff] %v13821_v54  ;;  %5413 = vst [vmem:[#allocation2 + $0x30] sm:$0x1] %v16058_v6  ;;  %v13870_v50 = vadd.f32 %v10572_v48, %v13681_v63  ;;  %10827 = vmatpush3.bf16.msra.mxu0 %v11389_v55  ;;  %v11390_v54 = vld [vmem:[#allocation3 + $0x10] sm:$0xff]   ;;  %v11392_v55 = vld [vmem:[#allocation3 + $0x8] sm:$0xff]  }
 0x1ba   : > { %v13825_v0 = vpop.f32.mrf.mxu1  ;;  %5414 = vst [vmem:[#allocation2 + $0x48] sm:$0x1] %v16058_v6  ;;  %5415 = vst [vmem:[#allocation2 + $0x60] sm:$0x1] %v16058_v6  ;;  %v2902_v32 = vpop.f32.mrf.mxu0  ;;  %10828 = vmatprep.subr.bf16.mxu0 %v11390_v54 }
 0x1bb   : > { %16139 = vst [vmem:[#allocation38_spill] sm:$0xff] %v13825_v0  ;;  %5416 = vst [vmem:[#allocation2 + $0x78] sm:$0x1] %v16058_v6  ;;  %v13875_v51 = vadd.f32 %v2902_v32, %v13684_v53  ;;  %v5544_v48 = vld [vmem:[#allocation2 + $0x1] sm:$0xff]  ;;  %10785 = vmatpush3.bf16.msra.mxu1 %v11391_v8 }
 0x1bc   : > { %5417 = vst [vmem:[#allocation2 + $0x90] sm:$0x1] %v16058_v6  ;;  %5418 = vst [vmem:[#allocation2 + $0xa8] sm:$0x1] %v16058_v6  ;;  %v13872_v14 = vpop.f32.mrf.mxu1  ;;  %v10573_v0 = vpop.f32.mrf.mxu0 }
 0x1bd   : > { %5419 = vst [vmem:[#allocation2 + $0xc0] sm:$0x1] %v16058_v6  ;;  %5420 = vst [vmem:[#allocation2 + $0xd8] sm:$0x1] %v16058_v6  ;;  %v13878_v40 = vadd.f32 %v10573_v0, %v13692_v27  ;;  %10829 = vmatpush3.bf16.msra.mxu0 %v11390_v54  ;;  %v11393_v54 = vld [vmem:[#allocation3] sm:$0xff]  }
 0x1be   : > { %5421 = vst [vmem:[#allocation2 + $0xf0] sm:$0x1] %v16058_v6  ;;  %5422 = vst [vmem:[#allocation2 + $0x108] sm:$0x1] %v16058_v6  ;;  %v13882_v63 = vpop.f32.mrf.mxu0  ;;  %10830 = vmatprep.subr.bf16.mxu0 %v11392_v55 }
 0x1bf   : > { %5423 = vst [vmem:[#allocation2 + $0x120] sm:$0x1] %v16058_v6  ;;  %5424 = vst [vmem:[#allocation2 + $0x138] sm:$0x1] %v16058_v6 }
 0x1c0   : > { %5425 = vst [vmem:[#allocation2 + $0x150] sm:$0x1] %v16058_v6  ;;  %5426 = vst [vmem:[#allocation2 + $0x168] sm:$0x1] %v16058_v6  ;;  %v10576_v57 = vpop.f32.mrf.mxu0 }
 0x1c1   : > { %5427 = vst [vmem:[#allocation2 + $0x180] sm:$0x1] %v16058_v6  ;;  %5430 = vst [vmem:[#allocation2 + $0x29] sm:$0x1] %v16058_v6  ;;  %v13887_v32 = vadd.f32 %v10576_v57, %v13698_v29  ;;  %10831 = vmatpush3.bf16.msra.mxu0 %v11392_v55 }
 0x1c2   : > { %5431 = vst [vmem:[#allocation2 + $0x41] sm:$0x1] %v16058_v6  ;;  %5432 = vst [vmem:[#allocation2 + $0x59] sm:$0x1] %v16058_v6  ;;  %v2918_v0 = vpop.f32.mrf.mxu0  ;;  %10832 = vmatprep.subr.bf16.mxu0 %v11393_v54 }
 0x1c3   : > { %5433 = vst [vmem:[#allocation2 + $0x71] sm:$0x1] %v16058_v6  ;;  %5434 = vst [vmem:[#allocation2 + $0x89] sm:$0x1] %v16058_v6 }
 0x1c4   : > { %5435 = vst [vmem:[#allocation2 + $0xa1] sm:$0x1] %v16058_v6  ;;  %5436 = vst [vmem:[#allocation2 + $0xb9] sm:$0x1] %v16058_v6 }
 0x1c5   : > { %5437 = vst [vmem:[#allocation2 + $0xd1] sm:$0x1] %v16058_v6  ;;  %5438 = vst [vmem:[#allocation2 + $0xe9] sm:$0x1] %v16058_v6  ;;  %10833 = vmatpush3.bf16.msra.mxu0 %v11393_v54 }
 0x1c6   : > { %5439 = vst [vmem:[#allocation2 + $0x101] sm:$0x1] %v16058_v6  ;;  %5440 = vst [vmem:[#allocation2 + $0x119] sm:$0x1] %v16058_v6 }
 0x1c7   : > { %5441 = vst [vmem:[#allocation2 + $0x131] sm:$0x1] %v16058_v6  ;;  %5442 = vst [vmem:[#allocation2 + $0x149] sm:$0x1] %v16058_v6 }
 0x1c8   : > { %5443 = vst [vmem:[#allocation2 + $0x161] sm:$0x1] %v16058_v6  ;;  %5444 = vst [vmem:[#allocation2 + $0x179] sm:$0x1] %v16058_v6 }
 0x1c9   : > { %5445 = vst [vmem:[#allocation2 + $0x191] sm:$0x1] %v16058_v6  ;;  %5411 = vst [vmem:[#allocation2] sm:$0x1] %v16058_v6 }
 0x1ca   : > { %5429 = vst [vmem:[#allocation2 + $0x11] sm:$0x1] %v16058_v6  ;;  %5428 = vst [vmem:[#allocation2 + $0x198] sm:$0x1] %v16058_v6 }
 0x1cb   : > { %5446 = vst [vmem:[#allocation2 + $0x1a9] sm:$0x1] %v16058_v6  ;;  %16140 = vst [vmem:[#allocation39_spill] sm:$0xff] %v13870_v50  ;;  %v13880_v6 = vpop.f32.mrf.mxu1 }
 0x1cc   : > { %16141 = vst [vmem:[#allocation40_spill] sm:$0xff] %v13872_v14  ;;  %16142 = vst [vmem:[#allocation41_spill] sm:$0xff] %v13875_v51  ;;  %v5545_v14 = vld [vmem:[#allocation2 + $0x9] sm:$0xff] }
 0x1cd   : > { %16143 = vst [vmem:[#allocation42_spill] sm:$0xff] %v13878_v40  ;;  %16144 = vst [vmem:[#allocation43_spill] sm:$0xff] %v13880_v6  ;;  %v13884_v50 = vpop.f32.mrf.mxu1  ;;  %v5576_v53 = vpack.c.bf16 %v5545_v14, %v5544_v48  ;;  %v13892_v6 = vadd.f32 %v2918_v0, %v13703_v62  ;;  %v10577_v40 = vpop.f32.mrf.mxu0  ;;  %v16152_v48 = vmov 0.0  }
 0x1ce   : > { %16145 = vst [vmem:[#allocation44_spill] sm:$0xff] %v13884_v50  ;;  %16146 = vst [vmem:[#allocation45_spill] sm:$0xff] %v13887_v32  ;;  %v13897_v8 = vadd.f32 %v10577_v40, %v13709_v61  ;;  %v16199_v32 = vld [vmem:[#allocation21_spill] sm:$0xff] }
 0x1cf   : > { %v13889_v27 = vpop.f32.mrf.mxu1  ;;  %10786 = vmatprep.mubr.bf16.mxu1 %v5576_v53  ;;  %16148 = vst [vmem:[#allocation47_spill] sm:$0xff] %v13892_v6  ;;  %v13899_v14 = vpop.f32.mrf.mxu0 }
 0x1d0   : > { %16147 = vst [vmem:[#allocation46_spill] sm:$0xff] %v13889_v27  ;;  %16150 = vst [vmem:[#allocation49_spill] sm:$0xff] %v13897_v8  ;;  %v5480_v29 = vld [vmem:[#allocation2] sm:$0xff] }
 0x1d1   : > { %v13894_v51 = vpop.f32.mrf.mxu1  ;;  %16151 = vst [vmem:[#allocation50_spill] sm:$0xff] %v13899_v14  ;;  %v5512_v53 = vpack.c.bf16 %v16152_v48, %v5480_v29  ;;  %v13902_v57 = vpop.f32.mrf.mxu0 }
 0x1d2   : > { %16149 = vst [vmem:[#allocation48_spill] sm:$0xff] %v13894_v51 }
 0x1d3   : > { %v13904_v27 = vpop.f32.mrf.mxu1  ;;  %10834 = vmatprep.mubr.bf16.mxu0 %v5512_v53  ;;  %v13906_v62 = vpop.f32.mrf.mxu0 }
 0x1d4   : > { %16153 = vst [vmem:[#allocation51_spill] sm:$0xff] %v13904_v27  ;;  %16154 = vst [vmem:[#allocation52_spill] sm:$0xff] %v13906_v62  ;;  %v16202_v62 = vld [vmem:[#allocation32_spill] sm:$0xff] }
 0x1d5   : > { %v13908_v55 = vpop.f32.mrf.mxu1  ;;  %v13910_v0 = vpop.f32.mrf.mxu0 }
 0x1d6   : > { %16155 = vst [vmem:[#allocation53_spill] sm:$0xff] %v13908_v55  ;;  %16156 = vst [vmem:[#allocation54_spill] sm:$0xff] %v13910_v0 }
 0x1d7   : > { %v13912_v61 = vpop.f32.mrf.mxu1  ;;  %v13914_v40 = vpop.f32.mrf.mxu0 }
 0x1d8   : > { %16157 = vst [vmem:[#allocation55_spill] sm:$0xff] %v13912_v61  ;;  %16158 = vst [vmem:[#allocation56_spill] sm:$0xff] %v13914_v40  ;;  %v16200_v40 = vld [vmem:[#allocation30_spill] sm:$0xff] }
 0x1d9   : > { %v13916_v51 = vpop.f32.mrf.mxu1  ;;  %v13918_v54 = vpop.f32.mrf.mxu0 }
 0x1da   : > { %16159 = vst [vmem:[#allocation57_spill] sm:$0xff] %v13916_v51  ;;  %16160 = vst [vmem:[#allocation58_spill] sm:$0xff] %v13918_v54 }
 0x1db   : > { %v13920_v29 = vpop.f32.mrf.mxu0  ;;  %v13922_v48 = vpop.f32.mrf.mxu1 }
 0x1dc   : > { %16161 = vst [vmem:[#allocation59_spill] sm:$0xff] %v13920_v29  ;;  %16162 = vst [vmem:[#allocation60_spill] sm:$0xff] %v13922_v48 }
 0x1dd   : > { %v13924_v27 = vpop.f32.mrf.mxu0  ;;  %v13926_v53 = vpop.f32.mrf.mxu1 }
 0x1de   : > { %16163 = vst [vmem:[#allocation61_spill] sm:$0xff] %v13924_v27  ;;  %16164 = vst [vmem:[#allocation62_spill] sm:$0xff] %v13926_v53 }
 0x1df   : > { %v13928_v8 = vpop.f32.mrf.mxu0  ;;  %v13930_v55 = vpop.f32.mrf.mxu1 }
 0x1e0   : > { %16165 = vst [vmem:[#allocation63_spill] sm:$0xff] %v13928_v8  ;;  %16166 = vst [vmem:[#allocation64_spill] sm:$0xff] %v13930_v55 }
 0x1e1   : > { %v13932_v50 = vpop.f32.mrf.mxu0  ;;  %v13934_v61 = vpop.f32.mrf.mxu1 }
 0x1e2   : > { %16167 = vst [vmem:[#allocation65_spill] sm:$0xff] %v13932_v50  ;;  %16168 = vst [vmem:[#allocation66_spill] sm:$0xff] %v13934_v61  ;;  %v13956_v61 = vld [vmem:[#allocation3 + $0xb8] sm:$0xff]  }
 0x1e3   : > { %v13936_v6 = vpop.f32.mrf.mxu0  ;;  %v13938_v51 = vpop.f32.mrf.mxu1  ;;  %16179 = vst [vmem:[#allocation77_spill] sm:$0xff] %v13956_v61  ;;  %10866 = vmatprep.subr.bf16.mxu1 %v13956_v61 }
 0x1e4   : > { %16169 = vst [vmem:[#allocation67_spill] sm:$0xff] %v13936_v6  ;;  %16170 = vst [vmem:[#allocation68_spill] sm:$0xff] %v13938_v51 }
 0x1e5   : > { %v13940_v54 = vpop.f32.mrf.mxu0  ;;  %v13942_v29 = vpop.f32.mrf.mxu1 }
 0x1e6   : > { %16171 = vst [vmem:[#allocation69_spill] sm:$0xff] %v13940_v54  ;;  %16172 = vst [vmem:[#allocation70_spill] sm:$0xff] %v13942_v29 }
 0x1e7   : > { %v13944_v48 = vpop.f32.mrf.mxu0  ;;  %v13946_v27 = vpop.f32.mrf.mxu1 }
 0x1e8   : > { %16173 = vst [vmem:[#allocation71_spill] sm:$0xff] %v13944_v48  ;;  %16174 = vst [vmem:[#allocation72_spill] sm:$0xff] %v13946_v27 }
 0x1e9   : > { %v13948_v53 = vpop.f32.mrf.mxu0  ;;  %v13952_v55 = vpop.f32.mrf.mxu1 }
 0x1ea   : > { %16175 = vst [vmem:[#allocation73_spill] sm:$0xff] %v13948_v53  ;;  %16177 = vst [vmem:[#allocation75_spill] sm:$0xff] %v13952_v55 }
 0x1eb   : > { %v13950_v8 = vpop.f32.mrf.mxu0  ;;  %v13961_v51 = vpop.f32.mrf.mxu1 }
 0x1ec   : > { %16176 = vst [vmem:[#allocation74_spill] sm:$0xff] %v13950_v8  ;;  %16181 = vst [vmem:[#allocation79_spill] sm:$0xff] %v13961_v51  ;;  %v13983_v51 = vld [vmem:[#allocation3 + $0xf8] sm:$0xff]  }
 0x1ed   : > { %v13954_v50 = vpop.f32.mrf.mxu0  ;;  %v13967_v27 = vpop.f32.mrf.mxu1  ;;  %16192 = vst [vmem:[#allocation90_spill] sm:$0xff] %v13983_v51  ;;  %10914 = vmatprep.subr.bf16.mxu0 %v13983_v51 }
 0x1ee   : > { %16178 = vst [vmem:[#allocation76_spill] sm:$0xff] %v13954_v50  ;;  %16184 = vst [vmem:[#allocation82_spill] sm:$0xff] %v13967_v27 }
 0x1ef   : > { %v13958_v6 = vpop.f32.mrf.mxu0  ;;  %v13973_v55 = vpop.f32.mrf.mxu1 }
 0x1f0   : > { %16180 = vst [vmem:[#allocation78_spill] sm:$0xff] %v13958_v6  ;;  %16187 = vst [vmem:[#allocation85_spill] sm:$0xff] %v13973_v55  ;;  %v16196_v55 = vld [vmem:[#allocation15_spill] sm:$0xff] }
 0x1f1   : > { %v13963_v29 = vpop.f32.mrf.mxu0  ;;  %v13979_v6 = vpop.f32.mrf.mxu1 }
 0x1f2   : > { %16182 = vst [vmem:[#allocation80_spill] sm:$0xff] %v13963_v29  ;;  %16190 = vst [vmem:[#allocation88_spill] sm:$0xff] %v13979_v6 }
 0x1f3   : > { %v13965_v48 = vpop.f32.mrf.mxu0 }
 0x1f4   : > { %16183 = vst [vmem:[#allocation81_spill] sm:$0xff] %v13965_v48  ;;  %v13988_v48 = vpop.f32.mrf.mxu1 }
 0x1f5   : > { %v13969_v53 = vpop.f32.mrf.mxu0  ;;  %16194 = vst [vmem:[#allocation92_spill] sm:$0xff] %v13988_v48 }
 0x1f6   : > { %16185 = vst [vmem:[#allocation83_spill] sm:$0xff] %v13969_v53  ;;  %v14003_v14 = vpop.f32.mrf.mxu1 }
 0x1f7   : > { %v13971_v8 = vpop.f32.mrf.mxu0 }
 0x1f8   : > { %16186 = vst [vmem:[#allocation84_spill] sm:$0xff] %v13971_v8  ;;  %v16195_v8 = vld [vmem:[#allocation16_spill] sm:$0xff] }
 0x1f9   : > { %v13975_v50 = vpop.f32.mrf.mxu0  ;;  %v1280_v27 = vadd.f32 %v16196_v55, %v16195_v8  ;;  %v2180_v8 = vadd.f32 %v13473_v24, %v13499_v28 }
 0x1fa   : > { %16188 = vst [vmem:[#allocation86_spill] sm:$0xff] %v13975_v50 }
 0x1fb   : > { %v13977_v54 = vpop.f32.mrf.mxu0  ;;  %v1809_v51 = vadd.f32 %v13635_v44, %v1280_v27  ;;  %v2934_v44 = vadd.f32 %v13728_v4, %v2180_v8  ;;  %v16203_v27 = vld [vmem:[#allocation34_spill] sm:$0xff] }
 0x1fc   : > { %16189 = vst [vmem:[#allocation87_spill] sm:$0xff] %v13977_v54  ;;  %v16198_v54 = vld [vmem:[#allocation23_spill] sm:$0xff]  ;;  %v16216_v8 = vld [vmem:[#allocation22_spill] sm:$0xff] }
 0x1fd   : > { %v13981_v61 = vpop.f32.mrf.mxu0  ;;  %v1296_v6 = vadd.f32 %v16199_v32, %v16198_v54  ;;  %v2196_v24 = vadd.f32 %v13627_v21, %v1809_v51  ;;  %v3434_v21 = vadd.f32 %v13711_v15, %v13724_v12  ;;  %v3441_v15 = vadd.f32 %v13740_v2, %v13752_v60  ;;  %v16209_v60 = vld [vmem:[#allocation14_spill] sm:$0xff] }
 0x1fe   : > { %16191 = vst [vmem:[#allocation89_spill] sm:$0xff] %v13981_v61  ;;  %v16201_v61 = vld [vmem:[#allocation27_spill] sm:$0xff]  ;;  %v16213_v51 = vld [vmem:[#allocation18_spill] sm:$0xff] }
 0x1ff   : > { %v13985_v29 = vpop.f32.mrf.mxu0  ;;  %v1312_v0 = vadd.f32 %v16201_v61, %v16200_v40  ;;  %v1813_v55 = vadd.f32 %v13658_v56, %v1296_v6  ;;  %v2184_v61 = vadd.f32 %v13515_v35, %v13538_v41  ;;  %v14023_v56 = vpop.f32.mrf.mxu1  ;;  %v16214_v54 = vld [vmem:[#allocation26_spill] sm:$0xff] }
 0x200   : > { %16193 = vst [vmem:[#allocation91_spill] sm:$0xff] %v13985_v29  ;;  %v1328_v29 = vadd.f32 %v16202_v62, %v13453_v22  ;;  %v2188_v22 = vadd.f32 %v13550_v36, %v13573_v45  ;;  %v2192_v62 = vadd.f32 %v16203_v27, %v13616_v23  ;;  %v3433_v45 = vadd.f32 %v13700_v7, %v13714_v9 }
 0x201   : > { %v13990_v53 = vpop.f32.mrf.mxu0  ;;  %v2938_v28 = vadd.f32 %v13747_v11, %v2184_v61  ;;  %v2200_v35 = vadd.f32 %v13650_v49, %v1813_v55  ;;  %v3431_v23 = vadd.f32 %v13705_v47, %v13719_v38  ;;  %v3432_v49 = vadd.f32 %v13716_v37, %v2934_v44  ;;  %v14053_v37 = vpop.f32.mrf.mxu1  ;;  %v16219_v44 = vld [vmem:[#allocation36_spill] sm:$0xff] }
 0x202   : > { %v1821_v32 = vadd.f32 %v13707_v18, %v1328_v29  ;;  %v2942_v36 = vadd.f32 %v13766_v33, %v2188_v22  ;;  %v2946_v4 = vadd.f32 %v13785_v19, %v2192_v62  ;;  %v2950_v7 = vadd.f32 %v13804_v20, %v2196_v24  ;;  %v16207_v33 = vld [vmem:[#allocation19_spill] sm:$0xff] }
 0x203   : > { %v13994_v50 = vpop.f32.mrf.mxu0  ;;  %v3438_v47 = vadd.f32 %v13730_v39, %v13743_v52  ;;  %v3436_v9 = vadd.f32 %v13735_v46, %v2938_v28  ;;  %v3439_v38 = vadd.f32 %v13745_v1, %v13757_v58  ;;  %v2954_v39 = vadd.f32 %v13823_v59, %v2200_v35  ;;  %v16208_v46 = vld [vmem:[#allocation24_spill] sm:$0xff]  ;;  %v16210_v20 = vld [vmem:[#allocation11_spill] sm:$0xff]  ;;  %v14097_v24 = vpop.f32.mrf.mxu1  ;;  %v16221_v28 = vld [vmem:[#allocation33_spill] sm:$0xff] }
 0x204   : > { %16197 = vst [vmem:[#allocation16_spill] sm:$0xff] %v13994_v50  ;;  %v1817_v50 = vadd.f32 %v13686_v31, %v1312_v0  ;;  %v2208_v18 = vadd.f32 %v13695_v30, %v1821_v32  ;;  %v3435_v30 = vadd.f32 %v13726_v42, %v13738_v17  ;;  %v16206_v17 = vld [vmem:[#allocation28_spill] sm:$0xff]  ;;  %v3443_v2 = vadd.f32 %v16208_v46, %v13776_v43  ;;  %v16217_v32 = vld [vmem:[#allocation25_spill] sm:$0xff] }
 0x205   : > { %v14005_v48 = vpop.f32.mrf.mxu0  ;;  %v3445_v19 = vadd.f32 %v16207_v33, %v16206_v17  ;;  %v3446_v1 = vadd.f32 %v16210_v20, %v16209_v60  ;;  %v16211_v58 = vld [vmem:[#allocation12_spill] sm:$0xff]  ;;  %v14074_v0 = vadd.f32 %v16213_v51, %v13795_v34  ;;  %v14081_v55 = vadd.f32 %v16216_v8, %v2950_v7  ;;  %v16220_v34 = vld [vmem:[#allocation31_spill] sm:$0xff]  ;;  %v16228_v17 = vld [vmem:[#allocation37_spill] sm:$0xff] }
 0x206   : > { %v2204_v41 = vadd.f32 %v13677_v13, %v1817_v50  ;;  %v3437_v13 = vadd.f32 %v13721_v3, %v13733_v26  ;;  %v16204_v3 = vld [vmem:[#allocation17_spill] sm:$0xff]  ;;  %v16205_v26 = vld [vmem:[#allocation10_spill] sm:$0xff]  ;;  %v3444_v6 = vadd.f32 %v16211_v58, %v2946_v4  ;;  %v16215_v59 = vld [vmem:[#allocation20_spill] sm:$0xff]  ;;  %v14086_v61 = vadd.f32 %v16217_v32, %v13809_v25 }
 0x207   : > { %v14014_v40 = vpop.f32.mrf.mxu0  ;;  %v3442_v12 = vadd.f32 %v16204_v3, %v13762_v10  ;;  %v3440_v42 = vadd.f32 %v16205_v26, %v2942_v36  ;;  %v16212_v50 = vld [vmem:[#allocation13_spill] sm:$0xff]  ;;  %v14078_v29 = vadd.f32 %v16215_v59, %v16214_v54  ;;  %v14094_v27 = vadd.f32 %v16220_v34, %v16219_v44  ;;  %v16224_v25 = vld [vmem:[#allocation50_spill] sm:$0xff]  ;;  %v16225_v7 = vld [vmem:[#allocation52_spill] sm:$0xff] }
 0x208   : > { %v14070_v10 = vadd.f32 %v16212_v50, %v13790_v16  ;;  %v2958_v43 = vadd.f32 %v13882_v63, %v2204_v41  ;;  %v16218_v16 = vld [vmem:[#allocation29_spill] sm:$0xff]  ;;  %v3820_v62 = vadd.f32 %v13902_v57, %v3433_v45  ;;  %v14100_v35 = vadd.f32 %v16221_v28, %v2954_v39  ;;  %v16222_v63 = vld [vmem:[#allocation39_spill] sm:$0xff]  ;;  %v16229_v57 = vld [vmem:[#allocation42_spill] sm:$0xff] }
 0x209   : > { %v14025_v31 = vpop.f32.mrf.mxu0  ;;  %v14090_v22 = vadd.f32 %v16218_v16, %v13814_v5  ;;  %v16223_v41 = vld [vmem:[#allocation35_spill] sm:$0xff]  ;;  %v2962_v4 = vadd.f32 %v16224_v25, %v2208_v18  ;;  %v3818_v5 = vadd.f32 %v16225_v7, %v3431_v23  ;;  %v16227_v26 = vld [vmem:[#allocation41_spill] sm:$0xff]  ;;  %v16230_v45 = vld [vmem:[#allocation38_spill] sm:$0xff] }
 0x20a   : > { %v14104_v36 = vadd.f32 %v16223_v41, %v16222_v63  ;;  %v14112_v33 = vadd.f32 %v16228_v17, %v16227_v26  ;;  %v14116_v46 = vadd.f32 %v16230_v45, %v16229_v57  ;;  %v16231_v39 = vld [vmem:[#allocation54_spill] sm:$0xff]  ;;  %v16232_v20 = vld [vmem:[#allocation56_spill] sm:$0xff]  ;;  %v16234_v18 = vld [vmem:[#allocation45_spill] sm:$0xff]  ;;  %v14139_v26 = vpop.f32.mrf.mxu1 }
 0x20b   : > { %v14038_v11 = vpop.f32.mrf.mxu0  ;;  %v3821_v60 = vadd.f32 %v16231_v39, %v3434_v21  ;;  %v3819_v58 = vadd.f32 %v16232_v20, %v3432_v49  ;;  %v16233_v50 = vld [vmem:[#allocation40_spill] sm:$0xff]  ;;  %v16235_v54 = vld [vmem:[#allocation43_spill] sm:$0xff]  ;;  %v16238_v16 = vld [vmem:[#allocation58_spill] sm:$0xff] }
 0x20c   : > { %v14121_v51 = vadd.f32 %v16233_v50, %v2958_v43  ;;  %v14125_v23 = vadd.f32 %v16235_v54, %v16234_v18  ;;  %v16236_v59 = vld [vmem:[#allocation47_spill] sm:$0xff]  ;;  %v16237_v8 = vld [vmem:[#allocation44_spill] sm:$0xff]  ;;  %v3824_v44 = vadd.f32 %v16238_v16, %v3437_v13  ;;  %v16239_v34 = vld [vmem:[#allocation49_spill] sm:$0xff] }
 0x20d   : > { %v14061_v52 = vpop.f32.mrf.mxu0  ;;  %v14129_v32 = vadd.f32 %v16237_v8, %v16236_v59  ;;  %v16240_v28 = vld [vmem:[#allocation46_spill] sm:$0xff]  ;;  %v16241_v21 = vld [vmem:[#allocation51_spill] sm:$0xff]  ;;  %v16243_v43 = vld [vmem:[#allocation61_spill] sm:$0xff] }
 0x20e   : > { %v14134_v63 = vadd.f32 %v16240_v28, %v16239_v34  ;;  %v4574_v41 = vadd.f32 %v16241_v21, %v3820_v62  ;;  %v16242_v49 = vld [vmem:[#allocation59_spill] sm:$0xff]  ;;  %v3825_v7 = vadd.f32 %v16243_v43, %v3438_v47  ;;  %v16244_v17 = vld [vmem:[#allocation48_spill] sm:$0xff]  ;;  %v16245_v45 = vld [vmem:[#allocation53_spill] sm:$0xff] }
 0x20f   : > { %v14108_v3 = vpop.f32.mrf.mxu0  ;;  %v3822_v25 = vadd.f32 %v16242_v49, %v3435_v30  ;;  %v14142_v57 = vadd.f32 %v16244_v17, %v2962_v4  ;;  %v4572_v39 = vadd.f32 %v16245_v45, %v3818_v5  ;;  %v16246_v20 = vld [vmem:[#allocation63_spill] sm:$0xff]  ;;  %v16247_v13 = vld [vmem:[#allocation65_spill] sm:$0xff]  ;;  %v16251_v28 = vld [vmem:[#allocation60_spill] sm:$0xff] }
 0x210   : > { %16226 = vst [vmem:[#allocation15_spill] sm:$0xff] %v14108_v3  ;;  %v3823_v50 = vadd.f32 %v16246_v20, %v3436_v9  ;;  %v3828_v18 = vadd.f32 %v16247_v13, %v3441_v15  ;;  %v14150_v62 = vld [vmem:[%s16043_s2] ss:$0 sm:$0xff]  ;;  %v16249_v47 = vld [vmem:[#allocation57_spill] sm:$0xff]  ;;  %v4578_v21 = vadd.f32 %v16251_v28, %v3824_v44  ;;  %v16260_v28 = vld [vmem:[#allocation76_spill] sm:$0xff] }
 0x211   : > { %v10740_v54 = vpop.f32.mrf.mxu0  ;;  %v16248_v30 = vld [vmem:[#allocation55_spill] sm:$0xff]  ;;  %v4573_v8 = vadd.f32 %v16249_v47, %v3819_v58  ;;  %v16252_v5 = vld [vmem:[#allocation69_spill] sm:$0xff]  ;;  %v16256_v58 = vld [vmem:[#allocation64_spill] sm:$0xff] }
 0x212   : > { %v4575_v59 = vadd.f32 %v16248_v30, %v3821_v60  ;;  %v16250_v16 = vld [vmem:[#allocation67_spill] sm:$0xff]  ;;  %v5072_v4 = vadd.f32 %v10740_v54, %v4574_v41  ;;  %v3829_v49 = vadd.f32 %v16252_v5, %v3442_v12  ;;  %v16254_v15 = vld [vmem:[#allocation73_spill] sm:$0xff]  ;;  %v16255_v60 = vld [vmem:[#allocation62_spill] sm:$0xff]  ;;  %v4579_v30 = vadd.f32 %v16256_v58, %v3825_v7 }
 0x213   : > { %v3826_v34 = vadd.f32 %v16250_v16, %v3439_v38  ;;  %v16253_v9 = vld [vmem:[#allocation71_spill] sm:$0xff]  ;;  %v3832_v17 = vadd.f32 %v16254_v15, %v3445_v19  ;;  %v4943_v20 = vpop.f32.mrf.mxu0  ;;  %v4576_v13 = vadd.f32 %v16255_v60, %v3822_v25  ;;  %v14166_v38 = vpop.f32.mrf.mxu1  ;;  %v16257_v12 = vld [vmem:[#allocation66_spill] sm:$0xff]  ;;  %v3833_v5 = vadd.f32 %v16260_v28, %v3446_v1 }
 0x214   : > { %v3827_v43 = vadd.f32 %v16253_v9, %v3440_v42  ;;  %v14162_v45 = vld [vmem:[%s16044_s3] ss:$0 sm:$0xff]  ;;  %v5111_v44 = vmul.f32 %v14150_v62, %v5072_v4  ;;  %v5070_v41 = vadd.f32 %v4943_v20, %v4572_v39  ;;  %v4577_v54 = vadd.f32 %v16257_v12, %v3823_v50  ;;  %v16258_v42 = vld [vmem:[#allocation68_spill] sm:$0xff]  ;;  %v16259_v19 = vld [vmem:[#allocation74_spill] sm:$0xff] }
 0x215   : > { %v14171_v47 = vadd.f32 %v16258_v42, %v3828_v18  ;;  %v3830_v16 = vadd.f32 %v16259_v19, %v3443_v2  ;;  %v10741_v9 = vpop.f32.mrf.mxu0  ;;  %v16261_v15 = vld [vmem:[#allocation70_spill] sm:$0xff]  ;;  %v16262_v39 = vld [vmem:[#allocation72_spill] sm:$0xff]  ;;  %v16263_v50 = vld [vmem:[#allocation75_spill] sm:$0xff] }
 0x216   : > { %v14176_v3 = vadd.f32 %v16261_v15, %v3826_v34  ;;  %v14179_v25 = vadd.f32 %v14162_v45, %v5111_v44  ;;  %v5109_v7 = vmul.f32 %v14150_v62, %v5070_v41  ;;  %v5073_v4 = vadd.f32 %v10741_v9, %v4575_v59  ;;  %v16264_v60 = vld [vmem:[#allocation79_spill] sm:$0xff]  ;;  %v16265_v1 = vld [vmem:[#allocation78_spill] sm:$0xff]  ;;  %v14192_v34 = vpop.f32.mrf.mxu1  ;;  %v16269_v9 = vld [vmem:[#allocation81_spill] sm:$0xff] }
 0x217   : > { %v14183_v20 = vadd.f32 %v16262_v39, %v3829_v49  ;;  %v14186_v18 = vadd.f32 %v16263_v50, %v3827_v43  ;;  %v14189_v2 = vadd.f32 %v16264_v60, %v3832_v17  ;;  %v3831_v58 = vadd.f32 %v16265_v1, %v3444_v6  ;;  %v4946_v12 = vpop.f32.mrf.mxu0  ;;  %v16266_v41 = vld [vmem:[#allocation82_spill] sm:$0xff]  ;;  %v16267_v43 = vld [vmem:[#allocation85_spill] sm:$0xff]  ;;  %v16268_v17 = vld [vmem:[#allocation80_spill] sm:$0xff] }
 0x218   : > { %v9716_v44 = vmul.f32 -1.442695, %v14179_v25  ;;  %v14196_v42 = vadd.f32 %v14162_v45, %v5109_v7  ;;  %v5112_v59 = vmul.f32 %v14150_v62, %v5073_v4  ;;  %v5071_v49 = vadd.f32 %v4946_v12, %v4573_v8 }
 0x219   : > { %v14200_v19 = vadd.f32 %v16266_v41, %v3830_v16  ;;  %v14203_v28 = vadd.f32 %v16267_v43, %v3833_v5  ;;  %v3836_v6 = vadd.f32 %v16268_v17, %v14070_v10  ;;  %v3834_v15 = vadd.f32 %v16269_v9, %v14074_v0  ;;  %v10744_v39 = vpop.f32.mrf.mxu0  ;;  %v16270_v16 = vld [vmem:[#allocation88_spill] sm:$0xff]  ;;  %v16271_v5 = vld [vmem:[#allocation83_spill] sm:$0xff]  ;;  %v14221_v41 = vpop.f32.mrf.mxu1 }
 0x21a   : > { %11450 = vpow2.f32 %v9716_v44  ;;  %v9714_v7 = vmul.f32 -1.442695, %v14196_v42  ;;  %v14211_v50 = vadd.f32 %v14162_v45, %v5112_v59  ;;  %v5110_v8 = vmul.f32 %v14150_v62, %v5071_v49  ;;  %v16272_v10 = vld [vmem:[#allocation84_spill] sm:$0xff] }
 0x21b   : > { %v14215_v4 = vadd.f32 %v16270_v16, %v3831_v58  ;;  %v3837_v60 = vadd.f32 %v16271_v5, %v14078_v29  ;;  %v3835_v1 = vadd.f32 %v16272_v10, %v14081_v55  ;;  %v5076_v12 = vadd.f32 %v10744_v39, %v4578_v21  ;;  %v4959_v0 = vpop.f32.mrf.mxu0  ;;  %v16273_v43 = vld [vmem:[#allocation92_spill] sm:$0xff]  ;;  %v16274_v29 = vld [vmem:[#allocation86_spill] sm:$0xff]  ;;  %v4541_v10 = vpop.f32.mrf.mxu1 }
 0x21c   : > { %11452 = vpow2.f32 %v9714_v7  ;;  %v9717_v44 = vmul.f32 -1.442695, %v14211_v50  ;;  %v14225_v59 = vadd.f32 %v14162_v45, %v5110_v8  ;;  %v5074_v49 = vadd.f32 %v4959_v0, %v4576_v13 }
 0x21d   : > { %v14228_v58 = vadd.f32 %v16273_v43, %v3836_v6  ;;  %v14231_v17 = vadd.f32 %v14003_v14, %v3834_v15  ;;  %v3840_v55 = vadd.f32 %v16274_v29, %v14086_v61  ;;  %v5115_v21 = vmul.f32 %v14150_v62, %v5076_v12  ;;  %v10745_v9 = vpop.f32.mrf.mxu0  ;;  %v16275_v6 = vld [vmem:[#allocation87_spill] sm:$0xff]  ;;  %v16276_v14 = vld [vmem:[#allocation89_spill] sm:$0xff] }
 0x21e   : > { %11454 = vpow2.f32 %v9717_v44  ;;  %v9715_v39 = vmul.f32 -1.442695, %v14225_v59  ;;  %v5113_v7 = vmul.f32 %v14150_v62, %v5074_v49  ;;  %v5077_v8 = vadd.f32 %v10745_v9, %v4579_v30  ;;  %v10717_v9 = vpop.f32.mrf.mxu1 }
 0x21f   : > { %v14239_v13 = vadd.f32 %v14023_v56, %v3837_v60  ;;  %v3838_v16 = vadd.f32 %v16275_v6, %v14090_v22  ;;  %v3841_v15 = vadd.f32 %v16276_v14, %v14094_v27  ;;  %v14246_v61 = vadd.f32 %v14162_v45, %v5115_v21  ;;  %v4962_v5 = vpop.f32.mrf.mxu0  ;;  %v16277_v22 = vld [vmem:[#allocation91_spill] sm:$0xff] }
 0x220   : > { %11456 = vpow2.f32 %v9715_v39  ;;  %v14249_v12 = vadd.f32 %v14162_v45, %v5113_v7  ;;  %v5116_v30 = vmul.f32 %v14150_v62, %v5077_v8  ;;  %v5075_v0 = vadd.f32 %v4962_v5, %v4577_v54 }
 0x221   : > { %v14253_v56 = vadd.f32 %v14053_v37, %v3835_v1  ;;  %v3839_v60 = vadd.f32 %v16277_v22, %v14100_v35  ;;  %v3844_v27 = vadd.f32 %v13990_v53, %v14104_v36  ;;  %v9720_v44 = vmul.f32 -1.442695, %v14246_v61  ;;  %v10748_v49 = vpop.f32.mrf.mxu0  ;;  %v16278_v53 = vld [vmem:[#allocation16_spill] sm:$0xff] }
 0x222   : > { %v9718_v43 = vmul.f32 -1.442695, %v14249_v12  ;;  %v14262_v29 = vadd.f32 %v14162_v45, %v5116_v30  ;;  %v5114_v21 = vmul.f32 %v14150_v62, %v5075_v0  ;;  %v5080_v54 = vadd.f32 %v10748_v49, %v14171_v47 }
 0x223   : > { %v14267_v37 = vadd.f32 %v14097_v24, %v3840_v55  ;;  %v14270_v35 = vadd.f32 %v14139_v26, %v3838_v16  ;;  %v3842_v36 = vadd.f32 %v16278_v53, %v14112_v33  ;;  %11458 = vpow2.f32 %v9720_v44  ;;  %v4975_v1 = vpop.f32.mrf.mxu0 }
 0x224   : > { %11460 = vpow2.f32 %v9718_v43  ;;  %v9721_v39 = vmul.f32 -1.442695, %v14262_v29  ;;  %v14276_v7 = vadd.f32 %v14162_v45, %v5114_v21  ;;  %v5119_v47 = vmul.f32 %v14150_v62, %v5080_v54 }
 0x225   : > { %v14280_v24 = vadd.f32 %v14166_v38, %v3841_v15  ;;  %v3845_v26 = vadd.f32 %v14005_v48, %v14116_v46  ;;  %v3843_v33 = vadd.f32 %v14014_v40, %v14121_v51  ;;  %v5078_v55 = vadd.f32 %v4975_v1, %v14176_v3  ;;  %v10749_v8 = vpop.f32.mrf.mxu0  ;;  %v4544_v51 = vpop.f32.mrf.mxu1  ;;  %v16279_v1 = vld [vmem:[#allocation15_spill] sm:$0xff] }
 0x226   : > { %11462 = vpow2.f32 %v9721_v39  ;;  %v9719_v6 = vmul.f32 -1.442695, %v14276_v7  ;;  %v14289_v16 = vadd.f32 %v14162_v45, %v5119_v47  ;;  %v5081_v14 = vadd.f32 %v10749_v8, %v14183_v20 }
 0x227   : > { %v11451_v5 = vpop.eup %11450  ;;  %v14293_v38 = vadd.f32 %v14192_v34, %v3839_v60  ;;  %v3848_v48 = vadd.f32 %v14025_v31, %v14125_v23  ;;  %v14299_v40 = vadd.f32 %v14038_v11, %v14129_v32  ;;  %v5117_v3 = vmul.f32 %v14150_v62, %v5078_v55  ;;  %v4978_v46 = vpop.f32.mrf.mxu0 }
 0x228   : > { %v5278_v15 = vadd.f32 1.0, %v11451_v5  ;;  %11464 = vpow2.f32 %v9719_v6  ;;  %v9724_v30 = vmul.f32 -1.442695, %v14289_v16  ;;  %v5120_v20 = vmul.f32 %v14150_v62, %v5081_v14  ;;  %v10720_v43 = vpop.f32.mrf.mxu1 }
 0x229   : > { %v11453_v0 = vpop.eup %11452  ;;  %v14305_v34 = vadd.f32 %v14221_v41, %v3844_v27  ;;  %v14309_v31 = vadd.f32 %v14061_v52, %v14134_v63  ;;  %v14312_v11 = vadd.f32 %v14162_v45, %v5117_v3  ;;  %v5079_v23 = vadd.f32 %v4978_v46, %v14186_v18  ;;  %v10752_v32 = vpop.f32.mrf.mxu0 }
 0x22a   : > { %11466 = vrcp.f32 %v5278_v15  ;;  %v5276_v22 = vadd.f32 1.0, %v11453_v0  ;;  %v14316_v60 = vadd.f32 %v14162_v45, %v5120_v20  ;;  %v5084_v44 = vadd.f32 %v10752_v32, %v14189_v2  ;;  %v4557_v46 = vpop.f32.mrf.mxu1 }
 0x22b   : > { %v11455_v49 = vpop.eup %11454  ;;  %v14319_v41 = vadd.f32 %v4541_v10, %v3842_v36  ;;  %11468 = vpow2.f32 %v9724_v30  ;;  %v9722_v52 = vmul.f32 -1.442695, %v14312_v11  ;;  %v5118_v63 = vmul.f32 %v14150_v62, %v5079_v23  ;;  %v4991_v27 = vpop.f32.mrf.mxu0 }
 0x22c   : > { %11470 = vrcp.f32 %v5276_v22  ;;  %v5279_v18 = vadd.f32 1.0, %v11455_v49  ;;  %v9725_v21 = vmul.f32 -1.442695, %v14316_v60  ;;  %v5123_v54 = vmul.f32 %v14150_v62, %v5084_v44 }
 0x22d   : > { %v11457_v53 = vpop.eup %11456  ;;  %v14327_v2 = vadd.f32 %v16279_v1, %v14142_v57  ;;  %11472 = vpow2.f32 %v9722_v52  ;;  %v14330_v10 = vadd.f32 %v14162_v45, %v5118_v63  ;;  %v5082_v36 = vadd.f32 %v4991_v27, %v14200_v19  ;;  %v10753_v39 = vpop.f32.mrf.mxu0 }
 0x22e   : > { %11474 = vrcp.f32 %v5279_v18  ;;  %v5277_v47 = vadd.f32 1.0, %v11457_v53  ;;  %v14334_v55 = vadd.f32 %v14162_v45, %v5123_v54  ;;  %v5085_v8 = vadd.f32 %v10753_v39, %v14203_v28  ;;  %v10721_v52 = vpop.f32.mrf.mxu1 }
 0x22f   : > { %v14337_v6 = vadd.f32 %v10717_v9, %v3845_v26  ;;  %11476 = vpow2.f32 %v9725_v21  ;;  %v9723_v57 = vmul.f32 -1.442695, %v14330_v10  ;;  %v5121_v14 = vmul.f32 %v14150_v62, %v5082_v36  ;;  %v4994_v5 = vpop.f32.mrf.mxu0 }
 0x230   : > { %v11459_v3 = vpop.eup %11458  ;;  %11478 = vrcp.f32 %v5277_v47  ;;  %v9728_v19 = vmul.f32 -1.442695, %v14334_v55  ;;  %v5124_v15 = vmul.f32 %v14150_v62, %v5085_v8  ;;  %v5083_v30 = vadd.f32 %v4994_v5, %v14215_v4 }
 0x231   : > { %v11461_v20 = vpop.eup %11460  ;;  %v14344_v0 = vadd.f32 %v4544_v51, %v3843_v33  ;;  %v5282_v28 = vadd.f32 1.0, %v11459_v3  ;;  %11480 = vpow2.f32 %v9723_v57  ;;  %v14347_v9 = vadd.f32 %v14162_v45, %v5121_v14  ;;  %v10756_v26 = vpop.f32.mrf.mxu0 }
 0x232   : > { %v5280_v23 = vadd.f32 1.0, %v11461_v20  ;;  %11482 = vpow2.f32 %v9728_v19  ;;  %v14350_v32 = vadd.f32 %v14162_v45, %v5124_v15  ;;  %v5122_v22 = vmul.f32 %v14150_v62, %v5083_v30 }
 0x233   : > { %v11463_v44 = vpop.eup %11462  ;;  %v14353_v49 = vadd.f32 %v10720_v43, %v3848_v48  ;;  %11484 = vrcp.f32 %v5282_v28  ;;  %v9726_v4 = vmul.f32 -1.442695, %v14347_v9  ;;  %v5088_v33 = vadd.f32 %v10756_v26, %v14228_v58  ;;  %v5007_v51 = vpop.f32.mrf.mxu0 }
 0x234   : > { %11486 = vrcp.f32 %v5280_v23  ;;  %v5283_v63 = vadd.f32 1.0, %v11463_v44  ;;  %v9729_v27 = vmul.f32 -1.442695, %v14350_v32  ;;  %v14359_v18 = vadd.f32 %v14162_v45, %v5122_v22 }
 0x235   : > { %v11465_v21 = vpop.eup %11464  ;;  %v14362_v54 = vadd.f32 %v4557_v46, %v14299_v40  ;;  %11488 = vpow2.f32 %v9726_v4  ;;  %v5127_v48 = vmul.f32 %v14150_v62, %v5088_v33  ;;  %v5086_v43 = vadd.f32 %v5007_v51, %v14231_v17  ;;  %v10757_v53 = vpop.f32.mrf.mxu0 }
 0x236   : > { %11490 = vrcp.f32 %v5283_v63  ;;  %v5281_v58 = vadd.f32 1.0, %v11465_v21  ;;  %v9727_v1 = vmul.f32 -1.442695, %v14359_v18  ;;  %v5089_v36 = vadd.f32 %v10757_v53, %v14239_v13  ;;  %v4560_v17 = vpop.f32.mrf.mxu1 }
 0x237   : > { %v11467_v39 = vpop.eup %11466  ;;  %v14369_v47 = vadd.f32 %v10721_v52, %v14309_v31  ;;  %11492 = vpow2.f32 %v9729_v27  ;;  %v14372_v40 = vadd.f32 %v14162_v45, %v5127_v48  ;;  %v5125_v8 = vmul.f32 %v14150_v62, %v5086_v43  ;;  %v5010_v57 = vpop.f32.mrf.mxu0 }
 0x238   : > { %v11469_v14 = vpop.eup %11468  ;;  %v14376_v5 = vmul.f32 %v11467_v39, %v14179_v25  ;;  %11494 = vrcp.f32 %v5281_v58  ;;  %v5128_v3 = vmul.f32 %v14150_v62, %v5089_v36  ;;  %v5087_v13 = vadd.f32 %v5010_v57, %v14253_v56 }
 0x239   : > { %v11471_v46 = vpop.eup %11470  ;;  %v5286_v31 = vadd.f32 1.0, %v11469_v14  ;;  %11496 = vpow2.f32 %v9727_v1  ;;  %v9732_v19 = vmul.f32 -1.442695, %v14372_v40  ;;  %v14382_v15 = vadd.f32 %v14162_v45, %v5125_v8  ;;  %v10760_v30 = vpop.f32.mrf.mxu0 }
 0x23a   : > { %v11473_v20 = vpop.eup %11472  ;;  %5450 = vst [vmem:[#allocation2 + $0x31] sm:$0xff] %v14376_v5  ;;  %v14386_v25 = vmul.f32 %v11471_v46, %v14196_v42  ;;  %v14389_v28 = vadd.f32 %v14162_v45, %v5128_v3  ;;  %v5126_v56 = vmul.f32 %v14150_v62, %v5087_v13  ;;  %v5092_v26 = vadd.f32 %v10760_v30, %v14267_v37 }
 0x23b   : > { %v11475_v23 = vpop.eup %11474  ;;  %v14394_v22 = vadd.f32 %v4560_v17, %v14327_v2  ;;  %11498 = vrcp.f32 %v5286_v31  ;;  %v5284_v44 = vadd.f32 1.0, %v11473_v20  ;;  %v9730_v4 = vmul.f32 -1.442695, %v14382_v15  ;;  %v5023_v33 = vpop.f32.mrf.mxu0 }
 0x23c   : > { %v11477_v51 = vpop.eup %11476  ;;  %5448 = vst [vmem:[#allocation2 + $0x19] sm:$0xff] %v14386_v25  ;;  %v14399_v42 = vmul.f32 %v11475_v23, %v14211_v50  ;;  %11500 = vpow2.f32 %v9732_v19  ;;  %v9733_v52 = vmul.f32 -1.442695, %v14389_v28  ;;  %v14403_v37 = vadd.f32 %v14162_v45, %v5126_v56 }
 0x23d   : > { %v11479_v63 = vpop.eup %11478  ;;  %11502 = vrcp.f32 %v5284_v44  ;;  %v5287_v2 = vadd.f32 1.0, %v11477_v51  ;;  %v5131_v27 = vmul.f32 %v14150_v62, %v5092_v26  ;;  %v5090_v21 = vadd.f32 %v5023_v33, %v14270_v35  ;;  %v10761_v48 = vpop.f32.mrf.mxu0 }
 0x23e   : > { %v11481_v43 = vpop.eup %11480  ;;  %5451 = vst [vmem:[#allocation2 + $0x39] sm:$0xff] %v14399_v42  ;;  %v14409_v50 = vmul.f32 %v11479_v63, %v14225_v59  ;;  %11504 = vpow2.f32 %v9730_v4  ;;  %v9731_v53 = vmul.f32 -1.442695, %v14403_v37  ;;  %v5093_v58 = vadd.f32 %v10761_v48, %v14280_v24 }
 0x23f   : > { %v11483_v1 = vpop.eup %11482  ;;  %11506 = vrcp.f32 %v5287_v2  ;;  %v5285_v36 = vadd.f32 1.0, %v11481_v43  ;;  %v14414_v39 = vadd.f32 %v14162_v45, %v5131_v27  ;;  %v5129_v35 = vmul.f32 %v14150_v62, %v5090_v21  ;;  %v5026_v8 = vpop.f32.mrf.mxu0 }
 0x240   : > { %v11485_v57 = vpop.eup %11484  ;;  %5449 = vst [vmem:[#allocation2 + $0x21] sm:$0xff] %v14409_v50  ;;  %v5290_v14 = vadd.f32 1.0, %v11483_v1  ;;  %11508 = vpow2.f32 %v9733_v52  ;;  %v5132_v59 = vmul.f32 %v14150_v62, %v5093_v58  ;;  %v5091_v17 = vadd.f32 %v5026_v8, %v14293_v38 }
 0x241   : > { %v11487_v3 = vpop.eup %11486  ;;  %v14421_v24 = vmul.f32 %v11485_v57, %v14246_v61  ;;  %11510 = vrcp.f32 %v5285_v36  ;;  %v9736_v13 = vmul.f32 -1.442695, %v14414_v39  ;;  %v14425_v46 = vadd.f32 %v14162_v45, %v5129_v35  ;;  %v10764_v31 = vpop.f32.mrf.mxu0 }
 0x242   : > { %v11489_v19 = vpop.eup %11488  ;;  %v14428_v30 = vmul.f32 %v11487_v3, %v14249_v12  ;;  %11512 = vrcp.f32 %v5290_v14  ;;  %v14431_v20 = vadd.f32 %v14162_v45, %v5132_v59  ;;  %v5130_v38 = vmul.f32 %v14150_v62, %v5091_v17 }
 0x243   : > { %v11491_v56 = vpop.eup %11490  ;;  %5454 = vst [vmem:[#allocation2 + $0x61] sm:$0xff] %v14421_v24  ;;  %v5288_v61 = vadd.f32 1.0, %v11489_v19  ;;  %11514 = vpow2.f32 %v9731_v53  ;;  %v9734_v26 = vmul.f32 -1.442695, %v14425_v46  ;;  %v5096_v23 = vadd.f32 %v10764_v31, %v14305_v34  ;;  %v5039_v44 = vpop.f32.mrf.mxu0 }
 0x244   : > { %v11493_v4 = vpop.eup %11492  ;;  %5452 = vst [vmem:[#allocation2 + $0x49] sm:$0xff] %v14428_v30  ;;  %v14439_v12 = vmul.f32 %v11491_v56, %v14262_v29  ;;  %11516 = vpow2.f32 %v9736_v13  ;;  %v9737_v33 = vmul.f32 -1.442695, %v14431_v20  ;;  %v14443_v51 = vadd.f32 %v14162_v45, %v5130_v38 }
 0x245   : > { %v11495_v52 = vpop.eup %11494  ;;  %11518 = vrcp.f32 %v5288_v61  ;;  %v5291_v63 = vadd.f32 1.0, %v11493_v4  ;;  %v5135_v2 = vmul.f32 %v14150_v62, %v5096_v23  ;;  %v5094_v34 = vadd.f32 %v5039_v44, %v14319_v41  ;;  %v10765_v27 = vpop.f32.mrf.mxu0 }
 0x246   : > { %v11497_v21 = vpop.eup %11496  ;;  %5455 = vst [vmem:[#allocation2 + $0x69] sm:$0xff] %v14439_v12  ;;  %v14449_v29 = vmul.f32 %v11495_v52, %v14276_v7  ;;  %11520 = vpow2.f32 %v9734_v26  ;;  %v9735_v48 = vmul.f32 -1.442695, %v14443_v51  ;;  %v5097_v43 = vadd.f32 %v10765_v27, %v14337_v6  ;;  %v11395_v6 = vld [vmem:[#allocation3 + $0xb0] sm:$0xff]   ;;  %v16280_v26 = vld [vmem:[#allocation77_spill] sm:$0xff]  ;;  %v5482_v52 = vld [vmem:[#allocation2 + $0x18] sm:$0xff] }
 0x247   : > { %11522 = vrcp.f32 %v5291_v63  ;;  %v5289_v53 = vadd.f32 1.0, %v11497_v21  ;;  %v14454_v58 = vadd.f32 %v14162_v45, %v5135_v2  ;;  %v5133_v1 = vmul.f32 %v14150_v62, %v5094_v34  ;;  %v5042_v41 = vpop.f32.mrf.mxu0  ;;  %v5485_v27 = vld [vmem:[#allocation2 + $0x38] sm:$0xff] }
 0x248   : > { %v11499_v36 = vpop.eup %11498  ;;  %5453 = vst [vmem:[#allocation2 + $0x51] sm:$0xff] %v14449_v29  ;;  %11524 = vpow2.f32 %v9737_v33  ;;  %v5136_v7 = vmul.f32 %v14150_v62, %v5097_v43  ;;  %v5095_v35 = vadd.f32 %v5042_v41, %v14344_v0  ;;  %v5577_v8 = vpack.c.bf16 %v14409_v50, %v14386_v25  ;;  %v5483_v50 = vld [vmem:[#allocation2 + $0x20] sm:$0xff] }
 0x249   : > { %v11501_v57 = vpop.eup %11500  ;;  %v14463_v14 = vmul.f32 %v11499_v36, %v14289_v16  ;;  %11526 = vrcp.f32 %v5289_v53  ;;  %v9740_v59 = vmul.f32 -1.442695, %v14454_v58  ;;  %v14467_v17 = vadd.f32 %v14162_v45, %v5133_v1  ;;  %v10768_v3 = vpop.f32.mrf.mxu0 }
 0x24a   : > { %v11503_v13 = vpop.eup %11502  ;;  %v5294_v31 = vadd.f32 1.0, %v11501_v57  ;;  %11528 = vpow2.f32 %v9735_v48  ;;  %v14470_v0 = vadd.f32 %v14162_v45, %v5136_v7  ;;  %v5134_v25 = vmul.f32 %v14150_v62, %v5095_v35  ;;  %10787 = vmatmul.mubr.bf16.vlgmr.msra.gmra.mxu1 %v5577_v8  ;;  %v14491_v48 = vld [vmem:[#allocation3 + $0xf0] sm:$0xff]   ;;  %v5484_v8 = vld [vmem:[#allocation2 + $0x30] sm:$0xff] }
 0x24b   : > { %v11505_v19 = vpop.eup %11504  ;;  %5458 = vst [vmem:[#allocation2 + $0x91] sm:$0xff] %v14463_v14  ;;  %v14475_v16 = vmul.f32 %v11503_v13, %v14312_v11  ;;  %11530 = vpow2.f32 %v9740_v59  ;;  %v9738_v38 = vmul.f32 -1.442695, %v14467_v17  ;;  %v5100_v56 = vadd.f32 %v10768_v3, %v14353_v49  ;;  %v5055_v61 = vpop.f32.mrf.mxu0  ;;  %10867 = vmatpush3.bf16.msra.mxu1 %v16280_v26  ;;  %v11396_v11 = vld [vmem:[#allocation3 + $0xa8] sm:$0xff]   ;;  %v5486_v26 = vld [vmem:[#allocation2 + $0x48] sm:$0xff] }
 0x24c   : > { %v11507_v23 = vpop.eup %11506  ;;  %11532 = vrcp.f32 %v5294_v31  ;;  %v5292_v44 = vadd.f32 1.0, %v11505_v19  ;;  %v9741_v4 = vmul.f32 -1.442695, %v14470_v0  ;;  %v14482_v33 = vadd.f32 %v14162_v45, %v5134_v25  ;;  %10868 = vmatprep.subr.bf16.mxu1 %v11395_v6  ;;  %v14511_v31 = vld [vmem:[#allocation3 + $0xa0] sm:$0xff]   ;;  %v16281_v25 = vld [vmem:[#allocation90_spill] sm:$0xff] }
 0x24d   : > { %v11509_v63 = vpop.eup %11508  ;;  %5456 = vst [vmem:[#allocation2 + $0x79] sm:$0xff] %v14475_v16  ;;  %v14486_v2 = vmul.f32 %v11507_v23, %v14316_v60  ;;  %11534 = vpow2.f32 %v9738_v38  ;;  %v5139_v49 = vmul.f32 %v14150_v62, %v5100_v56  ;;  %v14489_v34 = vpack.c.bf16 %v5483_v50, %v5482_v52  ;;  %v10769_v21 = vpop.f32.mrf.mxu0  ;;  %v11402_v23 = vld [vmem:[#allocation3 + $0xe8] sm:$0xff]  }
 0x24e   : > { %v11511_v43 = vpop.eup %11510  ;;  %11536 = vrcp.f32 %v5292_v44  ;;  %v5295_v53 = vadd.f32 1.0, %v11509_v63  ;;  %v9739_v1 = vmul.f32 -1.442695, %v14482_v33  ;;  %v5098_v41 = vadd.f32 %v5055_v61, %v14362_v54  ;;  %v5489_v63 = vld [vmem:[#allocation2 + $0x68] sm:$0xff] }
 0x24f   : > { %v11513_v36 = vpop.eup %11512  ;;  %5459 = vst [vmem:[#allocation2 + $0x99] sm:$0xff] %v14486_v2  ;;  %v14497_v60 = vmul.f32 %v11511_v43, %v14330_v10  ;;  %11538 = vpow2.f32 %v9741_v4  ;;  %v14500_v7 = vadd.f32 %v14162_v45, %v5139_v49  ;;  %10835 = vmatmul.mubr.bf16.vlgmr.msra.gmra.mxu0 %v14489_v34  ;;  %v5578_v35 = vpack.c.bf16 %v14399_v42, %v14376_v5  ;;  %v5058_v57 = vpop.f32.mrf.mxu0  ;;  %v5487_v13 = vld [vmem:[#allocation2 + $0x50] sm:$0xff]  ;;  %v5488_v43 = vld [vmem:[#allocation2 + $0x60] sm:$0xff] }
 0x250   : > { %10869 = vmatpush3.bf16.msra.mxu1 %v11395_v6  ;;  %v11515_v59 = vpop.eup %11514  ;;  %v14506_v54 = vmul.f32 %v11513_v36, %v14334_v55  ;;  %11540 = vrcp.f32 %v5295_v53  ;;  %v5137_v10 = vmul.f32 %v14150_v62, %v5098_v41  ;;  %v14509_v3 = vpack.c.bf16 %v5485_v27, %v5484_v8  ;;  %10915 = vmatpush3.bf16.msra.mxu0 %v16281_v25  ;;  %v11398_v53 = vld [vmem:[#allocation3 + $0x98] sm:$0xff]  }
 0x251   : > { %10870 = vmatprep.subr.bf16.mxu1 %v11396_v11  ;;  %v11517_v50 = vpop.eup %11516  ;;  %5457 = vst [vmem:[#allocation2 + $0x81] sm:$0xff] %v14497_v60  ;;  %v5293_v5 = vadd.f32 1.0, %v11515_v59  ;;  %11542 = vpow2.f32 %v9739_v1  ;;  %v9744_v42 = vmul.f32 -1.442695, %v14500_v7  ;;  %10790 = vmatprep.mubr.bf16.mxu1 %v5578_v35  ;;  %v5101_v55 = vadd.f32 %v10769_v21, %v14369_v47 }
 0x252   : > { %10916 = vmatprep.subr.bf16.mxu0 %v14491_v48  ;;  %v11519_v6 = vpop.eup %11518  ;;  %5462 = vst [vmem:[#allocation2 + $0xc1] sm:$0xff] %v14506_v54  ;;  %v5298_v19 = vadd.f32 1.0, %v11517_v50  ;;  %v14520_v38 = vadd.f32 %v14162_v45, %v5137_v10  ;;  %10838 = vmatprep.mubr.bf16.mxu0 %v14509_v3  ;;  %v5099_v56 = vadd.f32 %v5058_v57, %v14394_v22 }
 0x253   : > { %v5579_v61 = vpack.c.bf16 %v14449_v29, %v14428_v30  ;;  %v11521_v44 = vpop.eup %11520  ;;  %v14527_v47 = vmul.f32 %v11519_v6, %v14347_v9  ;;  %11544 = vrcp.f32 %v5293_v5  ;;  %v5140_v4 = vmul.f32 %v14150_v62, %v5101_v55  ;;  %v11405_v6 = vld [vmem:[#allocation3 + $0xd8] sm:$0xff]  }
 0x254   : > { %v14530_v52 = vpack.c.bf16 %v5487_v13, %v5486_v26  ;;  %10871 = vmatpush3.bf16.msra.mxu1 %v11396_v11  ;;  %v11523_v49 = vpop.eup %11522  ;;  %11546 = vrcp.f32 %v5298_v19  ;;  %v5296_v27 = vadd.f32 1.0, %v11521_v44  ;;  %v9742_v22 = vmul.f32 -1.442695, %v14520_v38  ;;  %10917 = vmatpush3.bf16.msra.mxu0 %v14491_v48  ;;  %v5490_v25 = vld [vmem:[#allocation2 + $0x78] sm:$0xff] }
 0x255   : > { %v5138_v30 = vmul.f32 %v14150_v62, %v5099_v56  ;;  %10791 = vmatmul.mubr.bf16.gmra.mxu1 %v5579_v61  ;;  %10872 = vmatprep.subr.bf16.mxu1 %v14511_v31  ;;  %v11525_v29 = vpop.eup %11524  ;;  %5460 = vst [vmem:[#allocation2 + $0xa9] sm:$0xff] %v14527_v47  ;;  %v14537_v9 = vmul.f32 %v11523_v49, %v14350_v32  ;;  %11548 = vpow2.f32 %v9744_v42  ;;  %v11403_v32 = vld [vmem:[#allocation3 + $0xe0] sm:$0xff]  }
 0x256   : > { %v14540_v21 = vadd.f32 %v14162_v45, %v5140_v4  ;;  %v5580_v11 = vpack.c.bf16 %v14439_v12, %v14421_v24  ;;  %v11527_v62 = vpop.eup %11526  ;;  %11550 = vrcp.f32 %v5296_v27  ;;  %v5299_v1 = vadd.f32 1.0, %v11525_v29  ;;  %10918 = vmatprep.subr.bf16.mxu0 %v11402_v23  ;;  %v5493_v55 = vld [vmem:[#allocation2 + $0x98] sm:$0xff]  ;;  %v5492_v61 = vld [vmem:[#allocation2 + $0x90] sm:$0xff]  ;;  %v11406_v4 = vld [vmem:[#allocation3 + $0xd0] sm:$0xff]  }
 0x257   : > { %v14546_v41 = vadd.f32 %v14162_v45, %v5138_v30  ;;  %v14548_v36 = vpack.c.bf16 %v5489_v63, %v5488_v43  ;;  %v11529_v35 = vpop.eup %11528  ;;  %5463 = vst [vmem:[#allocation2 + $0xc9] sm:$0xff] %v14537_v9  ;;  %v14552_v8 = vmul.f32 %v11527_v62, %v14359_v18  ;;  %11552 = vpow2.f32 %v9742_v22  ;;  %10839 = vmatmul.mubr.bf16.gmra.mxu0 %v14530_v52 }
 0x258   : > { %v9745_v24 = vmul.f32 -1.442695, %v14540_v21  ;;  %10794 = vmatprep.mubr.bf16.mxu1 %v5580_v11  ;;  %v5581_v45 = vpack.c.bf16 %v14497_v60, %v14475_v16  ;;  %v11531_v12 = vpop.eup %11530  ;;  %11554 = vrcp.f32 %v5299_v1  ;;  %v5297_v48 = vadd.f32 1.0, %v11529_v35  ;;  %v5491_v59 = vld [vmem:[#allocation2 + $0x80] sm:$0xff]  ;;  %10873 = vmatpush3.bf16.msra.mxu1 %v14511_v31  ;;  %v11407_v11 = vld [vmem:[#allocation3 + $0x80] sm:$0xff]  }
 0x259   : > { %v9743_v57 = vmul.f32 -1.442695, %v14546_v41  ;;  %10842 = vmatprep.mubr.bf16.mxu0 %v14548_v36  ;;  %v5582_v18 = vpack.c.bf16 %v14486_v2, %v14463_v14  ;;  %v11533_v10 = vpop.eup %11532  ;;  %5461 = vst [vmem:[#allocation2 + $0xb1] sm:$0xff] %v14552_v8  ;;  %v5302_v13 = vadd.f32 1.0, %v11531_v12  ;;  %10874 = vmatprep.subr.bf16.mxu1 %v11398_v53  ;;  %v5583_v50 = vpack.c.bf16 %v14552_v8, %v14527_v47  ;;  %v11401_v2 = vld [vmem:[#allocation3 + $0x90] sm:$0xff]  }
 0x25a   : > { %11556 = vpow2.f32 %v9745_v24  ;;  %10919 = vmatpush3.bf16.msra.mxu0 %v11402_v23  ;;  %v11535_v16 = vpop.eup %11534  ;;  %v14565_v60 = vmul.f32 %v11533_v10, %v14372_v40  ;;  %v5584_v14 = vpack.c.bf16 %v14537_v9, %v14506_v54  ;;  %v14571_v42 = vpack.c.bf16 %v5491_v59, %v5490_v25  ;;  %v14607_v59 = vld [vmem:[#allocation3 + $0x138] sm:$0xff]   ;;  %v11409_v10 = vld [vmem:[#allocation3 + $0xc0] sm:$0xff]  }
 0x25b   : > { %11558 = vrcp.f32 %v5297_v48  ;;  %10920 = vmatprep.subr.bf16.mxu0 %v11403_v32  ;;  %v11537_v31 = vpop.eup %11536  ;;  %v5300_v5 = vadd.f32 1.0, %v11535_v16  ;;  %v14581_v44 = vpack.c.bf16 %v5493_v55, %v5492_v61 }
 0x25c   : > { %11560 = vrcp.f32 %v5302_v13  ;;  %v11539_v19 = vpop.eup %11538  ;;  %5466 = vst [vmem:[#allocation2 + $0xf1] sm:$0xff] %v14565_v60  ;;  %v14575_v40 = vmul.f32 %v11537_v31, %v14382_v15  ;;  %10875 = vmatpush3.bf16.msra.mxu1 %v11398_v53  ;;  %v11404_v15 = vld [vmem:[#allocation3 + $0x88] sm:$0xff]   ;;  %v5494_v9 = vld [vmem:[#allocation2 + $0xa8] sm:$0xff] }
 0x25d   : > { %11562 = vpow2.f32 %v9743_v57  ;;  %10795 = vmatmul.mubr.bf16.gmra.mxu1 %v5581_v45  ;;  %v11541_v56 = vpop.eup %11540  ;;  %v5303_v54 = vadd.f32 1.0, %v11539_v19  ;;  %10876 = vmatprep.subr.bf16.mxu1 %v11401_v2  ;;  %v5496_v45 = vld [vmem:[#allocation2 + $0xc0] sm:$0xff]  ;;  %v14622_v19 = vld [vmem:[#allocation3 + $0x178] sm:$0xff]  }
 0x25e   : > { %11564 = vrcp.f32 %v5300_v5  ;;  %10798 = vmatprep.mubr.bf16.mxu1 %v5582_v18  ;;  %v11543_v26 = vpop.eup %11542  ;;  %5464 = vst [vmem:[#allocation2 + $0xd9] sm:$0xff] %v14575_v40  ;;  %v14579_v23 = vmul.f32 %v11541_v56, %v14389_v28  ;;  %10921 = vmatpush3.bf16.msra.mxu0 %v11403_v32  ;;  %v5497_v1 = vld [vmem:[#allocation2 + $0xc8] sm:$0xff]  ;;  %v11408_v32 = vld [vmem:[#allocation3 + $0xc8] sm:$0xff]  }
 0x25f   : > { %11566 = vrcp.f32 %v5303_v54  ;;  %v5301_v47 = vadd.f32 1.0, %v11543_v26  ;;  %10843 = vmatmul.mubr.bf16.gmra.mxu0 %v14571_v42  ;;  %10922 = vmatprep.subr.bf16.mxu0 %v11405_v6  ;;  %v14605_v57 = vpack.c.bf16 %v5497_v1, %v5496_v45  ;;  %v6029_v45 = vld [vmem:[#allocation2 + $0x1a] sm:$0xff] }
 0x260   : > { %v11545_v63 = vpop.eup %11544  ;;  %5467 = vst [vmem:[#allocation2 + $0xf9] sm:$0xff] %v14579_v23  ;;  %10846 = vmatprep.mubr.bf16.mxu0 %v14581_v44  ;;  %v5495_v49 = vld [vmem:[#allocation2 + $0xb0] sm:$0xff]  ;;  %v5586_v28 = vpack.c.bf16 %v14579_v23, %v14565_v60  ;;  %10877 = vmatpush3.bf16.msra.mxu1 %v11401_v2 }
 0x261   : > { %v11547_v27 = vpop.eup %11546  ;;  %v14589_v22 = vmul.f32 %v11545_v63, %v14403_v37  ;;  %11568 = vrcp.f32 %v5301_v47  ;;  %10878 = vmatprep.subr.bf16.mxu1 %v11404_v15  ;;  %v14595_v62 = vpack.c.bf16 %v5495_v49, %v5494_v9 }
 0x262   : > { %v11549_v30 = vpop.eup %11548  ;;  %v14592_v29 = vmul.f32 %v11547_v27, %v14414_v39  ;;  %10923 = vmatpush3.bf16.msra.mxu0 %v11405_v6 }
 0x263   : > { %v11551_v43 = vpop.eup %11550  ;;  %5465 = vst [vmem:[#allocation2 + $0xe1] sm:$0xff] %v14589_v22  ;;  %v5306_v53 = vadd.f32 1.0, %v11549_v30  ;;  %v5585_v37 = vpack.c.bf16 %v14589_v22, %v14575_v40  ;;  %10924 = vmatprep.subr.bf16.mxu0 %v11406_v4  ;;  %v5500_v54 = vld [vmem:[#allocation2 + $0xf0] sm:$0xff] }
 0x264   : > { %v11553_v35 = vpop.eup %11552  ;;  %5470 = vst [vmem:[#allocation2 + $0x121] sm:$0xff] %v14592_v29  ;;  %v14601_v39 = vmul.f32 %v11551_v43, %v14425_v46  ;;  %10879 = vmatpush3.bf16.msra.mxu1 %v11404_v15 }
 0x265   : > { %10799 = vmatmul.mubr.bf16.gmra.mxu1 %v5583_v50  ;;  %v11555_v8 = vpop.eup %11554  ;;  %11570 = vrcp.f32 %v5306_v53  ;;  %v5304_v24 = vadd.f32 1.0, %v11553_v35  ;;  %10880 = vmatprep.subr.bf16.mxu1 %v11407_v11  ;;  %v5498_v31 = vld [vmem:[#allocation2 + $0xd8] sm:$0xff]  ;;  %v6028_v35 = vld [vmem:[#allocation2 + $0xa] sm:$0xff] }
 0x266   : > { %10802 = vmatprep.mubr.bf16.mxu1 %v5584_v14  ;;  %5468 = vst [vmem:[#allocation2 + $0x109] sm:$0xff] %v14601_v39  ;;  %v5395_v48 = vmul.f32 %v11555_v8, %v14431_v20  ;;  %10925 = vmatpush3.bf16.msra.mxu0 %v11406_v4 }
 0x267   : > { %v11557_v12 = vpop.eup %11556  ;;  %11572 = vrcp.f32 %v5304_v24  ;;  %10847 = vmatmul.mubr.bf16.gmra.mxu0 %v14595_v62  ;;  %10926 = vmatprep.subr.bf16.mxu0 %v11408_v32 }
 0x268   : > { %v11559_v46 = vpop.eup %11558  ;;  %v5307_v18 = vadd.f32 1.0, %v11557_v12  ;;  %5471 = vst [vmem:[#allocation2 + $0x129] sm:$0xff] %v5395_v48  ;;  %10850 = vmatprep.mubr.bf16.mxu0 %v14605_v57  ;;  %v5588_v20 = vpack.c.bf16 %v5395_v48, %v14592_v29  ;;  %10881 = vmatpush3.bf16.msra.mxu1 %v11407_v11  ;;  %v6030_v12 = vld [vmem:[#allocation2 + $0x22] sm:$0xff]  ;;  %v6031_v48 = vld [vmem:[#allocation2 + $0x32] sm:$0xff] }
 0x269   : > { %v11561_v13 = vpop.eup %11560  ;;  %v5393_v16 = vmul.f32 %v11559_v46, %v14443_v51  ;;  %10962 = vmatprep.subr.bf16.mxu1 %v14607_v59  ;;  %v6032_v46 = vld [vmem:[#allocation2 + $0x3a] sm:$0xff] }
 0x26a   : > { %v11563_v25 = vpop.eup %11562  ;;  %v14614_v50 = vmul.f32 %v11561_v13, %v14454_v58  ;;  %11574 = vrcp.f32 %v5307_v18  ;;  %v5499_v5 = vld [vmem:[#allocation2 + $0xe0] sm:$0xff]  ;;  %10927 = vmatpush3.bf16.msra.mxu0 %v11408_v32  ;;  %v5501_v58 = vld [vmem:[#allocation2 + $0xf8] sm:$0xff]  ;;  %v14655_v18 = vpack.c.bf16 %v6030_v12, %v6029_v45  ;;  %v14657_v13 = vpack.c.bf16 %v6032_v46, %v6031_v48 }
 0x26b   : > { %v11565_v14 = vpop.eup %11564  ;;  %5469 = vst [vmem:[#allocation2 + $0x111] sm:$0xff] %v5393_v16  ;;  %v5305_v2 = vadd.f32 1.0, %v11563_v25  ;;  %v5587_v55 = vpack.c.bf16 %v5393_v16, %v14601_v39  ;;  %v14620_v6 = vpack.c.bf16 %v5499_v5, %v5498_v31  ;;  %10928 = vmatprep.subr.bf16.mxu0 %v11409_v10  ;;  %v14628_v26 = vpack.c.bf16 %v5501_v58, %v5500_v54  ;;  %v5504_v27 = vld [vmem:[#allocation2 + $0x120] sm:$0xff]  ;;  %v6033_v25 = vld [vmem:[#allocation2 + $0x4a] sm:$0xff]  ;;  %v6039_v58 = vld [vmem:[#allocation2 + $0x92] sm:$0xff] }
 0x26c   : > { %5474 = vst [vmem:[#allocation2 + $0x151] sm:$0xff] %v14614_v50  ;;  %v5396_v51 = vmul.f32 %v11565_v14, %v14467_v17  ;;  %v11567_v40 = vpop.eup %11566  ;;  %v11416_v16 = vld [vmem:[#allocation3 + $0x170] sm:$0xff]   ;;  %v6036_v14 = vld [vmem:[#allocation2 + $0x6a] sm:$0xff] }
 0x26d   : > { %11576 = vrcp.f32 %v5305_v2  ;;  %10803 = vmatmul.mubr.bf16.gmra.mxu1 %v5585_v37  ;;  %v5399_v56 = vmul.f32 %v11567_v40, %v14470_v0  ;;  %v5502_v47 = vld [vmem:[#allocation2 + $0x108] sm:$0xff]  ;;  %v11413_v31 = vld [vmem:[#allocation3 + $0x120] sm:$0xff]   ;;  %v6639_v12 = vld [vmem:[#allocation2 + $0x19] sm:$0xff] }
 0x26e   : > { %5472 = vst [vmem:[#allocation2 + $0x139] sm:$0xff] %v5396_v51  ;;  %10806 = vmatprep.mubr.bf16.mxu1 %v5586_v28  ;;  %v11569_v61 = vpop.eup %11568  ;;  %10929 = vmatpush3.bf16.msra.mxu0 %v11409_v10  ;;  %v11411_v10 = vld [vmem:[#allocation3 + $0x130] sm:$0xff]   ;;  %v11421_v54 = vld [vmem:[#allocation3 + $0x158] sm:$0xff]  }
 0x26f   : > { %5475 = vst [vmem:[#allocation2 + $0x159] sm:$0xff] %v5399_v56  ;;  %v5397_v17 = vmul.f32 %v11569_v61, %v14482_v33  ;;  %10851 = vmatmul.mubr.bf16.gmra.mxu0 %v14620_v6  ;;  %v5590_v15 = vpack.c.bf16 %v5399_v56, %v14614_v50  ;;  %11010 = vmatprep.subr.bf16.mxu0 %v14622_v19  ;;  %v5505_v49 = vld [vmem:[#allocation2 + $0x128] sm:$0xff]  ;;  %v11417_v56 = vld [vmem:[#allocation3 + $0x110] sm:$0xff]  }
 0x270   : > { %10854 = vmatprep.mubr.bf16.mxu0 %v14628_v26  ;;  %v14639_v30 = vpack.c.bf16 %v5505_v49, %v5504_v27  ;;  %v6035_v50 = vld [vmem:[#allocation2 + $0x62] sm:$0xff]  ;;  %v6047_v27 = vld [vmem:[#allocation2 + $0xf2] sm:$0xff] }
 0x271   : > { %5473 = vst [vmem:[#allocation2 + $0x141] sm:$0xff] %v5397_v17  ;;  %v5589_v60 = vpack.c.bf16 %v5397_v17, %v5396_v51  ;;  %v14667_v5 = vpack.c.bf16 %v6036_v14, %v6035_v50  ;;  %v6038_v51 = vld [vmem:[#allocation2 + $0x82] sm:$0xff]  ;;  %v6041_v17 = vld [vmem:[#allocation2 + $0xaa] sm:$0xff] }
 0x272   : > { %v5503_v0 = vld [vmem:[#allocation2 + $0x110] sm:$0xff]  ;;  %v11571_v23 = vpop.eup %11570  ;;  %v11432_v14 = vld [vmem:[#allocation3 + $0x1f0] sm:$0xff]  }
 0x273   : > { %v5402_v4 = vmul.f32 %v11571_v23, %v14500_v7  ;;  %v14636_v63 = vpack.c.bf16 %v5503_v0, %v5502_v47  ;;  %v5508_v37 = vld [vmem:[#allocation2 + $0x150] sm:$0xff]  ;;  %v6043_v0 = vld [vmem:[#allocation2 + $0xc2] sm:$0xff] }
 0x274   : > { %v11573_v28 = vpop.eup %11572  ;;  %v11423_v47 = vld [vmem:[#allocation3 + $0x100] sm:$0xff]  }
 0x275   : > { %10807 = vmatmul.mubr.bf16.gmra.mxu1 %v5587_v55  ;;  %5478 = vst [vmem:[#allocation2 + $0x181] sm:$0xff] %v5402_v4  ;;  %v5400_v33 = vmul.f32 %v11573_v28, %v14520_v38  ;;  %v5506_v43 = vld [vmem:[#allocation2 + $0x138] sm:$0xff] }
 0x276   : > { %10810 = vmatprep.mubr.bf16.mxu1 %v5588_v20  ;;  %v5509_v38 = vld [vmem:[#allocation2 + $0x158] sm:$0xff] }
 0x277   : > { %v11575_v22 = vpop.eup %11574  ;;  %5476 = vst [vmem:[#allocation2 + $0x169] sm:$0xff] %v5400_v33  ;;  %10855 = vmatmul.mubr.bf16.gmra.mxu0 %v14636_v63  ;;  %v14647_v32 = vpack.c.bf16 %v5509_v38, %v5508_v37  ;;  %v11412_v20 = vld [vmem:[#allocation3 + $0x128] sm:$0xff]  }
 0x278   : > { %v5403_v29 = vmul.f32 %v11575_v22, %v14540_v21  ;;  %10858 = vmatprep.mubr.bf16.mxu0 %v14639_v30  ;;  %v5507_v7 = vld [vmem:[#allocation2 + $0x140] sm:$0xff]  ;;  %v11424_v4 = vld [vmem:[#allocation3 + $0x148] sm:$0xff]  }
 0x279   : > { %v14645_v53 = vpack.c.bf16 %v5507_v7, %v5506_v43  ;;  %v6027_v21 = vld [vmem:[#allocation2 + $0x2] sm:$0xff]  ;;  %v6037_v55 = vld [vmem:[#allocation2 + $0x7a] sm:$0xff]  ;;  %v6052_v43 = vld [vmem:[#allocation2 + $0x12a] sm:$0xff] }
 0x27a   : > { %v11577_v9 = vpop.eup %11576  ;;  %5479 = vst [vmem:[#allocation2 + $0x189] sm:$0xff] %v5403_v29  ;;  %v6059_v39 = vpack.c.bf16 %v6028_v35, %v6027_v21  ;;  %v14673_v40 = vpack.c.bf16 %v6038_v51, %v6037_v55  ;;  %v6045_v28 = vld [vmem:[#allocation2 + $0xda] sm:$0xff]  ;;  %v11431_v29 = vld [vmem:[#allocation3 + $0x1f8] sm:$0xff]   ;;  %v11429_v51 = vld [vmem:[#allocation3 + $0x1a0] sm:$0xff]  }
 0x27b   : > { %v5401_v11 = vmul.f32 %v11577_v9, %v14546_v41  ;;  %v6048_v22 = vld [vmem:[#allocation2 + $0xfa] sm:$0xff]  ;;  %v6054_v21 = vld [vmem:[#allocation2 + $0x142] sm:$0xff] }
 0x27c   : > { %v14691_v9 = vpack.c.bf16 %v6048_v22, %v6047_v27  ;;  %v6053_v37 = vld [vmem:[#allocation2 + $0x13a] sm:$0xff] }
 0x27d   : > { %5477 = vst [vmem:[#allocation2 + $0x171] sm:$0xff] %v5401_v11  ;;  %10811 = vmatmul.mubr.bf16.gmra.mxu1 %v5589_v60  ;;  %v5591_v1 = vpack.c.bf16 %v5401_v11, %v5400_v33  ;;  %v6044_v60 = vld [vmem:[#allocation2 + $0xca] sm:$0xff]  ;;  %v6046_v33 = vld [vmem:[#allocation2 + $0xe2] sm:$0xff]  ;;  %v6056_v35 = vld [vmem:[#allocation2 + $0x15a] sm:$0xff] }
 0x27e   : > { %10814 = vmatprep.mubr.bf16.mxu1 %v5590_v15  ;;  %v5510_v8 = vld [vmem:[#allocation2 + $0x168] sm:$0xff]  ;;  %v6042_v15 = vld [vmem:[#allocation2 + $0xb2] sm:$0xff]  ;;  %v14683_v49 = vpack.c.bf16 %v6044_v60, %v6043_v0  ;;  %v14689_v7 = vpack.c.bf16 %v6046_v33, %v6045_v28  ;;  %v6363_v46 = vld [vmem:[#allocation2 + $0x180] sm:$0xff] }
 0x27f   : > { %10859 = vmatmul.mubr.bf16.gmra.mxu0 %v14645_v53  ;;  %v14681_v23 = vpack.c.bf16 %v6042_v15, %v6041_v17  ;;  %v6051_v11 = vld [vmem:[#allocation2 + $0x122] sm:$0xff]  ;;  %v6647_v55 = vld [vmem:[#allocation2 + $0x79] sm:$0xff]  ;;  %v11439_v33 = vld [vmem:[#allocation3 + $0x180] sm:$0xff]  }
 0x280   : > { %10862 = vmatprep.mubr.bf16.mxu0 %v14647_v32  ;;  %v6651_v17 = vld [vmem:[#allocation2 + $0xa9] sm:$0xff]  ;;  %v11433_v15 = vld [vmem:[#allocation3 + $0x190] sm:$0xff]   ;;  %v11440_v27 = vld [vmem:[#allocation3 + $0x1c8] sm:$0xff]  }
 0x281   : > { %v11437_v0 = vld [vmem:[#allocation3 + $0x1d8] sm:$0xff]   ;;  %v6655_v28 = vld [vmem:[#allocation2 + $0xd9] sm:$0xff] }
 0x284   : > { %v5511_v41 = vld [vmem:[#allocation2 + $0x170] sm:$0xff] }
 0x285   : > { %10815 = vmatmul.mubr.bf16.gmra.mxu1 %v5591_v1  ;;  %v14651_v24 = vpack.c.bf16 %v5511_v41, %v5510_v8  ;;  %v14699_v1 = vpack.c.bf16 %v6052_v43, %v6051_v11  ;;  %v6057_v8 = vld [vmem:[#allocation2 + $0x16a] sm:$0xff]  ;;  %v6058_v41 = vld [vmem:[#allocation2 + $0x172] sm:$0xff] }
 0x286   : > { %10882 = vmatprep.mubr.bf16.mxu1 %v6059_v39  ;;  %v14705_v39 = vpack.c.bf16 %v6054_v21, %v6053_v37  ;;  %v14713_v45 = vpack.c.bf16 %v6058_v41, %v6057_v8  ;;  %v6659_v43 = vld [vmem:[#allocation2 + $0x109] sm:$0xff]  ;;  %v6661_v21 = vld [vmem:[#allocation2 + $0x121] sm:$0xff]  ;;  %v6666_v41 = vld [vmem:[#allocation2 + $0x159] sm:$0xff] }
 0x287   : > { %10863 = vmatmul.mubr.bf16.gmra.mxu0 %v14651_v24 }
 0x288   : > { %10930 = vmatprep.mubr.bf16.mxu0 %v14489_v34  ;;  %v6034_v34 = vld [vmem:[#allocation2 + $0x52] sm:$0xff] }
 0x289   : > { %v14665_v2 = vpack.c.bf16 %v6034_v34, %v6033_v25  ;;  %v6643_v25 = vld [vmem:[#allocation2 + $0x49] sm:$0xff]  ;;  %v11427_v34 = vld [vmem:[#allocation3 + $0x1b0] sm:$0xff]  }
 0x28d   : > { %10883 = vmatmul.mubr.bf16.vlgmr.msra.gmra.mxu1 %v14655_v18 }
 0x28e   : > { %10886 = vmatprep.mubr.bf16.mxu1 %v14657_v13  ;;  %10963 = vmatpush3.bf16.msra.mxu1 %v14607_v59  ;;  %v11418_v59 = vld [vmem:[#allocation3 + $0x168] sm:$0xff]  }
 0x28f   : > { %10964 = vmatprep.subr.bf16.mxu1 %v11411_v10  ;;  %10931 = vmatmul.mubr.bf16.vlgmr.msra.gmra.mxu0 %v14509_v3  ;;  %v11419_v3 = vld [vmem:[#allocation3 + $0x160] sm:$0xff]  }
 0x290   : > { %10934 = vmatprep.mubr.bf16.mxu0 %v14530_v52  ;;  %11011 = vmatpush3.bf16.msra.mxu0 %v14622_v19  ;;  %v11414_v52 = vld [vmem:[#allocation3 + $0x118] sm:$0xff]   ;;  %v6040_v19 = vld [vmem:[#allocation2 + $0x9a] sm:$0xff] }
 0x291   : > { %11012 = vmatprep.subr.bf16.mxu0 %v11416_v16  ;;  %v14675_v61 = vpack.c.bf16 %v6040_v19, %v6039_v58  ;;  %v11434_v58 = vld [vmem:[#allocation3 + $0x1e8] sm:$0xff]  }
 0x292   : > { %10965 = vmatpush3.bf16.msra.mxu1 %v11411_v10 }
 0x293   : > { %10966 = vmatprep.subr.bf16.mxu1 %v11412_v20 }
 0x294   : > { %11013 = vmatpush3.bf16.msra.mxu0 %v11416_v16  ;;  %v6642_v16 = vld [vmem:[#allocation2 + $0x39] sm:$0xff] }
 0x295   : > { %10887 = vmatmul.mubr.bf16.gmra.mxu1 %v14665_v2  ;;  %11014 = vmatprep.subr.bf16.mxu0 %v11418_v59 }
 0x296   : > { %10890 = vmatprep.mubr.bf16.mxu1 %v14667_v5  ;;  %10967 = vmatpush3.bf16.msra.mxu1 %v11412_v20  ;;  %v6641_v20 = vld [vmem:[#allocation2 + $0x31] sm:$0xff] }
 0x297   : > { %10968 = vmatprep.subr.bf16.mxu1 %v11413_v31  ;;  %10935 = vmatmul.mubr.bf16.gmra.mxu0 %v14548_v36  ;;  %v11422_v36 = vld [vmem:[#allocation3 + $0x150] sm:$0xff]  }
 0x298   : > { %10938 = vmatprep.mubr.bf16.mxu0 %v14571_v42  ;;  %11015 = vmatpush3.bf16.msra.mxu0 %v11418_v59  ;;  %v11420_v42 = vld [vmem:[#allocation3 + $0x108] sm:$0xff]   ;;  %v6646_v59 = vld [vmem:[#allocation2 + $0x69] sm:$0xff] }
 0x299   : > { %11016 = vmatprep.subr.bf16.mxu0 %v11419_v3 }
 0x29a   : > { %10969 = vmatpush3.bf16.msra.mxu1 %v11413_v31  ;;  %v11428_v31 = vld [vmem:[#allocation3 + $0x1a8] sm:$0xff]  }
 0x29b   : > { %10970 = vmatprep.subr.bf16.mxu1 %v11414_v52 }
 0x29c   : > { %11017 = vmatpush3.bf16.msra.mxu0 %v11419_v3  ;;  %v6645_v3 = vld [vmem:[#allocation2 + $0x61] sm:$0xff] }
 0x29d   : > { %10891 = vmatmul.mubr.bf16.gmra.mxu1 %v14673_v40  ;;  %11018 = vmatprep.subr.bf16.mxu0 %v11421_v54 }
 0x29e   : > { %10894 = vmatprep.mubr.bf16.mxu1 %v14675_v61  ;;  %10971 = vmatpush3.bf16.msra.mxu1 %v11414_v52  ;;  %v14728_v52 = vpack.c.bf16 %v6646_v59, %v6645_v3  ;;  %v11443_v3 = vld [vmem:[#allocation3 + $0x230] sm:$0xff]  }
 0x29f   : > { %10972 = vmatprep.subr.bf16.mxu1 %v11417_v56  ;;  %10939 = vmatmul.mubr.bf16.gmra.mxu0 %v14581_v44  ;;  %v11425_v44 = vld [vmem:[#allocation3 + $0x140] sm:$0xff]  }
 0x2a0   : > { %10942 = vmatprep.mubr.bf16.mxu0 %v14595_v62  ;;  %11019 = vmatpush3.bf16.msra.mxu0 %v11421_v54  ;;  %v11426_v62 = vld [vmem:[#allocation3 + $0x1b8] sm:$0xff]   ;;  %v6652_v54 = vld [vmem:[#allocation2 + $0xb1] sm:$0xff] }
 0x2a1   : > { %11020 = vmatprep.subr.bf16.mxu0 %v11422_v36  ;;  %v14738_v60 = vpack.c.bf16 %v6652_v54, %v6651_v17 }
 0x2a2   : > { %10973 = vmatpush3.bf16.msra.mxu1 %v11417_v56  ;;  %v6650_v56 = vld [vmem:[#allocation2 + $0x99] sm:$0xff] }
 0x2a3   : > { %10974 = vmatprep.subr.bf16.mxu1 %v11420_v42 }
 0x2a4   : > { %11021 = vmatpush3.bf16.msra.mxu0 %v11422_v36  ;;  %v6649_v36 = vld [vmem:[#allocation2 + $0x91] sm:$0xff] }
 0x2a5   : > { %10895 = vmatmul.mubr.bf16.gmra.mxu1 %v14681_v23  ;;  %11022 = vmatprep.subr.bf16.mxu0 %v11424_v4 }
 0x2a6   : > { %10898 = vmatprep.mubr.bf16.mxu1 %v14683_v49  ;;  %10975 = vmatpush3.bf16.msra.mxu1 %v11420_v42  ;;  %v14736_v42 = vpack.c.bf16 %v6650_v56, %v6649_v36  ;;  %v7259_v56 = vld [vmem:[#allocation2 + $0x80] sm:$0xff]  ;;  %v7261_v36 = vld [vmem:[#allocation2 + $0x98] sm:$0xff] }
 0x2a7   : > { %10976 = vmatprep.subr.bf16.mxu1 %v11423_v47  ;;  %10943 = vmatmul.mubr.bf16.gmra.mxu0 %v14605_v57  ;;  %v6049_v57 = vld [vmem:[#allocation2 + $0x10a] sm:$0xff] }
 0x2a8   : > { %10946 = vmatprep.mubr.bf16.mxu0 %v14620_v6  ;;  %11023 = vmatpush3.bf16.msra.mxu0 %v11424_v4  ;;  %v6050_v6 = vld [vmem:[#allocation2 + $0x112] sm:$0xff]  ;;  %v6656_v4 = vld [vmem:[#allocation2 + $0xe1] sm:$0xff] }
 0x2a9   : > { %11024 = vmatprep.subr.bf16.mxu0 %v11425_v44  ;;  %v14697_v38 = vpack.c.bf16 %v6050_v6, %v6049_v57  ;;  %v14746_v22 = vpack.c.bf16 %v6656_v4, %v6655_v28  ;;  %v6660_v57 = vld [vmem:[#allocation2 + $0x111] sm:$0xff] }
 0x2aa   : > { %10977 = vmatpush3.bf16.msra.mxu1 %v11423_v47  ;;  %v6654_v47 = vld [vmem:[#allocation2 + $0xc9] sm:$0xff]  ;;  %v6657_v6 = vld [vmem:[#allocation2 + $0xf1] sm:$0xff]  ;;  %v14754_v37 = vpack.c.bf16 %v6660_v57, %v6659_v43 }
 0x2ab   : > { %11058 = vmatprep.subr.bf16.mxu1 %v11426_v62  ;;  %v7265_v43 = vld [vmem:[#allocation2 + $0xc8] sm:$0xff] }
 0x2ac   : > { %11025 = vmatpush3.bf16.msra.mxu0 %v11425_v44  ;;  %v6653_v44 = vld [vmem:[#allocation2 + $0xc1] sm:$0xff] }
 0x2ad   : > { %10899 = vmatmul.mubr.bf16.gmra.mxu1 %v14689_v7  ;;  %11106 = vmatprep.subr.bf16.mxu0 %v11431_v29 }
 0x2ae   : > { %10902 = vmatprep.mubr.bf16.mxu1 %v14691_v9 }
 0x2af   : > { %10947 = vmatmul.mubr.bf16.gmra.mxu0 %v14628_v26  ;;  %v6055_v26 = vld [vmem:[#allocation2 + $0x152] sm:$0xff] }
 0x2b0   : > { %10950 = vmatprep.mubr.bf16.mxu0 %v14636_v63  ;;  %v14707_v63 = vpack.c.bf16 %v6056_v35, %v6055_v26  ;;  %v6663_v35 = vld [vmem:[#allocation2 + $0x139] sm:$0xff] }
 0x2b5   : > { %10903 = vmatmul.mubr.bf16.gmra.mxu1 %v14697_v38 }
 0x2b6   : > { %10906 = vmatprep.mubr.bf16.mxu1 %v14699_v1 }
 0x2b7   : > { %10951 = vmatmul.mubr.bf16.gmra.mxu0 %v14639_v30  ;;  %v6640_v30 = vld [vmem:[#allocation2 + $0x21] sm:$0xff] }
 0x2b8   : > { %10954 = vmatprep.mubr.bf16.mxu0 %v14645_v53  ;;  %v6364_v53 = vld [vmem:[#allocation2 + $0x188] sm:$0xff]  ;;  %v6671_v48 = vpack.c.bf16 %v6640_v30, %v6639_v12  ;;  %v6665_v30 = vld [vmem:[#allocation2 + $0x151] sm:$0xff] }
 0x2b9   : > { %v14716_v10 = vpack.c.bf16 %v6364_v53, %v6363_v46  ;;  %v14768_v53 = vpack.c.bf16 %v6666_v41, %v6665_v30  ;;  %v6669_v46 = vld [vmem:[#allocation2 + $0x181] sm:$0xff] }
 0x2ba   : > { %v11447_v30 = vld [vmem:[#allocation3 + $0x210] sm:$0xff]  }
 0x2bd   : > { %10907 = vmatmul.mubr.bf16.gmra.mxu1 %v14705_v39 }
 0x2be   : > { %10910 = vmatprep.mubr.bf16.mxu1 %v14707_v63 }
 0x2bf   : > { %10955 = vmatmul.mubr.bf16.gmra.mxu0 %v14647_v32  ;;  %v6644_v32 = vld [vmem:[#allocation2 + $0x51] sm:$0xff] }
 0x2c0   : > { %10958 = vmatprep.mubr.bf16.mxu0 %v14651_v24  ;;  %v14720_v24 = vpack.c.bf16 %v6642_v16, %v6641_v20  ;;  %v14722_v50 = vpack.c.bf16 %v6644_v32, %v6643_v25  ;;  %v6976_v32 = vld [vmem:[#allocation2 + $0x18a] sm:$0xff] }
 0x2c1   : > { %v7252_v20 = vld [vmem:[#allocation2 + $0x30] sm:$0xff] }
 0x2c5   : > { %10911 = vmatmul.mubr.bf16.gmra.mxu1 %v14713_v45 }
 0x2c6   : > { %10978 = vmatprep.mubr.bf16.mxu1 %v6671_v48  ;;  %v6670_v48 = vld [vmem:[#allocation2 + $0x189] sm:$0xff] }
 0x2c7   : > { %10959 = vmatmul.mubr.bf16.gmra.mxu0 %v14716_v10  ;;  %v14776_v16 = vpack.c.bf16 %v6670_v48, %v6669_v46 }
 0x2c8   : > { %11026 = vmatprep.mubr.bf16.mxu0 %v14655_v18  ;;  %v6648_v18 = vld [vmem:[#allocation2 + $0x81] sm:$0xff] }
 0x2c9   : > { %v14730_v19 = vpack.c.bf16 %v6648_v18, %v6647_v55  ;;  %v7256_v18 = vld [vmem:[#allocation2 + $0x60] sm:$0xff] }
 0x2cd   : > { %10979 = vmatmul.mubr.bf16.vlgmr.msra.gmra.mxu1 %v14720_v24 }
 0x2ce   : > { %10982 = vmatprep.mubr.bf16.mxu1 %v14722_v50  ;;  %11059 = vmatpush3.bf16.msra.mxu1 %v11426_v62  ;;  %v14744_v62 = vpack.c.bf16 %v6654_v47, %v6653_v44  ;;  %v11445_v47 = vld [vmem:[#allocation3 + $0x220] sm:$0xff]  }
 0x2cf   : > { %11060 = vmatprep.subr.bf16.mxu1 %v11427_v34  ;;  %11027 = vmatmul.mubr.bf16.vlgmr.msra.gmra.mxu0 %v14657_v13  ;;  %v11435_v13 = vld [vmem:[#allocation3 + $0x1e0] sm:$0xff]  }
 0x2d0   : > { %11030 = vmatprep.mubr.bf16.mxu0 %v14665_v2  ;;  %11107 = vmatpush3.bf16.msra.mxu0 %v11431_v29  ;;  %v11430_v2 = vld [vmem:[#allocation3 + $0x198] sm:$0xff]   ;;  %v6658_v29 = vld [vmem:[#allocation2 + $0xf9] sm:$0xff] }
 0x2d1   : > { %11108 = vmatprep.subr.bf16.mxu0 %v11432_v14  ;;  %v14752_v11 = vpack.c.bf16 %v6658_v29, %v6657_v6  ;;  %v7263_v29 = vld [vmem:[#allocation2 + $0xb0] sm:$0xff] }
 0x2d2   : > { %11061 = vmatpush3.bf16.msra.mxu1 %v11427_v34 }
 0x2d3   : > { %11062 = vmatprep.subr.bf16.mxu1 %v11428_v31 }
 0x2d4   : > { %11109 = vmatpush3.bf16.msra.mxu0 %v11432_v14  ;;  %v7255_v14 = vld [vmem:[#allocation2 + $0x50] sm:$0xff] }
 0x2d5   : > { %10983 = vmatmul.mubr.bf16.gmra.mxu1 %v14728_v52  ;;  %11110 = vmatprep.subr.bf16.mxu0 %v11434_v58 }
 0x2d6   : > { %10986 = vmatprep.mubr.bf16.mxu1 %v14730_v19  ;;  %11063 = vmatpush3.bf16.msra.mxu1 %v11428_v31 }
 0x2d7   : > { %11064 = vmatprep.subr.bf16.mxu1 %v11429_v51  ;;  %11031 = vmatmul.mubr.bf16.gmra.mxu0 %v14667_v5  ;;  %v11438_v5 = vld [vmem:[#allocation3 + $0x1d0] sm:$0xff]  }
 0x2d8   : > { %11034 = vmatprep.mubr.bf16.mxu0 %v14673_v40  ;;  %11111 = vmatpush3.bf16.msra.mxu0 %v11434_v58  ;;  %v11436_v40 = vld [vmem:[#allocation3 + $0x188] sm:$0xff]  }
 0x2d9   : > { %11112 = vmatprep.subr.bf16.mxu0 %v11435_v13 }
 0x2da   : > { %11065 = vmatpush3.bf16.msra.mxu1 %v11429_v51 }
 0x2db   : > { %11066 = vmatprep.subr.bf16.mxu1 %v11430_v2 }
 0x2dc   : > { %11113 = vmatpush3.bf16.msra.mxu0 %v11435_v13  ;;  %v11444_v13 = vld [vmem:[#allocation3 + $0x228] sm:$0xff]  }
 0x2dd   : > { %10987 = vmatmul.mubr.bf16.gmra.mxu1 %v14736_v42  ;;  %11114 = vmatprep.subr.bf16.mxu0 %v11437_v0 }
 0x2de   : > { %10990 = vmatprep.mubr.bf16.mxu1 %v14738_v60  ;;  %11067 = vmatpush3.bf16.msra.mxu1 %v11430_v2 }
 0x2df   : > { %11068 = vmatprep.subr.bf16.mxu1 %v11433_v15  ;;  %11035 = vmatmul.mubr.bf16.gmra.mxu0 %v14675_v61  ;;  %v11441_v61 = vld [vmem:[#allocation3 + $0x1c0] sm:$0xff]  }
 0x2e0   : > { %11038 = vmatprep.mubr.bf16.mxu0 %v14681_v23  ;;  %11115 = vmatpush3.bf16.msra.mxu0 %v11437_v0  ;;  %v11442_v23 = vld [vmem:[#allocation3 + $0x238] sm:$0xff]  }
 0x2e1   : > { %11116 = vmatprep.subr.bf16.mxu0 %v11438_v5 }
 0x2e2   : > { %11069 = vmatpush3.bf16.msra.mxu1 %v11433_v15  ;;  %v7258_v15 = vld [vmem:[#allocation2 + $0x78] sm:$0xff] }
 0x2e3   : > { %11070 = vmatprep.subr.bf16.mxu1 %v11436_v40 }
 0x2e4   : > { %11117 = vmatpush3.bf16.msra.mxu0 %v11438_v5  ;;  %v7287_v5 = vpack.c.bf16 %v7259_v56, %v7258_v15  ;;  %v7271_v15 = vld [vmem:[#allocation2 + $0x110] sm:$0xff] }
 0x2e5   : > { %10991 = vmatmul.mubr.bf16.gmra.mxu1 %v14744_v62  ;;  %11118 = vmatprep.subr.bf16.mxu0 %v11440_v27 }
 0x2e6   : > { %10994 = vmatprep.mubr.bf16.mxu1 %v14746_v22  ;;  %11071 = vmatpush3.bf16.msra.mxu1 %v11436_v40  ;;  %v7260_v40 = vld [vmem:[#allocation2 + $0x90] sm:$0xff] }
 0x2e7   : > { %11072 = vmatprep.subr.bf16.mxu1 %v11439_v33  ;;  %11039 = vmatmul.mubr.bf16.gmra.mxu0 %v14683_v49  ;;  %v6662_v49 = vld [vmem:[#allocation2 + $0x129] sm:$0xff]  ;;  %v7288_v44 = vpack.c.bf16 %v7261_v36, %v7260_v40 }
 0x2e8   : > { %11042 = vmatprep.mubr.bf16.mxu0 %v14689_v7  ;;  %11119 = vmatpush3.bf16.msra.mxu0 %v11440_v27  ;;  %v6664_v7 = vld [vmem:[#allocation2 + $0x141] sm:$0xff]  ;;  %v14760_v26 = vpack.c.bf16 %v6662_v49, %v6661_v21 }
 0x2e9   : > { %11120 = vmatprep.subr.bf16.mxu0 %v11441_v61  ;;  %v14762_v8 = vpack.c.bf16 %v6664_v7, %v6663_v35  ;;  %v7262_v7 = vld [vmem:[#allocation2 + $0xa8] sm:$0xff] }
 0x2ea   : > { %11073 = vmatpush3.bf16.msra.mxu1 %v11439_v33  ;;  %v7289_v41 = vpack.c.bf16 %v7263_v29, %v7262_v7 }
 0x2eb   : > { %11154 = vmatprep.subr.bf16.mxu1 %v11442_v23 }
 0x2ec   : > { %11121 = vmatpush3.bf16.msra.mxu0 %v11441_v61  ;;  %v11446_v61 = vld [vmem:[#allocation3 + $0x218] sm:$0xff]  }
 0x2ed   : > { %10995 = vmatmul.mubr.bf16.gmra.mxu1 %v14752_v11 }
 0x2ee   : > { %10998 = vmatprep.mubr.bf16.mxu1 %v14754_v37 }
 0x2ef   : > { %11043 = vmatmul.mubr.bf16.gmra.mxu0 %v14691_v9  ;;  %v6668_v9 = vld [vmem:[#allocation2 + $0x171] sm:$0xff] }
 0x2f0   : > { %11046 = vmatprep.mubr.bf16.mxu0 %v14697_v38  ;;  %v6667_v38 = vld [vmem:[#allocation2 + $0x169] sm:$0xff] }
 0x2f1   : > { %v14770_v12 = vpack.c.bf16 %v6668_v9, %v6667_v38  ;;  %v7264_v9 = vld [vmem:[#allocation2 + $0xc0] sm:$0xff] }
 0x2f2   : > { %v7290_v48 = vpack.c.bf16 %v7265_v43, %v7264_v9 }
 0x2f5   : > { %10999 = vmatmul.mubr.bf16.gmra.mxu1 %v14760_v26 }
 0x2f6   : > { %11002 = vmatprep.mubr.bf16.mxu1 %v14762_v8 }
 0x2f7   : > { %11047 = vmatmul.mubr.bf16.gmra.mxu0 %v14699_v1  ;;  %v7253_v1 = vld [vmem:[#allocation2 + $0x38] sm:$0xff] }
 0x2f8   : > { %11050 = vmatprep.mubr.bf16.mxu0 %v14705_v39  ;;  %v6975_v39 = vld [vmem:[#allocation2 + $0x182] sm:$0xff]  ;;  %v7284_v25 = vpack.c.bf16 %v7253_v1, %v7252_v20 }
 0x2f9   : > { %v14779_v34 = vpack.c.bf16 %v6976_v32, %v6975_v39  ;;  %v11448_v32 = vld [vmem:[#allocation3 + $0x208] sm:$0xff]  }
 0x2fd   : > { %11003 = vmatmul.mubr.bf16.gmra.mxu1 %v14768_v53 }
 0x2fe   : > { %11006 = vmatprep.mubr.bf16.mxu1 %v14770_v12 }
 0x2ff   : > { %11051 = vmatmul.mubr.bf16.gmra.mxu0 %v14707_v63  ;;  %v7257_v63 = vld [vmem:[#allocation2 + $0x68] sm:$0xff] }
 0x300   : > { %11054 = vmatprep.mubr.bf16.mxu0 %v14713_v45  ;;  %v7254_v45 = vld [vmem:[#allocation2 + $0x48] sm:$0xff]  ;;  %v7286_v55 = vpack.c.bf16 %v7257_v63, %v7256_v18 }
 0x301   : > { %v7285_v59 = vpack.c.bf16 %v7255_v14, %v7254_v45  ;;  %v7269_v45 = vld [vmem:[#allocation2 + $0xf8] sm:$0xff] }
 0x305   : > { %11007 = vmatmul.mubr.bf16.gmra.mxu1 %v14776_v16 }
 0x306   : > { %11074 = vmatprep.mubr.bf16.mxu1 %v7284_v25  ;;  %v7267_v25 = vld [vmem:[#allocation2 + $0xe0] sm:$0xff] }
 0x307   : > { %11055 = vmatmul.mubr.bf16.gmra.mxu0 %v14779_v34 }
 0x308   : > { %11122 = vmatprep.mubr.bf16.mxu0 %v14720_v24 }
 0x30a   : > { %v10788_v31 = vpop.f32.mrf.mxu1 }
 0x30c   : > { %v5691_v51 = vpop.f32.mrf.mxu1 }
 0x30d   : > { %11075 = vmatmul.mubr.bf16.vlgmr.msra.gmra.mxu1 %v7285_v59  ;;  %v7266_v59 = vld [vmem:[#allocation2 + $0xd8] sm:$0xff] }
 0x30e   : > { %11078 = vmatprep.mubr.bf16.mxu1 %v7286_v55  ;;  %11155 = vmatpush3.bf16.msra.mxu1 %v11442_v23  ;;  %v10789_v58 = vpop.f32.mrf.mxu1  ;;  %v7291_v55 = vpack.c.bf16 %v7267_v25, %v7266_v59 }
 0x30f   : > { %11156 = vmatprep.subr.bf16.mxu1 %v11443_v3  ;;  %v10836_v2 = vpop.f32.mrf.mxu0  ;;  %11123 = vmatmul.mubr.bf16.vlgmr.msra.gmra.mxu0 %v14722_v50 }
 0x310   : > { %v14784_v54 = vadd.f32 %v10836_v2, %v10788_v31  ;;  %11126 = vmatprep.mubr.bf16.mxu0 %v14728_v52  ;;  %v5694_v24 = vpop.f32.mrf.mxu1 }
 0x311   : > { %v5900_v17 = vpop.f32.mrf.mxu0 }
 0x312   : > { %11157 = vmatpush3.bf16.msra.mxu1 %v11443_v3  ;;  %v14787_v0 = vadd.f32 %v5900_v17, %v5691_v51  ;;  %v7268_v51 = vld [vmem:[#allocation2 + $0xf0] sm:$0xff] }
 0x313   : > { %11158 = vmatprep.subr.bf16.mxu1 %v11444_v13  ;;  %v10837_v4 = vpop.f32.mrf.mxu0  ;;  %v7292_v2 = vpack.c.bf16 %v7269_v45, %v7268_v51 }
 0x314   : > { %v14789_v28 = vadd.f32 %v10837_v4, %v10789_v58  ;;  %v11449_v58 = vld [vmem:[#allocation3 + $0x200] sm:$0xff]  }
 0x315   : > { %v10792_v50 = vpop.f32.mrf.mxu1  ;;  %11079 = vmatmul.mubr.bf16.gmra.mxu1 %v7287_v5  ;;  %v5903_v33 = vpop.f32.mrf.mxu0 }
 0x316   : > { %11082 = vmatprep.mubr.bf16.mxu1 %v7288_v44  ;;  %11159 = vmatpush3.bf16.msra.mxu1 %v11444_v13  ;;  %v14791_v52 = vadd.f32 %v5903_v33, %v5694_v24  ;;  %v7270_v44 = vld [vmem:[#allocation2 + $0x108] sm:$0xff] }
 0x317   : > { %v5707_v27 = vpop.f32.mrf.mxu1  ;;  %11160 = vmatprep.subr.bf16.mxu1 %v11445_v47  ;;  %v10840_v23 = vpop.f32.mrf.mxu0  ;;  %11127 = vmatmul.mubr.bf16.gmra.mxu0 %v14730_v19 }
 0x318   : > { %v14794_v57 = vadd.f32 %v10840_v23, %v10792_v50  ;;  %11130 = vmatprep.mubr.bf16.mxu0 %v14736_v42 }
 0x319   : > { %v10793_v6 = vpop.f32.mrf.mxu1  ;;  %v5916_v49 = vpop.f32.mrf.mxu0 }
 0x31a   : > { %11161 = vmatpush3.bf16.msra.mxu1 %v11445_v47  ;;  %v14797_v21 = vadd.f32 %v5916_v49, %v5707_v27  ;;  %v7273_v47 = vld [vmem:[#allocation2 + $0x128] sm:$0xff]  ;;  %v7293_v27 = vpack.c.bf16 %v7271_v15, %v7270_v44  ;;  %v7864_v44 = vld [vmem:[#allocation2 + $0x32] sm:$0xff] }
 0x31b   : > { %v5710_v35 = vpop.f32.mrf.mxu1  ;;  %11162 = vmatprep.subr.bf16.mxu1 %v11446_v61  ;;  %v10841_v38 = vpop.f32.mrf.mxu0 }
 0x31c   : > { %v14799_v19 = vadd.f32 %v10841_v38, %v10793_v6 }
 0x31d   : > { %v10796_v1 = vpop.f32.mrf.mxu1  ;;  %11083 = vmatmul.mubr.bf16.gmra.mxu1 %v7289_v41  ;;  %v5919_v46 = vpop.f32.mrf.mxu0 }
 0x31e   : > { %11086 = vmatprep.mubr.bf16.mxu1 %v7290_v48  ;;  %11163 = vmatpush3.bf16.msra.mxu1 %v11446_v61  ;;  %v14801_v42 = vadd.f32 %v5919_v46, %v5710_v35  ;;  %v7272_v61 = vld [vmem:[#allocation2 + $0x120] sm:$0xff]  ;;  %v7274_v48 = vld [vmem:[#allocation2 + $0x138] sm:$0xff] }
 0x31f   : > { %v5723_v39 = vpop.f32.mrf.mxu1  ;;  %11164 = vmatprep.subr.bf16.mxu1 %v11447_v30  ;;  %v10844_v20 = vpop.f32.mrf.mxu0  ;;  %11131 = vmatmul.mubr.bf16.gmra.mxu0 %v14738_v60  ;;  %v7294_v29 = vpack.c.bf16 %v7273_v47, %v7272_v61  ;;  %v7275_v35 = vld [vmem:[#allocation2 + $0x140] sm:$0xff]  ;;  %v11713_v61 = vld [vmem:[#allocation2 + $0x8] sm:$0xff] }
 0x320   : > { %v14804_v14 = vadd.f32 %v10844_v20, %v10796_v1  ;;  %11134 = vmatprep.mubr.bf16.mxu0 %v14744_v62 }
 0x321   : > { %v10797_v63 = vpop.f32.mrf.mxu1  ;;  %v5932_v31 = vpop.f32.mrf.mxu0 }
 0x322   : > { %11165 = vmatpush3.bf16.msra.mxu1 %v11447_v30  ;;  %v14807_v18 = vadd.f32 %v5932_v31, %v5723_v39  ;;  %v7277_v30 = vld [vmem:[#allocation2 + $0x158] sm:$0xff]  ;;  %v7295_v39 = vpack.c.bf16 %v7275_v35, %v7274_v48 }
 0x323   : > { %v5726_v3 = vpop.f32.mrf.mxu1  ;;  %11166 = vmatprep.subr.bf16.mxu1 %v11448_v32  ;;  %v10845_v13 = vpop.f32.mrf.mxu0 }
 0x324   : > { %v14809_v60 = vadd.f32 %v10845_v13, %v10797_v63  ;;  %v7278_v13 = vld [vmem:[#allocation2 + $0x168] sm:$0xff] }
 0x325   : > { %v10800_v56 = vpop.f32.mrf.mxu1  ;;  %11087 = vmatmul.mubr.bf16.gmra.mxu1 %v7291_v55  ;;  %v5935_v24 = vpop.f32.mrf.mxu0 }
 0x326   : > { %11090 = vmatprep.mubr.bf16.mxu1 %v7292_v2  ;;  %11167 = vmatpush3.bf16.msra.mxu1 %v11448_v32  ;;  %v14811_v62 = vadd.f32 %v5935_v24, %v5726_v3  ;;  %v7276_v32 = vld [vmem:[#allocation2 + $0x150] sm:$0xff] }
 0x327   : > { %v5739_v36 = vpop.f32.mrf.mxu1  ;;  %11168 = vmatprep.subr.bf16.mxu1 %v11449_v58  ;;  %v10848_v17 = vpop.f32.mrf.mxu0  ;;  %11135 = vmatmul.mubr.bf16.gmra.mxu0 %v14746_v22  ;;  %v7296_v25 = vpack.c.bf16 %v7277_v30, %v7276_v32  ;;  %v7279_v3 = vld [vmem:[#allocation2 + $0x170] sm:$0xff] }
 0x328   : > { %v14814_v5 = vadd.f32 %v10848_v17, %v10800_v56  ;;  %11138 = vmatprep.mubr.bf16.mxu0 %v14752_v11  ;;  %v7297_v24 = vpack.c.bf16 %v7279_v3, %v7278_v13  ;;  %v7866_v32 = vld [vmem:[#allocation2 + $0x4a] sm:$0xff] }
 0x329   : > { %v10801_v40 = vpop.f32.mrf.mxu1  ;;  %v5948_v4 = vpop.f32.mrf.mxu0 }
 0x32a   : > { %11169 = vmatpush3.bf16.msra.mxu1 %v11449_v58  ;;  %v14817_v50 = vadd.f32 %v5948_v4, %v5739_v36 }
 0x32b   : > { %v5742_v33 = vpop.f32.mrf.mxu1  ;;  %v10849_v23 = vpop.f32.mrf.mxu0 }
 0x32c   : > { %v14819_v6 = vadd.f32 %v10849_v23, %v10801_v40 }
 0x32d   : > { %v10804_v22 = vpop.f32.mrf.mxu1  ;;  %11091 = vmatmul.mubr.bf16.gmra.mxu1 %v7293_v27  ;;  %v5951_v43 = vpop.f32.mrf.mxu0 }
 0x32e   : > { %11094 = vmatprep.mubr.bf16.mxu1 %v7294_v29  ;;  %v14821_v49 = vadd.f32 %v5951_v43, %v5742_v33  ;;  %v7865_v29 = vld [vmem:[#allocation2 + $0x3a] sm:$0xff] }
 0x32f   : > { %v5755_v11 = vpop.f32.mrf.mxu1  ;;  %v10852_v7 = vpop.f32.mrf.mxu0  ;;  %11139 = vmatmul.mubr.bf16.gmra.mxu0 %v14754_v37  ;;  %v7589_v43 = vld [vmem:[#allocation2 + $0x1a1] sm:$0xff] }
 0x330   : > { %v14824_v41 = vadd.f32 %v10852_v7, %v10804_v22  ;;  %11142 = vmatprep.mubr.bf16.mxu0 %v14760_v26  ;;  %v7588_v22 = vld [vmem:[#allocation2 + $0x199] sm:$0xff] }
 0x331   : > { %v10805_v9 = vpop.f32.mrf.mxu1  ;;  %v5964_v38 = vpop.f32.mrf.mxu0  ;;  %v7605_v30 = vpack.c.bf16 %v7589_v43, %v7588_v22  ;;  %v7872_v22 = vld [vmem:[#allocation2 + $0x92] sm:$0xff]  ;;  %v7873_v43 = vld [vmem:[#allocation2 + $0x9a] sm:$0xff] }
 0x332   : > { %v14827_v1 = vadd.f32 %v5964_v38, %v5755_v11 }
 0x333   : > { %v5758_v46 = vpop.f32.mrf.mxu1  ;;  %v10853_v20 = vpop.f32.mrf.mxu0 }
 0x334   : > { %v14829_v63 = vadd.f32 %v10853_v20, %v10805_v9  ;;  %v7896_v9 = vpack.c.bf16 %v7865_v29, %v7864_v44  ;;  %v7867_v20 = vld [vmem:[#allocation2 + $0x52] sm:$0xff] }
 0x335   : > { %v10808_v45 = vpop.f32.mrf.mxu1  ;;  %11095 = vmatmul.mubr.bf16.gmra.mxu1 %v7295_v39  ;;  %v5967_v37 = vpop.f32.mrf.mxu0 }
 0x336   : > { %11098 = vmatprep.mubr.bf16.mxu1 %v7296_v25  ;;  %v14831_v31 = vadd.f32 %v5967_v37, %v5758_v46  ;;  %v7868_v37 = vld [vmem:[#allocation2 + $0x62] sm:$0xff] }
 0x337   : > { %v5771_v26 = vpop.f32.mrf.mxu1  ;;  %v10856_v59 = vpop.f32.mrf.mxu0  ;;  %11143 = vmatmul.mubr.bf16.gmra.mxu0 %v14762_v8  ;;  %v7282_v8 = vld [vmem:[#allocation2 + $0x198] sm:$0xff] }
 0x338   : > { %v14834_v55 = vadd.f32 %v10856_v59, %v10808_v45  ;;  %11146 = vmatprep.mubr.bf16.mxu0 %v14768_v53  ;;  %v7299_v23 = vpack.c.bf16 %v11713_v61, %v7282_v8  ;;  %v7871_v61 = vld [vmem:[#allocation2 + $0x82] sm:$0xff] }
 0x339   : > { %v10809_v51 = vpop.f32.mrf.mxu1  ;;  %v5980_v58 = vpop.f32.mrf.mxu0 }
 0x33a   : > { %v14837_v2 = vadd.f32 %v5980_v58, %v5771_v26  ;;  %v7869_v26 = vld [vmem:[#allocation2 + $0x6a] sm:$0xff]  ;;  %v7897_v58 = vpack.c.bf16 %v7867_v20, %v7866_v32 }
 0x33b   : > { %v5774_v56 = vpop.f32.mrf.mxu1  ;;  %v10857_v36 = vpop.f32.mrf.mxu0 }
 0x33c   : > { %v14839_v17 = vadd.f32 %v10857_v36, %v10809_v51 }
 0x33d   : > { %v10812_v15 = vpop.f32.mrf.mxu1  ;;  %11099 = vmatmul.mubr.bf16.gmra.mxu1 %v7297_v24  ;;  %v5983_v40 = vpop.f32.mrf.mxu0 }
 0x33e   : > { %11102 = vmatprep.mubr.bf16.mxu1 %v14716_v10  ;;  %v14842_v47 = vadd.f32 %v5983_v40, %v5774_v56  ;;  %v7898_v56 = vpack.c.bf16 %v7869_v26, %v7868_v37  ;;  %v7874_v26 = vld [vmem:[#allocation2 + $0xaa] sm:$0xff] }
 0x33f   : > { %v5787_v4 = vpop.f32.mrf.mxu1  ;;  %v10860_v53 = vpop.f32.mrf.mxu0  ;;  %11147 = vmatmul.mubr.bf16.gmra.mxu0 %v14770_v12 }
 0x340   : > { %v14845_v33 = vadd.f32 %v10860_v53, %v10812_v15  ;;  %11150 = vmatprep.mubr.bf16.mxu0 %v14776_v16 }
 0x341   : > { %v10813_v27 = vpop.f32.mrf.mxu1  ;;  %v5996_v11 = vpop.f32.mrf.mxu0 }
 0x342   : > { %v14848_v10 = vadd.f32 %v5996_v11, %v5787_v4 }
 0x343   : > { %v5790_v7 = vpop.f32.mrf.mxu1  ;;  %v10861_v35 = vpop.f32.mrf.mxu0 }
 0x344   : > { %v14850_v38 = vadd.f32 %v10861_v35, %v10813_v27  ;;  %v7870_v27 = vld [vmem:[#allocation2 + $0x7a] sm:$0xff] }
 0x345   : > { %v10816_v12 = vpop.f32.mrf.mxu1  ;;  %11103 = vmatmul.mubr.bf16.gmra.mxu1 %v7299_v23  ;;  %v5999_v48 = vpop.f32.mrf.mxu0 }
 0x346   : > { %11170 = vmatprep.mubr.bf16.mxu1 %v7896_v9  ;;  %v14852_v16 = vadd.f32 %v5999_v48, %v5790_v7  ;;  %v7899_v9 = vpack.c.bf16 %v7871_v61, %v7870_v27  ;;  %v7900_v48 = vpack.c.bf16 %v7873_v43, %v7872_v22 }
 0x347   : > { %v5803_v46 = vpop.f32.mrf.mxu1  ;;  %v10864_v39 = vpop.f32.mrf.mxu0  ;;  %11151 = vmatmul.mubr.bf16.gmra.mxu0 %v7605_v30 }
 0x348   : > { %v14854_v25 = vadd.f32 %v10864_v39, %v10816_v12 }
 0x349   : > { %v10817_v45 = vpop.f32.mrf.mxu1  ;;  %v6012_v59 = vpop.f32.mrf.mxu0 }
 0x34a   : > { %v14856_v3 = vadd.f32 %v6012_v59, %v5803_v46  ;;  %v7875_v59 = vld [vmem:[#allocation2 + $0xb2] sm:$0xff] }
 0x34b   : > { %v5806_v51 = vpop.f32.mrf.mxu1  ;;  %v10865_v13 = vpop.f32.mrf.mxu0 }
 0x34c   : > { %v14858_v24 = vadd.f32 %v10865_v13, %v10817_v45  ;;  %v7877_v13 = vld [vmem:[#allocation2 + $0xca] sm:$0xff] }
 0x34d   : > { %v10884_v36 = vpop.f32.mrf.mxu1  ;;  %11171 = vmatmul.mubr.bf16.vlgmr.msra.gmra.mxu1 %v7897_v58  ;;  %v6015_v15 = vpop.f32.mrf.mxu0  ;;  %v7876_v58 = vld [vmem:[#allocation2 + $0xc2] sm:$0xff] }
 0x34e   : > { %v6303_v40 = vadd.f32 %v10884_v36, %v14784_v54  ;;  %11174 = vmatprep.mubr.bf16.mxu1 %v7898_v56  ;;  %v14861_v8 = vadd.f32 %v6015_v15, %v5806_v51 }
 0x34f   : > { %v6174_v4 = vpop.f32.mrf.mxu1  ;;  %v10932_v53 = vpop.f32.mrf.mxu0 }
 0x350   : > { %v6301_v44 = vadd.f32 %v6174_v4, %v14787_v0  ;;  %v14864_v23 = vadd.f32 %v10932_v53, %v6303_v40  ;;  %v7901_v40 = vpack.c.bf16 %v7875_v59, %v7874_v26 }
 0x351   : > { %v10885_v29 = vpop.f32.mrf.mxu1  ;;  %v6480_v11 = vpop.f32.mrf.mxu0 }
 0x352   : > { %v6304_v7 = vadd.f32 %v10885_v29, %v14789_v28  ;;  %v14867_v35 = vadd.f32 %v6480_v11, %v6301_v44  ;;  %v7902_v44 = vpack.c.bf16 %v7877_v13, %v7876_v58 }
 0x353   : > { %v6177_v54 = vpop.f32.mrf.mxu1  ;;  %v10933_v30 = vpop.f32.mrf.mxu0 }
 0x354   : > { %v6302_v12 = vadd.f32 %v6177_v54, %v14791_v52  ;;  %v14870_v46 = vadd.f32 %v10933_v30, %v6304_v7  ;;  %v7878_v7 = vld [vmem:[#allocation2 + $0xda] sm:$0xff]  ;;  %v7879_v54 = vld [vmem:[#allocation2 + $0xe2] sm:$0xff]  ;;  %v7880_v30 = vld [vmem:[#allocation2 + $0xf2] sm:$0xff] }
 0x355   : > { %v10888_v0 = vpop.f32.mrf.mxu1  ;;  %11175 = vmatmul.mubr.bf16.gmra.mxu1 %v7899_v9  ;;  %v6483_v39 = vpop.f32.mrf.mxu0 }
 0x356   : > { %v6307_v32 = vadd.f32 %v10888_v0, %v14794_v57  ;;  %11178 = vmatprep.mubr.bf16.mxu1 %v7900_v48  ;;  %v14873_v20 = vadd.f32 %v6483_v39, %v6302_v12  ;;  %v7881_v12 = vld [vmem:[#allocation2 + $0xfa] sm:$0xff] }
 0x357   : > { %v6190_v45 = vpop.f32.mrf.mxu1  ;;  %v10936_v28 = vpop.f32.mrf.mxu0 }
 0x358   : > { %v6305_v37 = vadd.f32 %v6190_v45, %v14797_v21  ;;  %v14876_v51 = vadd.f32 %v10936_v28, %v6307_v32  ;;  %v7903_v32 = vpack.c.bf16 %v7879_v54, %v7878_v7 }
 0x359   : > { %v10889_v52 = vpop.f32.mrf.mxu1  ;;  %v6496_v56 = vpop.f32.mrf.mxu0 }
 0x35a   : > { %v6308_v36 = vadd.f32 %v10889_v52, %v14799_v19  ;;  %v14879_v15 = vadd.f32 %v6496_v56, %v6305_v37  ;;  %v7904_v37 = vpack.c.bf16 %v7881_v12, %v7880_v30 }
 0x35b   : > { %v6193_v57 = vpop.f32.mrf.mxu1  ;;  %v10937_v4 = vpop.f32.mrf.mxu0 }
 0x35c   : > { %v6306_v53 = vadd.f32 %v6193_v57, %v14801_v42  ;;  %v14882_v27 = vadd.f32 %v10937_v4, %v6308_v36  ;;  %v7882_v36 = vld [vmem:[#allocation2 + $0x10a] sm:$0xff]  ;;  %v7883_v57 = vld [vmem:[#allocation2 + $0x112] sm:$0xff]  ;;  %v7884_v4 = vld [vmem:[#allocation2 + $0x122] sm:$0xff] }
 0x35d   : > { %v10892_v21 = vpop.f32.mrf.mxu1  ;;  %11179 = vmatmul.mubr.bf16.gmra.mxu1 %v7901_v40  ;;  %v6499_v61 = vpop.f32.mrf.mxu0 }
 0x35e   : > { %v6311_v29 = vadd.f32 %v10892_v21, %v14804_v14  ;;  %11182 = vmatprep.mubr.bf16.mxu1 %v7902_v44  ;;  %v14885_v22 = vadd.f32 %v6499_v61, %v6306_v53  ;;  %v7885_v53 = vld [vmem:[#allocation2 + $0x12a] sm:$0xff] }
 0x35f   : > { %v6206_v43 = vpop.f32.mrf.mxu1  ;;  %v10940_v19 = vpop.f32.mrf.mxu0 }
 0x360   : > { %v6309_v11 = vadd.f32 %v6206_v43, %v14807_v18  ;;  %v14888_v9 = vadd.f32 %v10940_v19, %v6311_v29  ;;  %v7905_v29 = vpack.c.bf16 %v7883_v57, %v7882_v36 }
 0x361   : > { %v10893_v42 = vpop.f32.mrf.mxu1  ;;  %v6512_v48 = vpop.f32.mrf.mxu0 }
 0x362   : > { %v6312_v0 = vadd.f32 %v10893_v42, %v14809_v60  ;;  %v14891_v39 = vadd.f32 %v6512_v48, %v6309_v11  ;;  %v7906_v11 = vpack.c.bf16 %v7885_v53, %v7884_v4 }
 0x363   : > { %v6209_v14 = vpop.f32.mrf.mxu1  ;;  %v10941_v45 = vpop.f32.mrf.mxu0 }
 0x364   : > { %v6310_v28 = vadd.f32 %v6209_v14, %v14811_v62  ;;  %v14894_v26 = vadd.f32 %v10941_v45, %v6312_v0  ;;  %v7886_v0 = vld [vmem:[#allocation2 + $0x13a] sm:$0xff]  ;;  %v7887_v14 = vld [vmem:[#allocation2 + $0x142] sm:$0xff]  ;;  %v7888_v45 = vld [vmem:[#allocation2 + $0x152] sm:$0xff] }
 0x365   : > { %v10896_v18 = vpop.f32.mrf.mxu1  ;;  %11183 = vmatmul.mubr.bf16.gmra.mxu1 %v7903_v32  ;;  %v6515_v59 = vpop.f32.mrf.mxu0 }
 0x366   : > { %v6315_v52 = vadd.f32 %v10896_v18, %v14814_v5  ;;  %11186 = vmatprep.mubr.bf16.mxu1 %v7904_v37  ;;  %v14897_v58 = vadd.f32 %v6515_v59, %v6310_v28  ;;  %v7889_v28 = vld [vmem:[#allocation2 + $0x15a] sm:$0xff] }
 0x367   : > { %v6222_v13 = vpop.f32.mrf.mxu1  ;;  %v10944_v60 = vpop.f32.mrf.mxu0 }
 0x368   : > { %v6313_v56 = vadd.f32 %v6222_v13, %v14817_v50  ;;  %v14900_v40 = vadd.f32 %v10944_v60, %v6315_v52  ;;  %v7907_v52 = vpack.c.bf16 %v7887_v14, %v7886_v0  ;;  %v7894_v0 = vld [vmem:[#allocation2 + $0x19a] sm:$0xff]  ;;  %v7895_v14 = vld [vmem:[#allocation2 + $0x1a2] sm:$0xff] }
 0x369   : > { %v10897_v62 = vpop.f32.mrf.mxu1  ;;  %v6528_v44 = vpop.f32.mrf.mxu0 }
 0x36a   : > { %v6316_v21 = vadd.f32 %v10897_v62, %v14819_v6  ;;  %v14903_v61 = vadd.f32 %v6528_v44, %v6313_v56  ;;  %v7908_v56 = vpack.c.bf16 %v7889_v28, %v7888_v45 }
 0x36b   : > { %v6225_v5 = vpop.f32.mrf.mxu1  ;;  %v10945_v43 = vpop.f32.mrf.mxu0 }
 0x36c   : > { %v6314_v19 = vadd.f32 %v6225_v5, %v14821_v49  ;;  %v14906_v7 = vadd.f32 %v10945_v43, %v6316_v21  ;;  %v7890_v21 = vld [vmem:[#allocation2 + $0x16a] sm:$0xff]  ;;  %v7891_v5 = vld [vmem:[#allocation2 + $0x172] sm:$0xff] }
 0x36d   : > { %v10900_v50 = vpop.f32.mrf.mxu1  ;;  %11187 = vmatmul.mubr.bf16.gmra.mxu1 %v7905_v29  ;;  %v6531_v54 = vpop.f32.mrf.mxu0 }
 0x36e   : > { %v6319_v42 = vadd.f32 %v10900_v50, %v14824_v41  ;;  %11190 = vmatprep.mubr.bf16.mxu1 %v7906_v11  ;;  %v14909_v30 = vadd.f32 %v6531_v54, %v6314_v19  ;;  %v7909_v54 = vpack.c.bf16 %v7891_v5, %v7890_v21 }
 0x36f   : > { %v6238_v12 = vpop.f32.mrf.mxu1  ;;  %v10948_v6 = vpop.f32.mrf.mxu0 }
 0x370   : > { %v6317_v48 = vadd.f32 %v6238_v12, %v14827_v1  ;;  %v14912_v32 = vadd.f32 %v10948_v6, %v6319_v42 }
 0x371   : > { %v10901_v49 = vpop.f32.mrf.mxu1  ;;  %v6544_v37 = vpop.f32.mrf.mxu0 }
 0x372   : > { %v6320_v18 = vadd.f32 %v10901_v49, %v14829_v63  ;;  %v14915_v59 = vadd.f32 %v6544_v37, %v6317_v48 }
 0x373   : > { %v6241_v41 = vpop.f32.mrf.mxu1  ;;  %v10949_v13 = vpop.f32.mrf.mxu0 }
 0x374   : > { %v6318_v60 = vadd.f32 %v6241_v41, %v14831_v31  ;;  %v14918_v36 = vadd.f32 %v10949_v13, %v6320_v18  ;;  %v7911_v18 = vpack.c.bf16 %v7895_v14, %v7894_v0 }
 0x375   : > { %v10904_v1 = vpop.f32.mrf.mxu1  ;;  %11191 = vmatmul.mubr.bf16.gmra.mxu1 %v7907_v52  ;;  %v6547_v57 = vpop.f32.mrf.mxu0 }
 0x376   : > { %v6323_v62 = vadd.f32 %v10904_v1, %v14834_v55  ;;  %11194 = vmatprep.mubr.bf16.mxu1 %v7908_v56  ;;  %v14921_v4 = vadd.f32 %v6547_v57, %v6318_v60 }
 0x377   : > { %v6254_v53 = vpop.f32.mrf.mxu1  ;;  %v10952_v63 = vpop.f32.mrf.mxu0 }
 0x378   : > { %v6321_v44 = vadd.f32 %v6254_v53, %v14837_v2  ;;  %v14924_v29 = vadd.f32 %v10952_v63, %v6323_v62 }
 0x379   : > { %v10905_v31 = vpop.f32.mrf.mxu1  ;;  %v6560_v43 = vpop.f32.mrf.mxu0 }
 0x37a   : > { %v6324_v19 = vadd.f32 %v10905_v31, %v14839_v17  ;;  %v14927_v11 = vadd.f32 %v6560_v43, %v6321_v44 }
 0x37b   : > { %v6257_v50 = vpop.f32.mrf.mxu1  ;;  %v10953_v55 = vpop.f32.mrf.mxu0 }
 0x37c   : > { %v6322_v42 = vadd.f32 %v6257_v50, %v14842_v47  ;;  %v14930_v12 = vadd.f32 %v10953_v55, %v6324_v19 }
 0x37d   : > { %v10908_v6 = vpop.f32.mrf.mxu1  ;;  %11195 = vmatmul.mubr.bf16.gmra.mxu1 %v7909_v54  ;;  %v6563_v2 = vpop.f32.mrf.mxu0 }
 0x37e   : > { %v6327_v48 = vadd.f32 %v10908_v6, %v14845_v33  ;;  %11198 = vmatprep.mubr.bf16.mxu1 %v14779_v34  ;;  %v14934_v49 = vadd.f32 %v6563_v2, %v6322_v42 }
 0x37f   : > { %v6270_v17 = vpop.f32.mrf.mxu1  ;;  %v10956_v45 = vpop.f32.mrf.mxu0 }
 0x380   : > { %v6325_v28 = vadd.f32 %v6270_v17, %v14848_v10  ;;  %v14937_v37 = vadd.f32 %v10956_v45, %v6327_v48 }
 0x381   : > { %v10909_v47 = vpop.f32.mrf.mxu1  ;;  %v6576_v41 = vpop.f32.mrf.mxu0 }
 0x382   : > { %v6328_v52 = vadd.f32 %v10909_v47, %v14850_v38  ;;  %v14940_v13 = vadd.f32 %v6576_v41, %v6325_v28 }
 0x383   : > { %v6273_v33 = vpop.f32.mrf.mxu1  ;;  %v10957_v60 = vpop.f32.mrf.mxu0 }
 0x384   : > { %v6326_v34 = vadd.f32 %v6273_v33, %v14852_v16  ;;  %v14943_v56 = vadd.f32 %v10957_v60, %v6328_v52 }
 0x385   : > { %v10912_v1 = vpop.f32.mrf.mxu1  ;;  %11199 = vmatmul.mubr.bf16.gmra.mxu1 %v7911_v18  ;;  %v6579_v57 = vpop.f32.mrf.mxu0 }
 0x386   : > { %v6331_v10 = vadd.f32 %v10912_v1, %v14854_v25  ;;  %v14946_v62 = vadd.f32 %v6579_v57, %v6326_v34 }
 0x387   : > { %v6286_v53 = vpop.f32.mrf.mxu1  ;;  %v10960_v63 = vpop.f32.mrf.mxu0 }
 0x388   : > { %v6329_v44 = vadd.f32 %v6286_v53, %v14856_v3  ;;  %v14949_v38 = vadd.f32 %v10960_v63, %v6331_v10 }
 0x389   : > { %v10913_v21 = vpop.f32.mrf.mxu1  ;;  %v6592_v5 = vpop.f32.mrf.mxu0 }
 0x38a   : > { %v6332_v31 = vadd.f32 %v10913_v21, %v14858_v24  ;;  %v14952_v16 = vadd.f32 %v6592_v5, %v6329_v44 }
 0x38b   : > { %v6289_v43 = vpop.f32.mrf.mxu1  ;;  %v10961_v19 = vpop.f32.mrf.mxu0 }
 0x38c   : > { %v6330_v50 = vadd.f32 %v6289_v43, %v14861_v8  ;;  %v14955_v54 = vadd.f32 %v10961_v19, %v6332_v31 }
 0x38d   : > { %v10980_v25 = vpop.f32.mrf.mxu1  ;;  %v6595_v55 = vpop.f32.mrf.mxu0 }
 0x38e   : > { %v14958_v42 = vadd.f32 %v10980_v25, %v14864_v23  ;;  %v14960_v3 = vadd.f32 %v6595_v55, %v6330_v50 }
 0x38f   : > { %v6786_v6 = vpop.f32.mrf.mxu1  ;;  %v14962_v2 = vpop.f32.mrf.mxu0 }
 0x390   : > { %v14965_v24 = vadd.f32 %v6786_v6, %v14867_v35 }
 0x391   : > { %v10981_v48 = vpop.f32.mrf.mxu1  ;;  %v14967_v0 = vpop.f32.mrf.mxu0 }
 0x392   : > { %v14970_v8 = vadd.f32 %v10981_v48, %v14870_v46 }
 0x393   : > { %v6789_v14 = vpop.f32.mrf.mxu1  ;;  %v14972_v17 = vpop.f32.mrf.mxu0 }
 0x394   : > { %v14975_v23 = vadd.f32 %v6789_v14, %v14873_v20 }
 0x395   : > { %v10984_v45 = vpop.f32.mrf.mxu1  ;;  %v14977_v28 = vpop.f32.mrf.mxu0 }
 0x396   : > { %v14980_v47 = vadd.f32 %v10984_v45, %v14876_v51 }
 0x397   : > { %v6802_v35 = vpop.f32.mrf.mxu1  ;;  %v14982_v18 = vpop.f32.mrf.mxu0 }
 0x398   : > { %v14985_v41 = vadd.f32 %v6802_v35, %v14879_v15 }
 0x399   : > { %v10985_v46 = vpop.f32.mrf.mxu1  ;;  %v14987_v52 = vpop.f32.mrf.mxu0 }
 0x39a   : > { %v14990_v33 = vadd.f32 %v10985_v46, %v14882_v27 }
 0x39b   : > { %v6805_v20 = vpop.f32.mrf.mxu1  ;;  %v14992_v60 = vpop.f32.mrf.mxu0 }
 0x39c   : > { %v14995_v34 = vadd.f32 %v6805_v20, %v14885_v22 }
 0x39d   : > { %v10988_v51 = vpop.f32.mrf.mxu1  ;;  %v14997_v1 = vpop.f32.mrf.mxu0 }
 0x39e   : > { %v15000_v57 = vadd.f32 %v10988_v51, %v14888_v9 }
 0x39f   : > { %v6818_v15 = vpop.f32.mrf.mxu1  ;;  %v15002_v10 = vpop.f32.mrf.mxu0 }
 0x3a0   : > { %v15005_v53 = vadd.f32 %v6818_v15, %v14891_v39 }
 0x3a1   : > { %v10989_v27 = vpop.f32.mrf.mxu1  ;;  %v15007_v63 = vpop.f32.mrf.mxu0 }
 0x3a2   : > { %v15010_v44 = vadd.f32 %v10989_v27, %v14894_v26 }
 0x3a3   : > { %v6821_v22 = vpop.f32.mrf.mxu1  ;;  %v15012_v21 = vpop.f32.mrf.mxu0 }
 0x3a4   : > { %v15015_v5 = vadd.f32 %v6821_v22, %v14897_v58 }
 0x3a5   : > { %v10992_v9 = vpop.f32.mrf.mxu1  ;;  %v15017_v31 = vpop.f32.mrf.mxu0 }
 0x3a6   : > { %v15020_v43 = vadd.f32 %v10992_v9, %v14900_v40 }
 0x3a7   : > { %v6834_v39 = vpop.f32.mrf.mxu1  ;;  %v15022_v19 = vpop.f32.mrf.mxu0 }
 0x3a8   : > { %v15025_v50 = vadd.f32 %v6834_v39, %v14903_v61 }
 0x3a9   : > { %v10993_v26 = vpop.f32.mrf.mxu1  ;;  %v15027_v25 = vpop.f32.mrf.mxu0 }
 0x3aa   : > { %v15030_v55 = vadd.f32 %v10993_v26, %v14906_v7 }
 0x3ab   : > { %v6837_v58 = vpop.f32.mrf.mxu1  ;;  %v15032_v6 = vpop.f32.mrf.mxu0 }
 0x3ac   : > { %v15035_v48 = vadd.f32 %v6837_v58, %v14909_v30 }
 0x3ad   : > { %v10996_v40 = vpop.f32.mrf.mxu1  ;;  %v15037_v14 = vpop.f32.mrf.mxu0 }
 0x3ae   : > { %v15040_v45 = vadd.f32 %v10996_v40, %v14912_v32 }
 0x3af   : > { %v6850_v61 = vpop.f32.mrf.mxu1  ;;  %v15042_v35 = vpop.f32.mrf.mxu0 }
 0x3b0   : > { %v15045_v46 = vadd.f32 %v6850_v61, %v14915_v59 }
 0x3b1   : > { %v10997_v7 = vpop.f32.mrf.mxu1  ;;  %v15047_v20 = vpop.f32.mrf.mxu0 }
 0x3b2   : > { %v15050_v51 = vadd.f32 %v10997_v7, %v14918_v36 }
 0x3b3   : > { %v6853_v30 = vpop.f32.mrf.mxu1  ;;  %v15052_v15 = vpop.f32.mrf.mxu0 }
 0x3b4   : > { %v15055_v27 = vadd.f32 %v6853_v30, %v14921_v4 }
 0x3b5   : > { %v11000_v32 = vpop.f32.mrf.mxu1  ;;  %v15057_v22 = vpop.f32.mrf.mxu0 }
 0x3b6   : > { %v15060_v9 = vadd.f32 %v11000_v32, %v14924_v29 }
 0x3b7   : > { %v6866_v59 = vpop.f32.mrf.mxu1  ;;  %v15062_v39 = vpop.f32.mrf.mxu0 }
 0x3b8   : > { %16282 = vst [vmem:[#allocation23_spill] sm:$0xff] %v15060_v9  ;;  %16283 = vst [vmem:[#allocation21_spill] sm:$0xff] %v15062_v39  ;;  %v15065_v26 = vadd.f32 %v6866_v59, %v14927_v11 }
 0x3b9   : > { %v11001_v36 = vpop.f32.mrf.mxu1  ;;  %v15067_v58 = vpop.f32.mrf.mxu0 }
 0x3ba   : > { %16284 = vst [vmem:[#allocation30_spill] sm:$0xff] %v15065_v26  ;;  %16285 = vst [vmem:[#allocation27_spill] sm:$0xff] %v15067_v58  ;;  %v6936_v40 = vadd.f32 %v11001_v36, %v14930_v12 }
 0x3bb   : > { %v6869_v61 = vpop.f32.mrf.mxu1  ;;  %v11049_v4 = vpop.f32.mrf.mxu0 }
 0x3bc   : > { %v15071_v7 = vadd.f32 %v6869_v61, %v14934_v49  ;;  %v15073_v30 = vadd.f32 %v11049_v4, %v6936_v40 }
 0x3bd   : > { %v11004_v29 = vpop.f32.mrf.mxu1  ;;  %v15075_v32 = vpop.f32.mrf.mxu0 }
 0x3be   : > { %16286 = vst [vmem:[#allocation32_spill] sm:$0xff] %v15073_v30  ;;  %16287 = vst [vmem:[#allocation34_spill] sm:$0xff] %v15075_v32  ;;  %v6939_v39 = vadd.f32 %v11004_v29, %v14937_v37 }
 0x3bf   : > { %v6882_v11 = vpop.f32.mrf.mxu1  ;;  %v11052_v59 = vpop.f32.mrf.mxu0 }
 0x3c0   : > { %v6937_v26 = vadd.f32 %v6882_v11, %v14940_v13  ;;  %v15079_v58 = vadd.f32 %v11052_v59, %v6939_v39  ;;  %v9855_v13 = vld [vmem:[%s11954_s17 + $0x18] sm:$0xf] }
 0x3c1   : > { %v11005_v12 = vpop.f32.mrf.mxu1  ;;  %v7188_v36 = vpop.f32.mrf.mxu0 }
 0x3c2   : > { %16288 = vst [vmem:[#allocation17_spill] sm:$0xff] %v15079_v58  ;;  %v6940_v9 = vadd.f32 %v11005_v12, %v14943_v56  ;;  %v15082_v49 = vadd.f32 %v7188_v36, %v6937_v26  ;;  %v8545_v36 = vshrl.u32 %v9855_v13, 16 }
 0x3c3   : > { %v6885_v40 = vpop.f32.mrf.mxu1  ;;  %v11053_v61 = vpop.f32.mrf.mxu0 }
 0x3c4   : > { %16289 = vst [vmem:[#allocation10_spill] sm:$0xff] %v15082_v49  ;;  %v6938_v4 = vadd.f32 %v6885_v40, %v14946_v62  ;;  %v15085_v30 = vadd.f32 %v11053_v61, %v6940_v9  ;;  %v8548_v49 = vshll.u32 %v9855_v13, 16  ;;  %v8547_v13 = vrot.slane %v8545_v36, 4 }
 0x3c5   : > { %v11008_v37 = vpop.f32.mrf.mxu1  ;;  %v7191_v29 = vpop.f32.mrf.mxu0  ;;  %v15135_v36 = vadd.f32 %v14992_v60, %v14990_v33 }
 0x3c6   : > { %16290 = vst [vmem:[#allocation28_spill] sm:$0xff] %v15085_v30  ;;  %v6943_v32 = vadd.f32 %v11008_v37, %v14949_v38  ;;  %v15089_v39 = vadd.f32 %v7191_v29, %v6938_v4  ;;  %v9856_v38 = vld [vmem:[%s11954_s17 + $0x1c] sm:$0xf]  ;;  %v15101_v29 = vadd.f32 %v14962_v2, %v14958_v42  ;;  %v9852_v2 = vld [vmem:[%s11954_s17 + $0xc] sm:$0xf] }
 0x3c7   : > { %v6898_v11 = vpop.f32.mrf.mxu1  ;;  %v11056_v59 = vpop.f32.mrf.mxu0  ;;  %v8558_v42 = vshrl.u32 %v9856_v38, 16 }
 0x3c8   : > { %16291 = vst [vmem:[#allocation19_spill] sm:$0xff] %v15089_v39  ;;  %v6941_v56 = vadd.f32 %v6898_v11, %v14952_v16  ;;  %v15092_v26 = vadd.f32 %v11056_v59, %v6943_v32  ;;  %v8550_v11 = vrot.slane %v8548_v49, 5  ;;  %v15113_v59 = vadd.f32 %v14972_v17, %v14970_v8  ;;  %v9853_v17 = vld [vmem:[%s11954_s17 + $0x10] sm:$0xf] }
 0x3c9   : > { %v11009_v12 = vpop.f32.mrf.mxu1  ;;  %v7204_v62 = vpop.f32.mrf.mxu0  ;;  %v15122_v49 = vadd.f32 %v14982_v18, %v14980_v47  ;;  %v15147_v47 = vadd.f32 %v15007_v63, %v15005_v53  ;;  %v8530_v53 = vshll.u32 %v9853_v17, 16  ;;  %v8534_v63 = vshrl.u32 %v9853_v17, 16 }
 0x3ca   : > { %16292 = vst [vmem:[#allocation24_spill] sm:$0xff] %v15092_v26  ;;  %v6944_v9 = vadd.f32 %v11009_v12, %v14955_v54  ;;  %v15095_v40 = vadd.f32 %v7204_v62, %v6941_v56  ;;  %v15109_v54 = vadd.f32 %v14967_v0, %v14965_v24  ;;  %v8554_v56 = vshll.u32 %v9856_v38, 16  ;;  %v9857_v38 = vld [vmem:[%s11954_s17 + $0x20] sm:$0x1] }
 0x3cb   : > { %v6901_v61 = vpop.f32.mrf.mxu1  ;;  %v11057_v37 = vpop.f32.mrf.mxu0  ;;  %v15118_v12 = vadd.f32 %v14977_v28, %v14975_v23  ;;  %v15126_v24 = vadd.f32 %v14987_v52, %v14985_v41  ;;  %v15139_v23 = vadd.f32 %v14997_v1, %v14995_v34  ;;  %v15143_v28 = vadd.f32 %v15002_v10, %v15000_v57  ;;  %v9861_v41 = vld [vmem:[%s11954_s17 + $0x30] sm:$0xf]  ;;  %v9858_v57 = vld [vmem:[%s11954_s17 + $0x24] sm:$0xf] }
 0x3cc   : > { %16293 = vst [vmem:[#allocation14_spill] sm:$0xff] %v15095_v40  ;;  %v6942_v4 = vadd.f32 %v6901_v61, %v14960_v3  ;;  %v15103_v16 = vadd.f32 %v11057_v37, %v6944_v9  ;;  %v15154_v52 = vadd.f32 %v15012_v21, %v15010_v44  ;;  %v8551_v60 = vor.u32 %v8550_v11, %v8547_v13 }
 0x3cd   : > { %v15105_v32 = vpop.f32.mrf.mxu1  ;;  %v7207_v3 = vpop.f32.mrf.mxu0  ;;  %v8521_v34 = vshrl.u32 %v9852_v2, 16  ;;  %v8524_v1 = vshll.u32 %v9852_v2, 16  ;;  %v15161_v62 = vrot.slane %v8554_v56, 5  ;;  %v8560_v9 = vrot.slane %v8558_v42, 4 }
 0x3ce   : > { %16294 = vst [vmem:[#allocation11_spill] sm:$0xff] %v15103_v16  ;;  %v15128_v0 = vadd.f32 %v7207_v3, %v6942_v4  ;;  %v15165_v61 = vadd.f32 %v15017_v31, %v15015_v5  ;;  %v15169_v44 = vadd.f32 %v15022_v19, %v15020_v43  ;;  %v8593_v37 = vshrl.u32 %v9861_v41, 16  ;;  %v9862_v31 = vld [vmem:[%s11954_s17 + $0x34] sm:$0xf] }
 0x3cf   : > { %v15130_v8 = vpop.f32.mrf.mxu1  ;;  %v15149_v18 = vpop.f32.mrf.mxu0  ;;  %v8596_v4 = vshll.u32 %v9861_v41, 16  ;;  %v15176_v13 = vadd.f32 %v15027_v25, %v15025_v50  ;;  %v15180_v11 = vadd.f32 %v15032_v6, %v15030_v55  ;;  %v8569_v43 = vshrl.u32 %v9858_v57, 16  ;;  %v9859_v25 = vld [vmem:[%s11954_s17 + $0x28] sm:$0xf] }
 0x3d0   : > { %16295 = vst [vmem:[#allocation12_spill] sm:$0xff] %v15128_v0  ;;  %16296 = vst [vmem:[#allocation13_spill] sm:$0xff] %v15165_v61  ;;  %v8572_v19 = vshll.u32 %v9858_v57, 16  ;;  %v15187_v3 = vadd.f32 %v15037_v14, %v15035_v48  ;;  %v8552_v42 = vrot.slane %v8551_v60, 4  ;;  %v8523_v2 = vrot.slane %v8521_v34, 4 }
 0x3d1   : > { %v15156_v33 = vpop.f32.mrf.mxu1  ;;  %v15159_v10 = vpop.f32.mrf.mxu0  ;;  %16297 = vst [vmem:[#allocation18_spill] sm:$0xff] %v15169_v44  ;;  %16298 = vst [vmem:[#allocation26_spill] sm:$0xff] %v15176_v13  ;;  %v8526_v50 = vrot.slane %v8524_v1, 5  ;;  %v15194_v55 = vrot.slane %v8530_v53, 5  ;;  %v8561_v6 = vor.u32 %v8560_v9, %v15161_v62  ;;  %v8564_v41 = vshll.u32 %v9857_v38, 16 }
 0x3d2   : > { %16299 = vst [vmem:[#allocation20_spill] sm:$0xff] %v15180_v11  ;;  %16300 = vst [vmem:[#allocation22_spill] sm:$0xff] %v15187_v3  ;;  %v8536_v0 = vrot.slane %v8534_v63, 4  ;;  %v9854_v57 = vld [vmem:[%s11954_s17 + $0x14] sm:$0x1]  ;;  %v8595_v40 = vrot.slane %v8593_v37, 4  ;;  %v15204_v53 = vadd.f32 %v15042_v35, %v15040_v45  ;;  %v15208_v63 = vadd.f32 %v15047_v20, %v15045_v46 }
 0x3d3   : > { %v15171_v21 = vpop.f32.mrf.mxu1  ;;  %v15182_v5 = vpop.f32.mrf.mxu0  ;;  %v8598_v48 = vrot.slane %v8596_v4, 5  ;;  %v8602_v14 = vshll.u32 %v9862_v31, 16  ;;  %v8606_v3 = vshrl.u32 %v9862_v31, 16  ;;  %v8571_v34 = vrot.slane %v8569_v43, 4  ;;  %v9865_v13 = vld [vmem:[%s11954_s17 + $0x40] sm:$0xf] }
 0x3d4   : > { %v8574_v1 = vrot.slane %v8572_v19, 5  ;;  %v8578_v26 = vshll.u32 %v9859_v25, 16  ;;  %v8582_v39 = vshrl.u32 %v9859_v25, 16  ;;  %16301 = vst [vmem:[#allocation25_spill] sm:$0xff] %v15204_v53  ;;  %16302 = vst [vmem:[#allocation29_spill] sm:$0xff] %v15208_v63  ;;  %v15212_v9 = vadd.f32 %v15052_v15, %v15050_v51  ;;  %v16309_v63 = vld [vmem:[#allocation30_spill] sm:$0xff] }
 0x3d5   : > { %v15189_v56 = vpop.f32.mrf.mxu1  ;;  %v15192_v17 = vpop.f32.mrf.mxu0  ;;  %v15216_v38 = vadd.f32 %v15057_v22, %v15055_v27  ;;  %v8557_v35 = vsel %vm11999_vm2, %v8552_v42, %v15161_v62  ;;  %v8527_v31 = vor.u32 %v8526_v50, %v8523_v2  ;;  %v8537_v46 = vor.u32 %v8536_v0, %v15194_v55  ;;  %v9867_v51 = vld [vmem:[%s11954_s17 + $0x48] sm:$0xf]  ;;  %v9863_v62 = vld [vmem:[%s11954_s17 + $0x38] sm:$0x1]  ;;  %v16306_v0 = vld [vmem:[#allocation23_spill] sm:$0xff] }
 0x3d6   : > { %16303 = vst [vmem:[#allocation36_spill] sm:$0xff] %v15212_v9  ;;  %v8540_v20 = vshll.u32 %v9854_v57, 16  ;;  %v8562_v43 = vrot.slane %v8561_v6, 4  ;;  %v8566_v27 = vrot.slane %v8564_v41, 5  ;;  %v8599_v22 = vor.u32 %v8598_v48, %v8595_v40  ;;  %v16307_v50 = vld [vmem:[#allocation21_spill] sm:$0xff]  ;;  %v16310_v53 = vld [vmem:[#allocation27_spill] sm:$0xff] }
 0x3d7   : > { %v15197_v16 = vpop.f32.mrf.mxu1  ;;  %v15200_v60 = vpop.f32.mrf.mxu0  ;;  %16304 = vst [vmem:[#allocation31_spill] sm:$0xff] %v15216_v38  ;;  %v15229_v19 = vrot.slane %v8602_v14, 5  ;;  %v8575_v38 = vor.u32 %v8574_v1, %v8571_v34  ;;  %v15233_v9 = vrot.slane %v8578_v26, 5  ;;  %v8608_v42 = vrot.slane %v8606_v3, 4  ;;  %v9860_v41 = vld [vmem:[%s11954_s17 + $0x2c] sm:$0x1] }
 0x3d8   : > { %v8584_v2 = vrot.slane %v8582_v39, 4  ;;  %v15238_v57 = vadd.f32 %v16307_v50, %v16306_v0  ;;  %v15242_v6 = vadd.f32 %v16310_v53, %v16309_v63  ;;  %v8641_v48 = vshrl.u32 %v9867_v51, 16  ;;  %v9864_v0 = vld [vmem:[%s11954_s17 + $0x3c] sm:$0xf] }
 0x3d9   : > { %v15218_v37 = vpop.f32.mrf.mxu1  ;;  %v15220_v4 = vpop.f32.mrf.mxu0  ;;  %v8644_v14 = vshll.u32 %v9867_v51, 16  ;;  %v15249_v34 = vunpack.c.l.bf16 %v8557_v35  ;;  %v8528_v39 = vrot.slane %v8527_v31, 4  ;;  %v8538_v3 = vrot.slane %v8537_v46, 4  ;;  %v16313_v50 = vld [vmem:[#allocation34_spill] sm:$0xff]  ;;  %v9868_v51 = vld [vmem:[%s11954_s17 + $0x4c] sm:$0xf] }
 0x3da   : > { %16308 = vst [vmem:[#allocation33_spill] sm:$0xff] %v15238_v57  ;;  %16311 = vst [vmem:[#allocation39_spill] sm:$0xff] %v15242_v6  ;;  %v8542_v1 = vrot.slane %v8540_v20, 5  ;;  %v15254_v57 = vadd.f32 %v16313_v50, %v15071_v7  ;;  %v8567_v63 = vsel %vm11999_vm2, %v8562_v43, %v8566_v27  ;;  %v8600_v6 = vrot.slane %v8599_v22, 4 }
 0x3db   : > { %v15227_v15 = vpop.f32.mrf.mxu1  ;;  %v15231_v25 = vpop.f32.mrf.mxu0  ;;  %16312 = vst [vmem:[#allocation35_spill] sm:$0xff] %v15249_v34  ;;  %v8612_v11 = vshll.u32 %v9863_v62, 16  ;;  %v8576_v35 = vrot.slane %v8575_v38, 4  ;;  %v8609_v31 = vor.u32 %v8608_v42, %v15229_v19  ;;  %v8585_v46 = vor.u32 %v8584_v2, %v15233_v9 }
 0x3dc   : > { %16314 = vst [vmem:[#allocation50_spill] sm:$0xff] %v15254_v57  ;;  %v8588_v20 = vshll.u32 %v9860_v41, 16  ;;  %v8643_v7 = vrot.slane %v8641_v48, 4  ;;  %v8646_v50 = vrot.slane %v8644_v14, 5  ;;  %v8617_v57 = vshrl.u32 %v9864_v0, 16 }
 0x3dd   : > { %v15244_v40 = vpop.f32.mrf.mxu1  ;;  %v15247_v26 = vpop.f32.mrf.mxu0  ;;  %v8620_v44 = vshll.u32 %v9864_v0, 16  ;;  %v8650_v27 = vshll.u32 %v9868_v51, 16  ;;  %v8654_v22 = vshrl.u32 %v9868_v51, 16  ;;  %v8626_v62 = vshll.u32 %v9865_v13, 16 }
 0x3de   : > { %v8630_v61 = vshrl.u32 %v9865_v13, 16  ;;  %v8533_v38 = vsel %vm11999_vm2, %v8528_v39, %v15194_v55  ;;  %v15275_v42 = vunpack.c.l.bf16 %v8567_v63  ;;  %v8543_v2 = vsel %vm11999_vm2, %v8538_v3, %v8542_v1  ;;  %v9873_v55 = vld [vmem:[%s11954_s17 + $0x60] sm:$0xf] }
 0x3df   : > { %v15256_v53 = vpop.f32.mrf.mxu1  ;;  %v15262_v30 = vpop.f32.mrf.mxu0  ;;  %v8605_v41 = vsel %vm11999_vm2, %v8600_v6, %v15229_v19  ;;  %v8581_v13 = vsel %vm11999_vm2, %v8576_v35, %v15233_v9  ;;  %v8610_v14 = vrot.slane %v8609_v31, 4  ;;  %v8614_v0 = vrot.slane %v8612_v11, 5 }
 0x3e0   : > { %16316 = vst [vmem:[#allocation41_spill] sm:$0xff] %v15275_v42  ;;  %v8586_v51 = vrot.slane %v8585_v46, 4  ;;  %v8590_v63 = vrot.slane %v8588_v20, 5  ;;  %v8647_v3 = vor.u32 %v8646_v50, %v8643_v7  ;;  %v8619_v1 = vrot.slane %v8617_v57, 4  ;;  %v9869_v20 = vld [vmem:[%s11954_s17 + $0x50] sm:$0x1] }
 0x3e1   : > { %v15266_v34 = vpop.f32.mrf.mxu1  ;;  %v15268_v43 = vpop.f32.mrf.mxu0  ;;  %v8622_v42 = vrot.slane %v8620_v44, 5  ;;  %v15292_v19 = vrot.slane %v8650_v27, 5  ;;  %v15294_v6 = vrot.slane %v8626_v62, 5  ;;  %v8656_v9 = vrot.slane %v8654_v22, 4  ;;  %v9866_v7 = vld [vmem:[%s11954_s17 + $0x44] sm:$0x1] }
 0x3e2   : > { %v8632_v35 = vrot.slane %v8630_v61, 4  ;;  %v15298_v31 = vunpack.c.l.bf16 %v8533_v38  ;;  %v15300_v46 = vunpack.c.l.bf16 %v8543_v2  ;;  %v8689_v57 = vshrl.u32 %v9873_v55, 16  ;;  %v9870_v38 = vld [vmem:[%s11954_s17 + $0x54] sm:$0xf] }
 0x3e3   : > { %v15270_v58 = vpop.f32.mrf.mxu1  ;;  %v15282_v48 = vpop.f32.mrf.mxu0  ;;  %v8692_v44 = vshll.u32 %v9873_v55, 16  ;;  %v7528_v50 = vadd.f32 %v15105_v32, %v15101_v29  ;;  %v15308_v62 = vunpack.c.l.bf16 %v8605_v41  ;;  %v15310_v22 = vunpack.c.l.bf16 %v8581_v13  ;;  %v9874_v32 = vld [vmem:[%s11954_s17 + $0x64] sm:$0xf] }
 0x3e4   : > { %16315 = vst [vmem:[#allocation52_spill] sm:$0xff] %v15270_v58  ;;  %16318 = vst [vmem:[#allocation42_spill] sm:$0xff] %v15298_v31  ;;  %v8615_v61 = vsel %vm11999_vm2, %v8610_v14, %v8614_v0  ;;  %v7526_v2 = vadd.f32 %v15130_v8, %v15109_v54  ;;  %v8591_v55 = vsel %vm11999_vm2, %v8586_v51, %v8590_v63  ;;  %v8648_v31 = vrot.slane %v8647_v3, 4 }
 0x3e5   : > { %v15288_v39 = vpop.f32.mrf.mxu1  ;;  %v15290_v58 = vpop.f32.mrf.mxu0  ;;  %16319 = vst [vmem:[#allocation38_spill] sm:$0xff] %v15300_v46  ;;  %16320 = vst [vmem:[#allocation54_spill] sm:$0xff] %v15308_v62  ;;  %v8623_v29 = vor.u32 %v8622_v42, %v8619_v1  ;;  %v8657_v41 = vor.u32 %v8656_v9, %v15292_v19  ;;  %v8660_v13 = vshll.u32 %v9869_v20, 16  ;;  %v8636_v14 = vshll.u32 %v9866_v7, 16 }
 0x3e6   : > { %16321 = vst [vmem:[#allocation56_spill] sm:$0xff] %v15310_v22  ;;  %v8633_v22 = vor.u32 %v8632_v35, %v15294_v6  ;;  %v8691_v62 = vrot.slane %v8689_v57, 4  ;;  %v8694_v54 = vrot.slane %v8692_v44, 5  ;;  %v8665_v8 = vshrl.u32 %v9870_v38, 16 }
 0x3e7   : > { %v15296_v11 = vpop.f32.mrf.mxu1  ;;  %v15306_v27 = vpop.f32.mrf.mxu0  ;;  %v15329_v51 = vadd.f32 %v15149_v18, %v7528_v50  ;;  %v15333_v63 = vunpack.c.l.bf16 %v8615_v61  ;;  %v8698_v3 = vshll.u32 %v9874_v32, 16  ;;  %v8702_v1 = vshrl.u32 %v9874_v32, 16 }
 0x3e8   : > { %16317 = vst [vmem:[#allocation37_spill] sm:$0xff] %v15296_v11  ;;  %v15336_v9 = vadd.f32 %v15159_v10, %v7526_v2  ;;  %v7529_v35 = vadd.f32 %v15156_v33, %v15113_v59  ;;  %v15342_v7 = vunpack.c.l.bf16 %v8591_v55  ;;  %v8624_v57 = vrot.slane %v8623_v29, 4 }
 0x3e9   : > { %v15317_v46 = vpop.f32.mrf.mxu1  ;;  %v15322_v11 = vpop.f32.mrf.mxu0  ;;  %16323 = vst [vmem:[#allocation45_spill] sm:$0xff] %v15333_v63  ;;  %v8653_v18 = vsel %vm11999_vm2, %v8648_v31, %v15292_v19  ;;  %v8658_v44 = vrot.slane %v8657_v41, 4  ;;  %v8662_v50 = vrot.slane %v8660_v13, 5  ;;  %v8634_v61 = vrot.slane %v8633_v22, 4 }
 0x3ea   : > { %16322 = vst [vmem:[#allocation40_spill] sm:$0xff] %v15317_v46  ;;  %v8668_v46 = vshll.u32 %v9870_v38, 16  ;;  %16324 = vst [vmem:[#allocation43_spill] sm:$0xff] %v15342_v7  ;;  %v9871_v38 = vld [vmem:[%s11954_s17 + $0x58] sm:$0xf]  ;;  %v8638_v10 = vrot.slane %v8636_v14, 5  ;;  %v8695_v2 = vor.u32 %v8694_v54, %v8691_v62  ;;  %v15351_v33 = vadd.f32 %v15182_v5, %v7529_v35 }
 0x3eb   : > { %v15326_v0 = vpop.f32.mrf.mxu1  ;;  %v15331_v42 = vpop.f32.mrf.mxu0  ;;  %v8667_v63 = vrot.slane %v8665_v8, 4  ;;  %v7527_v55 = vadd.f32 %v15171_v21, %v15118_v12  ;;  %v8700_v19 = vrot.slane %v8698_v3, 5  ;;  %v8704_v31 = vrot.slane %v8702_v1, 4  ;;  %v9875_v5 = vld [vmem:[%s11954_s17 + $0x68] sm:$0x1] }
 0x3ec   : > { %v8670_v59 = vrot.slane %v8668_v46, 5  ;;  %v7532_v22 = vadd.f32 %v15189_v56, %v15122_v49  ;;  %v8629_v62 = vsel %vm11999_vm2, %v8624_v57, %v15294_v6  ;;  %v8674_v46 = vshll.u32 %v9871_v38, 16 }
 0x3ed   : > { %v15340_v20 = vpop.f32.mrf.mxu1  ;;  %v15355_v29 = vpop.f32.mrf.mxu0  ;;  %v8678_v13 = vshrl.u32 %v9871_v38, 16  ;;  %v15366_v14 = vadd.f32 %v15192_v17, %v7527_v55  ;;  %v7530_v12 = vadd.f32 %v15197_v16, %v15126_v24  ;;  %v15370_v21 = vunpack.c.l.bf16 %v8653_v18 }
 0x3ee   : > { %v8663_v49 = vsel %vm11999_vm2, %v8658_v44, %v8662_v50  ;;  %v15375_v56 = vadd.f32 %v15200_v60, %v7532_v22  ;;  %v8639_v54 = vsel %vm11999_vm2, %v8634_v61, %v8638_v10  ;;  %v8696_v8 = vrot.slane %v8695_v2, 4  ;;  %v9879_v60 = vld [vmem:[%s11954_s17 + $0x78] sm:$0xf]  ;;  %v9876_v61 = vld [vmem:[%s11954_s17 + $0x6c] sm:$0xf] }
 0x3ef   : > { %v15348_v32 = vpop.f32.mrf.mxu1  ;;  %16325 = vst [vmem:[#allocation47_spill] sm:$0xff] %v15370_v21  ;;  %v8671_v17 = vor.u32 %v8670_v59, %v8667_v63  ;;  %v7533_v3 = vadd.f32 %v15218_v37, %v15135_v36  ;;  %v15383_v16 = vpop.f32.mrf.mxu0  ;;  %v15385_v24 = vunpack.c.l.bf16 %v8629_v62  ;;  %v8705_v1 = vor.u32 %v8704_v31, %v8700_v19  ;;  %v9880_v31 = vld [vmem:[%s11954_s17 + $0x7c] sm:$0xf] }
 0x3f0   : > { %v8708_v35 = vshll.u32 %v9875_v5, 16  ;;  %v15389_v57 = vadd.f32 %v15220_v4, %v7530_v12  ;;  %v15393_v44 = vunpack.c.l.bf16 %v8663_v49  ;;  %v8676_v63 = vrot.slane %v8674_v46, 5  ;;  %v9872_v4 = vld [vmem:[%s11954_s17 + $0x5c] sm:$0x1] }
 0x3f1   : > { %v15359_v41 = vpop.f32.mrf.mxu1  ;;  %16326 = vst [vmem:[#allocation44_spill] sm:$0xff] %v15385_v24  ;;  %v8680_v50 = vrot.slane %v8678_v13, 4  ;;  %v15397_v36 = vadd.f32 %v15231_v25, %v7533_v3  ;;  %v7531_v37 = vadd.f32 %v15227_v15, %v15139_v23  ;;  %v7536_v38 = vadd.f32 %v15244_v40, %v15143_v28  ;;  %v15411_v62 = vpop.f32.mrf.mxu0 }
 0x3f2   : > { %16327 = vst [vmem:[#allocation58_spill] sm:$0xff] %v15393_v44  ;;  %v15403_v10 = vunpack.c.l.bf16 %v8639_v54  ;;  %v8701_v59 = vsel %vm11999_vm2, %v8696_v8, %v8700_v19  ;;  %v8672_v55 = vrot.slane %v8671_v17, 4  ;;  %v8737_v22 = vshrl.u32 %v9879_v60, 16  ;;  %v16329_v54 = vld [vmem:[#allocation32_spill] sm:$0xff] }
 0x3f3   : > { %v15377_v6 = vpop.f32.mrf.mxu1  ;;  %v8740_v25 = vshll.u32 %v9879_v60, 16  ;;  %v8706_v46 = vrot.slane %v8705_v1, 4  ;;  %v8710_v23 = vrot.slane %v8708_v35, 5  ;;  %v8713_v15 = vshrl.u32 %v9876_v61, 16  ;;  %v9877_v1 = vld [vmem:[%s11954_s17 + $0x70] sm:$0xf] }
 0x3f4   : > { %16328 = vst [vmem:[#allocation49_spill] sm:$0xff] %v15403_v10  ;;  %v8716_v13 = vshll.u32 %v9876_v61, 16  ;;  %v15414_v28 = vadd.f32 %v15247_v26, %v7531_v37  ;;  %v7534_v40 = vadd.f32 %v15256_v53, %v15147_v47  ;;  %v8681_v12 = vor.u32 %v8680_v50, %v8676_v63  ;;  %v15431_v50 = vpop.f32.mrf.mxu0 }
 0x3f5   : > { %v15391_v18 = vpop.f32.mrf.mxu1  ;;  %v8684_v19 = vshll.u32 %v9872_v4, 16  ;;  %v15419_v49 = vadd.f32 %v15262_v30, %v7536_v38  ;;  %v8746_v17 = vshll.u32 %v9880_v31, 16  ;;  %v8750_v3 = vshrl.u32 %v9880_v31, 16 }
 0x3f6   : > { %v7537_v35 = vadd.f32 %v15266_v34, %v15154_v52  ;;  %v15429_v60 = vunpack.c.l.bf16 %v8701_v59  ;;  %v8739_v47 = vrot.slane %v8737_v22, 4  ;;  %v8742_v53 = vrot.slane %v8740_v25, 5  ;;  %v16331_v22 = vld [vmem:[#allocation17_spill] sm:$0xff] }
 0x3f7   : > { %v15406_v2 = vpop.f32.mrf.mxu1  ;;  %v8677_v30 = vsel %vm11999_vm2, %v8672_v55, %v8676_v63  ;;  %v8711_v61 = vsel %vm11999_vm2, %v8706_v46, %v8710_v23  ;;  %v8715_v37 = vrot.slane %v8713_v15, 4  ;;  %v8718_v38 = vrot.slane %v8716_v13, 5  ;;  %v16332_v46 = vld [vmem:[#allocation13_spill] sm:$0xff]  ;;  %v16333_v23 = vld [vmem:[#allocation52_spill] sm:$0xff] }
 0x3f8   : > { %16330 = vst [vmem:[#allocation46_spill] sm:$0xff] %v15429_v60  ;;  %v8682_v52 = vrot.slane %v8681_v12, 4  ;;  %v8686_v34 = vrot.slane %v8684_v19, 5  ;;  %v8722_v31 = vshll.u32 %v9877_v1, 16  ;;  %v8726_v59 = vshrl.u32 %v9877_v1, 16 }
 0x3f9   : > { %v11097_v5 = vpop.f32.mrf.mxu1  ;;  %v9881_v60 = vld [vmem:[%s11954_s17 + $0x80] sm:$0x1]  ;;  %v8752_v63 = vrot.slane %v8750_v3, 4  ;;  %v15445_v55 = vadd.f32 %v15282_v48, %v7537_v35  ;;  %v7535_v15 = vadd.f32 %v16333_v23, %v16332_v46  ;;  %v15449_v12 = vunpack.c.l.bf16 %v8677_v30  ;;  %v9885_v1 = vld [vmem:[%s11954_s17 + $0x90] sm:$0xf] }
 0x3fa   : > { %v15422_v8 = vadd.f32 %v11097_v5, %v16329_v54  ;;  %v15438_v5 = vadd.f32 %v15268_v43, %v7534_v40  ;;  %v8748_v54 = vrot.slane %v8746_v17, 5  ;;  %v8743_v19 = vor.u32 %v8742_v53, %v8739_v47  ;;  %v16335_v43 = vld [vmem:[#allocation18_spill] sm:$0xff]  ;;  %v16338_v47 = vld [vmem:[#allocation28_spill] sm:$0xff] }
 0x3fb   : > { %v15427_v26 = vpop.f32.mrf.mxu1  ;;  %16334 = vst [vmem:[#allocation51_spill] sm:$0xff] %v15449_v12  ;;  %v7540_v40 = vadd.f32 %v15288_v39, %v16335_v43  ;;  %v16336_v17 = vld [vmem:[#allocation10_spill] sm:$0xff]  ;;  %v15459_v3 = vunpack.c.l.bf16 %v8711_v61  ;;  %v8719_v48 = vor.u32 %v8718_v38, %v8715_v37  ;;  %v8687_v46 = vsel %vm11999_vm2, %v8682_v52, %v8686_v34  ;;  %v9878_v43 = vld [vmem:[%s11954_s17 + $0x74] sm:$0x1] }
 0x3fc   : > { %v8724_v23 = vrot.slane %v8722_v31, 5  ;;  %v8756_v30 = vshll.u32 %v9881_v60, 16  ;;  %v8728_v12 = vrot.slane %v8726_v59, 4  ;;  %v8753_v39 = vor.u32 %v8752_v63, %v8748_v54  ;;  %v16339_v37 = vld [vmem:[#allocation26_spill] sm:$0xff]  ;;  %v16340_v38 = vld [vmem:[#allocation37_spill] sm:$0xff]  ;;  %v16341_v31 = vld [vmem:[#allocation20_spill] sm:$0xff] }
 0x3fd   : > { %v11100_v4 = vpop.f32.mrf.mxu1  ;;  %16337 = vst [vmem:[#allocation59_spill] sm:$0xff] %v15459_v3  ;;  %v8785_v10 = vshrl.u32 %v9885_v1, 16  ;;  %v8788_v44 = vshll.u32 %v9885_v1, 16  ;;  %v15471_v61 = vadd.f32 %v15306_v27, %v7540_v40  ;;  %v7538_v52 = vadd.f32 %v16340_v38, %v16339_v37  ;;  %v16342_v59 = vld [vmem:[#allocation40_spill] sm:$0xff]  ;;  %v16343_v63 = vld [vmem:[#allocation19_spill] sm:$0xff] }
 0x3fe   : > { %v15441_v25 = vadd.f32 %v11100_v4, %v16331_v22  ;;  %v15454_v4 = vpop.f32.mrf.mxu0  ;;  %v8744_v34 = vrot.slane %v8743_v19, 4  ;;  %v15482_v1 = vunpack.c.l.bf16 %v8687_v46  ;;  %v8758_v37 = vrot.slane %v8756_v30, 5  ;;  %v16344_v19 = vld [vmem:[#allocation24_spill] sm:$0xff] }
 0x3ff   : > { %v7495_v13 = vpop.f32.mrf.mxu1  ;;  %v15486_v27 = vadd.f32 %v15322_v11, %v7538_v52  ;;  %v8729_v38 = vor.u32 %v8728_v12, %v8724_v23  ;;  %v8732_v3 = vshll.u32 %v9878_v43, 16  ;;  %v8787_v21 = vrot.slane %v8785_v10, 4  ;;  %v16346_v12 = vld [vmem:[#allocation25_spill] sm:$0xff] }
 0x400   : > { %v15457_v22 = vadd.f32 %v7495_v13, %v16336_v17  ;;  %v15468_v13 = vadd.f32 %v15290_v58, %v7535_v15  ;;  %v7541_v17 = vadd.f32 %v16342_v59, %v16341_v31  ;;  %v8720_v58 = vrot.slane %v8719_v48, 4  ;;  %v9882_v15 = vld [vmem:[%s11954_s17 + $0x84] sm:$0xf]  ;;  %v9886_v59 = vld [vmem:[%s11954_s17 + $0x94] sm:$0xf] }
 0x401   : > { %v11101_v35 = vpop.f32.mrf.mxu1  ;;  %v8754_v31 = vrot.slane %v8753_v39, 4  ;;  %v8790_v7 = vrot.slane %v8788_v44, 5  ;;  %v8749_v48 = vsel %vm11999_vm2, %v8744_v34, %v8748_v54  ;;  %v8761_v11 = vshrl.u32 %v9882_v15, 16  ;;  %v16347_v39 = vld [vmem:[#allocation14_spill] sm:$0xff] }
 0x402   : > { %v15464_v53 = vadd.f32 %v11101_v35, %v16338_v47  ;;  %v15477_v35 = vpop.f32.mrf.mxu0  ;;  %v8764_v52 = vshll.u32 %v9882_v15, 16  ;;  %v15497_v30 = vadd.f32 %v15331_v42, %v7541_v17  ;;  %v7544_v43 = vadd.f32 %v15340_v20, %v16346_v12  ;;  %v16348_v15 = vld [vmem:[#allocation11_spill] sm:$0xff] }
 0x403   : > { %v7498_v60 = vpop.f32.mrf.mxu1  ;;  %v8794_v54 = vshll.u32 %v9886_v59, 16  ;;  %v8798_v34 = vshrl.u32 %v9886_v59, 16  ;;  %v15511_v17 = vunpack.c.l.bf16 %v8749_v48  ;;  %v8759_v20 = vsel %vm11999_vm2, %v8754_v31, %v8758_v37  ;;  %v16351_v37 = vld [vmem:[#allocation12_spill] sm:$0xff] }
 0x404   : > { %v15480_v47 = vadd.f32 %v7498_v60, %v16343_v63  ;;  %v16345_v60 = vld [vmem:[#allocation22_spill] sm:$0xff]  ;;  %v8791_v12 = vor.u32 %v8790_v7, %v8787_v21  ;;  %v15521_v59 = vadd.f32 %v15383_v16, %v7544_v43  ;;  %v9883_v21 = vld [vmem:[%s11954_s17 + $0x88] sm:$0xf]  ;;  %v15538_v16 = vunpack.c.l.bf16 %v8759_v20  ;;  %v16352_v43 = vld [vmem:[#allocation31_spill] sm:$0xff] }
 0x405   : > { %v11104_v40 = vpop.f32.mrf.mxu1  ;;  %v7539_v46 = vadd.f32 %v15326_v0, %v16345_v60  ;;  %v8725_v0 = vsel %vm11999_vm2, %v8720_v58, %v8724_v23  ;;  %v8734_v60 = vrot.slane %v8732_v3, 5  ;;  %v8763_v3 = vrot.slane %v8761_v11, 4  ;;  %v15555_v20 = vld [vmem:[%s16047_s6] ss:$0 sm:$0xff] }
 0x406   : > { %v15489_v24 = vadd.f32 %v11104_v40, %v16344_v19  ;;  %v15501_v40 = vpop.f32.mrf.mxu0  ;;  %v8730_v19 = vrot.slane %v8729_v38, 4  ;;  %v8766_v38 = vrot.slane %v8764_v52, 5  ;;  %v8800_v11 = vrot.slane %v8798_v34, 4  ;;  %v16353_v34 = vld [vmem:[#allocation33_spill] sm:$0xff] }
 0x407   : > { %v7511_v63 = vpop.f32.mrf.mxu1 }
 0x408   : > { %v15504_v10 = vadd.f32 %v7511_v63, %v16347_v39  ;;  %v15516_v63 = vadd.f32 %v15355_v29, %v7539_v46  ;;  %v16349_v39 = vld [vmem:[#allocation29_spill] sm:$0xff]  ;;  %v15530_v29 = vunpack.c.l.bf16 %v8725_v0  ;;  %v8735_v46 = vsel %vm11999_vm2, %v8730_v19, %v8734_v60 }
 0x409   : > { %v11105_v44 = vpop.f32.mrf.mxu1  ;;  %v7542_v23 = vadd.f32 %v15348_v32, %v16349_v39  ;;  %v15536_v32 = vld [vmem:[%s16046_s5] ss:$0 sm:$0xff]  ;;  %v7543_v0 = vadd.f32 %v15377_v6, %v16352_v43  ;;  %v8767_v60 = vor.u32 %v8766_v38, %v8763_v3 }
 0x40a   : > { %v15509_v42 = vadd.f32 %v11105_v44, %v16348_v15  ;;  %v16350_v44 = vld [vmem:[#allocation36_spill] sm:$0xff]  ;;  %v15525_v15 = vpop.f32.mrf.mxu0 }
 0x40b   : > { %v7514_v58 = vpop.f32.mrf.mxu1  ;;  %v7545_v48 = vadd.f32 %v15359_v41, %v16350_v44  ;;  %v8796_v41 = vrot.slane %v8794_v54, 5  ;;  %v15543_v52 = vadd.f32 %v15411_v62, %v7542_v23  ;;  %v9887_v44 = vld [vmem:[%s11954_s17 + $0x98] sm:$0x1]  ;;  %v8770_v54 = vshll.u32 %v9883_v21, 16 }
 0x40c   : > { %v15528_v7 = vadd.f32 %v7514_v58, %v16351_v37  ;;  %v8792_v58 = vrot.slane %v8791_v12, 4  ;;  %v8774_v62 = vshrl.u32 %v9883_v21, 16  ;;  %v7548_v23 = vadd.f32 %v15391_v18, %v16353_v34  ;;  %v15559_v6 = vpop.f32.mrf.mxu0 }
 0x40d   : > { %v11172_v31 = vpop.f32.mrf.mxu1  ;;  %v15550_v37 = vadd.f32 %v15431_v50, %v7545_v48  ;;  %v15563_v50 = vunpack.c.l.bf16 %v8735_v46  ;;  %v15566_v48 = vadd.f32 %v15454_v4, %v7543_v0  ;;  %v8801_v38 = vor.u32 %v8800_v11, %v8796_v41 }
 0x40e   : > { %v8140_v39 = vadd.f32 %v11172_v31, %v15329_v51  ;;  %v16355_v31 = vld [vmem:[#allocation39_spill] sm:$0xff]  ;;  %v8804_v21 = vshll.u32 %v9887_v44, 16  ;;  %v15578_v4 = vadd.f32 %v15477_v35, %v7548_v23  ;;  %v8768_v0 = vrot.slane %v8767_v60, 4  ;;  %v15580_v11 = vpop.f32.mrf.mxu0 }
 0x40f   : > { %v8011_v19 = vpop.f32.mrf.mxu1  ;;  %16354 = vst [vmem:[#allocation61_spill] sm:$0xff] %v15563_v50  ;;  %v7546_v43 = vadd.f32 %v15406_v2, %v16355_v31  ;;  %v8772_v2 = vrot.slane %v8770_v54, 5  ;;  %v8802_v54 = vrot.slane %v8801_v38, 4 }
 0x410   : > { %v8179_v51 = vmul.f32 %v15536_v32, %v8140_v39  ;;  %v8138_v12 = vadd.f32 %v8011_v19, %v15336_v9  ;;  %v8797_v9 = vsel %vm11999_vm2, %v8792_v58, %v8796_v41  ;;  %v8776_v19 = vrot.slane %v8774_v62, 4  ;;  %v9884_v41 = vld [vmem:[%s11954_s17 + $0x8c] sm:$0x1] }
 0x411   : > { %v11173_v3 = vpop.f32.mrf.mxu1  ;;  %v15590_v35 = vadd.f32 %v15501_v40, %v7546_v43  ;;  %v15592_v60 = vunpack.c.l.bf16 %v8797_v9  ;;  %v8806_v62 = vrot.slane %v8804_v21, 5  ;;  %v8773_v40 = vsel %vm11999_vm2, %v8768_v0, %v8772_v2 }
 0x412   : > { %v15571_v18 = vadd.f32 %v15555_v20, %v8179_v51  ;;  %v8177_v34 = vmul.f32 %v15536_v32, %v8138_v12  ;;  %v8141_v39 = vadd.f32 %v11173_v3, %v15351_v33  ;;  %v8777_v43 = vor.u32 %v8776_v19, %v8772_v2 }
 0x413   : > { %v8014_v46 = vpop.f32.mrf.mxu1  ;;  %16356 = vst [vmem:[#allocation48_spill] sm:$0xff] %v15592_v60  ;;  %v8780_v9 = vshll.u32 %v9884_v41, 16  ;;  %v8807_v0 = vsel %vm11999_vm2, %v8802_v54, %v8806_v62 }
 0x414   : > { %v9822_v44 = vmul.f32 -1.442695, %v15571_v18  ;;  %v15584_v51 = vadd.f32 %v15555_v20, %v8177_v34  ;;  %v8180_v33 = vmul.f32 %v15536_v32, %v8141_v39  ;;  %v8139_v12 = vadd.f32 %v8014_v46, %v15366_v14  ;;  %v9891_v34 = vld [vmem:[%s11954_s17 + $0xa8] sm:$0xf]  ;;  %v15603_v46 = vpop.f32.mrf.mxu0 }
 0x415   : > { %v11176_v58 = vpop.f32.mrf.mxu1  ;;  %v8833_v2 = vshrl.u32 %v9891_v34, 16  ;;  %v8836_v54 = vshll.u32 %v9891_v34, 16 }
 0x416   : > { %11578 = vpow2.f32 %v9822_v44  ;;  %v9820_v23 = vmul.f32 -1.442695, %v15584_v51  ;;  %v15596_v31 = vadd.f32 %v15555_v20, %v8180_v33  ;;  %v8178_v3 = vmul.f32 %v15536_v32, %v8139_v12  ;;  %v16357_v33 = vld [vmem:[#allocation50_spill] sm:$0xff]  ;;  %v15627_v62 = vpop.f32.mrf.mxu0 }
 0x417   : > { %v8144_v14 = vadd.f32 %v11176_v58, %v15375_v56  ;;  %v8027_v39 = vpop.f32.mrf.mxu1  ;;  %v7547_v12 = vadd.f32 %v15427_v26, %v16357_v33  ;;  %v15637_v33 = vrot.slane %v8777_v43, 4 }
 0x418   : > { %11580 = vpow2.f32 %v9820_v23  ;;  %v9823_v38 = vmul.f32 -1.442695, %v15596_v31  ;;  %v15607_v21 = vadd.f32 %v15555_v20, %v8178_v3  ;;  %v8142_v44 = vadd.f32 %v8027_v39, %v15389_v57 }
 0x419   : > { %v8183_v56 = vmul.f32 %v15536_v32, %v8144_v14  ;;  %v11177_v58 = vpop.f32.mrf.mxu1  ;;  %v15620_v57 = vadd.f32 %v15525_v15, %v15422_v8  ;;  %v15625_v14 = vunpack.c.l.bf16 %v8773_v40  ;;  %v15639_v40 = vrot.slane %v8780_v9, 5 }
 0x41a   : > { %11582 = vpow2.f32 %v9823_v38  ;;  %v9821_v19 = vmul.f32 -1.442695, %v15607_v21  ;;  %v8181_v41 = vmul.f32 %v15536_v32, %v8142_v44  ;;  %v8145_v23 = vadd.f32 %v11177_v58, %v15397_v36 }
 0x41b   : > { %v15623_v26 = vadd.f32 %v15555_v20, %v8183_v56  ;;  %v8030_v3 = vpop.f32.mrf.mxu1  ;;  %16358 = vst [vmem:[#allocation53_spill] sm:$0xff] %v15625_v14  ;;  %v15635_v44 = vunpack.c.l.bf16 %v8807_v0  ;;  %v15653_v0 = vrot.slane %v8833_v2, 4  ;;  %v15655_v9 = vrot.slane %v8836_v54, 5 }
 0x41c   : > { %11584 = vpow2.f32 %v9821_v19  ;;  %v15630_v39 = vadd.f32 %v15555_v20, %v8181_v41  ;;  %v8184_v36 = vmul.f32 %v15536_v32, %v8145_v23  ;;  %v8143_v38 = vadd.f32 %v8030_v3, %v15414_v28  ;;  %v15648_v28 = vld [vmem:[%s11954_s17 + $0xac] sm:$0xf]  ;;  %v7804_v23 = vpop.f32.mrf.mxu0 }
 0x41d   : > { %v9826_v8 = vmul.f32 -1.442695, %v15623_v26  ;;  %v11180_v15 = vpop.f32.mrf.mxu1  ;;  %16359 = vst [vmem:[#allocation63_spill] sm:$0xff] %v15635_v44  ;;  %v15651_v41 = vadd.f32 %v15559_v6, %v7547_v12  ;;  %v8842_v54 = vshll.u32 %v15648_v28, 16 }
 0x41e   : > { %v9824_v34 = vmul.f32 -1.442695, %v15630_v39  ;;  %v15643_v56 = vadd.f32 %v15555_v20, %v8184_v36  ;;  %v8182_v58 = vmul.f32 %v15536_v32, %v8143_v38  ;;  %v8148_v19 = vadd.f32 %v11180_v15, %v15419_v49  ;;  %v15663_v38 = vld [vmem:[%s11954_s17 + $0x9c] sm:$0xf] }
 0x41f   : > { %11586 = vpow2.f32 %v9826_v8  ;;  %v8043_v43 = vpop.f32.mrf.mxu1  ;;  %v15692_v44 = vrot.slane %v8842_v54, 5 }
 0x420   : > { %11588 = vpow2.f32 %v9824_v34  ;;  %v9827_v3 = vmul.f32 -1.442695, %v15643_v56  ;;  %v15659_v36 = vadd.f32 %v15555_v20, %v8182_v58  ;;  %v8187_v49 = vmul.f32 %v15536_v32, %v8148_v19 }
 0x421   : > { %v8146_v6 = vadd.f32 %v8043_v43, %v15438_v5  ;;  %v11181_v12 = vpop.f32.mrf.mxu1  ;;  %v15679_v5 = vadd.f32 %v15580_v11, %v15441_v25 }
 0x422   : > { %11590 = vpow2.f32 %v9827_v3  ;;  %v9825_v15 = vmul.f32 -1.442695, %v15659_v36  ;;  %v15674_v34 = vadd.f32 %v15555_v20, %v8187_v49  ;;  %v8149_v58 = vadd.f32 %v11181_v12, %v15445_v55  ;;  %v11152_v3 = vpop.f32.mrf.mxu0 }
 0x423   : > { %v11579_v19 = vpop.eup %11578  ;;  %v8185_v43 = vmul.f32 %v15536_v32, %v8146_v6  ;;  %v8046_v2 = vpop.f32.mrf.mxu1 }
 0x424   : > { %v8346_v14 = vadd.f32 1.0, %v11579_v19  ;;  %11592 = vpow2.f32 %v9825_v15  ;;  %v9830_v49 = vmul.f32 -1.442695, %v15674_v34  ;;  %v8188_v60 = vmul.f32 %v15536_v32, %v8149_v58  ;;  %v7817_v54 = vpop.f32.mrf.mxu0 }
 0x425   : > { %v11581_v55 = vpop.eup %11580  ;;  %v15687_v12 = vadd.f32 %v15555_v20, %v8185_v43  ;;  %v8147_v25 = vadd.f32 %v8046_v2, %v15468_v13  ;;  %v11184_v11 = vpop.f32.mrf.mxu1  ;;  %v15700_v43 = vadd.f32 %v15603_v46, %v15457_v22 }
 0x426   : > { %11594 = vrcp.f32 %v8346_v14  ;;  %v8344_v8 = vadd.f32 1.0, %v11581_v55  ;;  %v15695_v15 = vadd.f32 %v15555_v20, %v8188_v60  ;;  %v8152_v19 = vadd.f32 %v11184_v11, %v15471_v61 }
 0x427   : > { %v11583_v58 = vpop.eup %11582  ;;  %11596 = vpow2.f32 %v9830_v49  ;;  %v9828_v13 = vmul.f32 -1.442695, %v15687_v12  ;;  %v8186_v2 = vmul.f32 %v15536_v32, %v8147_v25  ;;  %v8059_v6 = vpop.f32.mrf.mxu1  ;;  %v15708_v61 = vadd.f32 %v15627_v62, %v15464_v53 }
 0x428   : > { %11598 = vrcp.f32 %v8344_v8  ;;  %v8347_v14 = vadd.f32 1.0, %v11583_v58  ;;  %v9831_v55 = vmul.f32 -1.442695, %v15695_v15  ;;  %v8191_v60 = vmul.f32 %v15536_v32, %v8152_v19 }
 0x429   : > { %v11585_v50 = vpop.eup %11584  ;;  %11600 = vpow2.f32 %v9828_v13  ;;  %v15711_v22 = vadd.f32 %v15555_v20, %v8186_v2  ;;  %v8150_v46 = vadd.f32 %v8059_v6, %v15486_v27  ;;  %v11185_v49 = vpop.f32.mrf.mxu1  ;;  %v15719_v19 = vadd.f32 %v7804_v23, %v15480_v47 }
 0x42a   : > { %11602 = vrcp.f32 %v8347_v14  ;;  %v8345_v25 = vadd.f32 1.0, %v11585_v50  ;;  %v15715_v8 = vadd.f32 %v15555_v20, %v8191_v60  ;;  %v8153_v11 = vadd.f32 %v11185_v49, %v15497_v30  ;;  %v11153_v2 = vpop.f32.mrf.mxu0 }
 0x42b   : > { %11604 = vpow2.f32 %v9831_v55  ;;  %v9829_v53 = vmul.f32 -1.442695, %v15711_v22  ;;  %v8189_v62 = vmul.f32 %v15536_v32, %v8150_v46  ;;  %v8062_v58 = vpop.f32.mrf.mxu1  ;;  %v15727_v47 = vadd.f32 %v11152_v3, %v15489_v24 }
 0x42c   : > { %v11587_v13 = vpop.eup %11586  ;;  %11606 = vrcp.f32 %v8345_v25  ;;  %v9834_v27 = vmul.f32 -1.442695, %v15715_v8  ;;  %v8192_v50 = vmul.f32 %v15536_v32, %v8153_v11  ;;  %v8151_v6 = vadd.f32 %v8062_v58, %v15516_v63 }
 0x42d   : > { %v11589_v30 = vpop.eup %11588  ;;  %v8350_v23 = vadd.f32 1.0, %v11587_v13  ;;  %11608 = vpow2.f32 %v9829_v53  ;;  %v15730_v14 = vadd.f32 %v15555_v20, %v8189_v62  ;;  %v11188_v55 = vpop.f32.mrf.mxu1  ;;  %v15737_v63 = vadd.f32 %v7817_v54, %v15504_v10 }
 0x42e   : > { %v8348_v60 = vadd.f32 1.0, %v11589_v30  ;;  %11610 = vpow2.f32 %v9834_v27  ;;  %v15733_v46 = vadd.f32 %v15555_v20, %v8192_v50  ;;  %v8190_v49 = vmul.f32 %v15536_v32, %v8151_v6  ;;  %v7820_v53 = vpop.f32.mrf.mxu0 }
 0x42f   : > { %v11591_v25 = vpop.eup %11590  ;;  %11612 = vrcp.f32 %v8350_v23  ;;  %v9832_v24 = vmul.f32 -1.442695, %v15730_v14  ;;  %v8156_v3 = vadd.f32 %v11188_v55, %v15521_v59  ;;  %v8075_v11 = vpop.f32.mrf.mxu1  ;;  %v15747_v10 = vadd.f32 %v11153_v2, %v15509_v42 }
 0x430   : > { %11614 = vrcp.f32 %v8348_v60  ;;  %v8351_v62 = vadd.f32 1.0, %v11591_v25  ;;  %v9835_v58 = vmul.f32 -1.442695, %v15733_v46  ;;  %v15744_v13 = vadd.f32 %v15555_v20, %v8190_v49 }
 0x431   : > { %v11593_v27 = vpop.eup %11592  ;;  %11616 = vpow2.f32 %v9832_v24  ;;  %v8195_v54 = vmul.f32 %v15536_v32, %v8156_v3  ;;  %v8154_v50 = vadd.f32 %v8075_v11, %v15543_v52  ;;  %v11189_v6 = vpop.f32.mrf.mxu1  ;;  %v15758_v60 = vadd.f32 %v7820_v53, %v15528_v7 }
 0x432   : > { %11618 = vrcp.f32 %v8351_v62  ;;  %v8349_v59 = vadd.f32 1.0, %v11593_v27  ;;  %v9833_v30 = vmul.f32 -1.442695, %v15744_v13  ;;  %v8157_v23 = vadd.f32 %v11189_v6, %v15550_v37  ;;  %v16360_v27 = vld [vmem:[#allocation35_spill] sm:$0xff] }
 0x433   : > { %v11595_v55 = vpop.eup %11594  ;;  %11620 = vpow2.f32 %v9835_v58  ;;  %v15761_v42 = vadd.f32 %v15555_v20, %v8195_v54  ;;  %v8193_v52 = vmul.f32 %v15536_v32, %v8154_v50  ;;  %v8078_v2 = vpop.f32.mrf.mxu1 }
 0x434   : > { %v11597_v49 = vpop.eup %11596  ;;  %v8442_v25 = vmul.f32 %v11595_v55, %v15571_v18  ;;  %11622 = vrcp.f32 %v8349_v59  ;;  %v8196_v24 = vmul.f32 %v15536_v32, %v8157_v23  ;;  %v8155_v3 = vadd.f32 %v8078_v2, %v15566_v48 }
 0x435   : > { %v11599_v37 = vpop.eup %11598  ;;  %v8354_v11 = vadd.f32 1.0, %v11597_v49  ;;  %11624 = vpow2.f32 %v9833_v30  ;;  %v9838_v7 = vmul.f32 -1.442695, %v15761_v42  ;;  %v15769_v53 = vadd.f32 %v15555_v20, %v8193_v52  ;;  %v11192_v62 = vpop.f32.mrf.mxu1 }
 0x436   : > { %v11601_v58 = vpop.eup %11600  ;;  %v8970_v54 = vadd.f32 %v16360_v27, %v8442_v25  ;;  %v8440_v18 = vmul.f32 %v11599_v37, %v15584_v51  ;;  %v15774_v50 = vadd.f32 %v15555_v20, %v8196_v24  ;;  %v8194_v48 = vmul.f32 %v15536_v32, %v8155_v3  ;;  %v16361_v51 = vld [vmem:[#allocation42_spill] sm:$0xff] }
 0x437   : > { %v11603_v6 = vpop.eup %11602  ;;  %11626 = vrcp.f32 %v8354_v11  ;;  %v8352_v59 = vadd.f32 1.0, %v11601_v58  ;;  %v9836_v30 = vmul.f32 -1.442695, %v15769_v53  ;;  %v8160_v23 = vadd.f32 %v11192_v62, %v15578_v4  ;;  %v8091_v55 = vpop.f32.mrf.mxu1  ;;  %v16362_v58 = vld [vmem:[#allocation41_spill] sm:$0xff] }
 0x438   : > { %v11605_v52 = vpop.eup %11604  ;;  %9002 = vst [vmem:[%s15780_s22 + $0x10] sm:$0xff] %v8970_v54  ;;  %v8968_v2 = vadd.f32 %v16361_v51, %v8440_v18  ;;  %v8443_v49 = vmul.f32 %v11603_v6, %v15596_v31  ;;  %11628 = vpow2.f32 %v9838_v7  ;;  %v9839_v25 = vmul.f32 -1.442695, %v15774_v50 }
 0x439   : > { %v11607_v24 = vpop.eup %11606  ;;  %11630 = vrcp.f32 %v8352_v59  ;;  %v8355_v3 = vadd.f32 1.0, %v11605_v52  ;;  %v15787_v37 = vadd.f32 %v15555_v20, %v8194_v48  ;;  %v8199_v4 = vmul.f32 %v15536_v32, %v8160_v23  ;;  %v11193_v11 = vpop.f32.mrf.mxu1  ;;  %v16363_v52 = vld [vmem:[#allocation38_spill] sm:$0xff] }
 0x43a   : > { %v11609_v62 = vpop.eup %11608  ;;  %9000 = vst [vmem:[%s15780_s22] sm:$0xff] %v8968_v2  ;;  %v8971_v27 = vadd.f32 %v16362_v58, %v8443_v49  ;;  %v8441_v54 = vmul.f32 %v11607_v24, %v15607_v21  ;;  %11632 = vpow2.f32 %v9836_v30  ;;  %v8158_v31 = vadd.f32 %v8091_v55, %v15590_v35 }
 0x43b   : > { %v11611_v7 = vpop.eup %11610  ;;  %11634 = vrcp.f32 %v8355_v3  ;;  %v8353_v18 = vadd.f32 1.0, %v11609_v62  ;;  %v9837_v6 = vmul.f32 -1.442695, %v15787_v37  ;;  %v15796_v48 = vadd.f32 %v15555_v20, %v8199_v4  ;;  %v8094_v59 = vpop.f32.mrf.mxu1 }
 0x43c   : > { %v11613_v23 = vpop.eup %11612  ;;  %9003 = vst [vmem:[%s15780_s22 + $0x18] sm:$0xff] %v8971_v27  ;;  %v8969_v51 = vadd.f32 %v16363_v52, %v8441_v54  ;;  %v8358_v2 = vadd.f32 1.0, %v11611_v7  ;;  %11636 = vpow2.f32 %v9839_v25  ;;  %v8197_v21 = vmul.f32 %v15536_v32, %v8158_v31  ;;  %v16364_v27 = vld [vmem:[#allocation54_spill] sm:$0xff]  ;;  %v16365_v7 = vld [vmem:[#allocation56_spill] sm:$0xff] }
 0x43d   : > { %v11615_v30 = vpop.eup %11614  ;;  %v8446_v35 = vmul.f32 %v11613_v23, %v15623_v26  ;;  %11638 = vrcp.f32 %v8353_v18  ;;  %v9842_v55 = vmul.f32 -1.442695, %v15796_v48  ;;  %v8161_v49 = vadd.f32 %v11193_v11, %v15620_v57  ;;  %v11196_v24 = vpop.f32.mrf.mxu1 }
 0x43e   : > { %v11617_v3 = vpop.eup %11616  ;;  %9001 = vst [vmem:[%s15780_s22 + $0x8] sm:$0xff] %v8969_v51  ;;  %v8444_v4 = vmul.f32 %v11615_v30, %v15630_v39  ;;  %11640 = vrcp.f32 %v8358_v2  ;;  %v15807_v62 = vadd.f32 %v15555_v20, %v8197_v21  ;;  %v8159_v25 = vadd.f32 %v8094_v59, %v15651_v41  ;;  %v16366_v21 = vld [vmem:[#allocation45_spill] sm:$0xff] }
 0x43f   : > { %v11619_v58 = vpop.eup %11618  ;;  %v8974_v26 = vadd.f32 %v16364_v27, %v8446_v35  ;;  %v8356_v54 = vadd.f32 1.0, %v11617_v3  ;;  %11642 = vpow2.f32 %v9837_v6  ;;  %v8200_v57 = vmul.f32 %v15536_v32, %v8161_v49  ;;  %v8107_v11 = vpop.f32.mrf.mxu1 }
 0x440   : > { %v11621_v31 = vpop.eup %11620  ;;  %v8972_v18 = vadd.f32 %v16365_v7, %v8444_v4  ;;  %v8447_v39 = vmul.f32 %v11619_v58, %v15643_v56  ;;  %11644 = vpow2.f32 %v9842_v55  ;;  %v9840_v23 = vmul.f32 -1.442695, %v15807_v62  ;;  %v16367_v58 = vld [vmem:[#allocation43_spill] sm:$0xff] }
 0x441   : > { %v11623_v52 = vpop.eup %11622  ;;  %9006 = vst [vmem:[%s15780_s22 + $0x30] sm:$0xff] %v8974_v26  ;;  %11646 = vrcp.f32 %v8356_v54  ;;  %v8359_v41 = vadd.f32 1.0, %v11621_v31  ;;  %v15817_v59 = vadd.f32 %v15555_v20, %v8200_v57  ;;  %v8198_v6 = vmul.f32 %v15536_v32, %v8159_v25  ;;  %v11197_v51 = vpop.f32.mrf.mxu1 }
 0x442   : > { %v11625_v2 = vpop.eup %11624  ;;  %9004 = vst [vmem:[%s15780_s22 + $0x20] sm:$0xff] %v8972_v18  ;;  %v8975_v30 = vadd.f32 %v16366_v21, %v8447_v39  ;;  %v8445_v56 = vmul.f32 %v11623_v52, %v15659_v36  ;;  %11648 = vpow2.f32 %v9840_v23  ;;  %v8164_v35 = vadd.f32 %v11196_v24, %v15679_v5 }
 0x443   : > { %11650 = vrcp.f32 %v8359_v41  ;;  %v8357_v55 = vadd.f32 1.0, %v11625_v2  ;;  %v9843_v49 = vmul.f32 -1.442695, %v15817_v59  ;;  %v15826_v3 = vadd.f32 %v15555_v20, %v8198_v6  ;;  %v8110_v4 = vpop.f32.mrf.mxu1 }
 0x444   : > { %v11627_v25 = vpop.eup %11626  ;;  %9007 = vst [vmem:[%s15780_s22 + $0x38] sm:$0xff] %v8975_v30  ;;  %v8973_v27 = vadd.f32 %v16367_v58, %v8445_v56  ;;  %v8203_v26 = vmul.f32 %v15536_v32, %v8164_v35  ;;  %v8162_v36 = vadd.f32 %v8107_v11, %v15700_v43  ;;  %v8165_v54 = vadd.f32 %v11197_v51, %v15708_v61  ;;  %v16368_v11 = vld [vmem:[#allocation47_spill] sm:$0xff]  ;;  %v16369_v56 = vld [vmem:[#allocation44_spill] sm:$0xff] }
 0x445   : > { %v11629_v5 = vpop.eup %11628  ;;  %v8450_v24 = vmul.f32 %v11627_v25, %v15674_v34  ;;  %11652 = vrcp.f32 %v8357_v55  ;;  %v9841_v57 = vmul.f32 -1.442695, %v15826_v3  ;;  %v8163_v31 = vadd.f32 %v8110_v4, %v15719_v19  ;;  %v11200_v7 = vpop.f32.mrf.mxu1 }
 0x446   : > { %v11631_v18 = vpop.eup %11630  ;;  %9005 = vst [vmem:[%s15780_s22 + $0x28] sm:$0xff] %v8973_v27  ;;  %v8362_v39 = vadd.f32 1.0, %v11629_v5  ;;  %11654 = vpow2.f32 %v9843_v49  ;;  %v15838_v23 = vadd.f32 %v15555_v20, %v8203_v26  ;;  %v8201_v43 = vmul.f32 %v15536_v32, %v8162_v36 }
 0x447   : > { %v11633_v61 = vpop.eup %11632  ;;  %v8978_v52 = vadd.f32 %v16368_v11, %v8450_v24  ;;  %v8448_v34 = vmul.f32 %v11631_v18, %v15687_v12  ;;  %11656 = vpow2.f32 %v9841_v57  ;;  %v8204_v41 = vmul.f32 %v15536_v32, %v8165_v54  ;;  %v8123_v19 = vpop.f32.mrf.mxu1  ;;  %v16370_v54 = vld [vmem:[#allocation58_spill] sm:$0xff] }
 0x448   : > { %v11635_v6 = vpop.eup %11634  ;;  %11658 = vrcp.f32 %v8362_v39  ;;  %v8360_v51 = vadd.f32 1.0, %v11633_v61  ;;  %v9846_v2 = vmul.f32 -1.442695, %v15838_v23  ;;  %v15846_v21 = vadd.f32 %v15555_v20, %v8201_v43 }
 0x449   : > { %v11637_v30 = vpop.eup %11636  ;;  %9010 = vst [vmem:[%s15780_s22 + $0x50] sm:$0xff] %v8978_v52  ;;  %v8976_v35 = vadd.f32 %v16369_v56, %v8448_v34  ;;  %v8451_v55 = vmul.f32 %v11635_v6, %v15695_v15  ;;  %v15852_v12 = vadd.f32 %v15555_v20, %v8204_v41  ;;  %v8202_v49 = vmul.f32 %v15536_v32, %v8163_v31  ;;  %v11201_v4 = vpop.f32.mrf.mxu1  ;;  %v16372_v34 = vld [vmem:[#allocation46_spill] sm:$0xff] }
 0x44a   : > { %v11639_v25 = vpop.eup %11638  ;;  %11660 = vrcp.f32 %v8360_v51  ;;  %v8363_v58 = vadd.f32 1.0, %v11637_v30  ;;  %v9844_v27 = vmul.f32 -1.442695, %v15846_v21  ;;  %v8168_v26 = vadd.f32 %v11200_v7, %v15727_v47  ;;  %v16371_v7 = vld [vmem:[#allocation49_spill] sm:$0xff] }
 0x44b   : > { %v11641_v36 = vpop.eup %11640  ;;  %9008 = vst [vmem:[%s15780_s22 + $0x40] sm:$0xff] %v8976_v35  ;;  %v8979_v5 = vadd.f32 %v16370_v54, %v8451_v55  ;;  %v8449_v15 = vmul.f32 %v11639_v25, %v15711_v22  ;;  %11662 = vpow2.f32 %v9846_v2  ;;  %v9847_v24 = vmul.f32 -1.442695, %v15852_v12  ;;  %v8126_v11 = vpop.f32.mrf.mxu1 }
 0x44c   : > { %v11643_v57 = vpop.eup %11642  ;;  %v8454_v31 = vmul.f32 %v11641_v36, %v15715_v8  ;;  %11664 = vrcp.f32 %v8363_v58  ;;  %v15863_v18 = vadd.f32 %v15555_v20, %v8202_v49  ;;  %v8207_v39 = vmul.f32 %v15536_v32, %v8168_v26  ;;  %v16373_v49 = vld [vmem:[#allocation51_spill] sm:$0xff] }
 0x44d   : > { %v11645_v47 = vpop.eup %11644  ;;  %9011 = vst [vmem:[%s15780_s22 + $0x58] sm:$0xff] %v8979_v5  ;;  %v8977_v43 = vadd.f32 %v16371_v7, %v8449_v15  ;;  %v8361_v61 = vadd.f32 1.0, %v11643_v57  ;;  %11666 = vpow2.f32 %v9844_v27  ;;  %v8166_v22 = vadd.f32 %v8123_v19, %v15737_v63 }
 0x44e   : > { %v11647_v52 = vpop.eup %11646  ;;  %v8982_v8 = vadd.f32 %v16372_v34, %v8454_v31  ;;  %v8366_v41 = vadd.f32 1.0, %v11645_v47  ;;  %11668 = vpow2.f32 %v9847_v24  ;;  %v9845_v6 = vmul.f32 -1.442695, %v15863_v18  ;;  %v9889_v31 = vld [vmem:[%s11954_s17 + $0xa0] sm:$0xf] }
 0x44f   : > { %v11649_v51 = vpop.eup %11648  ;;  %9009 = vst [vmem:[%s15780_s22 + $0x48] sm:$0xff] %v8977_v43  ;;  %v8452_v2 = vmul.f32 %v11647_v52, %v15730_v14  ;;  %11670 = vrcp.f32 %v8361_v61  ;;  %v15874_v30 = vadd.f32 %v15555_v20, %v8207_v39  ;;  %v8205_v56 = vmul.f32 %v15536_v32, %v8166_v22 }
 0x450   : > { %v11651_v35 = vpop.eup %11650  ;;  %9014 = vst [vmem:[%s15780_s22 + $0x70] sm:$0xff] %v8982_v8  ;;  %11672 = vrcp.f32 %v8366_v41  ;;  %v8364_v63 = vadd.f32 1.0, %v11649_v51  ;;  %v8169_v19 = vadd.f32 %v11201_v4, %v15747_v10  ;;  %v8167_v55 = vadd.f32 %v8126_v11, %v15758_v60  ;;  %v16374_v60 = vld [vmem:[#allocation59_spill] sm:$0xff]  ;;  %v9893_v8 = vld [vmem:[%s11954_s17 + $0xb0] sm:$0x1] }
 0x451   : > { %v8980_v25 = vadd.f32 %v16373_v49, %v8452_v2  ;;  %v8455_v58 = vmul.f32 %v11651_v35, %v15733_v46  ;;  %11674 = vpow2.f32 %v9845_v6  ;;  %v9850_v14 = vmul.f32 -1.442695, %v15874_v30 }
 0x452   : > { %v11653_v27 = vpop.eup %11652  ;;  %11676 = vrcp.f32 %v8364_v63  ;;  %v15884_v26 = vadd.f32 %v15555_v20, %v8205_v56  ;;  %v8208_v36 = vmul.f32 %v15536_v32, %v8169_v19  ;;  %v8206_v10 = vmul.f32 %v15536_v32, %v8167_v55 }
 0x453   : > { %v11655_v4 = vpop.eup %11654  ;;  %9012 = vst [vmem:[%s15780_s22 + $0x60] sm:$0xff] %v8980_v25  ;;  %v8983_v54 = vadd.f32 %v16374_v60, %v8455_v58  ;;  %v8453_v46 = vmul.f32 %v11653_v27, %v15744_v13  ;;  %v16375_v5 = vshrl.u32 %v15663_v38, 16  ;;  %11678 = vpow2.f32 %v9850_v14  ;;  %v9890_v60 = vld [vmem:[%s11954_s17 + $0xa4] sm:$0x1] }
 0x454   : > { %v11657_v24 = vpop.eup %11656  ;;  %v8367_v57 = vadd.f32 1.0, %v11655_v4  ;;  %v9848_v39 = vmul.f32 -1.442695, %v15884_v26  ;;  %v15896_v47 = vadd.f32 %v15555_v20, %v8208_v36  ;;  %v15899_v32 = vadd.f32 %v15555_v20, %v8206_v10 }
 0x455   : > { %v8811_v15 = vrot.slane %v16375_v5, 4  ;;  %v11659_v7 = vpop.eup %11658  ;;  %9015 = vst [vmem:[%s15780_s22 + $0x78] sm:$0xff] %v8983_v54  ;;  %v8981_v13 = vadd.f32 %v15482_v1, %v8453_v46  ;;  %v8365_v43 = vadd.f32 1.0, %v11657_v24  ;;  %v16376_v61 = vshll.u32 %v15663_v38, 16 }
 0x456   : > { %v16377_v11 = vshrl.u32 %v15648_v28, 16  ;;  %v8458_v34 = vmul.f32 %v11659_v7, %v15761_v42  ;;  %11680 = vrcp.f32 %v8367_v57  ;;  %v9851_v41 = vmul.f32 -1.442695, %v15896_v47 }
 0x457   : > { %v8814_v22 = vrot.slane %v16376_v61, 5  ;;  %v9849_v20 = vmul.f32 -1.442695, %v15899_v32  ;;  %v11661_v6 = vpop.eup %11660  ;;  %9013 = vst [vmem:[%s15780_s22 + $0x68] sm:$0xff] %v8981_v13  ;;  %11682 = vrcp.f32 %v8365_v43  ;;  %v16378_v1 = vsel %vm11999_vm2, %v15637_v33, %v15639_v40  ;;  %v9897_v40 = vld [vmem:[%s11954_s17 + $0xc0] sm:$0xf] }
 0x458   : > { %v8848_v52 = vrot.slane %v16377_v11, 4  ;;  %v15917_v28 = vunpack.c.l.bf16 %v16378_v1  ;;  %v8818_v38 = vshll.u32 %v9889_v31, 16  ;;  %v8822_v42 = vshrl.u32 %v9889_v31, 16  ;;  %v11663_v51 = vpop.eup %11662  ;;  %v16380_v13 = vld [vmem:[#allocation61_spill] sm:$0xff] }
 0x459   : > { %v8986_v2 = vadd.f32 %v15511_v17, %v8458_v34  ;;  %v8456_v56 = vmul.f32 %v11661_v6, %v15769_v53  ;;  %v16379_v35 = vor.u32 %v15655_v9, %v15653_v0  ;;  %11684 = vpow2.f32 %v9848_v39  ;;  %v11665_v19 = vpop.eup %11664  ;;  %v9894_v39 = vld [vmem:[%s11954_s17 + $0xb4] sm:$0xf] }
 0x45a   : > { %v8370_v55 = vadd.f32 1.0, %v11663_v51  ;;  %v8815_v49 = vor.u32 %v8814_v22, %v8811_v15  ;;  %v8852_v33 = vshll.u32 %v9893_v8, 16  ;;  %11686 = vpow2.f32 %v9851_v41  ;;  %v11667_v25 = vpop.eup %11666  ;;  %v9898_v22 = vld [vmem:[%s11954_s17 + $0xc4] sm:$0xf] }
 0x45b   : > { %v8840_v63 = vrot.slane %v16379_v35, 4  ;;  %9018 = vst [vmem:[%s15780_s22 + $0x90] sm:$0xff] %v8986_v2  ;;  %v8984_v58 = vadd.f32 %v15530_v29, %v8456_v56  ;;  %v8459_v17 = vmul.f32 %v11665_v19, %v15774_v50  ;;  %v8849_v53 = vor.u32 %v8848_v52, %v15692_v44  ;;  %v11669_v0 = vpop.eup %11668  ;;  %v16381_v52 = vld [vmem:[#allocation48_spill] sm:$0xff] }
 0x45c   : > { %11688 = vpow2.f32 %v9849_v20  ;;  %v8368_v9 = vadd.f32 1.0, %v11667_v25  ;;  %v15929_v14 = vrot.slane %v8818_v38, 5  ;;  %v8824_v27 = vrot.slane %v8822_v42, 4  ;;  %v11671_v36 = vpop.eup %11670  ;;  %v9895_v20 = vld [vmem:[%s11954_s17 + $0xb8] sm:$0xf]  ;;  %v16382_v42 = vld [vmem:[#allocation53_spill] sm:$0xff] }
 0x45d   : > { %11690 = vrcp.f32 %v8370_v55  ;;  %9016 = vst [vmem:[%s15780_s22 + $0x80] sm:$0xff] %v8984_v58  ;;  %v8987_v10 = vadd.f32 %v15538_v16, %v8459_v17  ;;  %v8371_v4 = vadd.f32 1.0, %v11669_v0  ;;  %v8881_v29 = vshrl.u32 %v9897_v40, 16  ;;  %v11673_v50 = vpop.eup %11672 }
 0x45e   : > { %v8884_v54 = vshll.u32 %v9897_v40, 16  ;;  %v8457_v46 = vmul.f32 %v11671_v36, %v15787_v37  ;;  %v8845_v5 = vsel %vm11999_vm2, %v8840_v63, %v15692_v44  ;;  %11692 = vrcp.f32 %v8368_v9  ;;  %v11675_v24 = vpop.eup %11674  ;;  %v16383_v36 = vld [vmem:[#allocation63_spill] sm:$0xff] }
 0x45f   : > { %v8816_v15 = vrot.slane %v8815_v49, 4  ;;  %9019 = vst [vmem:[%s15780_s22 + $0x98] sm:$0xff] %v8987_v10  ;;  %v8462_v57 = vmul.f32 %v11673_v50, %v15796_v48  ;;  %11694 = vrcp.f32 %v8371_v4  ;;  %v8850_v16 = vrot.slane %v8849_v53, 4  ;;  %v11677_v7 = vpop.eup %11676 }
 0x460   : > { %v8854_v31 = vrot.slane %v8852_v33, 5  ;;  %v8985_v37 = vadd.f32 %v16380_v13, %v8457_v46  ;;  %v8369_v43 = vadd.f32 1.0, %v11675_v24  ;;  %v8825_v61 = vor.u32 %v8824_v27, %v15929_v14  ;;  %v11679_v11 = vpop.eup %11678 }
 0x461   : > { %v8828_v44 = vshll.u32 %v9890_v60, 16  ;;  %v8990_v34 = vadd.f32 %v16381_v52, %v8462_v57  ;;  %v8460_v48 = vmul.f32 %v11677_v7, %v15807_v62  ;;  %v8883_v8 = vrot.slane %v8881_v29, 4 }
 0x462   : > { %v8886_v41 = vrot.slane %v8884_v54, 5  ;;  %9017 = vst [vmem:[%s15780_s22 + $0x88] sm:$0xff] %v8985_v37  ;;  %11696 = vrcp.f32 %v8369_v43  ;;  %v8374_v6 = vadd.f32 1.0, %v11679_v11  ;;  %v8857_v1 = vshrl.u32 %v9894_v39, 16 }
 0x463   : > { %v8860_v38 = vshll.u32 %v9894_v39, 16  ;;  %9022 = vst [vmem:[%s15780_s22 + $0xb0] sm:$0xff] %v8990_v34  ;;  %v8988_v51 = vadd.f32 %v16382_v42, %v8460_v48  ;;  %v8962_v2 = vunpack.c.l.bf16 %v8845_v5  ;;  %v8890_v56 = vshll.u32 %v9898_v22, 16  ;;  %v11681_v63 = vpop.eup %11680  ;;  %v9899_v5 = vld [vmem:[%s11954_s17 + $0xc8] sm:$0x1] }
 0x464   : > { %v8894_v35 = vshrl.u32 %v9898_v22, 16  ;;  %v8821_v62 = vsel %vm11999_vm2, %v8816_v15, %v15929_v14  ;;  %11698 = vrcp.f32 %v8374_v6  ;;  %v8866_v19 = vshll.u32 %v9895_v20, 16  ;;  %v11683_v49 = vpop.eup %11682 }
 0x465   : > { %v8870_v55 = vshrl.u32 %v9895_v20, 16  ;;  %9020 = vst [vmem:[%s15780_s22 + $0xa0] sm:$0xff] %v8988_v51  ;;  %v8463_v33 = vmul.f32 %v11681_v63, %v15817_v59  ;;  %v8855_v40 = vsel %vm11999_vm2, %v8850_v16, %v8854_v31  ;;  %v8826_v25 = vrot.slane %v8825_v61, 4  ;;  %v9896_v31 = vld [vmem:[%s11954_s17 + $0xbc] sm:$0x1]  ;;  %s9905_s17 = sshll.u32 %s11874_s28, 12 }
 0x466   : > { %v8887_v58 = vor.u32 %v8886_v41, %v8883_v8  ;;  %v11685_v17 = vpop.eup %11684  ;;  %v8461_v53 = vmul.f32 %v11683_v49, %v15826_v3  ;;  %v8830_v0 = vrot.slane %v8828_v44, 5  ;;  %v8859_v9 = vrot.slane %v8857_v1, 4  ;;  %s15992_s9 = scalar_lea.hbm %s16048_s7, %s9905_s17  ;;  %s16001_s28 = scalar_lea.sflag [#allocation5], %s284_s20 }
 0x467   : > { %v8862_v14 = vrot.slane %v8860_v38, 5  ;;  %v11687_v27 = vpop.eup %11686  ;;  %v8991_v10 = vadd.f32 %v16383_v36, %v8463_v33  ;;  %v8892_v4 = vrot.slane %v8890_v56, 5  ;;  %v8372_v59 = vadd.f32 1.0, %v11685_v17 }
 0x468   : > { %v8896_v60 = vrot.slane %v8894_v35, 4  ;;  %v8989_v54 = vadd.f32 %v15917_v28, %v8461_v53  ;;  %v8868_v50 = vrot.slane %v8866_v19, 5  ;;  %v8375_v46 = vadd.f32 1.0, %v11687_v27 }
 0x469   : > { %v11689_v29 = vpop.eup %11688  ;;  %v8872_v15 = vrot.slane %v8870_v55, 4  ;;  %9023 = vst [vmem:[%s15780_s22 + $0xb8] sm:$0xff] %v8991_v10  ;;  %v8960_v24 = vunpack.c.l.bf16 %v8821_v62  ;;  %v8888_v57 = vrot.slane %v8887_v58, 4  ;;  %11700 = vrcp.f32 %v8372_v59 }
 0x46a   : > { %v11691_v3 = vpop.eup %11690  ;;  %v8373_v16 = vadd.f32 1.0, %v11689_v29  ;;  %9021 = vst [vmem:[%s15780_s22 + $0xa8] sm:$0xff] %v8989_v54  ;;  %v8963_v7 = vunpack.c.l.bf16 %v8855_v40  ;;  %v8863_v13 = vor.u32 %v8862_v14, %v8859_v9  ;;  %11702 = vrcp.f32 %v8375_v46 }
 0x46b   : > { %v8466_v39 = vmul.f32 %v11691_v3, %v15838_v23  ;;  %v11693_v37 = vpop.eup %11692  ;;  %v8831_v28 = vsel %vm11999_vm2, %v8826_v25, %v8830_v0  ;;  %v8897_v43 = vor.u32 %v8896_v60, %v8892_v4  ;;  %v8900_v61 = vshll.u32 %v9899_v5, 16 }
 0x46c   : > { %11704 = vrcp.f32 %v8373_v16  ;;  %v11695_v44 = vpop.eup %11694  ;;  %v8464_v11 = vmul.f32 %v11693_v37, %v15846_v21  ;;  %v8873_v52 = vor.u32 %v8872_v15, %v8868_v50  ;;  %v8876_v34 = vshll.u32 %v9896_v31, 16 }
 0x46d   : > { %v8994_v22 = vadd.f32 %v8962_v2, %v8466_v39  ;;  %v8467_v23 = vmul.f32 %v11695_v44, %v15852_v12  ;;  %v8893_v48 = vsel %vm11999_vm2, %v8888_v57, %v8892_v4  ;;  %v8961_v41 = vunpack.c.l.bf16 %v8831_v28 }
 0x46e   : > { %v8992_v8 = vadd.f32 %v8960_v24, %v8464_v11  ;;  %v8864_v20 = vrot.slane %v8863_v13, 4  ;;  %v8898_v38 = vrot.slane %v8897_v43, 4  ;;  %v8902_v42 = vrot.slane %v8900_v61, 5 }
 0x46f   : > { %9026 = vst [vmem:[%s15780_s22 + $0xd0] sm:$0xff] %v8994_v22  ;;  %v11697_v6 = vpop.eup %11696  ;;  %v8995_v1 = vadd.f32 %v8963_v7, %v8467_v23  ;;  %v8966_v51 = vunpack.c.l.bf16 %v8893_v48  ;;  %v8874_v2 = vrot.slane %v8873_v52, 4  ;;  %v8878_v12 = vrot.slane %v8876_v34, 5 }
 0x470   : > { %9024 = vst [vmem:[%s15780_s22 + $0xc0] sm:$0xff] %v8992_v8  ;;  %v8465_v21 = vmul.f32 %v11697_v6, %v15863_v18  ;;  %v8869_v62 = vsel %vm11999_vm2, %v8864_v20, %v8868_v50  ;;  %v8903_v19 = vsel %vm11999_vm2, %v8898_v38, %v8902_v42 }
 0x471   : > { %v11699_v56 = vpop.eup %11698  ;;  %9027 = vst [vmem:[%s15780_s22 + $0xd8] sm:$0xff] %v8995_v1  ;;  %v8879_v18 = vsel %vm11999_vm2, %v8874_v2, %v8878_v12  ;;  %v8964_v49 = vunpack.c.l.bf16 %v8869_v62  ;;  %v8967_v40 = vunpack.c.l.bf16 %v8903_v19 }
 0x472   : > { %v8993_v35 = vadd.f32 %v8961_v41, %v8465_v21  ;;  %v8470_v63 = vmul.f32 %v11699_v56, %v15874_v30  ;;  %v8965_v58 = vunpack.c.l.bf16 %v8879_v18 }
 0x474   : > { %9025 = vst [vmem:[%s15780_s22 + $0xc8] sm:$0xff] %v8993_v35  ;;  %v8998_v55 = vadd.f32 %v8966_v51, %v8470_v63 }
 0x476   : > { %v11701_v33 = vpop.eup %11700  ;;  %9030 = vst [vmem:[%s15780_s22 + $0xf0] sm:$0xff] %v8998_v55 }
 0x477   : > { %v11703_v25 = vpop.eup %11702  ;;  %v8468_v30 = vmul.f32 %v11701_v33, %v15884_v26 }
 0x478   : > { %v8471_v53 = vmul.f32 %v11703_v25, %v15896_v47 }
 0x479   : > { %v11705_v17 = vpop.eup %11704  ;;  %v8996_v45 = vadd.f32 %v8964_v49, %v8468_v30 }
 0x47a   : > { %v8469_v0 = vmul.f32 %v11705_v17, %v15899_v32  ;;  %v8999_v9 = vadd.f32 %v8967_v40, %v8471_v53 }
 0x47b   : > { %9028 = vst [vmem:[%s15780_s22 + $0xe0] sm:$0xff] %v8996_v45 }
 0x47c   : > { %v8997_v26 = vadd.f32 %v8965_v58, %v8469_v0  ;;  %9031 = vst [vmem:[%s15780_s22 + $0xf8] sm:$0xff] %v8999_v9 }
 0x47e   : > { %9029 = vst [vmem:[%s15780_s22 + $0xe8] sm:$0xff] %v8997_v26 }
 0x47f   : > { %11753 = shalt.err (!%p11750_p0)
}
 0x480   : > { %s11754_s18 = scalar_lea.hbm %s15992_s9, 4096  ;;  %s11758_s21 = scalar_lea.hbm %s16048_s7, 8192 }
 0x481   : > { %p11755_p1 = scmp.ne.s32.totalorder %s15992_s9, %s11754_s18  ;;  %p11759_p4 = scmp.lt.s32.totalorder %s15992_s9, %s16048_s7 }
 0x482   : > { %p11760_p7 = scmp.lt.s32.totalorder %s11758_s21, %s11754_s18 }
 0x483   : > { %p11756_p2 = pnand %p11755_p1, %p11891_p5 }
 0x484   : > { %p11761_p6 = por %p11760_p7, %p11759_p4 }
 0x485   : > { %p11757_p3 = pneg %p11756_p2 }
 0x487   : > { %p11762_p8 = pnand %p11761_p6, %p11757_p3 }
 0x489   : > { %11765 = shalt.err (!%p11762_p8)
}
 0x48a   : > { %s11811_s29 = smov 128   ;;  %s11812_s8 = smov 8  }
 0x48b   : > { %11207 = dma.vmem_to_hbm [thread:$0]  (%p11891_p5), %s15994_s23, 4096, %s15992_s9, %s16001_s28, %s11811_s29, %s11811_s29, %s11812_s8  }
 0x48c PF: > { %p11219_p9 = scmp.ge.s32.totalorder %s11804_s27, 2  ;;  %s9061_s13 = sand.u32 1, %s11792_s24  }
 0x48d   : > { %p16384_p10 = scmp.ne.s32.totalorder %s16062_s12, 0  ;;  %s9062_s14 = scalar_lea.sflag [#allocation5], %s9061_s13 }
 0x48f   : > { %p11214_p11 = pnand %p11219_p9, %p16384_p10 }
 0x491   : > { %p11215_p12 = pneg %p11214_p11 }
 0x493   : > { %11787 = dma.done.wait (%p11215_p12), %s9062_s14, 4096  }
 0x494   : > { %11789 = vsyncadd (%p11215_p12), %s9062_s14, 4294963200  ;;  %p18_p13 = scmp.ge.s32.totalorder %s11878_s30, 4   ;;  %s16385_s24 = smov %s11796_s25 }
 0x495   : > { %s16386_s25 = smov %s11800_s26  ;;  %s16387_s26 = smov %s11889_s10 }
 0x496   : > { %s16388_s27 = smov %s11878_s30  ;;  %20 = sbr.rel (!%p18_p13) target bundleno = 4 (0x4), region = 109 }
 0x49b   :  { %9067 = vsyncpa [#allocation4], 1 }
 0x49c   :  { %9069 = vsyncpa [#allocation4 + $0x1], 1 }
 0x49d   :  { %9070 = vsyncpa [#allocation5], 1 }
 0x49e   :  { %9072 = vsyncpa [#allocation5 + $0x1], 1 }

</bundles_post_ra>
